<compile_context>
chip_gen: v7x
topology: tpu7x:2x2x1
jax: 0.10.0
libtpu: 0.0.40
codegen_flags: <defaults>
</compile_context>

<pallas_src>
import functools

import jax
import jax.numpy as jnp
from jax.experimental import pallas as pl
from jax.experimental.pallas import tpu as pltpu

_BN_EPS = 1e-5


# ----------------------------------------------------------------------------
# Fused double-conv kernel
# ----------------------------------------------------------------------------
def _double_conv_kernel(x_ref, w1_ref, b1_ref, w2_ref, b2_ref, o_ref, *,
                        tile_h, H, W, Cin, C1, C2p):
    """x_ref: (H+4, W+10, Cin) bf16 zero-padded image (resident per batch item).
       w*_ref: (9, Cin, Cout) bf16 (BN-folded), b*_ref: (1, Cout) f32.
       o_ref: (tile_h, W, C2p) f32 output row-tile."""
    t = pl.program_id(1)
    row0 = t * tile_h
    if tile_h % 8 == 0:
        row0 = pl.multiple_of(row0, 8)

    Ho1 = tile_h + 2           # conv1 rows needed by conv2 (1-row halo each side)
    Wc = W + 8                 # conv1 cols [-4, W+4): keeps reshapes 8-aligned

    # Input window for this tile: original rows [row0-2, row0+tile_h+2).
    xt = x_ref[pl.ds(row0, tile_h + 4), :, :]          # (tile_h+4, W+10, Cin)

    # ---- conv1 (3x3, pad=1) + folded BN + ReLU ------------------------------
    acc1 = jnp.zeros((Ho1 * Wc, C1), jnp.float32)
    for kh in range(3):
        for kw in range(3):
            tap = xt[kh:kh + Ho1, kw:kw + Wc, :].reshape(Ho1 * Wc, Cin)
            acc1 = acc1 + jnp.dot(tap, w1_ref[kh * 3 + kw],
                                  preferred_element_type=jnp.float32)
    y1 = jnp.maximum(acc1 + b1_ref[...], 0.0).reshape(Ho1, Wc, C1)

    # conv2's zero padding: zero every conv1 position outside the valid image.
    r = row0 - 1 + jax.lax.broadcasted_iota(jnp.int32, (Ho1, Wc, 1), 0)
    c = jax.lax.broadcasted_iota(jnp.int32, (Ho1, Wc, 1), 1) - 4
    valid = (r >= 0) & (r < H) & (c >= 0) & (c < W)
    y1 = jnp.where(valid, y1, 0.0).astype(jnp.bfloat16)     # stays in VMEM

    # ---- conv2 (3x3, pad=1) + folded BN + ReLU ------------------------------
    acc2 = jnp.zeros((tile_h * W, C2p), jnp.float32)
    for kh in range(3):
        for kw in range(3):
            tap = y1[kh:kh + tile_h, kw + 3:kw + 3 + W, :].reshape(tile_h * W, C1)
            acc2 = acc2 + jnp.dot(tap, w2_ref[kh * 3 + kw],
                                  preferred_element_type=jnp.float32)
    y2 = jnp.maximum(acc2 + b2_ref[...], 0.0)
    o_ref[...] = y2.reshape(tile_h, W, C2p).astype(o_ref.dtype)


# ----------------------------------------------------------------------------
# Wrapper: layout glue + BN folding + tiling choice
# ----------------------------------------------------------------------------
def _fold_bn(p, cout_pad):
    """Fold inference-mode BatchNorm into the conv weight/bias (HWIO weights)."""
    s = p["gamma"] * jax.lax.rsqrt(p["var"] + _BN_EPS)            # (Cout,)
    w = p["w"] * s                                                # (3,3,Cin,Cout)
    b = p["b"] * s + p["beta"] - p["mean"] * s                    # (Cout,)
    _, _, cin, cout = p["w"].shape
    w = w.reshape(9, cin, cout)
    if cout_pad > cout:
        w = jnp.pad(w, ((0, 0), (0, 0), (0, cout_pad - cout)))
        b = jnp.pad(b, ((0, cout_pad - cout),))
    return w.astype(jnp.bfloat16), b.reshape(1, cout_pad).astype(jnp.float32)


def _pick_tile_h(H, W, Cin, C1, C2p, vmem_budget):
    """Largest divisor of H whose working set fits the VMEM budget."""
    Wc, Wp = W + 8, W + 10
    resident = (H + 4) * Wp * Cin * 2 * 2                 # input block (2 bufs)
    weights = 2 * 2 * 9 * (Cin * C1 + C1 * C2p) + 2 * 4 * (C1 + C2p)

    def fits(th):
        xt = (th + 4) * Wp * Cin * 2
        y1 = (th + 2) * Wc * (C1 * 4 + C1 * 2 + 2 * Cin * 2)   # acc + bf16 + taps
        y2 = th * W * C2p * 4
        outb = th * W * C2p * 4 * 2
        return resident + weights + xt + y1 + y2 + outb <= vmem_budget

    for th in sorted((d for d in range(1, H + 1) if H % d == 0), reverse=True):
        if fits(th):
            return th
    return 1


def double_conv2d_forward(params, x_nchw, *, tile_h=None,
                          vmem_budget=20 * 1024 * 1024):
    """x_nchw: (N, Cin, H, W) f32 -> (N, Cout, H, W) f32."""
    N, Cin, H, W = x_nchw.shape
    C1 = params["c1"]["w"].shape[-1]
    C2 = params["c2"]["w"].shape[-1]
    # Lane-dense stores: pad Cout to a multiple of 128 only when it is already
    # >= 128 (for small Cout the padded store bytes would dominate).
    C2p = (-(-C2 // 128) * 128) if C2 >= 128 else C2

    w1, b1 = _fold_bn(params["c1"], C1)
    w2, b2 = _fold_bn(params["c2"], C2p)

    # NCHW -> NHWC, zero pad: 2 rows each side (double-conv row halo) and
    # 5 cols each side (1-col conv pad + alignment columns, masked in-kernel).
    x = jnp.transpose(x_nchw, (0, 2, 3, 1))
    xp = jnp.pad(x, ((0, 0), (2, 2), (5, 5), (0, 0))).astype(jnp.bfloat16)

    if tile_h is None:
        tile_h = _pick_tile_h(H, W, Cin, C1, C2p, vmem_budget)
    assert H % tile_h == 0, (H, tile_h)
    # Note: for very large H*W*Cin the per-image resident input block should be
    # replaced by a manually windowed make_async_copy; unnecessary at these sizes.

    kernel = functools.partial(_double_conv_kernel, tile_h=tile_h, H=H, W=W,
                               Cin=Cin, C1=C1, C2p=C2p)
    out = pl.pallas_call(
        kernel,
        out_shape=jax.ShapeDtypeStruct((N, H, W, C2p), jnp.float32),
        grid=(N, H // tile_h),
        in_specs=[
            pl.BlockSpec((None, H + 4, W + 10, Cin), lambda n, t: (n, 0, 0, 0)),
            pl.BlockSpec((9, Cin, C1), lambda n, t: (0, 0, 0)),
            pl.BlockSpec((1, C1), lambda n, t: (0, 0)),
            pl.BlockSpec((9, C1, C2p), lambda n, t: (0, 0, 0)),
            pl.BlockSpec((1, C2p), lambda n, t: (0, 0)),
        ],
        out_specs=pl.BlockSpec((None, tile_h, W, C2p), lambda n, t: (n, t, 0, 0)),
        compiler_params=pltpu.CompilerParams(
            dimension_semantics=("parallel", "parallel"),
            vmem_limit_bytes=32 * 1024 * 1024),
    )(xp, w1, b1, w2, b2)

    out = out[..., :C2]
    return jnp.transpose(out, (0, 3, 1, 2))                 # NHWC -> NCHW


# ----------------------------------------------------------------------------
# Synthetic parameters + pure-JAX reference
# ----------------------------------------------------------------------------
def _init_conv_bn(key, cin, cout):
    k = jax.random.split(key, 6)
    return dict(
        w=jax.random.normal(k[0], (3, 3, cin, cout), jnp.float32)
        / jnp.sqrt(9.0 * cin),
        b=0.01 * jax.random.normal(k[1], (cout,), jnp.float32),
        gamma=1.0 + 0.1 * jax.random.normal(k[2], (cout,), jnp.float32),
        beta=0.1 * jax.random.normal(k[3], (cout,), jnp.float32),
        mean=0.1 * jax.random.normal(k[4], (cout,), jnp.float32),
        var=1.0 + 0.1 * jax.random.uniform(k[5], (cout,), jnp.float32),
    )


def init_double_conv_params(key, in_channel, out_channel):
    k1, k2 = jax.random.split(key)
    return dict(c1=_init_conv_bn(k1, in_channel, out_channel),
                c2=_init_conv_bn(k2, out_channel, out_channel))


def double_conv2d_reference(params, x_nchw):
    x = jnp.transpose(x_nchw, (0, 2, 3, 1)).astype(jnp.float32)
    for name in ("c1", "c2"):
        p = params[name]
        x = jax.lax.conv_general_dilated(
            x, p["w"], window_strides=(1, 1), padding="SAME",
            dimension_numbers=("NHWC", "HWIO", "NHWC"))
        x = x + p["b"]
        x = (x - p["mean"]) * (p["gamma"] * jax.lax.rsqrt(p["var"] + _BN_EPS)) \
            + p["beta"]
        x = jnp.maximum(x, 0.0)
    return jnp.transpose(x, (0, 3, 1, 2))


# ----------------------------------------------------------------------------
# Demo
# ----------------------------------------------------------------------------
if __name__ == "__main__":
    key = jax.random.PRNGKey(0)
    k_param, k_input = jax.random.split(key)

    in_channel, out_channel = 4, 32
    params = init_double_conv_params(k_param, in_channel, out_channel)
    x = jax.random.normal(k_input, (2, in_channel, 16, 16), jnp.float32)  # NCHW

    fwd = jax.jit(double_conv2d_forward)
    out = jax.block_until_ready(fwd(params, x))
    assert out.shape == (2, out_channel, 16, 16), out.shape
    assert out.dtype == jnp.float32
    assert bool(jnp.all(jnp.isfinite(out)))

    ref = double_conv2d_reference(params, x)
    err = float(jnp.max(jnp.abs(out - ref)))
    assert err < 1e-1, f"max abs error vs reference: {err}"   # bf16 MXU operands

    # Exercise the multi-tile path (dynamic row window + boundary masking).
    out_tiled = jax.block_until_ready(
        jax.jit(functools.partial(double_conv2d_forward, tile_h=8))(params, x))
    err_tiled = float(jnp.max(jnp.abs(out_tiled - ref)))
    assert err_tiled < 1e-1, f"max abs error (tiled) vs reference: {err_tiled}"

    print("KERNEL_OK")
</pallas_src>

<mosaic_0001>
module attributes {stable_mosaic.version = 11 : i64} {
  func.func @_double_conv_kernel(%arg0: i32, %arg1: i32, %arg2: memref<1x20x26x4xbf16, #tpu.memory_space<vmem>>, %arg3: memref<9x4x32xbf16, #tpu.memory_space<vmem>>, %arg4: memref<1x32xf32, #tpu.memory_space<vmem>>, %arg5: memref<9x32x32xbf16, #tpu.memory_space<vmem>>, %arg6: memref<1x32xf32, #tpu.memory_space<vmem>>, %arg7: memref<1x16x16x32xf32, #tpu.memory_space<vmem>>) attributes {dimension_semantics = [#tpu.dimension_semantics<parallel>, #tpu.dimension_semantics<parallel>], iteration_bounds = array<i64: 2, 1>, scalar_prefetch = 0 : i64, scratch_operands = 0 : i64, tpu.core_type = #tpu.core_type<tc>, window_params = [{transform_indices = @transform_0, window_bounds = array<i64: 1, 20, 26, 4>}, {pipeline_mode = #tpu.pipeline_mode<synchronous>, transform_indices = @transform_1, window_bounds = array<i64: 9, 4, 32>}, {pipeline_mode = #tpu.pipeline_mode<synchronous>, transform_indices = @transform_2, window_bounds = array<i64: 1, 32>}, {pipeline_mode = #tpu.pipeline_mode<synchronous>, transform_indices = @transform_3, window_bounds = array<i64: 9, 32, 32>}, {pipeline_mode = #tpu.pipeline_mode<synchronous>, transform_indices = @transform_4, window_bounds = array<i64: 1, 32>}, {transform_indices = @transform_5, window_bounds = array<i64: 1, 16, 16, 32>}]} {
    %c16_i32 = arith.constant 16 : i32
    %0 = arith.muli %arg1, %c16_i32 : i32
    %1 = tpu.assume_multiple %0, 8 : i32
    %c0 = arith.constant 0 : index
    %2 = arith.index_cast %1 : i32 to index
    %c0_0 = arith.constant 0 : index
    %c0_1 = arith.constant 0 : index
    %3 = vector.load %arg2[%c0, %2, %c0_0, %c0_1] : memref<1x20x26x4xbf16, #tpu.memory_space<vmem>>, vector<1x20x26x4xbf16>
    %4 = vector.shape_cast %3 : vector<1x20x26x4xbf16> to vector<20x26x4xbf16>
    %cst = arith.constant 0.000000e+00 : f32
    %5 = vector.broadcast %cst : f32 to vector<432x32xf32>
    %6 = vector.extract_strided_slice %4 {offsets = [0, 0, 0], sizes = [18, 24, 4], strides = [1, 1, 1]} : vector<20x26x4xbf16> to vector<18x24x4xbf16>
    %7 = vector.shape_cast %6 : vector<18x24x4xbf16> to vector<432x4xbf16>
    %c0_2 = arith.constant 0 : index
    %c0_3 = arith.constant 0 : index
    %c0_4 = arith.constant 0 : index
    %8 = vector.load %arg3[%c0_2, %c0_3, %c0_4] : memref<9x4x32xbf16, #tpu.memory_space<vmem>>, vector<1x4x32xbf16>
    %9 = vector.shape_cast %8 : vector<1x4x32xbf16> to vector<4x32xbf16>
    %cst_5 = arith.constant dense<0.000000e+00> : vector<432x32xf32>
    %10 = tpu.matmul %7, %9, %cst_5 {dimension_numbers = #tpu.dot_dimension_numbers<[1], [0], [0], [1], [0, 0, 1, 1], [], []>} : vector<432x4xbf16>, vector<4x32xbf16>, vector<432x32xf32> -> vector<432x32xf32>
    %11 = arith.addf %5, %10 : vector<432x32xf32>
    %12 = vector.extract_strided_slice %4 {offsets = [0, 1, 0], sizes = [18, 24, 4], strides = [1, 1, 1]} : vector<20x26x4xbf16> to vector<18x24x4xbf16>
    %13 = vector.shape_cast %12 : vector<18x24x4xbf16> to vector<432x4xbf16>
    %c1 = arith.constant 1 : index
    %c0_6 = arith.constant 0 : index
    %c0_7 = arith.constant 0 : index
    %14 = vector.load %arg3[%c1, %c0_6, %c0_7] : memref<9x4x32xbf16, #tpu.memory_space<vmem>>, vector<1x4x32xbf16>
    %15 = vector.shape_cast %14 : vector<1x4x32xbf16> to vector<4x32xbf16>
    %cst_8 = arith.constant dense<0.000000e+00> : vector<432x32xf32>
    %16 = tpu.matmul %13, %15, %cst_8 {dimension_numbers = #tpu.dot_dimension_numbers<[1], [0], [0], [1], [0, 0, 1, 1], [], []>} : vector<432x4xbf16>, vector<4x32xbf16>, vector<432x32xf32> -> vector<432x32xf32>
    %17 = arith.addf %11, %16 : vector<432x32xf32>
    %18 = vector.extract_strided_slice %4 {offsets = [0, 2, 0], sizes = [18, 24, 4], strides = [1, 1, 1]} : vector<20x26x4xbf16> to vector<18x24x4xbf16>
    %19 = vector.shape_cast %18 : vector<18x24x4xbf16> to vector<432x4xbf16>
    %c2 = arith.constant 2 : index
    %c0_9 = arith.constant 0 : index
    %c0_10 = arith.constant 0 : index
    %20 = vector.load %arg3[%c2, %c0_9, %c0_10] : memref<9x4x32xbf16, #tpu.memory_space<vmem>>, vector<1x4x32xbf16>
    %21 = vector.shape_cast %20 : vector<1x4x32xbf16> to vector<4x32xbf16>
    %cst_11 = arith.constant dense<0.000000e+00> : vector<432x32xf32>
    %22 = tpu.matmul %19, %21, %cst_11 {dimension_numbers = #tpu.dot_dimension_numbers<[1], [0], [0], [1], [0, 0, 1, 1], [], []>} : vector<432x4xbf16>, vector<4x32xbf16>, vector<432x32xf32> -> vector<432x32xf32>
    %23 = arith.addf %17, %22 : vector<432x32xf32>
    %24 = vector.extract_strided_slice %4 {offsets = [1, 0, 0], sizes = [18, 24, 4], strides = [1, 1, 1]} : vector<20x26x4xbf16> to vector<18x24x4xbf16>
    %25 = vector.shape_cast %24 : vector<18x24x4xbf16> to vector<432x4xbf16>
    %c3 = arith.constant 3 : index
    %c0_12 = arith.constant 0 : index
    %c0_13 = arith.constant 0 : index
    %26 = vector.load %arg3[%c3, %c0_12, %c0_13] : memref<9x4x32xbf16, #tpu.memory_space<vmem>>, vector<1x4x32xbf16>
    %27 = vector.shape_cast %26 : vector<1x4x32xbf16> to vector<4x32xbf16>
    %cst_14 = arith.constant dense<0.000000e+00> : vector<432x32xf32>
    %28 = tpu.matmul %25, %27, %cst_14 {dimension_numbers = #tpu.dot_dimension_numbers<[1], [0], [0], [1], [0, 0, 1, 1], [], []>} : vector<432x4xbf16>, vector<4x32xbf16>, vector<432x32xf32> -> vector<432x32xf32>
    %29 = arith.addf %23, %28 : vector<432x32xf32>
    %30 = vector.extract_strided_slice %4 {offsets = [1, 1, 0], sizes = [18, 24, 4], strides = [1, 1, 1]} : vector<20x26x4xbf16> to vector<18x24x4xbf16>
    %31 = vector.shape_cast %30 : vector<18x24x4xbf16> to vector<432x4xbf16>
    %c4 = arith.constant 4 : index
    %c0_15 = arith.constant 0 : index
    %c0_16 = arith.constant 0 : index
    %32 = vector.load %arg3[%c4, %c0_15, %c0_16] : memref<9x4x32xbf16, #tpu.memory_space<vmem>>, vector<1x4x32xbf16>
    %33 = vector.shape_cast %32 : vector<1x4x32xbf16> to vector<4x32xbf16>
    %cst_17 = arith.constant dense<0.000000e+00> : vector<432x32xf32>
    %34 = tpu.matmul %31, %33, %cst_17 {dimension_numbers = #tpu.dot_dimension_numbers<[1], [0], [0], [1], [0, 0, 1, 1], [], []>} : vector<432x4xbf16>, vector<4x32xbf16>, vector<432x32xf32> -> vector<432x32xf32>
    %35 = arith.addf %29, %34 : vector<432x32xf32>
    %36 = vector.extract_strided_slice %4 {offsets = [1, 2, 0], sizes = [18, 24, 4], strides = [1, 1, 1]} : vector<20x26x4xbf16> to vector<18x24x4xbf16>
    %37 = vector.shape_cast %36 : vector<18x24x4xbf16> to vector<432x4xbf16>
    %c5 = arith.constant 5 : index
    %c0_18 = arith.constant 0 : index
    %c0_19 = arith.constant 0 : index
    %38 = vector.load %arg3[%c5, %c0_18, %c0_19] : memref<9x4x32xbf16, #tpu.memory_space<vmem>>, vector<1x4x32xbf16>
    %39 = vector.shape_cast %38 : vector<1x4x32xbf16> to vector<4x32xbf16>
    %cst_20 = arith.constant dense<0.000000e+00> : vector<432x32xf32>
    %40 = tpu.matmul %37, %39, %cst_20 {dimension_numbers = #tpu.dot_dimension_numbers<[1], [0], [0], [1], [0, 0, 1, 1], [], []>} : vector<432x4xbf16>, vector<4x32xbf16>, vector<432x32xf32> -> vector<432x32xf32>
    %41 = arith.addf %35, %40 : vector<432x32xf32>
    %42 = vector.extract_strided_slice %4 {offsets = [2, 0, 0], sizes = [18, 24, 4], strides = [1, 1, 1]} : vector<20x26x4xbf16> to vector<18x24x4xbf16>
    %43 = vector.shape_cast %42 : vector<18x24x4xbf16> to vector<432x4xbf16>
    %c6 = arith.constant 6 : index
    %c0_21 = arith.constant 0 : index
    %c0_22 = arith.constant 0 : index
    %44 = vector.load %arg3[%c6, %c0_21, %c0_22] : memref<9x4x32xbf16, #tpu.memory_space<vmem>>, vector<1x4x32xbf16>
    %45 = vector.shape_cast %44 : vector<1x4x32xbf16> to vector<4x32xbf16>
    %cst_23 = arith.constant dense<0.000000e+00> : vector<432x32xf32>
    %46 = tpu.matmul %43, %45, %cst_23 {dimension_numbers = #tpu.dot_dimension_numbers<[1], [0], [0], [1], [0, 0, 1, 1], [], []>} : vector<432x4xbf16>, vector<4x32xbf16>, vector<432x32xf32> -> vector<432x32xf32>
    %47 = arith.addf %41, %46 : vector<432x32xf32>
    %48 = vector.extract_strided_slice %4 {offsets = [2, 1, 0], sizes = [18, 24, 4], strides = [1, 1, 1]} : vector<20x26x4xbf16> to vector<18x24x4xbf16>
    %49 = vector.shape_cast %48 : vector<18x24x4xbf16> to vector<432x4xbf16>
    %c7 = arith.constant 7 : index
    %c0_24 = arith.constant 0 : index
    %c0_25 = arith.constant 0 : index
    %50 = vector.load %arg3[%c7, %c0_24, %c0_25] : memref<9x4x32xbf16, #tpu.memory_space<vmem>>, vector<1x4x32xbf16>
    %51 = vector.shape_cast %50 : vector<1x4x32xbf16> to vector<4x32xbf16>
    %cst_26 = arith.constant dense<0.000000e+00> : vector<432x32xf32>
    %52 = tpu.matmul %49, %51, %cst_26 {dimension_numbers = #tpu.dot_dimension_numbers<[1], [0], [0], [1], [0, 0, 1, 1], [], []>} : vector<432x4xbf16>, vector<4x32xbf16>, vector<432x32xf32> -> vector<432x32xf32>
    %53 = arith.addf %47, %52 : vector<432x32xf32>
    %54 = vector.extract_strided_slice %4 {offsets = [2, 2, 0], sizes = [18, 24, 4], strides = [1, 1, 1]} : vector<20x26x4xbf16> to vector<18x24x4xbf16>
    %55 = vector.shape_cast %54 : vector<18x24x4xbf16> to vector<432x4xbf16>
    %c8 = arith.constant 8 : index
    %c0_27 = arith.constant 0 : index
    %c0_28 = arith.constant 0 : index
    %56 = vector.load %arg3[%c8, %c0_27, %c0_28] : memref<9x4x32xbf16, #tpu.memory_space<vmem>>, vector<1x4x32xbf16>
    %57 = vector.shape_cast %56 : vector<1x4x32xbf16> to vector<4x32xbf16>
    %cst_29 = arith.constant dense<0.000000e+00> : vector<432x32xf32>
    %58 = tpu.matmul %55, %57, %cst_29 {dimension_numbers = #tpu.dot_dimension_numbers<[1], [0], [0], [1], [0, 0, 1, 1], [], []>} : vector<432x4xbf16>, vector<4x32xbf16>, vector<432x32xf32> -> vector<432x32xf32>
    %59 = arith.addf %53, %58 : vector<432x32xf32>
    %c0_30 = arith.constant 0 : index
    %c0_31 = arith.constant 0 : index
    %60 = vector.load %arg4[%c0_30, %c0_31] : memref<1x32xf32, #tpu.memory_space<vmem>>, vector<1x32xf32>
    %61 = vector.broadcast %60 : vector<1x32xf32> to vector<432x32xf32>
    %62 = arith.addf %59, %61 : vector<432x32xf32>
    %cst_32 = arith.constant 0.000000e+00 : f32
    %63 = vector.broadcast %cst_32 : f32 to vector<432x32xf32>
    %64 = arith.maximumf %62, %63 : vector<432x32xf32>
    %65 = vector.shape_cast %64 : vector<432x32xf32> to vector<18x24x32xf32>
    %c1_i32 = arith.constant 1 : i32
    %66 = arith.subi %1, %c1_i32 : i32
    %67 = tpu.iota {dimensions = array<i32: 0>} : vector<18x24x1xi32>
    %68 = vector.broadcast %66 : i32 to vector<18x24x1xi32>
    %69 = arith.addi %68, %67 : vector<18x24x1xi32>
    %70 = tpu.iota {dimensions = array<i32: 1>} : vector<18x24x1xi32>
    %c4_i32 = arith.constant 4 : i32
    %71 = vector.broadcast %c4_i32 : i32 to vector<18x24x1xi32>
    %72 = arith.subi %70, %71 : vector<18x24x1xi32>
    %c0_i32 = arith.constant 0 : i32
    %73 = vector.broadcast %c0_i32 : i32 to vector<18x24x1xi32>
    %74 = arith.cmpi sge, %69, %73 : vector<18x24x1xi32>
    %c16_i32_33 = arith.constant 16 : i32
    %75 = vector.broadcast %c16_i32_33 : i32 to vector<18x24x1xi32>
    %76 = arith.cmpi slt, %69, %75 : vector<18x24x1xi32>
    %77 = arith.andi %74, %76 : vector<18x24x1xi1>
    %c0_i32_34 = arith.constant 0 : i32
    %78 = vector.broadcast %c0_i32_34 : i32 to vector<18x24x1xi32>
    %79 = arith.cmpi sge, %72, %78 : vector<18x24x1xi32>
    %80 = arith.andi %77, %79 : vector<18x24x1xi1>
    %c16_i32_35 = arith.constant 16 : i32
    %81 = vector.broadcast %c16_i32_35 : i32 to vector<18x24x1xi32>
    %82 = arith.cmpi slt, %72, %81 : vector<18x24x1xi32>
    %83 = arith.andi %80, %82 : vector<18x24x1xi1>
    %cst_36 = arith.constant 0.000000e+00 : f32
    %84 = vector.shape_cast %83 : vector<18x24x1xi1> to vector<18x24x1xi1>
    %85 = vector.broadcast %84 : vector<18x24x1xi1> to vector<18x24x32xi1>
    %86 = vector.broadcast %cst_36 : f32 to vector<18x24x32xf32>
    %87 = arith.select %85, %65, %86 : vector<18x24x32xi1>, vector<18x24x32xf32>
    %88 = arith.truncf %87 : vector<18x24x32xf32> to vector<18x24x32xbf16>
    %cst_37 = arith.constant 0.000000e+00 : f32
    %89 = vector.broadcast %cst_37 : f32 to vector<256x32xf32>
    %90 = vector.extract_strided_slice %88 {offsets = [0, 3, 0], sizes = [16, 16, 32], strides = [1, 1, 1]} : vector<18x24x32xbf16> to vector<16x16x32xbf16>
    %91 = vector.shape_cast %90 : vector<16x16x32xbf16> to vector<256x32xbf16>
    %c0_38 = arith.constant 0 : index
    %c0_39 = arith.constant 0 : index
    %c0_40 = arith.constant 0 : index
    %92 = vector.load %arg5[%c0_38, %c0_39, %c0_40] : memref<9x32x32xbf16, #tpu.memory_space<vmem>>, vector<1x32x32xbf16>
    %93 = vector.shape_cast %92 : vector<1x32x32xbf16> to vector<32x32xbf16>
    %cst_41 = arith.constant dense<0.000000e+00> : vector<256x32xf32>
    %94 = tpu.matmul %91, %93, %cst_41 {dimension_numbers = #tpu.dot_dimension_numbers<[1], [0], [0], [1], [0, 0, 1, 1], [], []>} : vector<256x32xbf16>, vector<32x32xbf16>, vector<256x32xf32> -> vector<256x32xf32>
    %95 = arith.addf %89, %94 : vector<256x32xf32>
    %96 = vector.extract_strided_slice %88 {offsets = [0, 4, 0], sizes = [16, 16, 32], strides = [1, 1, 1]} : vector<18x24x32xbf16> to vector<16x16x32xbf16>
    %97 = vector.shape_cast %96 : vector<16x16x32xbf16> to vector<256x32xbf16>
    %c1_42 = arith.constant 1 : index
    %c0_43 = arith.constant 0 : index
    %c0_44 = arith.constant 0 : index
    %98 = vector.load %arg5[%c1_42, %c0_43, %c0_44] : memref<9x32x32xbf16, #tpu.memory_space<vmem>>, vector<1x32x32xbf16>
    %99 = vector.shape_cast %98 : vector<1x32x32xbf16> to vector<32x32xbf16>
    %cst_45 = arith.constant dense<0.000000e+00> : vector<256x32xf32>
    %100 = tpu.matmul %97, %99, %cst_45 {dimension_numbers = #tpu.dot_dimension_numbers<[1], [0], [0], [1], [0, 0, 1, 1], [], []>} : vector<256x32xbf16>, vector<32x32xbf16>, vector<256x32xf32> -> vector<256x32xf32>
    %101 = arith.addf %95, %100 : vector<256x32xf32>
    %102 = vector.extract_strided_slice %88 {offsets = [0, 5, 0], sizes = [16, 16, 32], strides = [1, 1, 1]} : vector<18x24x32xbf16> to vector<16x16x32xbf16>
    %103 = vector.shape_cast %102 : vector<16x16x32xbf16> to vector<256x32xbf16>
    %c2_46 = arith.constant 2 : index
    %c0_47 = arith.constant 0 : index
    %c0_48 = arith.constant 0 : index
    %104 = vector.load %arg5[%c2_46, %c0_47, %c0_48] : memref<9x32x32xbf16, #tpu.memory_space<vmem>>, vector<1x32x32xbf16>
    %105 = vector.shape_cast %104 : vector<1x32x32xbf16> to vector<32x32xbf16>
    %cst_49 = arith.constant dense<0.000000e+00> : vector<256x32xf32>
    %106 = tpu.matmul %103, %105, %cst_49 {dimension_numbers = #tpu.dot_dimension_numbers<[1], [0], [0], [1], [0, 0, 1, 1], [], []>} : vector<256x32xbf16>, vector<32x32xbf16>, vector<256x32xf32> -> vector<256x32xf32>
    %107 = arith.addf %101, %106 : vector<256x32xf32>
    %108 = vector.extract_strided_slice %88 {offsets = [1, 3, 0], sizes = [16, 16, 32], strides = [1, 1, 1]} : vector<18x24x32xbf16> to vector<16x16x32xbf16>
    %109 = vector.shape_cast %108 : vector<16x16x32xbf16> to vector<256x32xbf16>
    %c3_50 = arith.constant 3 : index
    %c0_51 = arith.constant 0 : index
    %c0_52 = arith.constant 0 : index
    %110 = vector.load %arg5[%c3_50, %c0_51, %c0_52] : memref<9x32x32xbf16, #tpu.memory_space<vmem>>, vector<1x32x32xbf16>
    %111 = vector.shape_cast %110 : vector<1x32x32xbf16> to vector<32x32xbf16>
    %cst_53 = arith.constant dense<0.000000e+00> : vector<256x32xf32>
    %112 = tpu.matmul %109, %111, %cst_53 {dimension_numbers = #tpu.dot_dimension_numbers<[1], [0], [0], [1], [0, 0, 1, 1], [], []>} : vector<256x32xbf16>, vector<32x32xbf16>, vector<256x32xf32> -> vector<256x32xf32>
    %113 = arith.addf %107, %112 : vector<256x32xf32>
    %114 = vector.extract_strided_slice %88 {offsets = [1, 4, 0], sizes = [16, 16, 32], strides = [1, 1, 1]} : vector<18x24x32xbf16> to vector<16x16x32xbf16>
    %115 = vector.shape_cast %114 : vector<16x16x32xbf16> to vector<256x32xbf16>
    %c4_54 = arith.constant 4 : index
    %c0_55 = arith.constant 0 : index
    %c0_56 = arith.constant 0 : index
    %116 = vector.load %arg5[%c4_54, %c0_55, %c0_56] : memref<9x32x32xbf16, #tpu.memory_space<vmem>>, vector<1x32x32xbf16>
    %117 = vector.shape_cast %116 : vector<1x32x32xbf16> to vector<32x32xbf16>
    %cst_57 = arith.constant dense<0.000000e+00> : vector<256x32xf32>
    %118 = tpu.matmul %115, %117, %cst_57 {dimension_numbers = #tpu.dot_dimension_numbers<[1], [0], [0], [1], [0, 0, 1, 1], [], []>} : vector<256x32xbf16>, vector<32x32xbf16>, vector<256x32xf32> -> vector<256x32xf32>
    %119 = arith.addf %113, %118 : vector<256x32xf32>
    %120 = vector.extract_strided_slice %88 {offsets = [1, 5, 0], sizes = [16, 16, 32], strides = [1, 1, 1]} : vector<18x24x32xbf16> to vector<16x16x32xbf16>
    %121 = vector.shape_cast %120 : vector<16x16x32xbf16> to vector<256x32xbf16>
    %c5_58 = arith.constant 5 : index
    %c0_59 = arith.constant 0 : index
    %c0_60 = arith.constant 0 : index
    %122 = vector.load %arg5[%c5_58, %c0_59, %c0_60] : memref<9x32x32xbf16, #tpu.memory_space<vmem>>, vector<1x32x32xbf16>
    %123 = vector.shape_cast %122 : vector<1x32x32xbf16> to vector<32x32xbf16>
    %cst_61 = arith.constant dense<0.000000e+00> : vector<256x32xf32>
    %124 = tpu.matmul %121, %123, %cst_61 {dimension_numbers = #tpu.dot_dimension_numbers<[1], [0], [0], [1], [0, 0, 1, 1], [], []>} : vector<256x32xbf16>, vector<32x32xbf16>, vector<256x32xf32> -> vector<256x32xf32>
    %125 = arith.addf %119, %124 : vector<256x32xf32>
    %126 = vector.extract_strided_slice %88 {offsets = [2, 3, 0], sizes = [16, 16, 32], strides = [1, 1, 1]} : vector<18x24x32xbf16> to vector<16x16x32xbf16>
    %127 = vector.shape_cast %126 : vector<16x16x32xbf16> to vector<256x32xbf16>
    %c6_62 = arith.constant 6 : index
    %c0_63 = arith.constant 0 : index
    %c0_64 = arith.constant 0 : index
    %128 = vector.load %arg5[%c6_62, %c0_63, %c0_64] : memref<9x32x32xbf16, #tpu.memory_space<vmem>>, vector<1x32x32xbf16>
    %129 = vector.shape_cast %128 : vector<1x32x32xbf16> to vector<32x32xbf16>
    %cst_65 = arith.constant dense<0.000000e+00> : vector<256x32xf32>
    %130 = tpu.matmul %127, %129, %cst_65 {dimension_numbers = #tpu.dot_dimension_numbers<[1], [0], [0], [1], [0, 0, 1, 1], [], []>} : vector<256x32xbf16>, vector<32x32xbf16>, vector<256x32xf32> -> vector<256x32xf32>
    %131 = arith.addf %125, %130 : vector<256x32xf32>
    %132 = vector.extract_strided_slice %88 {offsets = [2, 4, 0], sizes = [16, 16, 32], strides = [1, 1, 1]} : vector<18x24x32xbf16> to vector<16x16x32xbf16>
    %133 = vector.shape_cast %132 : vector<16x16x32xbf16> to vector<256x32xbf16>
    %c7_66 = arith.constant 7 : index
    %c0_67 = arith.constant 0 : index
    %c0_68 = arith.constant 0 : index
    %134 = vector.load %arg5[%c7_66, %c0_67, %c0_68] : memref<9x32x32xbf16, #tpu.memory_space<vmem>>, vector<1x32x32xbf16>
    %135 = vector.shape_cast %134 : vector<1x32x32xbf16> to vector<32x32xbf16>
    %cst_69 = arith.constant dense<0.000000e+00> : vector<256x32xf32>
    %136 = tpu.matmul %133, %135, %cst_69 {dimension_numbers = #tpu.dot_dimension_numbers<[1], [0], [0], [1], [0, 0, 1, 1], [], []>} : vector<256x32xbf16>, vector<32x32xbf16>, vector<256x32xf32> -> vector<256x32xf32>
    %137 = arith.addf %131, %136 : vector<256x32xf32>
    %138 = vector.extract_strided_slice %88 {offsets = [2, 5, 0], sizes = [16, 16, 32], strides = [1, 1, 1]} : vector<18x24x32xbf16> to vector<16x16x32xbf16>
    %139 = vector.shape_cast %138 : vector<16x16x32xbf16> to vector<256x32xbf16>
    %c8_70 = arith.constant 8 : index
    %c0_71 = arith.constant 0 : index
    %c0_72 = arith.constant 0 : index
    %140 = vector.load %arg5[%c8_70, %c0_71, %c0_72] : memref<9x32x32xbf16, #tpu.memory_space<vmem>>, vector<1x32x32xbf16>
    %141 = vector.shape_cast %140 : vector<1x32x32xbf16> to vector<32x32xbf16>
    %cst_73 = arith.constant dense<0.000000e+00> : vector<256x32xf32>
    %142 = tpu.matmul %139, %141, %cst_73 {dimension_numbers = #tpu.dot_dimension_numbers<[1], [0], [0], [1], [0, 0, 1, 1], [], []>} : vector<256x32xbf16>, vector<32x32xbf16>, vector<256x32xf32> -> vector<256x32xf32>
    %143 = arith.addf %137, %142 : vector<256x32xf32>
    %c0_74 = arith.constant 0 : index
    %c0_75 = arith.constant 0 : index
    %144 = vector.load %arg6[%c0_74, %c0_75] : memref<1x32xf32, #tpu.memory_space<vmem>>, vector<1x32xf32>
    %145 = vector.broadcast %144 : vector<1x32xf32> to vector<256x32xf32>
    %146 = arith.addf %143, %145 : vector<256x32xf32>
    %cst_76 = arith.constant 0.000000e+00 : f32
    %147 = vector.broadcast %cst_76 : f32 to vector<256x32xf32>
    %148 = arith.maximumf %146, %147 : vector<256x32xf32>
    %149 = vector.shape_cast %148 : vector<256x32xf32> to vector<16x16x32xf32>
    %c0_77 = arith.constant 0 : index
    %c0_78 = arith.constant 0 : index
    %c0_79 = arith.constant 0 : index
    %c0_80 = arith.constant 0 : index
    %150 = vector.load %arg7[%c0_77, %c0_78, %c0_79, %c0_80] : memref<1x16x16x32xf32, #tpu.memory_space<vmem>>, vector<1x16x16x32xf32>
    %151 = vector.shape_cast %150 : vector<1x16x16x32xf32> to vector<16x16x32xf32>
    %152 = vector.shape_cast %149 : vector<16x16x32xf32> to vector<1x16x16x32xf32>
    tpu.vector_store %arg7[%c0_77, %c0_78, %c0_79, %c0_80], %152 {strides = array<i32>} : memref<1x16x16x32xf32, #tpu.memory_space<vmem>>, vector<1x16x16x32xf32>,
    return
  }
  func.func @transform_0(%arg0: i32, %arg1: i32) -> (i32, i32, i32, i32) {
    %c0_i32 = arith.constant 0 : i32
    %c0_i32_0 = arith.constant 0 : i32
    %c0_i32_1 = arith.constant 0 : i32
    %c0_i32_2 = arith.constant 0 : i32
    return %arg0, %c0_i32, %c0_i32_0, %c0_i32_1 : i32, i32, i32, i32
  }
  func.func @transform_1(%arg0: i32, %arg1: i32) -> (i32, i32, i32) {
    %c0_i32 = arith.constant 0 : i32
    %c0_i32_0 = arith.constant 0 : i32
    %c0_i32_1 = arith.constant 0 : i32
    %c0_i32_2 = arith.constant 0 : i32
    return %c0_i32, %c0_i32_0, %c0_i32_1 : i32, i32, i32
  }
  func.func @transform_2(%arg0: i32, %arg1: i32) -> (i32, i32) {
    %c0_i32 = arith.constant 0 : i32
    %c0_i32_0 = arith.constant 0 : i32
    %c0_i32_1 = arith.constant 0 : i32
    return %c0_i32, %c0_i32_0 : i32, i32
  }
  func.func @transform_3(%arg0: i32, %arg1: i32) -> (i32, i32, i32) {
    %c0_i32 = arith.constant 0 : i32
    %c0_i32_0 = arith.constant 0 : i32
    %c0_i32_1 = arith.constant 0 : i32
    %c0_i32_2 = arith.constant 0 : i32
    return %c0_i32, %c0_i32_0, %c0_i32_1 : i32, i32, i32
  }
  func.func @transform_4(%arg0: i32, %arg1: i32) -> (i32, i32) {
    %c0_i32 = arith.constant 0 : i32
    %c0_i32_0 = arith.constant 0 : i32
    %c0_i32_1 = arith.constant 0 : i32
    return %c0_i32, %c0_i32_0 : i32, i32
  }
  func.func @transform_5(%arg0: i32, %arg1: i32) -> (i32, i32, i32, i32) {
    %c0_i32 = arith.constant 0 : i32
    %c0_i32_0 = arith.constant 0 : i32
    %c0_i32_1 = arith.constant 0 : i32
    return %arg0, %arg1, %c0_i32, %c0_i32_0 : i32, i32, i32, i32
  }
}

</mosaic_0001>

<bundles_post_ra>
// kernel: double_conv2d_forward.1
= control target key start
LH: loop header
LB: loop body
LE: loop exit
PB: predicated region body
PF: predicated region fallthrough
CT: control target
= control target key end

     0   :  { %10 = vsyncpa [#allocation3], 0  ;;  %s15381_s0 = inlined_call_operand.vmem [shape: bf16[2,20,26,4], index: 0, kind: input, shape index: {}]   ;;  %s15382_s1 = inlined_call_operand.vmem [shape: bf16[9,4,32], index: 1, kind: input, shape index: {}]   ;;  %s15383_s2 = inlined_call_operand.vmem [shape: f32[1,32], index: 2, kind: input, shape index: {}]   ;;  %s15384_s3 = inlined_call_operand.vmem [shape: bf16[9,32,32], index: 3, kind: input, shape index: {}]   ;;  %s15385_s4 = inlined_call_operand.vmem [shape: f32[1,32], index: 4, kind: input, shape index: {}]   ;;  %s15386_s5 = inlined_call_operand.hbm [shape: f32[2,16,16,32], index: 5, kind: output, shape index: {}]  }
   0x1   :  { %12 = vsyncpa [#allocation3 + $0x1], 0  ;;  %s11010_s18 = smov 0   ;;  %s11012_s19 = smov 0  }
   0x2   :  { %s11014_s20 = smov 0   ;;  %s11016_s21 = smov 0  }
   0x3   :  { %s11018_s22 = smov 0   ;;  %s11020_s23 = smov 0  }
   0x4 LB: > { %s8033_s24 = sadd.s32 4294967295, %s10971_s23   ;;  %s8034_s25 = sadd.s32 4294967294, %s10971_s23   ;;  %s10971_s23 = sphi %s11020_s23, %s18_s23   ;;  %s10967_s22 = sphi %s11018_s22, %s16216_s22   ;;  %s10963_s21 = sphi %s11016_s21, %s16215_s21   ;;  %s10959_s20 = sphi %s11014_s20, %s16214_s20   ;;  %s10955_s19 = sphi %s11012_s19, %s16213_s19   ;;  %s10951_s18 = sphi %s11010_s18, %s16212_s18  }
   0x5   : > { %s30_s26 = sadd.s32 1, %s10967_s22  ;;  %s149_s27 = sadd.s32 1, %s10959_s20 }
   0x6   : > { %p32_p0 = scmp.ge.s32.totalorder %s30_s26, 2  ;;  %p159_p1 = scmp.ne.s32.totalorder %s10959_s20, %s10955_s19 }
   0x7   : > { %p160_p2 = scmp.eq.s32.totalorder %s8033_s24, 1  ;;  %p165_p3 = scmp.ne.s32.totalorder %s10955_s19, %s10951_s18 }
   0x8   : > { %s16218_s26 = smov (%p32_p0, %s30_s26), 0  ;;  %p166_p5 = scmp.eq.s32.totalorder %s8034_s25, 1 }
   0x9   : > { %p11050_p4 = por %p160_p2, %p159_p1  ;;  %s144_s29 = ssub.s32 %s10967_s22, %s16218_s26 }
   0xa   : > { %p8037_p6 = scmp.ge.s32.totalorder %s10971_s23, 1  ;;  %p147_p7 = scmp.eq.s32.totalorder %s144_s29, 0 }
   0xb   : > { %p11057_p8 = por %p166_p5, %p165_p3  ;;  %p204_p9 = scmp.lt.s32.totalorder %s10971_s23, 3 }
   0xc   : > { %s11063_s6 = scalar_select %p147_p7, %s10959_s20, %s149_s27  }
   0xd   : > { %p205_p10 = pnand %p8037_p6, %p204_p9 }
   0xf   : > { %208 = sbr.rel (%p205_p10) target bundleno = 2237 (0x8bd), region = 40 }
  0x16   : > { %v8040_v0 = vld [vmem:[%s15382_s1 + $0x2] sm:$0x3]  ;;  %vm1104_vm0 = vcmask 1041408   ;;  %p232_p11 = scmp.lt.s32.totalorder %s10963_s21, 1  ;;  %v15389_v1 = vmov 0.0   ;;  %vm10974_vm1 = vmmov 0  }
  0x17   : > { %9101 = vmatprep.subr.bf16.mxu0 %v15389_v1  ;;  %v1106_v2 = vsel %vm1104_vm0, %v8040_v0, 0  ;;  %9103 = vmatprep.mubr.msk.bf16.mxu0 %vm10974_vm1, %v15389_v1  ;;  %vm324_vm2 = vsmask.f32 3328  ;;  %vm325_vm3 = vsmask.f32 7440  ;;  %vm1022_vm4 = vcmask 31744  }
  0x18   : > { %9102 = vmatpush3.bf16.msra.mxu0 %v1106_v2  ;;  %s233_s9 = scalar_select %p232_p11, %s10963_s21, 1  ;;  %v323_v3 = vld [vmem:[%s15382_s1] sm:$0x3]  ;;  %10415 = vmatprep.subr.bf16.mxu1 %v15389_v1  ;;  %vm11100_vm5 = vmor %vm324_vm2, %vm325_vm3  ;;  %v15553_v30 = vmov 0  ;;  %vm1843_vm6 = vcmask 1042432   ;;  %vm1844_vm7 = vcmask 1046532  }
  0x19   : > { %9211 = vmatprep.subr.bf16.mxu0 %v15389_v1  ;;  %v11080_v4 = vsel %vm1104_vm0, %v323_v3, 0  ;;  %9301 = vmatprep.mubr.msk.bf16.mxu1 %vm10974_vm1, %v15389_v1  ;;  %v15554_v30 = vsel %vm11100_vm5, 4294967295, %v15553_v30  ;;  %vm11945_vm8 = vmor %vm1843_vm6, %vm1844_vm7  ;;  %vm5700_vm9 = vcmask 261120   ;;  %vm5634_vm12 = vcmask 1045504   ;;  %s229_s10 = sand.u32 1, %s10955_s19   ;;  %s8686_s16 = sshll.u32 %s10963_s21, 12 }
  0x1a   : > { %s10673_s12 = smul.u32 320, %s233_s9  ;;  %10416 = vmatpush3.bf16.msra.mxu1 %v11080_v4  ;;  %15555 = vst [vmem:[#allocation5_spill] sm:$0xff] %v15554_v30  ;;  %vm5325_vm13 = vsmask.f32 6400  ;;  %vm6131_vm14 = vsmask.f32 5376 }
  0x1b   : > { %9431 = vmatprep.subr.bf16.mxu1 %v15389_v1  ;;  %s8038_s13 = sshll.u32 %s229_s10, 8  ;;  %s15335_s21 = scalar_lea.sflag [#allocation3], %s229_s10 }
  0x1c   : > { %s11089_s15 = scalar_lea.vmem %s15381_s0, %s10673_s12  ;;  %s15230_s14 = scalar_lea.vmem [#allocation2], %s8038_s13 }
  0x1d   : > { %v243_v5 = vld [vmem:[%s11089_s15] sm:$0xf]  ;;  %v244_v6 = vld [vmem:[%s11089_s15 + $0x4] sm:$0xf]  ;;  %v245_v7 = vld [vmem:[%s11089_s15 + $0x8] sm:$0xf] }
  0x1e   : > { %v328_v8 = vshrl.u32 %v243_v5, 16  ;;  %v331_v9 = vshll.u32 %v243_v5, 16  ;;  %v337_v10 = vshll.u32 %v244_v6, 16  ;;  %v341_v11 = vshrl.u32 %v244_v6, 16  ;;  %v246_v12 = vld [vmem:[%s11089_s15 + $0xc] sm:$0x1] }
  0x1f   : > { %v347_v13 = vshll.u32 %v245_v7, 16  ;;  %v247_v14 = vld [vmem:[%s11089_s15 + $0x10] sm:$0xf]  ;;  %v351_v15 = vshrl.u32 %v245_v7, 16  ;;  %v248_v20 = vld [vmem:[%s11089_s15 + $0x14] sm:$0xf] }
  0x20   : > { %v330_v16 = vrot.slane %v328_v8, 4  ;;  %v333_v17 = vrot.slane %v331_v9, 5  ;;  %v339_v18 = vrot.slane %v337_v10, 5  ;;  %v343_v19 = vrot.slane %v341_v11, 4  ;;  %v249_v29 = vld [vmem:[%s11089_s15 + $0x18] sm:$0xf] }
  0x21   : > { %v349_v21 = vrot.slane %v347_v13, 5  ;;  %v353_v22 = vrot.slane %v351_v15, 4  ;;  %v357_v23 = vshll.u32 %v246_v12, 16  ;;  %v362_v24 = vshrl.u32 %v247_v14, 16  ;;  %v250_v34 = vld [vmem:[%s11089_s15 + $0x1c] sm:$0x1] }
  0x22   : > { %v334_v25 = vor.u32 %v333_v17, %v330_v16  ;;  %v344_v26 = vor.u32 %v343_v19, %v339_v18  ;;  %v365_v27 = vshll.u32 %v247_v14, 16  ;;  %v371_v28 = vshll.u32 %v248_v20, 16  ;;  %v251_v44 = vld [vmem:[%s11089_s15 + $0x20] sm:$0xf]  ;;  %v252_v49 = vld [vmem:[%s11089_s15 + $0x24] sm:$0xf] }
  0x23   : > { %v354_v31 = vor.u32 %v353_v22, %v349_v21  ;;  %v359_v32 = vrot.slane %v357_v23, 5  ;;  %v364_v33 = vrot.slane %v362_v24, 4  ;;  %v375_v35 = vshrl.u32 %v248_v20, 16  ;;  %v253_v56 = vld [vmem:[%s11089_s15 + $0x28] sm:$0xf]  ;;  %s7958_s17 = sshll.u32 %s15230_s14, 4  ;;  %s15325_s17 = int_to_ptr.vmem [resolvable:$true] %s7958_s17 }
  0x24   : > { %v335_v36 = vrot.slane %v334_v25, 4  ;;  %v345_v37 = vrot.slane %v344_v26, 4  ;;  %v367_v38 = vrot.slane %v365_v27, 5  ;;  %v373_v39 = vrot.slane %v371_v28, 5  ;;  %v254_v3 = vld [vmem:[%s11089_s15 + $0x2c] sm:$0x1] }
  0x25   : > { %v355_v40 = vrot.slane %v354_v31, 4  ;;  %v377_v41 = vrot.slane %v375_v35, 4  ;;  %v381_v42 = vshll.u32 %v249_v29, 16  ;;  %v385_v43 = vshrl.u32 %v249_v29, 16  ;;  %v255_v5 = vld [vmem:[%s11089_s15 + $0x30] sm:$0xf] }
  0x26   : > { %v340_v45 = vsel %vm11100_vm5, %v335_v36, %v339_v18  ;;  %v350_v46 = vsel %vm11100_vm5, %v345_v37, %v349_v21  ;;  %v368_v47 = vor.u32 %v367_v38, %v364_v33  ;;  %v391_v48 = vshll.u32 %v250_v34, 16  ;;  %v256_v9 = vld [vmem:[%s11089_s15 + $0x34] sm:$0xf]  ;;  %v257_v22 = vld [vmem:[%s11089_s15 + $0x38] sm:$0xf]  ;;  %s10893_s27 = scalar_lea.vmem %s15325_s17, 4096 }
  0x27   : > { %v8041_v50 = vcombine.low %v340_v45, %v350_v46  ;;  %v378_v51 = vor.u32 %v377_v41, %v373_v39  ;;  %v383_v52 = vrot.slane %v381_v42, 5  ;;  %v360_v53 = vsel %vm11100_vm5, %v355_v40, %v359_v32  ;;  %v258_v34 = vld [vmem:[%s11089_s15 + $0x3c] sm:$0x1]  ;;  %v259_v37 = vld [vmem:[%s11089_s15 + $0x40] sm:$0xf]  ;;  %p10894_p12 = scmp.ne.s32.totalorder %s15325_s17, %s10893_s27  ;;  %s10977_s29 = smov [#allocation2]  }
  0x28   : > { %v369_v54 = vrot.slane %v368_v47, 4  ;;  %v387_v55 = vrot.slane %v385_v43, 4  ;;  %v396_v57 = vshrl.u32 %v251_v44, 16  ;;  %v399_v59 = vshll.u32 %v251_v44, 16  ;;  %v260_v42 = vld [vmem:[%s11089_s15 + $0x44] sm:$0xf] }
  0x29   : > { %9104 = vmatmul.mubr.msk.bf16.vlgmr.msra.gmra.mrb[0].mxu0 %vm1022_vm4, %v8041_v50  ;;  %v379_v58 = vrot.slane %v378_v51, 4  ;;  %v405_v60 = vshll.u32 %v252_v49, 16  ;;  %v409_v61 = vshrl.u32 %v252_v49, 16  ;;  %v393_v0 = vrot.slane %v391_v48, 5  ;;  %v294_v38 = vld [vmem:[%s11089_s15 + $0xcc] sm:$0x1]  ;;  %p10895_p13 = pnand %p10894_p12, %p11050_p4 }
  0x2a   : > { %9212 = vmatpush3.bf16.msra.mxu0 %v11080_v4  ;;  %9107 = vmatprep.mubr.msk.bf16.mxu0 %vm10974_vm1, %v15389_v1  ;;  %v11120_v62 = vsel %vm11100_vm5, %v369_v54, %v373_v39  ;;  %v388_v63 = vor.u32 %v387_v55, %v383_v52  ;;  %v398_v2 = vrot.slane %v396_v57, 4  ;;  %v401_v7 = vrot.slane %v399_v59, 5  ;;  %v262_v59 = vld [vmem:[%s11089_s15 + $0x4c] sm:$0x1]  ;;  %v11416_v12 = vld [vmem:[%s11089_s15 + $0xd0] sm:$0xf] }
  0x2b   : > { %15556 = vst [vmem:[#allocation6_spill] sm:$0xff] %v11120_v62  ;;  %v11126_v6 = vsel %vm11100_vm5, %v379_v58, %v383_v52  ;;  %v407_v8 = vrot.slane %v405_v60, 5  ;;  %v415_v4 = vshll.u32 %v253_v56, 16  ;;  %9321 = vmatprep.subr.bf16.mxu0 %v15389_v1  ;;  %v8042_v10 = vcombine.low %v360_v53, %v11120_v62  ;;  %v261_v53 = vld [vmem:[%s11089_s15 + $0x48] sm:$0xf]  ;;  %p10896_p0 = pneg %p10895_p13  ;;  %s10897_s7 = sshll.u32 %s10977_s29, 4  ;;  %s10898_s7 = int_to_ptr.vmem [resolvable:$false] %s10897_s7 }
  0x2c   : > { %15557 = vst [vmem:[#allocation7_spill] sm:$0xff] %v11126_v6  ;;  %v389_v11 = vrot.slane %v388_v63, 4  ;;  %v411_v13 = vrot.slane %v409_v61, 4  ;;  %v402_v14 = vor.u32 %v401_v7, %v398_v2  ;;  %v419_v15 = vshrl.u32 %v253_v56, 16  ;;  %s10899_s8 = scalar_lea.vmem %s10898_s7, 8192  ;;  %p10900_p1 = scmp.lt.s32.totalorder %s15325_s17, %s10898_s7 }
  0x2d   : > { %v425_v16 = vshll.u32 %v254_v3, 16  ;;  %v430_v17 = vshrl.u32 %v255_v5, 16  ;;  %v433_v20 = vshll.u32 %v255_v5, 16  ;;  %v439_v21 = vshll.u32 %v256_v9, 16  ;;  %p10901_p2 = scmp.lt.s32.totalorder %s10899_s8, %s10893_s27 }
  0x2e   : > { %v11135_v18 = vsel %vm11100_vm5, %v389_v11, %v393_v0  ;;  %v412_v19 = vor.u32 %v411_v13, %v407_v8  ;;  %v403_v24 = vrot.slane %v402_v14, 4  ;;  %v417_v25 = vrot.slane %v415_v4, 5 }
  0x2f   : > { %15558 = vst [vmem:[#allocation8_spill] sm:$0xff] %v11135_v18  ;;  %v8043_v23 = vcombine.low %v11126_v6, %v11135_v18  ;;  %v421_v26 = vrot.slane %v419_v15, 4  ;;  %v427_v28 = vrot.slane %v425_v16, 5  ;;  %v432_v29 = vrot.slane %v430_v17, 4  ;;  %v11391_v16 = vld [vmem:[%s11089_s15 + $0xc4] sm:$0xf]  ;;  %p10902_p3 = por %p10901_p2, %p10900_p1 }
  0x30   : > { %v413_v27 = vrot.slane %v412_v19, 4  ;;  %v435_v31 = vrot.slane %v433_v20, 5  ;;  %v11143_v32 = vsel %vm11100_vm5, %v403_v24, %v407_v8  ;;  %v443_v35 = vshrl.u32 %v256_v9, 16  ;;  %v263_v9 = vld [vmem:[%s11089_s15 + $0x50] sm:$0xf] }
  0x31   : > { %9108 = vmatmul.mubr.msk.bf16.gmra.mrb[4].mxu0 %vm1022_vm4, %v8042_v10  ;;  %15559 = vst [vmem:[#allocation9_spill] sm:$0xff] %v11143_v32  ;;  %v422_v33 = vor.u32 %v421_v26, %v417_v25  ;;  %v449_v36 = vshll.u32 %v257_v22, 16  ;;  %v441_v40 = vrot.slane %v439_v21, 5  ;;  %v453_v41 = vshrl.u32 %v257_v22, 16  ;;  %v264_v10 = vld [vmem:[%s11089_s15 + $0x54] sm:$0xf]  ;;  %p10903_p5 = pnand %p10902_p3, %p10896_p0 }
  0x32   : > { %9111 = vmatprep.mubr.msk.bf16.mxu0 %vm10974_vm1, %v15389_v1  ;;  %v436_v39 = vor.u32 %v435_v31, %v432_v29  ;;  %v11154_v43 = vsel %vm11100_vm5, %v413_v27, %v417_v25  ;;  %v445_v45 = vrot.slane %v443_v35, 4  ;;  %v459_v49 = vshll.u32 %v258_v34, 16  ;;  %v265_v19 = vld [vmem:[%s11089_s15 + $0x58] sm:$0xf]  ;;  %v266_v31 = vld [vmem:[%s11089_s15 + $0x5c] sm:$0x1] }
  0x33   : > { %15560 = vst [vmem:[#allocation10_spill] sm:$0xff] %v11154_v43  ;;  %v423_v44 = vrot.slane %v422_v33, 4  ;;  %v451_v46 = vrot.slane %v449_v36, 5  ;;  %v455_v48 = vrot.slane %v453_v41, 4  ;;  %v464_v50 = vshrl.u32 %v259_v37, 16 }
  0x34   : > { %v437_v47 = vrot.slane %v436_v39, 4  ;;  %v446_v52 = vor.u32 %v445_v45, %v441_v40  ;;  %v467_v54 = vshll.u32 %v259_v37, 16  ;;  %v473_v55 = vshll.u32 %v260_v42, 16 }
  0x35   : > { %v11158_v51 = vsel %vm11100_vm5, %v423_v44, %v427_v28  ;;  %v456_v57 = vor.u32 %v455_v48, %v451_v46  ;;  %v461_v58 = vrot.slane %v459_v49, 5  ;;  %v466_v63 = vrot.slane %v464_v50, 4  ;;  %v268_v49 = vld [vmem:[%s11089_s15 + $0x64] sm:$0xf] }
  0x36   : > { %15561 = vst [vmem:[#allocation11_spill] sm:$0xff] %v11158_v51  ;;  %v11166_v60 = vsel %vm11100_vm5, %v437_v47, %v441_v40  ;;  %v447_v61 = vrot.slane %v446_v52, 4  ;;  %v469_v0 = vrot.slane %v467_v54, 5  ;;  %v475_v3 = vrot.slane %v473_v55, 5  ;;  %v267_v40 = vld [vmem:[%s11089_s15 + $0x60] sm:$0xf] }
  0x37   : > { %15562 = vst [vmem:[#allocation12_spill] sm:$0xff] %v11166_v60  ;;  %v457_v2 = vrot.slane %v456_v57, 4  ;;  %v477_v5 = vshrl.u32 %v260_v42, 16  ;;  %v483_v7 = vshll.u32 %v261_v53, 16  ;;  %v487_v11 = vshrl.u32 %v261_v53, 16 }
  0x38   : > { %v11171_v8 = vsel %vm11100_vm5, %v447_v61, %v451_v46  ;;  %v470_v4 = vor.u32 %v469_v0, %v466_v63  ;;  %v493_v13 = vshll.u32 %v262_v59, 16  ;;  %v11179_v14 = vcombine.low %v11143_v32, %v11154_v43  ;;  %v269_v61 = vld [vmem:[%s11089_s15 + $0x68] sm:$0xf]  ;;  %v270_v63 = vld [vmem:[%s11089_s15 + $0x6c] sm:$0x1] }
  0x39   : > { %9112 = vmatmul.mubr.msk.bf16.gmra.mrb[8].mxu0 %vm1022_vm4, %v8043_v23  ;;  %15563 = vst [vmem:[#allocation13_spill] sm:$0xff] %v11171_v8  ;;  %v11183_v15 = vsel %vm11100_vm5, %v457_v2, %v461_v58  ;;  %v479_v17 = vrot.slane %v477_v5, 4  ;;  %v485_v21 = vrot.slane %v483_v7, 5  ;;  %v489_v22 = vrot.slane %v487_v11, 4  ;;  %v271_v7 = vld [vmem:[%s11089_s15 + $0x70] sm:$0xf] }
  0x3a   : > { %9115 = vmatprep.mubr.msk.bf16.mxu0 %vm10974_vm1, %v15389_v1  ;;  %15564 = vst [vmem:[#allocation14_spill] sm:$0xff] %v11179_v14  ;;  %15565 = vst [vmem:[#allocation15_spill] sm:$0xff] %v11183_v15  ;;  %v471_v20 = vrot.slane %v470_v4, 4  ;;  %v495_v23 = vrot.slane %v493_v13, 5  ;;  %v498_v25 = vshrl.u32 %v263_v9, 16  ;;  %v501_v26 = vshll.u32 %v263_v9, 16 }
  0x3b   : > { %v480_v24 = vor.u32 %v479_v17, %v475_v3  ;;  %v507_v27 = vshll.u32 %v264_v10, 16  ;;  %v490_v29 = vor.u32 %v489_v22, %v485_v21  ;;  %v511_v33 = vshrl.u32 %v264_v10, 16  ;;  %v11384_v58 = vld [vmem:[%s11089_s15 + $0xc0] sm:$0xf]  ;;  %v11933_v43 = vld [vmem:[%s11089_s15 + $0x54] sm:$0xf] }
  0x3c   : > { %v11190_v28 = vsel %vm11100_vm5, %v471_v20, %v475_v3  ;;  %v517_v34 = vshll.u32 %v265_v19, 16  ;;  %v500_v37 = vrot.slane %v498_v25, 4  ;;  %v503_v39 = vrot.slane %v501_v26, 5  ;;  %v273_v25 = vld [vmem:[%s11089_s15 + $0x78] sm:$0xf] }
  0x3d   : > { %15566 = vst [vmem:[#allocation16_spill] sm:$0xff] %v11190_v28  ;;  %v481_v35 = vrot.slane %v480_v24, 4  ;;  %v491_v41 = vrot.slane %v490_v29, 4  ;;  %v509_v42 = vrot.slane %v507_v27, 5  ;;  %v513_v44 = vrot.slane %v511_v33, 4 }
  0x3e   : > { %v504_v45 = vor.u32 %v503_v39, %v500_v37  ;;  %v519_v46 = vrot.slane %v517_v34, 5  ;;  %v521_v47 = vshrl.u32 %v265_v19, 16  ;;  %v527_v48 = vshll.u32 %v266_v31, 16  ;;  %v11936_v32 = vld [vmem:[%s11089_s15 + $0x58] sm:$0xf] }
  0x3f   : > { %v11201_v50 = vsel %vm11100_vm5, %v481_v35, %v485_v21  ;;  %v11205_v52 = vsel %vm11100_vm5, %v491_v41, %v495_v23  ;;  %v514_v53 = vor.u32 %v513_v44, %v509_v42  ;;  %v532_v54 = vshrl.u32 %v267_v40, 16  ;;  %v272_v21 = vld [vmem:[%s11089_s15 + $0x74] sm:$0xf]  ;;  %v274_v44 = vld [vmem:[%s11089_s15 + $0x7c] sm:$0x1] }
  0x40   : > { %15567 = vst [vmem:[#allocation17_spill] sm:$0xff] %v11201_v50  ;;  %15568 = vst [vmem:[#allocation18_spill] sm:$0xff] %v11205_v52  ;;  %v11211_v55 = vcombine.low %v11158_v51, %v11166_v60  ;;  %v505_v57 = vrot.slane %v504_v45, 4  ;;  %v523_v59 = vrot.slane %v521_v47, 4  ;;  %v535_v3 = vshll.u32 %v267_v40, 16 }
  0x41   : > { %9116 = vmatmul.mubr.msk.bf16.gmra.mrb[12].mxu0 %vm1022_vm4, %v11179_v14  ;;  %v515_v0 = vrot.slane %v514_v53, 4  ;;  %v534_v2 = vrot.slane %v532_v54, 4  ;;  %v541_v5 = vshll.u32 %v268_v49, 16  ;;  %v529_v10 = vrot.slane %v527_v48, 5  ;;  %v275_v45 = vld [vmem:[%s11089_s15 + $0x80] sm:$0xf] }
  0x42   : > { %9119 = vmatprep.mubr.msk.bf16.mxu0 %vm10974_vm1, %v15389_v1  ;;  %15569 = vst [vmem:[#allocation19_spill] sm:$0xff] %v11211_v55  ;;  %v11220_v4 = vsel %vm11100_vm5, %v505_v57, %v509_v42  ;;  %v524_v9 = vor.u32 %v523_v59, %v519_v46  ;;  %v545_v11 = vshrl.u32 %v268_v49, 16  ;;  %v537_v17 = vrot.slane %v535_v3, 5  ;;  %v276_v53 = vld [vmem:[%s11089_s15 + $0x84] sm:$0xf] }
  0x43   : > { %15570 = vst [vmem:[#allocation20_spill] sm:$0xff] %v11220_v4  ;;  %v11224_v13 = vsel %vm11100_vm5, %v515_v0, %v519_v46  ;;  %v543_v19 = vrot.slane %v541_v5, 5  ;;  %v551_v20 = vshll.u32 %v269_v61, 16  ;;  %v555_v27 = vshrl.u32 %v269_v61, 16 }
  0x44   : > { %15571 = vst [vmem:[#allocation21_spill] sm:$0xff] %v11224_v13  ;;  %v525_v22 = vrot.slane %v524_v9, 4  ;;  %v547_v24 = vrot.slane %v545_v11, 4  ;;  %v538_v26 = vor.u32 %v537_v17, %v534_v2  ;;  %v561_v29 = vshll.u32 %v270_v63, 16  ;;  %v277_v11 = vld [vmem:[%s11089_s15 + $0x88] sm:$0xf] }
  0x45   : > { %v566_v31 = vshrl.u32 %v271_v7, 16  ;;  %v11232_v33 = vcombine.low %v11171_v8, %v11183_v15  ;;  %v569_v35 = vshll.u32 %v271_v7, 16  ;;  %v575_v37 = vshll.u32 %v272_v21, 16 }
  0x46   : > { %v548_v34 = vor.u32 %v547_v24, %v543_v19  ;;  %v11238_v39 = vsel %vm11100_vm5, %v525_v22, %v529_v10  ;;  %v539_v40 = vrot.slane %v538_v26, 4  ;;  %v553_v41 = vrot.slane %v551_v20, 5  ;;  %v278_v22 = vld [vmem:[%s11089_s15 + $0x8c] sm:$0x1] }
  0x47   : > { %15572 = vst [vmem:[#allocation22_spill] sm:$0xff] %v11232_v33  ;;  %15573 = vst [vmem:[#allocation23_spill] sm:$0xff] %v11238_v39  ;;  %v557_v42 = vrot.slane %v555_v27, 4  ;;  %v563_v47 = vrot.slane %v561_v29, 5  ;;  %v568_v48 = vrot.slane %v566_v31, 4  ;;  %v571_v49 = vrot.slane %v569_v35, 5 }
  0x48   : > { %v549_v46 = vrot.slane %v548_v34, 4  ;;  %v11247_v54 = vsel %vm11100_vm5, %v539_v40, %v543_v19  ;;  %v579_v59 = vshrl.u32 %v272_v21, 16  ;;  %v585_v61 = vshll.u32 %v273_v25, 16 }
  0x49   : > { %9120 = vmatmul.mubr.msk.bf16.gmra.mrb[16].mxu0 %vm1022_vm4, %v11211_v55  ;;  %15574 = vst [vmem:[#allocation24_spill] sm:$0xff] %v11247_v54  ;;  %v558_v57 = vor.u32 %v557_v42, %v553_v41  ;;  %v572_v0 = vor.u32 %v571_v49, %v568_v48  ;;  %v577_v2 = vrot.slane %v575_v37, 5  ;;  %v589_v3 = vshrl.u32 %v273_v25, 16  ;;  %v279_v42 = vld [vmem:[%s11089_s15 + $0x90] sm:$0xf] }
  0x4a   : > { %9123 = vmatprep.mubr.msk.bf16.mxu0 %vm10974_vm1, %v15389_v1  ;;  %v11253_v5 = vsel %vm11100_vm5, %v549_v46, %v553_v41  ;;  %v581_v9 = vrot.slane %v579_v59, 4  ;;  %v587_v10 = vrot.slane %v585_v61, 5  ;;  %v595_v20 = vshll.u32 %v274_v44, 16  ;;  %v280_v44 = vld [vmem:[%s11089_s15 + $0x94] sm:$0xf] }
  0x4b   : > { %15575 = vst [vmem:[#allocation25_spill] sm:$0xff] %v11253_v5  ;;  %v559_v7 = vrot.slane %v558_v57, 4  ;;  %v573_v17 = vrot.slane %v572_v0, 4  ;;  %v591_v19 = vrot.slane %v589_v3, 4  ;;  %v600_v21 = vshrl.u32 %v275_v45, 16 }
  0x4c   : > { %v582_v25 = vor.u32 %v581_v9, %v577_v2  ;;  %v603_v26 = vshll.u32 %v275_v45, 16  ;;  %v609_v27 = vshll.u32 %v276_v53, 16  ;;  %v597_v34 = vrot.slane %v595_v20, 5  ;;  %v281_v49 = vld [vmem:[%s11089_s15 + $0x98] sm:$0xf] }
  0x4d   : > { %v11259_v24 = vsel %vm11100_vm5, %v559_v7, %v563_v47  ;;  %v592_v31 = vor.u32 %v591_v19, %v587_v10  ;;  %v11267_v35 = vsel %vm11100_vm5, %v573_v17, %v577_v2  ;;  %v602_v40 = vrot.slane %v600_v21, 4 }
  0x4e   : > { %15576 = vst [vmem:[#allocation26_spill] sm:$0xff] %v11259_v24  ;;  %15577 = vst [vmem:[#allocation27_spill] sm:$0xff] %v11267_v35  ;;  %v583_v37 = vrot.slane %v582_v25, 4  ;;  %v605_v41 = vrot.slane %v603_v26, 5  ;;  %v611_v46 = vrot.slane %v609_v27, 5  ;;  %v613_v47 = vshrl.u32 %v276_v53, 16 }
  0x4f   : > { %v593_v45 = vrot.slane %v592_v31, 4  ;;  %v619_v48 = vshll.u32 %v277_v11, 16  ;;  %v623_v61 = vshrl.u32 %v277_v11, 16  ;;  %v629_v0 = vshll.u32 %v278_v22, 16  ;;  %v283_v25 = vld [vmem:[%s11089_s15 + $0xa0] sm:$0xf] }
  0x50   : > { %v11276_v57 = vsel %vm11100_vm5, %v583_v37, %v587_v10  ;;  %v606_v59 = vor.u32 %v605_v41, %v602_v40  ;;  %v11280_v2 = vcombine.low %v11190_v28, %v11201_v50  ;;  %v615_v7 = vrot.slane %v613_v47, 4  ;;  %v11347_v40 = vld [vmem:[%s11089_s15 + $0xb4] sm:$0xf]  ;;  %v310_v50 = vld [vmem:[%s11089_s15 + $0x10c] sm:$0x1] }
  0x51   : > { %9124 = vmatmul.mubr.msk.bf16.gmra.mrb[20].mxu0 %vm1022_vm4, %v11232_v33  ;;  %15578 = vst [vmem:[#allocation28_spill] sm:$0xff] %v11276_v57  ;;  %v11284_v3 = vsel %vm11100_vm5, %v593_v45, %v597_v34  ;;  %v621_v17 = vrot.slane %v619_v48, 5  ;;  %v625_v10 = vrot.slane %v623_v61, 4  ;;  %v631_v19 = vrot.slane %v629_v0, 5  ;;  %v282_v48 = vld [vmem:[%s11089_s15 + $0x9c] sm:$0x1] }
  0x52   : > { %9127 = vmatprep.mubr.msk.bf16.mxu0 %vm10974_vm1, %v15389_v1  ;;  %15579 = vst [vmem:[#allocation29_spill] sm:$0xff] %v11280_v2  ;;  %15580 = vst [vmem:[#allocation30_spill] sm:$0xff] %v11284_v3  ;;  %v607_v9 = vrot.slane %v606_v59, 4  ;;  %v616_v20 = vor.u32 %v615_v7, %v611_v46  ;;  %v634_v11 = vshrl.u32 %v279_v42, 16  ;;  %v637_v21 = vshll.u32 %v279_v42, 16 }
  0x53   : > { %v643_v22 = vshll.u32 %v280_v44, 16  ;;  %v626_v27 = vor.u32 %v625_v10, %v621_v17  ;;  %v647_v31 = vshrl.u32 %v280_v44, 16  ;;  %v653_v34 = vshll.u32 %v281_v49, 16  ;;  %v11305_v7 = vld [vmem:[%s11089_s15 + $0xa4] sm:$0xf] }
  0x54   : > { %v11291_v26 = vsel %vm11100_vm5, %v607_v9, %v611_v46  ;;  %v617_v37 = vrot.slane %v616_v20, 4  ;;  %v636_v41 = vrot.slane %v634_v11, 4  ;;  %v639_v45 = vrot.slane %v637_v21, 5  ;;  %v11426_v33 = vld [vmem:[%s11089_s15 + $0xd4] sm:$0xf] }
  0x55   : > { %15581 = vst [vmem:[#allocation31_spill] sm:$0xff] %v11291_v26  ;;  %v627_v42 = vrot.slane %v626_v27, 4  ;;  %v645_v47 = vrot.slane %v643_v22, 5  ;;  %v649_v59 = vrot.slane %v647_v31, 4  ;;  %v11302_v44 = vcombine.low %v11205_v52, %v11220_v4  ;;  %v11337_v22 = vld [vmem:[%s11089_s15 + $0xb0] sm:$0xf] }
  0x56   : > { %v640_v46 = vor.u32 %v639_v45, %v636_v41  ;;  %v655_v61 = vrot.slane %v653_v34, 5  ;;  %v657_v0 = vshrl.u32 %v281_v49, 16  ;;  %v11309_v9 = vsel %vm11100_vm5, %v617_v37, %v621_v17  ;;  %v11318_v34 = vld [vmem:[%s11089_s15 + $0xa8] sm:$0xf]  ;;  %v303_v4 = vld [vmem:[%s11089_s15 + $0xf0] sm:$0xf] }
  0x57   : > { %15582 = vst [vmem:[#allocation32_spill] sm:$0xff] %v11302_v44  ;;  %15583 = vst [vmem:[#allocation33_spill] sm:$0xff] %v11309_v9  ;;  %v11313_v10 = vsel %vm11100_vm5, %v627_v42, %v631_v19  ;;  %v650_v20 = vor.u32 %v649_v59, %v645_v47  ;;  %v668_v11 = vshrl.u32 %v283_v25, 16  ;;  %v663_v31 = vshll.u32 %v282_v48, 16 }
  0x58   : > { %15584 = vst [vmem:[#allocation34_spill] sm:$0xff] %v11313_v10  ;;  %v641_v21 = vrot.slane %v640_v46, 4  ;;  %v659_v27 = vrot.slane %v657_v0, 4  ;;  %v671_v45 = vshll.u32 %v283_v25, 16  ;;  %v677_v17 = vshll.u32 %v11305_v7, 16 }
  0x59   : > { %9128 = vmatmul.mubr.msk.bf16.gmra.mrb[24].mxu0 %vm1022_vm4, %v11280_v2  ;;  %v651_v49 = vrot.slane %v650_v20, 4  ;;  %v670_v41 = vrot.slane %v668_v11, 4  ;;  %v681_v19 = vshrl.u32 %v11305_v7, 16  ;;  %v687_v20 = vshll.u32 %v11318_v34, 16  ;;  %v286_v11 = vld [vmem:[%s11089_s15 + $0xac] sm:$0x1] }
  0x5a   : > { %9131 = vmatprep.mubr.msk.bf16.mxu0 %vm10974_vm1, %v15389_v1  ;;  %v660_v37 = vor.u32 %v659_v27, %v655_v61  ;;  %v11324_v42 = vsel %vm11100_vm5, %v641_v21, %v645_v47  ;;  %v673_v48 = vrot.slane %v671_v45, 5  ;;  %v679_v46 = vrot.slane %v677_v17, 5 }
  0x5b   : > { %15585 = vst [vmem:[#allocation35_spill] sm:$0xff] %v11324_v42  ;;  %v11328_v59 = vsel %vm11100_vm5, %v651_v49, %v655_v61  ;;  %v683_v25 = vrot.slane %v681_v19, 4  ;;  %v665_v47 = vrot.slane %v663_v31, 5  ;;  %v691_v45 = vshrl.u32 %v11318_v34, 16 }
  0x5c   : > { %15586 = vst [vmem:[#allocation36_spill] sm:$0xff] %v11328_v59  ;;  %v661_v27 = vrot.slane %v660_v37, 4  ;;  %v674_v21 = vor.u32 %v673_v48, %v670_v41  ;;  %v697_v17 = vshll.u32 %v286_v11, 16  ;;  %v11344_v19 = vcombine.low %v11224_v13, %v11238_v39 }
  0x5d   : > { %v684_v61 = vor.u32 %v683_v25, %v679_v46  ;;  %v689_v0 = vrot.slane %v687_v20, 5  ;;  %v702_v31 = vshrl.u32 %v11337_v22, 16  ;;  %v693_v48 = vrot.slane %v691_v45, 4 }
  0x5e   : > { %v675_v49 = vrot.slane %v674_v21, 4  ;;  %15587 = vst [vmem:[#allocation37_spill] sm:$0xff] %v11344_v19  ;;  %v11352_v41 = vsel %vm11100_vm5, %v661_v27, %v665_v47  ;;  %v705_v25 = vshll.u32 %v11337_v22, 16  ;;  %v699_v29 = vrot.slane %v697_v17, 5  ;;  %v11363_v27 = vld [vmem:[%s11089_s15 + $0xb8] sm:$0xf] }
  0x5f   : > { %15588 = vst [vmem:[#allocation38_spill] sm:$0xff] %v11352_v41  ;;  %v685_v11 = vrot.slane %v684_v61, 4  ;;  %v704_v20 = vrot.slane %v702_v31, 4  ;;  %v694_v53 = vor.u32 %v693_v48, %v689_v0  ;;  %v711_v23 = vshll.u32 %v11347_v40, 16  ;;  %v11395_v48 = vld [vmem:[%s11089_s15 + $0xc8] sm:$0xf] }
  0x60   : > { %v11356_v37 = vsel %vm11100_vm5, %v675_v49, %v679_v46  ;;  %v707_v63 = vrot.slane %v705_v25, 5  ;;  %v715_v61 = vshrl.u32 %v11347_v40, 16  ;;  %v721_v49 = vshll.u32 %v11363_v27, 16  ;;  %v290_v25 = vld [vmem:[%s11089_s15 + $0xbc] sm:$0x1] }
  0x61   : > { %9132 = vmatmul.mubr.msk.bf16.gmra.mrb[28].mxu0 %vm1022_vm4, %v11302_v44  ;;  %15589 = vst [vmem:[#allocation39_spill] sm:$0xff] %v11356_v37  ;;  %v695_v46 = vrot.slane %v694_v53, 4  ;;  %v725_v45 = vshrl.u32 %v11363_v27, 16  ;;  %v11374_v17 = vsel %vm11100_vm5, %v685_v11, %v689_v0  ;;  %v11388_v36 = vcombine.low %v11247_v54, %v11253_v5 }
  0x62   : > { %9135 = vmatprep.mubr.msk.bf16.mxu0 %vm10974_vm1, %v15389_v1  ;;  %v708_v47 = vor.u32 %v707_v63, %v704_v20  ;;  %15590 = vst [vmem:[#allocation40_spill] sm:$0xff] %v11374_v17  ;;  %v713_v63 = vrot.slane %v711_v23, 5  ;;  %v717_v53 = vrot.slane %v715_v61, 4  ;;  %v723_v20 = vrot.slane %v721_v49, 5 }
  0x63   : > { %v11378_v31 = vsel %vm11100_vm5, %v695_v46, %v699_v29  ;;  %v727_v21 = vrot.slane %v725_v45, 4  ;;  %15592 = vst [vmem:[#allocation42_spill] sm:$0xff] %v11388_v36  ;;  %v731_v23 = vshll.u32 %v290_v25, 16  ;;  %v736_v46 = vshrl.u32 %v11384_v58, 16 }
  0x64   : > { %15591 = vst [vmem:[#allocation41_spill] sm:$0xff] %v11378_v31  ;;  %v709_v0 = vrot.slane %v708_v47, 4  ;;  %v718_v11 = vor.u32 %v717_v53, %v713_v63  ;;  %v739_v49 = vshll.u32 %v11384_v58, 16  ;;  %v745_v45 = vshll.u32 %v11391_v16, 16 }
  0x65   : > { %v728_v61 = vor.u32 %v727_v21, %v723_v20  ;;  %v749_v56 = vshrl.u32 %v11391_v16, 16  ;;  %v738_v21 = vrot.slane %v736_v46, 4  ;;  %v759_v44 = vshrl.u32 %v11395_v48, 16 }
  0x66   : > { %v719_v29 = vrot.slane %v718_v11, 4  ;;  %v11404_v47 = vsel %vm11100_vm5, %v709_v0, %v713_v63  ;;  %v741_v11 = vrot.slane %v739_v49, 5  ;;  %v755_v63 = vshll.u32 %v11395_v48, 16 }
  0x67   : > { %15593 = vst [vmem:[#allocation43_spill] sm:$0xff] %v11404_v47  ;;  %v729_v0 = vrot.slane %v728_v61, 4  ;;  %v765_v25 = vshll.u32 %v294_v38, 16  ;;  %v770_v49 = vshrl.u32 %v11416_v12, 16  ;;  %v761_v55 = vrot.slane %v759_v44, 4 }
  0x68   : > { %v11408_v53 = vsel %vm11100_vm5, %v719_v29, %v723_v20  ;;  %v11421_v20 = vcombine.low %v11259_v24, %v11267_v35  ;;  %v733_v29 = vrot.slane %v731_v23, 5  ;;  %v742_v46 = vor.u32 %v741_v11, %v738_v21  ;;  %v11464_v21 = vld [vmem:[%s11089_s15 + $0xe0] sm:$0xf] }
  0x69   : > { %9136 = vmatmul.mubr.msk.bf16.gmra.mrb[32].mxu0 %vm1022_vm4, %v11344_v19  ;;  %15594 = vst [vmem:[#allocation44_spill] sm:$0xff] %v11408_v53  ;;  %v751_v19 = vrot.slane %v749_v56, 4  ;;  %v773_v56 = vshll.u32 %v11416_v12, 16  ;;  %v772_v14 = vrot.slane %v770_v49, 4  ;;  %v767_v44 = vrot.slane %v765_v25, 5 }
  0x6a   : > { %9139 = vmatprep.mubr.msk.bf16.mxu0 %vm10974_vm1, %v15389_v1  ;;  %15595 = vst [vmem:[#allocation45_spill] sm:$0xff] %v11421_v20  ;;  %v743_v2 = vrot.slane %v742_v46, 4  ;;  %v11431_v61 = vsel %vm11100_vm5, %v729_v0, %v733_v29  ;;  %v11443_v0 = vld [vmem:[%s11089_s15 + $0xd8] sm:$0xf]  ;;  %v15598_v29 = vmov 0.0   ;;  %v11450_v46 = vcombine.low %v11276_v57, %v11284_v3 }
  0x6b   : > { %15596 = vst [vmem:[#allocation46_spill] sm:$0xff] %v11431_v61  ;;  %v775_v23 = vrot.slane %v773_v56, 5  ;;  %v793_v25 = vshrl.u32 %v11443_v0, 16  ;;  %v11469_v57 = vld [vmem:[%s11089_s15 + $0xe4] sm:$0xf]  ;;  %v804_v5 = vshrl.u32 %v11464_v21, 16  ;;  %v11493_v13 = vcombine.low %v11291_v26, %v11309_v9 }
  0x6c   : > { %15599 = vst [vmem:[#allocation48_spill] sm:$0xff] %v11450_v46  ;;  %v305_v9 = vld [vmem:[%s11089_s15 + $0xf8] sm:$0xf] }
  0x6d   : > { %15604 = vst [vmem:[#allocation53_spill] sm:$0xff] %v11493_v13 }
  0x71   : > { %9140 = vmatmul.mubr.msk.bf16.gmra.mrb[36].mxu0 %vm1022_vm4, %v11388_v36  ;;  %v747_v36 = vrot.slane %v745_v45, 5  ;;  %v757_v45 = vrot.slane %v755_v63, 5  ;;  %v779_v63 = vshll.u32 %v11426_v33, 16 }
  0x72   : > { %9143 = vmatprep.mubr.msk.bf16.mxu0 %vm10974_vm1, %v15389_v1 }
  0x73   : > { %v752_v1 = vor.u32 %v751_v19, %v747_v36  ;;  %v11435_v19 = vsel %vm11100_vm5, %v743_v2, %v747_v36  ;;  %v762_v11 = vor.u32 %v761_v55, %v757_v45  ;;  %v776_v36 = vor.u32 %v775_v23, %v772_v14  ;;  %v298_v14 = vld [vmem:[%s11089_s15 + $0xdc] sm:$0x1] }
  0x74   : > { %15597 = vst [vmem:[#allocation47_spill] sm:$0xff] %v11435_v19  ;;  %v783_v2 = vshrl.u32 %v11426_v33, 16  ;;  %v789_v55 = vshll.u32 %v11443_v0, 16 }
  0x75   : > { %v753_v38 = vrot.slane %v752_v1, 4  ;;  %v763_v1 = vrot.slane %v762_v11, 4  ;;  %v781_v11 = vrot.slane %v779_v63, 5  ;;  %v777_v35 = vrot.slane %v776_v36, 4  ;;  %v301_v36 = vld [vmem:[%s11089_s15 + $0xe8] sm:$0xf] }
  0x76   : > { %v785_v23 = vrot.slane %v783_v2, 4  ;;  %v791_v3 = vrot.slane %v789_v55, 5  ;;  %v813_v2 = vshll.u32 %v11469_v57, 16  ;;  %v806_v55 = vrot.slane %v804_v5, 4  ;;  %v302_v5 = vld [vmem:[%s11089_s15 + $0xec] sm:$0x1] }
  0x77   : > { %v11456_v49 = vsel %vm11100_vm5, %v753_v38, %v757_v45  ;;  %v11460_v56 = vsel %vm11100_vm5, %v763_v1, %v767_v44  ;;  %v795_v45 = vrot.slane %v793_v25, 4  ;;  %v799_v38 = vshll.u32 %v298_v14, 16 }
  0x78   : > { %15600 = vst [vmem:[#allocation49_spill] sm:$0xff] %v11456_v49  ;;  %15601 = vst [vmem:[#allocation50_spill] sm:$0xff] %v11460_v56  ;;  %v786_v24 = vor.u32 %v785_v23, %v781_v11  ;;  %v807_v1 = vshll.u32 %v11464_v21, 16  ;;  %v817_v25 = vshrl.u32 %v11469_v57, 16  ;;  %v11482_v14 = vsel %vm11100_vm5, %v777_v35, %v781_v11 }
  0x79   : > { %9144 = vmatmul.mubr.msk.bf16.gmra.mrb[40].mxu0 %vm1022_vm4, %v11421_v20  ;;  %v796_v63 = vor.u32 %v795_v45, %v791_v3  ;;  %15602 = vst [vmem:[#allocation51_spill] sm:$0xff] %v11482_v14  ;;  %v815_v45 = vrot.slane %v813_v2, 5  ;;  %v823_v11 = vshll.u32 %v301_v36, 16 }
  0x7a   : > { %9147 = vmatprep.mubr.msk.bf16.mxu0 %vm10974_vm1, %v15598_v29  ;;  %v787_v44 = vrot.slane %v786_v24, 4  ;;  %v809_v23 = vrot.slane %v807_v1, 5  ;;  %v819_v39 = vrot.slane %v817_v25, 4  ;;  %v833_v1 = vshll.u32 %v302_v5, 16  ;;  %v11507_v25 = vld [vmem:[%s11089_s15 + $0xf4] sm:$0xf] }
  0x7b   : > { %v797_v20 = vrot.slane %v796_v63, 4  ;;  %v838_v63 = vshrl.u32 %v303_v4, 16 }
  0x7c   : > { %v11486_v24 = vsel %vm11100_vm5, %v787_v44, %v791_v3  ;;  %v810_v35 = vor.u32 %v809_v23, %v806_v55  ;;  %v820_v3 = vor.u32 %v819_v39, %v815_v45  ;;  %v827_v44 = vshrl.u32 %v301_v36, 16 }
  0x7d   : > { %15603 = vst [vmem:[#allocation52_spill] sm:$0xff] %v11486_v24  ;;  %v825_v55 = vrot.slane %v823_v11, 5  ;;  %v841_v39 = vshll.u32 %v303_v4, 16  ;;  %v835_v54 = vrot.slane %v833_v1, 5 }
  0x7e   : > { %v811_v52 = vrot.slane %v810_v35, 4  ;;  %v829_v23 = vrot.slane %v827_v44, 4  ;;  %v821_v5 = vrot.slane %v820_v3, 4  ;;  %v11519_v44 = vcombine.low %v301_v36, %v303_v4  ;;  %v306_v36 = vld [vmem:[%s11089_s15 + $0xfc] sm:$0x1] }
  0x7f   : > { %v857_v3 = vshll.u32 %v305_v9, 16 }
  0x80   : > { %v11504_v2 = vsel %vm11100_vm5, %v811_v52, %v815_v45  ;;  %v830_v35 = vor.u32 %v829_v23, %v825_v55  ;;  %v847_v52 = vshll.u32 %v11507_v25, 16  ;;  %v11517_v45 = vcombine.low %v11313_v10, %v11324_v42  ;;  %15608 = vst [vmem:[#allocation57_spill] sm:$0xff] %v11519_v44  ;;  %9302 = vmatmul.mubr.msk.bf16.vlgmr.msra.gmra.mrb[0].mxu1 %vm1022_vm4, %v11519_v44  ;;  %v11558_v10 = vld [vmem:[%s11089_s15 + $0x108] sm:$0xf] }
  0x81   : > { %9148 = vmatmul.mubr.msk.bf16.gmra.mrb[44].mxu0 %vm1022_vm4, %v11450_v46  ;;  %v801_v46 = vrot.slane %v799_v38, 5  ;;  %15606 = vst [vmem:[#allocation55_spill] sm:$0xff] %v11504_v2  ;;  %v11524_v1 = vsel %vm11100_vm5, %v821_v5, %v825_v55  ;;  %9305 = vmatprep.mubr.msk.bf16.mxu1 %vm10974_vm1, %v15598_v29  ;;  %v11540_v55 = vld [vmem:[%s11089_s15 + $0x100] sm:$0xf]  ;;  %v11543_v5 = vld [vmem:[%s11089_s15 + $0x104] sm:$0xf]  ;;  %v11548_v44 = vcombine.low %v11507_v25, %v305_v9 }
  0x82   : > { %9151 = vmatprep.mubr.msk.bf16.mxu0 %vm10974_vm1, %v15598_v29  ;;  %15607 = vst [vmem:[#allocation56_spill] sm:$0xff] %v11517_v45  ;;  %v831_v11 = vrot.slane %v830_v35, 4  ;;  %15609 = vst [vmem:[#allocation58_spill] sm:$0xff] %v11524_v1  ;;  %v849_v4 = vrot.slane %v847_v52, 5  ;;  %v859_v35 = vrot.slane %v857_v3, 5  ;;  %v872_v3 = vshrl.u32 %v11540_v55, 16 }
  0x83   : > { %v11498_v38 = vsel %vm11100_vm5, %v797_v20, %v801_v46  ;;  %v840_v46 = vrot.slane %v838_v63, 4  ;;  %v851_v63 = vshrl.u32 %v11507_v25, 16  ;;  %v867_v20 = vshll.u32 %v306_v36, 16  ;;  %15611 = vst [vmem:[#allocation60_spill] sm:$0xff] %v11548_v44 }
  0x84   : > { %15605 = vst [vmem:[#allocation54_spill] sm:$0xff] %v11498_v38  ;;  %v11528_v23 = vsel %vm11100_vm5, %v831_v11, %v835_v54  ;;  %v11555_v42 = vcombine.low %v11328_v59, %v11352_v41 }
  0x85   : > { %15610 = vst [vmem:[#allocation59_spill] sm:$0xff] %v11528_v23  ;;  %v869_v15 = vrot.slane %v867_v20, 5  ;;  %v11587_v20 = vcombine.low %v11540_v55, %v11543_v5 }
  0x86   : > { %15612 = vst [vmem:[#allocation61_spill] sm:$0xff] %v11555_v42 }
  0x87   : > { %15616 = vst [vmem:[#allocation65_spill] sm:$0xff] %v11587_v20 }
  0x88   : > { %9306 = vmatmul.mubr.msk.bf16.gmra.mrb[4].mxu1 %vm1022_vm4, %v11548_v44 }
  0x89   : > { %9152 = vmatmul.mubr.msk.bf16.gmra.mrb[48].mxu0 %vm1022_vm4, %v11493_v13  ;;  %v843_v13 = vrot.slane %v841_v39, 5  ;;  %v861_v39 = vshrl.u32 %v305_v9, 16  ;;  %9309 = vmatprep.mubr.msk.bf16.mxu1 %vm10974_vm1, %v15598_v29 }
  0x8a   : > { %9155 = vmatprep.mubr.msk.bf16.mxu0 %vm10974_vm1, %v15598_v29 }
  0x8b   : > { %v844_v26 = vor.u32 %v843_v13, %v840_v46  ;;  %v853_v46 = vrot.slane %v851_v63, 4  ;;  %v863_v54 = vrot.slane %v861_v39, 4  ;;  %v875_v39 = vshll.u32 %v11540_v55, 16 }
  0x8d   : > { %v845_v52 = vrot.slane %v844_v26, 4  ;;  %v854_v11 = vor.u32 %v853_v46, %v849_v4  ;;  %v864_v13 = vor.u32 %v863_v54, %v859_v35  ;;  %v885_v26 = vshrl.u32 %v11543_v5, 16 }
  0x8e   : > { %v874_v46 = vrot.slane %v872_v3, 4  ;;  %v877_v54 = vrot.slane %v875_v39, 5  ;;  %v895_v3 = vshrl.u32 %v11558_v10, 16  ;;  %v11590_v39 = vld [vmem:[%s11089_s15 + $0x114] sm:$0xf] }
  0x8f   : > { %v855_v63 = vrot.slane %v854_v11, 4  ;;  %v11563_v9 = vsel %vm11100_vm5, %v845_v52, %v849_v4  ;;  %v887_v59 = vrot.slane %v885_v26, 4  ;;  %v865_v28 = vrot.slane %v864_v13, 4  ;;  %v11578_v52 = vld [vmem:[%s11089_s15 + $0x110] sm:$0xf]  ;;  %15617 = vst [vmem:[#allocation66_spill] sm:$0xff] %v11590_v39 }
  0x90   : > { %15613 = vst [vmem:[#allocation62_spill] sm:$0xff] %v11563_v9  ;;  %v878_v4 = vor.u32 %v877_v54, %v874_v46  ;;  %15615 = vst [vmem:[#allocation64_spill] sm:$0xff] %v11578_v52  ;;  %v901_v13 = vshll.u32 %v310_v50, 16  ;;  %v906_v26 = vshrl.u32 %v11578_v52, 16  ;;  %v909_v46 = vshll.u32 %v11578_v52, 16  ;;  %9310 = vmatmul.mubr.msk.bf16.gmra.mrb[8].mxu1 %vm1022_vm4, %v11587_v20 }
  0x91   : > { %9156 = vmatmul.mubr.msk.bf16.gmra.mrb[52].mxu0 %vm1022_vm4, %v11517_v45  ;;  %v881_v45 = vshll.u32 %v11543_v5, 16  ;;  %v11567_v36 = vsel %vm11100_vm5, %v855_v63, %v859_v35  ;;  %v891_v35 = vshll.u32 %v11558_v10, 16  ;;  %v11596_v54 = vsel %vm11100_vm5, %v865_v28, %v869_v15  ;;  %9313 = vmatprep.mubr.msk.bf16.mxu1 %vm10974_vm1, %v15598_v29  ;;  %v11636_v20 = vld [vmem:[%s11089_s15 + $0x120] sm:$0xf] }
  0x92   : > { %9159 = vmatprep.mubr.msk.bf16.mxu0 %vm10974_vm1, %v15598_v29  ;;  %15614 = vst [vmem:[#allocation63_spill] sm:$0xff] %v11567_v36  ;;  %15618 = vst [vmem:[#allocation67_spill] sm:$0xff] %v11596_v54  ;;  %v897_v50 = vrot.slane %v895_v3, 4  ;;  %v11604_v11 = vcombine.low %v11356_v37, %v11374_v17  ;;  %v903_v60 = vrot.slane %v901_v13, 5  ;;  %v915_v15 = vshll.u32 %v11590_v39, 16 }
  0x93   : > { %v883_v41 = vrot.slane %v881_v45, 5  ;;  %v879_v45 = vrot.slane %v878_v4, 4  ;;  %v893_v4 = vrot.slane %v891_v35, 5  ;;  %v908_v28 = vrot.slane %v906_v26, 4  ;;  %v11627_v26 = vld [vmem:[%s11089_s15 + $0x118] sm:$0xf] }
  0x94   : > { %15620 = vst [vmem:[#allocation69_spill] sm:$0xff] %v11604_v11  ;;  %v917_v13 = vrot.slane %v915_v15, 5  ;;  %15623 = vst [vmem:[#allocation72_spill] sm:$0xff] %v11627_v26  ;;  %v11633_v44 = vcombine.low %v11558_v10, %v11578_v52  ;;  %v925_v15 = vshll.u32 %v11627_v26, 16 }
  0x95   : > { %v888_v63 = vor.u32 %v887_v59, %v883_v41  ;;  %v11600_v59 = vsel %vm11100_vm5, %v879_v45, %v883_v41  ;;  %v898_v8 = vor.u32 %v897_v50, %v893_v4  ;;  %v911_v41 = vrot.slane %v909_v46, 5  ;;  %15625 = vst [vmem:[#allocation74_spill] sm:$0xff] %v11636_v20 }
  0x96   : > { %15619 = vst [vmem:[#allocation68_spill] sm:$0xff] %v11600_v59  ;;  %v919_v45 = vshrl.u32 %v11590_v39, 16  ;;  %15624 = vst [vmem:[#allocation73_spill] sm:$0xff] %v11633_v44 }
  0x97   : > { %v899_v35 = vrot.slane %v898_v8, 4  ;;  %v912_v46 = vor.u32 %v911_v41, %v908_v28  ;;  %v2919_v28 = vshrl.u32 %v11636_v20, 16  ;;  %v2922_v41 = vshll.u32 %v11636_v20, 16 }
  0x98   : > { %v921_v8 = vrot.slane %v919_v45, 4  ;;  %9314 = vmatmul.mubr.msk.bf16.gmra.mrb[12].mxu1 %vm1022_vm4, %v11633_v44 }
  0x99   : > { %9160 = vmatmul.mubr.msk.bf16.gmra.mrb[56].mxu0 %vm1022_vm4, %v11555_v42  ;;  %v889_v42 = vrot.slane %v888_v63, 4  ;;  %v11624_v3 = vsel %vm11100_vm5, %v899_v35, %v903_v60  ;;  %v11643_v60 = vld [vmem:[%s11089_s15 + $0x124] sm:$0xf]  ;;  %v913_v45 = vrot.slane %v912_v46, 4  ;;  %v2921_v50 = vrot.slane %v2919_v28, 4  ;;  %9317 = vmatprep.mubr.msk.bf16.mxu1 %vm10974_vm1, %v15598_v29 }
  0x9a   : > { %9163 = vmatprep.mubr.msk.bf16.mxu0 %vm10974_vm1, %v15598_v29  ;;  %15622 = vst [vmem:[#allocation71_spill] sm:$0xff] %v11624_v3  ;;  %15627 = vst [vmem:[#allocation76_spill] sm:$0xff] %v11643_v60  ;;  %v2928_v35 = vshll.u32 %v11643_v60, 16  ;;  %v11659_v46 = vld [vmem:[%s11089_s15 + $0x128] sm:$0xf] }
  0x9b   : > { %v11620_v63 = vsel %vm11100_vm5, %v889_v42, %v893_v4  ;;  %v922_v42 = vor.u32 %v921_v8, %v917_v13  ;;  %v11640_v4 = vcombine.low %v11378_v31, %v11404_v47  ;;  %v2924_v47 = vrot.slane %v2922_v41, 5  ;;  %15628 = vst [vmem:[#allocation77_spill] sm:$0xff] %v11659_v46 }
  0x9c   : > { %15621 = vst [vmem:[#allocation70_spill] sm:$0xff] %v11620_v63  ;;  %v927_v31 = vrot.slane %v925_v15, 5  ;;  %v2930_v17 = vrot.slane %v2928_v35, 5  ;;  %v11674_v15 = vcombine.low %v11408_v53, %v11431_v61 }
  0x9d   : > { %15626 = vst [vmem:[#allocation75_spill] sm:$0xff] %v11640_v4  ;;  %v923_v8 = vrot.slane %v922_v42, 4  ;;  %v2925_v44 = vor.u32 %v2924_v47, %v2921_v50  ;;  %v11663_v42 = vsel %vm11100_vm5, %v913_v45, %v917_v13  ;;  %v11711_v45 = vcombine.low %v11486_v24, %v11498_v38 }
  0x9e   : > { %15629 = vst [vmem:[#allocation78_spill] sm:$0xff] %v11663_v42  ;;  %15631 = vst [vmem:[#allocation80_spill] sm:$0xff] %v11674_v15 }
  0x9f   : > { %v11667_v28 = vsel %vm11100_vm5, %v923_v8, %v927_v31  ;;  %v2926_v35 = vrot.slane %v2925_v44, 4  ;;  %15637 = vst [vmem:[#allocation86_spill] sm:$0xff] %v11711_v45  ;;  %v11719_v8 = vcombine.low %v11504_v2, %v11524_v1  ;;  %v11744_v44 = vcombine.low %v11600_v59, %v11620_v63  ;;  %v11839_v63 = vld [vmem:[%s11089_s15 + $0x30] sm:$0xf] }
  0xa0   : > { %15630 = vst [vmem:[#allocation79_spill] sm:$0xff] %v11667_v28 }
  0xa1   : > { %9164 = vmatmul.mubr.msk.bf16.gmra.mrb[60].mxu0 %vm1022_vm4, %v11604_v11  ;;  %v2932_v11 = vshrl.u32 %v11643_v60, 16  ;;  %v11682_v13 = vsel %vm11100_vm5, %v2926_v35, %v2930_v17  ;;  %15638 = vst [vmem:[#allocation87_spill] sm:$0xff] %v11719_v8  ;;  %v11735_v35 = vcombine.low %v11567_v36, %v11596_v54  ;;  %15641 = vst [vmem:[#allocation90_spill] sm:$0xff] %v11744_v44  ;;  %v11854_v36 = vld [vmem:[%s11089_s15 + $0x34] sm:$0xf] }
  0xa2   : > { %9167 = vmatprep.mubr.msk.bf16.mxu0 %vm10974_vm1, %v15598_v29  ;;  %15633 = vst [vmem:[#allocation82_spill] sm:$0xff] %v11682_v13  ;;  %v11818_v13 = vld [vmem:[%s11089_s15 + $0x20] sm:$0xf] }
  0xa3   : > { %v2934_v37 = vrot.slane %v2932_v11, 4  ;;  %15640 = vst [vmem:[#allocation89_spill] sm:$0xff] %v11735_v35 }
  0xa5   : > { %v2935_v41 = vor.u32 %v2934_v37, %v2930_v17  ;;  %v11703_v17 = vcombine.low %v11460_v56, %v11482_v14 }
  0xa7   : > { %v2936_v47 = vrot.slane %v2935_v41, 4  ;;  %15636 = vst [vmem:[#allocation85_spill] sm:$0xff] %v11703_v17  ;;  %v11727_v41 = vcombine.low %v11528_v23, %v11563_v9  ;;  %v11857_v9 = vld [vmem:[%s11089_s15 + $0x38] sm:$0xf] }
  0xa8   : > { %v11861_v23 = vcombine.low %v11854_v36, %v11857_v9 }
  0xa9   : > { %9168 = vmatmul.mubr.msk.bf16.gmra.mrb[64].mxu0 %vm1022_vm4, %v11640_v4  ;;  %v2938_v4 = vshll.u32 %v11659_v46, 16  ;;  %15639 = vst [vmem:[#allocation88_spill] sm:$0xff] %v11727_v41 }
  0xaa   : > { %9171 = vmatprep.mubr.msk.bf16.mxu0 %vm10974_vm1, %v15598_v29  ;;  %15652 = vst [vmem:[#allocation101_spill] sm:$0xff] %v11861_v23 }
  0xab   : > { %v11676_v50 = vrot.slane %v2938_v4, 5  ;;  %v11695_v4 = vcombine.low %v11435_v19, %v11456_v49 }
  0xad   : > { %15632 = vst [vmem:[#allocation81_spill] sm:$0xff] %v11676_v50  ;;  %v11687_v37 = vsel %vm11100_vm5, %v2936_v47, %v11676_v50  ;;  %15635 = vst [vmem:[#allocation84_spill] sm:$0xff] %v11695_v4  ;;  %v929_v47 = vshrl.u32 %v11627_v26, 16  ;;  %v11821_v50 = vld [vmem:[%s11089_s15 + $0x24] sm:$0xf] }
  0xae   : > { %15634 = vst [vmem:[#allocation83_spill] sm:$0xff] %v11687_v37  ;;  %v11788_v37 = vld [vmem:[%s11089_s15 + $0x8] sm:$0xf] }
  0xaf   : > { %v931_v11 = vrot.slane %v929_v47, 4 }
  0xb1   : > { %9172 = vmatmul.mubr.msk.bf16.gmra.mrb[68].mxu0 %vm1022_vm4, %v11674_v15  ;;  %v11791_v15 = vld [vmem:[%s11089_s15 + $0x10] sm:$0xf] }
  0xb2   : > { %9175 = vmatprep.mubr.msk.bf16.mxu0 %vm10974_vm1, %v15598_v29  ;;  %v8150_v51 = vrot.slane %v11791_v15, 9 }
  0xb9   : > { %9176 = vmatmul.mubr.msk.bf16.gmra.mrb[72].mxu0 %vm1022_vm4, %v11695_v4 }
  0xba   : > { %9179 = vmatprep.mubr.msk.bf16.mxu0 %vm10974_vm1, %v15598_v29 }
  0xc1   : > { %9180 = vmatmul.mubr.msk.bf16.gmra.mrb[76].mxu0 %vm1022_vm4, %v11703_v17 }
  0xc2   : > { %9183 = vmatprep.mubr.msk.bf16.mxu0 %vm10974_vm1, %v15598_v29 }
  0xc9   : > { %9184 = vmatmul.mubr.msk.bf16.gmra.mrb[80].mxu0 %vm1022_vm4, %v11711_v45  ;;  %v11753_v45 = vcombine.low %v11624_v3, %v11663_v42  ;;  %v11836_v3 = vld [vmem:[%s11089_s15 + $0x28] sm:$0xf] }
  0xca   : > { %9187 = vmatprep.mubr.msk.bf16.mxu0 %vm10974_vm1, %v15598_v29  ;;  %v11843_v59 = vcombine.low %v11836_v3, %v11839_v63 }
  0xcb   : > { %15642 = vst [vmem:[#allocation91_spill] sm:$0xff] %v11753_v45 }
  0xcc   : > { %15649 = vst [vmem:[#allocation98_spill] sm:$0xff] %v11843_v59 }
  0xd1   : > { %9188 = vmatmul.mubr.msk.bf16.gmra.mrb[84].mxu0 %vm1022_vm4, %v11719_v8 }
  0xd2   : > { %9191 = vmatprep.mubr.msk.bf16.mxu0 %vm10974_vm1, %v15598_v29 }
  0xd9   : > { %9192 = vmatmul.mubr.msk.bf16.gmra.mrb[88].mxu0 %vm1022_vm4, %v11727_v41  ;;  %v314_v41 = vld [vmem:[%s11089_s15 + $0x11c] sm:$0x1] }
  0xda   : > { %9195 = vmatprep.mubr.msk.bf16.mxu0 %vm10974_vm1, %v15598_v29  ;;  %v935_v8 = vshll.u32 %v314_v41, 16 }
  0xdc   : > { %v937_v4 = vrot.slane %v935_v8, 5  ;;  %v8167_v8 = vld [vmem:[%s15382_s1 + $0x4] sm:$0x3] }
  0xe1   : > { %9196 = vmatmul.mubr.msk.bf16.gmra.mrb[92].mxu0 %vm1022_vm4, %v11735_v35  ;;  %v932_v35 = vor.u32 %v931_v11, %v927_v31 }
  0xe2   : > { %9199 = vmatprep.mubr.msk.bf16.mxu0 %vm10974_vm1, %v15598_v29 }
  0xe3   : > { %v933_v17 = vrot.slane %v932_v35, 4 }
  0xe5   : > { %v11761_v47 = vsel %vm11100_vm5, %v933_v17, %v937_v4  ;;  %v11775_v4 = vld [vmem:[%s11089_s15] sm:$0xf]  ;;  %v11778_v17 = vld [vmem:[%s11089_s15 + $0x4] sm:$0xf] }
  0xe6   : > { %15643 = vst [vmem:[#allocation92_spill] sm:$0xff] %v11761_v47  ;;  %v11765_v31 = vcombine.low %v11667_v28, %v11761_v47  ;;  %v8095_v35 = vcombine.low %v11775_v4, %v11778_v17  ;;  %v11825_v28 = vcombine.low %v11818_v13, %v11821_v50 }
  0xe8   : > { %15644 = vst [vmem:[#allocation93_spill] sm:$0xff] %v11765_v31  ;;  %15646 = vst [vmem:[#allocation95_spill] sm:$0xff] %v11825_v28 }
  0xe9   : > { %9200 = vmatmul.mubr.msk.bf16.gmra.mrb[96].mxu0 %vm1022_vm4, %v11744_v44  ;;  %v2191_v44 = vsel %vm1104_vm0, %v8167_v8, 0 }
  0xea   : > { %9203 = vmatprep.mubr.msk.bf16.mxu0 %vm10974_vm1, %v15598_v29 }
  0xf1   : > { %9204 = vmatmul.mubr.msk.bf16.gmra.mrb[100].mxu0 %vm1022_vm4, %v11753_v45 }
  0xf2   : > { %9207 = vmatprep.mubr.msk.bf16.mxu0 %vm10974_vm1, %v15598_v29 }
  0xf9   : > { %9208 = vmatmul.mubr.msk.bf16.gmra.mrb[104].mxu0 %vm1022_vm4, %v11765_v31 }
  0xfa   : > { %9213 = vmatprep.mubr.msk.bf16.mxu0 %vm10974_vm1, %v15598_v29 }
  0xfc   : > { %v1142_v11 = vpop.f32.mrb[0].mxu0 }
  0xfd   : > { %v9105_v41 = vpop.f32.mrb[1].mxu0 }
  0xfe   : > { %v1145_v45 = vpop.f32.mrb[2].mxu0 }
  0xff   : > { %v9106_v31 = vpop.f32.mrb[3].mxu0  ;;  %v8096_v45 = vcombine.low %v11788_v37, %v11791_v15 }
 0x101   : > { %9214 = vmatmul.mubr.msk.bf16.vlgmr.msra.gmra.mrb[108].mxu0 %vm1022_vm4, %v8095_v35 }
 0x102   : > { %9322 = vmatpush3.bf16.msra.mxu0 %v2191_v44  ;;  %9217 = vmatprep.mubr.msk.bf16.mxu0 %vm10974_vm1, %v15598_v29 }
 0x103   : > { %9541 = vmatprep.subr.bf16.mxu0 %v15598_v29 }
 0x104   : > { %v1150_v11 = vpop.f32.mrb[4].mxu0 }
 0x105   : > { %v9109_v41 = vpop.f32.mrb[5].mxu0  ;;  %v11803_v11 = vld [vmem:[%s11089_s15 + $0x14] sm:$0xf] }
 0x106   : > { %v11795_v31 = vpop.f32.mrb[6].mxu0  ;;  %v11806_v41 = vld [vmem:[%s11089_s15 + $0x18] sm:$0xf] }
 0x107   : > { %v9110_v8 = vpop.f32.mrb[7].mxu0  ;;  %v8097_v30 = vcombine.low %v11803_v11, %v11806_v41  ;;  %v15481_v18 = vrot.slane %v11806_v41, 5 }
 0x109   : > { %9218 = vmatmul.mubr.msk.bf16.gmra.mrb[112].mxu0 %vm1022_vm4, %v8096_v45 }
 0x10a   : > { %9221 = vmatprep.mubr.msk.bf16.mxu0 %vm10974_vm1, %v15598_v29 }
 0x10c   : > { %v11800_v44 = vpop.f32.mrb[8].mxu0 }
 0x10d   : > { %v9113_v35 = vpop.f32.mrb[9].mxu0 }
 0x10e   : > { %v11810_v47 = vpop.f32.mrb[10].mxu0 }
 0x10f   : > { %v9114_v8 = vpop.f32.mrb[11].mxu0 }
 0x111   : > { %9222 = vmatmul.mubr.msk.bf16.gmra.mrb[116].mxu0 %vm1022_vm4, %v8097_v30 }
 0x112   : > { %9225 = vmatprep.mubr.msk.bf16.mxu0 %vm10974_vm1, %v15598_v29 }
 0x114   : > { %v11815_v45 = vpop.f32.mrb[12].mxu0 }
 0x115   : > { %15645 = vst [vmem:[#allocation94_spill] sm:$0xff] %v11815_v45  ;;  %v9117_v35 = vpop.f32.mrb[13].mxu0 }
 0x116   : > { %v11827_v42 = vpop.f32.mrb[14].mxu0 }
 0x117   : > { %15647 = vst [vmem:[#allocation96_spill] sm:$0xff] %v11827_v42  ;;  %v9118_v8 = vpop.f32.mrb[15].mxu0 }
 0x119   : > { %9226 = vmatmul.mubr.msk.bf16.gmra.mrb[120].mxu0 %vm1022_vm4, %v11825_v28 }
 0x11a   : > { %9229 = vmatprep.mubr.msk.bf16.mxu0 %vm10974_vm1, %v15598_v29 }
 0x11c   : > { %v11833_v30 = vpop.f32.mrb[16].mxu0 }
 0x11d   : > { %15648 = vst [vmem:[#allocation97_spill] sm:$0xff] %v11833_v30  ;;  %v9121_v35 = vpop.f32.mrb[17].mxu0 }
 0x11e   : > { %v11845_v54 = vpop.f32.mrb[18].mxu0 }
 0x11f   : > { %15650 = vst [vmem:[#allocation99_spill] sm:$0xff] %v11845_v54  ;;  %v9122_v8 = vpop.f32.mrb[19].mxu0 }
 0x121   : > { %9230 = vmatmul.mubr.msk.bf16.gmra.mrb[124].mxu0 %vm1022_vm4, %v11843_v59  ;;  %v11869_v59 = vcombine.low %v11590_v39, %v11627_v26 }
 0x122   : > { %9233 = vmatprep.mubr.msk.bf16.mxu0 %vm10974_vm1, %v15598_v29 }
 0x123   : > { %15654 = vst [vmem:[#allocation103_spill] sm:$0xff] %v11869_v59  ;;  %9318 = vmatmul.mubr.msk.bf16.gmra.mrb[16].mxu1 %vm1022_vm4, %v11869_v59  ;;  %v8222_v59 = vld [vmem:[%s15382_s1 + $0x6] sm:$0x3] }
 0x124   : > { %v11851_v35 = vpop.f32.mrb[20].mxu0  ;;  %9433 = vmatprep.mubr.msk.bf16.mxu1 %vm10974_vm1, %v15598_v29  ;;  %v2613_v56 = vsel %vm1104_vm0, %v8222_v59, 0  ;;  %v11911_v59 = vld [vmem:[%s11089_s15 + $0x50] sm:$0xf] }
 0x125   : > { %15651 = vst [vmem:[#allocation100_spill] sm:$0xff] %v11851_v35  ;;  %v9125_v28 = vpop.f32.mrb[21].mxu0  ;;  %9432 = vmatpush3.bf16.msra.mxu1 %v2613_v56  ;;  %v11908_v56 = vld [vmem:[%s11089_s15 + $0x48] sm:$0xf] }
 0x126   : > { %v11863_v8 = vpop.f32.mrb[22].mxu0  ;;  %9651 = vmatprep.subr.bf16.mxu1 %v15598_v29 }
 0x127   : > { %15653 = vst [vmem:[#allocation102_spill] sm:$0xff] %v11863_v8  ;;  %v9126_v1 = vpop.f32.mrb[23].mxu0 }
 0x128   : > { %v11880_v1 = vld [vmem:[%s11089_s15 + $0x40] sm:$0xf] }
 0x129   : > { %9234 = vmatmul.mubr.msk.bf16.gmra.mrb[128].mxu0 %vm1022_vm4, %v11861_v23  ;;  %v11883_v23 = vld [vmem:[%s11089_s15 + $0x44] sm:$0xf] }
 0x12a   : > { %9237 = vmatprep.mubr.msk.bf16.mxu0 %vm10974_vm1, %v15598_v29  ;;  %v11887_v38 = vcombine.low %v11880_v1, %v11883_v23 }
 0x12c   : > { %v11875_v28 = vpop.f32.mrb[24].mxu0  ;;  %15656 = vst [vmem:[#allocation105_spill] sm:$0xff] %v11887_v38 }
 0x12d   : > { %15655 = vst [vmem:[#allocation104_spill] sm:$0xff] %v11875_v28  ;;  %v9129_v2 = vpop.f32.mrb[25].mxu0 }
 0x12e   : > { %v11889_v24 = vpop.f32.mrb[26].mxu0  ;;  %v8223_v2 = vcombine.low %v11791_v15, %v11803_v11  ;;  %v15664_v15 = vmov 0 }
 0x12f   : > { %15657 = vst [vmem:[#allocation106_spill] sm:$0xff] %v11889_v24  ;;  %v9130_v14 = vpop.f32.mrb[27].mxu0  ;;  %v15665_v15 = vsel %vm11945_vm8, 4294967295, %v15664_v15 }
 0x130   : > { %9434 = vmatmul.mubr.msk.bf16.vlgmr.msra.gmra.mrb[20].mxu1 %vm1022_vm4, %v8223_v2  ;;  %v8224_v2 = vcombine.low %v11806_v41, %v11818_v13  ;;  %15666 = vst [vmem:[#allocation113_spill] sm:$0xff] %v15665_v15  ;;  %v15897_v15 = vld [vmem:[#allocation35_spill] sm:$0xff] }
 0x131   : > { %9238 = vmatmul.mubr.msk.bf16.gmra.mrb[132].mxu0 %vm1022_vm4, %v11887_v38  ;;  %9437 = vmatprep.mubr.msk.bf16.mxu1 %vm10974_vm1, %v15598_v29  ;;  %v11915_v38 = vcombine.low %v11908_v56, %v11911_v59 }
 0x132   : > { %9241 = vmatprep.mubr.msk.bf16.mxu0 %vm10974_vm1, %v15598_v29 }
 0x133   : > { %15659 = vst [vmem:[#allocation108_spill] sm:$0xff] %v11915_v38 }
 0x134   : > { %v11903_v49 = vpop.f32.mrb[28].mxu0 }
 0x135   : > { %15658 = vst [vmem:[#allocation107_spill] sm:$0xff] %v11903_v49  ;;  %v9133_v14 = vpop.f32.mrb[29].mxu0 }
 0x136   : > { %v11917_v19 = vpop.f32.mrb[30].mxu0  ;;  %v1858_v14 = vrot.slane %v11803_v11, 5  ;;  %v11940_v11 = vcombine.low %v11933_v43, %v11936_v32 }
 0x137   : > { %15660 = vst [vmem:[#allocation109_spill] sm:$0xff] %v11917_v19  ;;  %v9134_v61 = vpop.f32.mrb[31].mxu0 }
 0x138   : > { %9438 = vmatmul.mubr.msk.bf16.gmra.mrb[24].mxu1 %vm1022_vm4, %v8224_v2  ;;  %v1860_v61 = vrot.slane %v1858_v14, 4  ;;  %15662 = vst [vmem:[#allocation111_spill] sm:$0xff] %v11940_v11 }
 0x139   : > { %9242 = vmatmul.mubr.msk.bf16.gmra.mrb[136].mxu0 %vm1022_vm4, %v11915_v38  ;;  %9441 = vmatprep.mubr.msk.bf16.mxu1 %vm10974_vm1, %v15598_v29 }
 0x13a   : > { %9245 = vmatprep.mubr.msk.bf16.mxu0 %vm10974_vm1, %v15598_v29  ;;  %v11957_v62 = vsel %vm11945_vm8, %v1860_v61, %v15481_v18  ;;  %v11976_v61 = vld [vmem:[%s11089_s15 + $0x64] sm:$0xf] }
 0x13c   : > { %v11927_v53 = vpop.f32.mrb[32].mxu0 }
 0x13d   : > { %15661 = vst [vmem:[#allocation110_spill] sm:$0xff] %v11927_v53  ;;  %v9137_v38 = vpop.f32.mrb[33].mxu0  ;;  %v8225_v53 = vcombine.low %v11821_v50, %v11836_v3 }
 0x13e   : > { %v11942_v2 = vpop.f32.mrb[34].mxu0  ;;  %v11951_v38 = vsel %vm11945_vm8, %v8150_v51, %v1858_v14  ;;  %v11973_v14 = vld [vmem:[%s11089_s15 + $0x60] sm:$0xf] }
 0x13f   : > { %15663 = vst [vmem:[#allocation112_spill] sm:$0xff] %v11942_v2  ;;  %v9138_v6 = vpop.f32.mrb[35].mxu0  ;;  %15668 = vst [vmem:[#allocation115_spill] sm:$0xff] %v11973_v14  ;;  %v11980_v2 = vcombine.low %v11973_v14, %v11976_v61 }
 0x140   : > { %9442 = vmatmul.mubr.msk.bf16.gmra.mrb[28].mxu1 %vm1022_vm4, %v8225_v53  ;;  %v8226_v53 = vcombine.low %v11839_v63, %v11854_v36 }
 0x141   : > { %9246 = vmatmul.mubr.msk.bf16.gmra.mrb[140].mxu0 %vm1022_vm4, %v11940_v11  ;;  %9445 = vmatprep.mubr.msk.bf16.mxu1 %vm10974_vm1, %v15598_v29  ;;  %15669 = vst [vmem:[#allocation116_spill] sm:$0xff] %v11980_v2 }
 0x142   : > { %9249 = vmatprep.mubr.msk.bf16.mxu0 %vm10974_vm1, %v15598_v29 }
 0x144   : > { %v11968_v6 = vpop.f32.mrb[36].mxu0 }
 0x145   : > { %15667 = vst [vmem:[#allocation114_spill] sm:$0xff] %v11968_v6  ;;  %v9141_v51 = vpop.f32.mrb[37].mxu0  ;;  %v11999_v6 = vld [vmem:[%s11089_s15 + $0x70] sm:$0xf] }
 0x146   : > { %v11982_v18 = vpop.f32.mrb[38].mxu0  ;;  %15673 = vst [vmem:[#allocation120_spill] sm:$0xff] %v11999_v6 }
 0x147   : > { %15670 = vst [vmem:[#allocation117_spill] sm:$0xff] %v11982_v18  ;;  %v9142_v11 = vpop.f32.mrb[39].mxu0 }
 0x148   : > { %9446 = vmatmul.mubr.msk.bf16.gmra.mrb[32].mxu1 %vm1022_vm4, %v8226_v53  ;;  %v11996_v11 = vld [vmem:[%s11089_s15 + $0x68] sm:$0xf]  ;;  %v8227_v53 = vcombine.low %v11857_v9, %v11880_v1 }
 0x149   : > { %9250 = vmatmul.mubr.msk.bf16.gmra.mrb[144].mxu0 %vm1022_vm4, %v11980_v2  ;;  %9449 = vmatprep.mubr.msk.bf16.mxu1 %vm10974_vm1, %v15598_v29  ;;  %15672 = vst [vmem:[#allocation119_spill] sm:$0xff] %v11996_v11  ;;  %v12003_v2 = vcombine.low %v11996_v11, %v11999_v6 }
 0x14a   : > { %9253 = vmatprep.mubr.msk.bf16.mxu0 %vm10974_vm1, %v15598_v29 }
 0x14b   : > { %15674 = vst [vmem:[#allocation121_spill] sm:$0xff] %v12003_v2 }
 0x14c   : > { %v11991_v51 = vpop.f32.mrb[40].mxu0 }
 0x14d   : > { %15671 = vst [vmem:[#allocation118_spill] sm:$0xff] %v11991_v51  ;;  %v9145_v18 = vpop.f32.mrb[41].mxu0  ;;  %v12022_v51 = vld [vmem:[%s11089_s15 + $0x78] sm:$0xf] }
 0x14e   : > { %v12005_v19 = vpop.f32.mrb[42].mxu0 }
 0x14f   : > { %15675 = vst [vmem:[#allocation122_spill] sm:$0xff] %v12005_v19  ;;  %v9146_v49 = vpop.f32.mrb[43].mxu0 }
 0x150   : > { %9450 = vmatmul.mubr.msk.bf16.gmra.mrb[36].mxu1 %vm1022_vm4, %v8227_v53  ;;  %v12019_v49 = vld [vmem:[%s11089_s15 + $0x74] sm:$0xf]  ;;  %v8228_v53 = vcombine.low %v11883_v23, %v11908_v56 }
 0x151   : > { %9254 = vmatmul.mubr.msk.bf16.gmra.mrb[148].mxu0 %vm1022_vm4, %v12003_v2  ;;  %9453 = vmatprep.mubr.msk.bf16.mxu1 %vm10974_vm1, %v15598_v29  ;;  %15677 = vst [vmem:[#allocation124_spill] sm:$0xff] %v12019_v49  ;;  %v12026_v2 = vcombine.low %v12019_v49, %v12022_v51 }
 0x152   : > { %9257 = vmatprep.mubr.msk.bf16.mxu0 %vm10974_vm1, %v15598_v29 }
 0x153   : > { %15678 = vst [vmem:[#allocation125_spill] sm:$0xff] %v12026_v2 }
 0x154   : > { %v12014_v18 = vpop.f32.mrb[44].mxu0 }
 0x155   : > { %15676 = vst [vmem:[#allocation123_spill] sm:$0xff] %v12014_v18  ;;  %v9149_v19 = vpop.f32.mrb[45].mxu0 }
 0x156   : > { %v12028_v24 = vpop.f32.mrb[46].mxu0 }
 0x157   : > { %15679 = vst [vmem:[#allocation126_spill] sm:$0xff] %v12028_v24  ;;  %v9150_v28 = vpop.f32.mrb[47].mxu0  ;;  %v12042_v24 = vld [vmem:[%s11089_s15 + $0x80] sm:$0xf] }
 0x158   : > { %9454 = vmatmul.mubr.msk.bf16.gmra.mrb[40].mxu1 %vm1022_vm4, %v8228_v53  ;;  %v12045_v28 = vld [vmem:[%s11089_s15 + $0x84] sm:$0xf]  ;;  %v8229_v53 = vcombine.low %v11911_v59, %v11933_v43 }
 0x159   : > { %9258 = vmatmul.mubr.msk.bf16.gmra.mrb[152].mxu0 %vm1022_vm4, %v12026_v2  ;;  %9457 = vmatprep.mubr.msk.bf16.mxu1 %vm10974_vm1, %v15598_v29  ;;  %v12049_v2 = vcombine.low %v12042_v24, %v12045_v28 }
 0x15a   : > { %9261 = vmatprep.mubr.msk.bf16.mxu0 %vm10974_vm1, %v15598_v29 }
 0x15b   : > { %15681 = vst [vmem:[#allocation128_spill] sm:$0xff] %v12049_v2 }
 0x15c   : > { %v12037_v19 = vpop.f32.mrb[48].mxu0 }
 0x15d   : > { %15680 = vst [vmem:[#allocation127_spill] sm:$0xff] %v12037_v19  ;;  %v9153_v18 = vpop.f32.mrb[49].mxu0 }
 0x15e   : > { %v12051_v60 = vpop.f32.mrb[50].mxu0  ;;  %v12059_v18 = vpop.f32.mrb[0].mxu1 }
 0x15f   : > { %15682 = vst [vmem:[#allocation129_spill] sm:$0xff] %v12051_v60  ;;  %v9154_v46 = vpop.f32.mrb[51].mxu0  ;;  %v9303_v19 = vpop.f32.mrb[1].mxu1  ;;  %v12072_v60 = vld [vmem:[%s11089_s15 + $0x90] sm:$0xf] }
 0x160   : > { %9458 = vmatmul.mubr.msk.bf16.gmra.mrb[44].mxu1 %vm1022_vm4, %v8229_v53  ;;  %v12064_v35 = vpop.f32.mrb[2].mxu1 }
 0x161   : > { %9262 = vmatmul.mubr.msk.bf16.gmra.mrb[156].mxu0 %vm1022_vm4, %v12049_v2  ;;  %9461 = vmatprep.mubr.msk.bf16.mxu1 %vm10974_vm1, %v15598_v29  ;;  %v12069_v2 = vld [vmem:[%s11089_s15 + $0x88] sm:$0xf]  ;;  %v9304_v19 = vpop.f32.mrb[3].mxu1 }
 0x162   : > { %9265 = vmatprep.mubr.msk.bf16.mxu0 %vm10974_vm1, %v15598_v29  ;;  %v12076_v26 = vcombine.low %v12069_v2, %v12072_v60  ;;  %v12086_v20 = vpop.f32.mrb[4].mxu1 }
 0x163   : > { %v9307_v54 = vpop.f32.mrb[5].mxu1 }
 0x164   : > { %v12062_v8 = vpop.f32.mrb[52].mxu0  ;;  %15684 = vst [vmem:[#allocation131_spill] sm:$0xff] %v12076_v26  ;;  %v12091_v19 = vpop.f32.mrb[6].mxu1 }
 0x165   : > { %15683 = vst [vmem:[#allocation130_spill] sm:$0xff] %v12062_v8  ;;  %v9157_v46 = vpop.f32.mrb[53].mxu0  ;;  %v9308_v54 = vpop.f32.mrb[7].mxu1 }
 0x166   : > { %v12078_v53 = vpop.f32.mrb[54].mxu0  ;;  %v8230_v46 = vcombine.low %v11936_v32, %v11973_v14 }
 0x167   : > { %15685 = vst [vmem:[#allocation132_spill] sm:$0xff] %v12078_v53  ;;  %v9158_v8 = vpop.f32.mrb[55].mxu0  ;;  %v12099_v53 = vld [vmem:[%s11089_s15 + $0x98] sm:$0xf] }
 0x168   : > { %9462 = vmatmul.mubr.msk.bf16.gmra.mrb[48].mxu1 %vm1022_vm4, %v8230_v46 }
 0x169   : > { %9266 = vmatmul.mubr.msk.bf16.gmra.mrb[160].mxu0 %vm1022_vm4, %v12076_v26  ;;  %9465 = vmatprep.mubr.msk.bf16.mxu1 %vm10974_vm1, %v15598_v29  ;;  %v12096_v26 = vld [vmem:[%s11089_s15 + $0x94] sm:$0xf] }
 0x16a   : > { %9269 = vmatprep.mubr.msk.bf16.mxu0 %vm10974_vm1, %v15598_v29  ;;  %v12103_v52 = vcombine.low %v12096_v26, %v12099_v53 }
 0x16c   : > { %v12089_v30 = vpop.f32.mrb[56].mxu0  ;;  %15687 = vst [vmem:[#allocation134_spill] sm:$0xff] %v12103_v52 }
 0x16d   : > { %15686 = vst [vmem:[#allocation133_spill] sm:$0xff] %v12089_v30  ;;  %v9161_v8 = vpop.f32.mrb[57].mxu0  ;;  %v8231_v30 = vcombine.low %v11976_v61, %v11996_v11 }
 0x16e   : > { %v12105_v39 = vpop.f32.mrb[58].mxu0  ;;  %v12113_v8 = vpop.f32.mrb[8].mxu1 }
 0x16f   : > { %15688 = vst [vmem:[#allocation135_spill] sm:$0xff] %v12105_v39  ;;  %v9162_v46 = vpop.f32.mrb[59].mxu0  ;;  %v9311_v42 = vpop.f32.mrb[9].mxu1 }
 0x170   : > { %9466 = vmatmul.mubr.msk.bf16.gmra.mrb[52].mxu1 %vm1022_vm4, %v8231_v30  ;;  %v12118_v54 = vpop.f32.mrb[10].mxu1  ;;  %v8232_v30 = vcombine.low %v11999_v6, %v12019_v49 }
 0x171   : > { %9270 = vmatmul.mubr.msk.bf16.gmra.mrb[164].mxu0 %vm1022_vm4, %v12103_v52  ;;  %9469 = vmatprep.mubr.msk.bf16.mxu1 %vm10974_vm1, %v15598_v29  ;;  %v12123_v52 = vld [vmem:[%s11089_s15 + $0xa0] sm:$0xf]  ;;  %v9312_v11 = vpop.f32.mrb[11].mxu1 }
 0x172   : > { %9273 = vmatprep.mubr.msk.bf16.mxu0 %vm10974_vm1, %v15598_v29  ;;  %v12127_v39 = vcombine.low %v12123_v52, %v11305_v7 }
 0x174   : > { %v12116_v14 = vpop.f32.mrb[60].mxu0  ;;  %15690 = vst [vmem:[#allocation137_spill] sm:$0xff] %v12127_v39 }
 0x175   : > { %15689 = vst [vmem:[#allocation136_spill] sm:$0xff] %v12116_v14  ;;  %v9165_v46 = vpop.f32.mrb[61].mxu0 }
 0x176   : > { %v12129_v45 = vpop.f32.mrb[62].mxu0  ;;  %v12137_v46 = vpop.f32.mrb[12].mxu1 }
 0x177   : > { %15691 = vst [vmem:[#allocation138_spill] sm:$0xff] %v12129_v45  ;;  %v9166_v42 = vpop.f32.mrb[63].mxu0  ;;  %v9315_v14 = vpop.f32.mrb[13].mxu1 }
 0x178   : > { %9470 = vmatmul.mubr.msk.bf16.gmra.mrb[56].mxu1 %vm1022_vm4, %v8232_v30  ;;  %v1813_v11 = vpop.f32.mrb[14].mxu1  ;;  %v8233_v14 = vcombine.low %v12022_v51, %v12042_v24 }
 0x179   : > { %9274 = vmatmul.mubr.msk.bf16.gmra.mrb[168].mxu0 %vm1022_vm4, %v12127_v39  ;;  %9473 = vmatprep.mubr.msk.bf16.mxu1 %vm10974_vm1, %v15598_v29  ;;  %v12146_v39 = vcombine.low %v11318_v34, %v11337_v22  ;;  %v9316_v45 = vpop.f32.mrb[15].mxu1  ;;  %v12163_v34 = vcombine.low %v11347_v40, %v11363_v27  ;;  %v8234_v11 = vcombine.low %v12045_v28, %v12069_v2 }
 0x17a   : > { %9277 = vmatprep.mubr.msk.bf16.mxu0 %vm10974_vm1, %v15598_v29  ;;  %v12180_v27 = vcombine.low %v11384_v58, %v11391_v16  ;;  %v12197_v58 = vcombine.low %v11395_v48, %v11416_v12  ;;  %v12214_v48 = vcombine.low %v11426_v33, %v11443_v0 }
 0x17b   : > { %15692 = vst [vmem:[#allocation139_spill] sm:$0xff] %v12146_v39  ;;  %15694 = vst [vmem:[#allocation141_spill] sm:$0xff] %v12163_v34 }
 0x17c   : > { %v12140_v7 = vpop.f32.mrb[64].mxu0  ;;  %15697 = vst [vmem:[#allocation144_spill] sm:$0xff] %v12180_v27  ;;  %15700 = vst [vmem:[#allocation147_spill] sm:$0xff] %v12197_v58 }
 0x17d   : > { %v9169_v42 = vpop.f32.mrb[65].mxu0  ;;  %15703 = vst [vmem:[#allocation150_spill] sm:$0xff] %v12214_v48 }
 0x17e   : > { %v12148_v49 = vpop.f32.mrb[66].mxu0 }
 0x17f   : > { %v9170_v6 = vpop.f32.mrb[67].mxu0 }
 0x180   : > { %9474 = vmatmul.mubr.msk.bf16.gmra.mrb[60].mxu1 %vm1022_vm4, %v8233_v14 }
 0x181   : > { %9278 = vmatmul.mubr.msk.bf16.gmra.mrb[172].mxu0 %vm1022_vm4, %v12146_v39  ;;  %9477 = vmatprep.mubr.msk.bf16.mxu1 %vm10974_vm1, %v15598_v29 }
 0x182   : > { %9281 = vmatprep.mubr.msk.bf16.mxu0 %vm10974_vm1, %v15598_v29 }
 0x184   : > { %v12157_v30 = vpop.f32.mrb[68].mxu0 }
 0x185   : > { %15693 = vst [vmem:[#allocation140_spill] sm:$0xff] %v12157_v30  ;;  %v9173_v22 = vpop.f32.mrb[69].mxu0 }
 0x186   : > { %v12165_v45 = vpop.f32.mrb[70].mxu0 }
 0x187   : > { %15695 = vst [vmem:[#allocation142_spill] sm:$0xff] %v12165_v45  ;;  %v9174_v6 = vpop.f32.mrb[71].mxu0  ;;  %v12279_v45 = vld [vmem:[%s11089_s15 + $0xc0] sm:$0xf] }
 0x188   : > { %9478 = vmatmul.mubr.msk.bf16.gmra.mrb[64].mxu1 %vm1022_vm4, %v8234_v11  ;;  %v8235_v6 = vcombine.low %v12072_v60, %v12096_v26 }
 0x189   : > { %9282 = vmatmul.mubr.msk.bf16.gmra.mrb[176].mxu0 %vm1022_vm4, %v12163_v34  ;;  %9481 = vmatprep.mubr.msk.bf16.mxu1 %vm10974_vm1, %v15598_v29 }
 0x18a   : > { %9285 = vmatprep.mubr.msk.bf16.mxu0 %vm10974_vm1, %v15598_v29 }
 0x18c   : > { %v12174_v42 = vpop.f32.mrb[72].mxu0 }
 0x18d   : > { %15696 = vst [vmem:[#allocation143_spill] sm:$0xff] %v12174_v42  ;;  %v9177_v40 = vpop.f32.mrb[73].mxu0  ;;  %v12276_v42 = vld [vmem:[%s11089_s15 + $0xb8] sm:$0xf] }
 0x18e   : > { %v12182_v14 = vpop.f32.mrb[74].mxu0 }
 0x18f   : > { %15698 = vst [vmem:[#allocation145_spill] sm:$0xff] %v12182_v14  ;;  %v9178_v22 = vpop.f32.mrb[75].mxu0 }
 0x190   : > { %9482 = vmatmul.mubr.msk.bf16.gmra.mrb[68].mxu1 %vm1022_vm4, %v8235_v6  ;;  %v8236_v6 = vcombine.low %v12099_v53, %v12123_v52 }
 0x191   : > { %9286 = vmatmul.mubr.msk.bf16.gmra.mrb[180].mxu0 %vm1022_vm4, %v12180_v27  ;;  %9485 = vmatprep.mubr.msk.bf16.mxu1 %vm10974_vm1, %v15598_v29  ;;  %v12221_v27 = vld [vmem:[%s11089_s15 + $0xa4] sm:$0xf] }
 0x192   : > { %9289 = vmatprep.mubr.msk.bf16.mxu0 %vm10974_vm1, %v15598_v29 }
 0x194   : > { %v12191_v11 = vpop.f32.mrb[76].mxu0 }
 0x195   : > { %15699 = vst [vmem:[#allocation146_spill] sm:$0xff] %v12191_v11  ;;  %v9181_v16 = vpop.f32.mrb[77].mxu0 }
 0x196   : > { %v12199_v40 = vpop.f32.mrb[78].mxu0 }
 0x197   : > { %15701 = vst [vmem:[#allocation148_spill] sm:$0xff] %v12199_v40  ;;  %v9182_v22 = vpop.f32.mrb[79].mxu0 }
 0x198   : > { %9486 = vmatmul.mubr.msk.bf16.gmra.mrb[72].mxu1 %vm1022_vm4, %v8236_v6  ;;  %v12224_v6 = vld [vmem:[%s11089_s15 + $0xa8] sm:$0xf] }
 0x199   : > { %9290 = vmatmul.mubr.msk.bf16.gmra.mrb[184].mxu0 %vm1022_vm4, %v12197_v58  ;;  %9489 = vmatprep.mubr.msk.bf16.mxu1 %vm10974_vm1, %v15598_v29  ;;  %v8237_v34 = vcombine.low %v12221_v27, %v12224_v6 }
 0x19a   : > { %9293 = vmatprep.mubr.msk.bf16.mxu0 %vm10974_vm1, %v15598_v29 }
 0x19c   : > { %v12208_v16 = vpop.f32.mrb[80].mxu0 }
 0x19d   : > { %15702 = vst [vmem:[#allocation149_spill] sm:$0xff] %v12208_v16  ;;  %v9185_v12 = vpop.f32.mrb[81].mxu0 }
 0x19e   : > { %v12216_v22 = vpop.f32.mrb[82].mxu0  ;;  %v1848_v12 = vrot.slane %v11778_v17, 5  ;;  %v8149_v17 = vrot.slane %v11775_v4, 9 }
 0x19f   : > { %15704 = vst [vmem:[#allocation151_spill] sm:$0xff] %v12216_v22  ;;  %v9186_v58 = vpop.f32.mrb[83].mxu0 }
 0x1a0   : > { %9490 = vmatmul.mubr.msk.bf16.gmra.mrb[76].mxu1 %vm1022_vm4, %v8237_v34  ;;  %v12238_v58 = vcombine.low %v11464_v21, %v11469_v57  ;;  %v1850_v22 = vrot.slane %v1848_v12, 4  ;;  %v12247_v34 = vld [vmem:[%s11089_s15 + $0xb0] sm:$0xf]  ;;  %v1849_v21 = vsel %vm11945_vm8, %v8149_v17, %v1848_v12 }
 0x1a1   : > { %9294 = vmatmul.mubr.msk.bf16.gmra.mrb[188].mxu0 %vm1022_vm4, %v12214_v48  ;;  %9493 = vmatprep.mubr.msk.bf16.mxu1 %vm10974_vm1, %v15598_v29  ;;  %v1851_v48 = vrot.slane %v11788_v37, 5 }
 0x1a2   : > { %9297 = vmatprep.mubr.msk.bf16.mxu0 %vm10974_vm1, %v15598_v29  ;;  %15706 = vst [vmem:[#allocation153_spill] sm:$0xff] %v12238_v58 }
 0x1a3   : > { %v1852_v37 = vsel %vm11945_vm8, %v1850_v22, %v1851_v48  ;;  %v10845_v22 = vld [vmem:[%s11089_s15 + $0xc] sm:$0x1] }
 0x1a4   : > { %v12232_v33 = vpop.f32.mrb[84].mxu0  ;;  %v8168_v12 = vcombine.low %v1849_v21, %v1852_v37  ;;  %v1854_v40 = vrot.slane %v10845_v22, 5  ;;  %v15711_v37 = vrot.slane %v11806_v41, 5  ;;  %v12306_v22 = vld [vmem:[%s11089_s15 + $0xc8] sm:$0xf] }
 0x1a5   : > { %15705 = vst [vmem:[#allocation152_spill] sm:$0xff] %v12232_v33  ;;  %v9189_v0 = vpop.f32.mrb[85].mxu0  ;;  %v12250_v33 = vld [vmem:[%s11089_s15 + $0xb4] sm:$0xf] }
 0x1a6   : > { %v12241_v39 = vpop.f32.mrb[86].mxu0  ;;  %v8238_v57 = vcombine.low %v12247_v34, %v12250_v33 }
 0x1a7   : > { %15707 = vst [vmem:[#allocation154_spill] sm:$0xff] %v12241_v39  ;;  %v9190_v16 = vpop.f32.mrb[87].mxu0  ;;  %v1853_v39 = vrot.slane %v1851_v48, 4 }
 0x1a8   : > { %9494 = vmatmul.mubr.msk.bf16.gmra.mrb[80].mxu1 %vm1022_vm4, %v8238_v57  ;;  %v8277_v16 = vld [vmem:[%s15382_s1 + $0x8] sm:$0x3] }
 0x1a9   : > { %9298 = vmatmul.mubr.msk.bf16.gmra.mrb[192].mxu0 %vm1022_vm4, %v12238_v58  ;;  %9497 = vmatprep.mubr.msk.bf16.mxu1 %vm10974_vm1, %v15598_v29  ;;  %v3066_v14 = vsel %vm1104_vm0, %v8277_v16, 0 }
 0x1aa   : > { %9323 = vmatprep.mubr.msk.bf16.mxu0 %vm10974_vm1, %v15598_v29 }
 0x1ac   : > { %v1318_v4 = vpop.f32.mrb[88].mxu0 }
 0x1ad   : > { %v12267_v0 = vadd.f32 %v12059_v18, %v1318_v4  ;;  %v9193_v58 = vpop.f32.mrb[89].mxu0  ;;  %v8239_v18 = vcombine.low %v12276_v42, %v12279_v45  ;;  %v1863_v4 = vrot.slane %v15711_v37, 4 }
 0x1ae   : > { %v1321_v17 = vpop.f32.mrb[90].mxu0 }
 0x1af   : > { %15708 = vst [vmem:[#allocation155_spill] sm:$0xff] %v12267_v0  ;;  %v12271_v57 = vadd.f32 %v12064_v35, %v1321_v17  ;;  %v9194_v11 = vpop.f32.mrb[91].mxu0  ;;  %v1855_v35 = vsel %vm11945_vm8, %v1853_v39, %v1854_v40  ;;  %v10848_v39 = vld [vmem:[%s11089_s15 + $0x1c] sm:$0x1]  ;;  %v12303_v17 = vld [vmem:[%s11089_s15 + $0xc4] sm:$0xf] }
 0x1b0   : > { %9498 = vmatmul.mubr.msk.bf16.gmra.mrb[84].mxu1 %vm1022_vm4, %v8239_v18  ;;  %v8169_v58 = vcombine.low %v1855_v35, %v11951_v38  ;;  %v1864_v40 = vrot.slane %v10848_v39, 5 }
 0x1b1   : > { %15709 = vst [vmem:[#allocation156_spill] sm:$0xff] %v12271_v57  ;;  %9324 = vmatmul.mubr.msk.bf16.vlgmr.msra.gmra.mrb[196].mxu0 %vm1022_vm4, %v8168_v12  ;;  %9501 = vmatprep.mubr.msk.bf16.mxu1 %vm10974_vm1, %v15598_v29 }
 0x1b2   : > { %9542 = vmatpush3.bf16.msra.mxu0 %v3066_v14  ;;  %9327 = vmatprep.mubr.msk.bf16.mxu0 %vm10974_vm1, %v15598_v29  ;;  %v12314_v41 = vsel %vm11945_vm8, %v1863_v4, %v1864_v40  ;;  %v1871_v4 = vrot.slane %v11836_v3, 5  ;;  %v12332_v40 = vld [vmem:[%s11089_s15 + $0xd0] sm:$0xf] }
 0x1b3   : > { %9761 = vmatprep.subr.bf16.mxu0 %v15598_v29 }
 0x1b4   : > { %v1326_v11 = vpop.f32.mrb[92].mxu0 }
 0x1b5   : > { %v12292_v48 = vadd.f32 %v12086_v20, %v1326_v11  ;;  %v9197_v14 = vpop.f32.mrb[93].mxu0  ;;  %v8240_v20 = vcombine.low %v12303_v17, %v12306_v22 }
 0x1b6   : > { %v1329_v21 = vpop.f32.mrb[94].mxu0  ;;  %v8170_v14 = vcombine.low %v11957_v62, %v12314_v41 }
 0x1b7   : > { %15710 = vst [vmem:[#allocation157_spill] sm:$0xff] %v12292_v48  ;;  %v12299_v16 = vadd.f32 %v12091_v19, %v1329_v21  ;;  %v9198_v12 = vpop.f32.mrb[95].mxu0  ;;  %v1868_v19 = vrot.slane %v11821_v50, 5  ;;  %v8151_v21 = vrot.slane %v11818_v13, 9 }
 0x1b8   : > { %9502 = vmatmul.mubr.msk.bf16.gmra.mrb[88].mxu1 %vm1022_vm4, %v8240_v20 }
 0x1b9   : > { %15712 = vst [vmem:[#allocation158_spill] sm:$0xff] %v12299_v16  ;;  %9328 = vmatmul.mubr.msk.bf16.gmra.mrb[200].mxu0 %vm1022_vm4, %v8169_v58  ;;  %9505 = vmatprep.mubr.msk.bf16.mxu1 %vm10974_vm1, %v15598_v29  ;;  %v1870_v37 = vrot.slane %v1868_v19, 4  ;;  %v12343_v3 = vsel %vm11945_vm8, %v8151_v21, %v1868_v19 }
 0x1ba   : > { %9331 = vmatprep.mubr.msk.bf16.mxu0 %vm10974_vm1, %v15598_v29 }
 0x1bb   : > { %v12347_v13 = vsel %vm11945_vm8, %v1870_v37, %v1871_v4  ;;  %v8152_v37 = vrot.slane %v11839_v63, 9 }
 0x1bc   : > { %v1334_v18 = vpop.f32.mrb[96].mxu0  ;;  %v12357_v19 = vcombine.low %v12343_v3, %v12347_v13 }
 0x1bd   : > { %v12321_v35 = vadd.f32 %v12113_v8, %v1334_v18  ;;  %v9201_v11 = vpop.f32.mrb[97].mxu0  ;;  %v12335_v8 = vld [vmem:[%s11089_s15 + $0xd4] sm:$0xf] }
 0x1be   : > { %v1337_v58 = vpop.f32.mrb[98].mxu0  ;;  %v8241_v12 = vcombine.low %v12332_v40, %v12335_v8  ;;  %15716 = vst [vmem:[#allocation162_spill] sm:$0xff] %v12357_v19 }
 0x1bf   : > { %15713 = vst [vmem:[#allocation159_spill] sm:$0xff] %v12321_v35  ;;  %v12328_v50 = vadd.f32 %v12118_v54, %v1337_v58  ;;  %v9202_v39 = vpop.f32.mrb[99].mxu0  ;;  %v10853_v58 = vld [vmem:[%s11089_s15 + $0x2c] sm:$0x1] }
 0x1c0   : > { %9506 = vmatmul.mubr.msk.bf16.gmra.mrb[92].mxu1 %vm1022_vm4, %v8241_v12  ;;  %v1874_v21 = vrot.slane %v10853_v58, 5  ;;  %v1878_v39 = vrot.slane %v11854_v36, 5 }
 0x1c1   : > { %15714 = vst [vmem:[#allocation160_spill] sm:$0xff] %v12328_v50  ;;  %9332 = vmatmul.mubr.msk.bf16.gmra.mrb[204].mxu0 %vm1022_vm4, %v8170_v14  ;;  %9509 = vmatprep.mubr.msk.bf16.mxu1 %vm10974_vm1, %v15598_v29  ;;  %v1873_v14 = vrot.slane %v1871_v4, 4  ;;  %v1881_v4 = vrot.slane %v11857_v9, 5  ;;  %v12394_v9 = vld [vmem:[%s11089_s15 + $0xe4] sm:$0xf] }
 0x1c2   : > { %9335 = vmatprep.mubr.msk.bf16.mxu0 %vm10974_vm1, %v15598_v29  ;;  %v12380_v36 = vsel %vm11945_vm8, %v8152_v37, %v1878_v39 }
 0x1c3   : > { %v12376_v63 = vsel %vm11945_vm8, %v1873_v14, %v1874_v21  ;;  %v1880_v21 = vrot.slane %v1878_v39, 4 }
 0x1c4   : > { %v1342_v54 = vpop.f32.mrb[100].mxu0 }
 0x1c5   : > { %v12353_v20 = vadd.f32 %v12137_v46, %v1342_v54  ;;  %v9205_v18 = vpop.f32.mrb[101].mxu0  ;;  %v12365_v46 = vld [vmem:[%s11089_s15 + $0xd8] sm:$0xf]  ;;  %v12368_v54 = vld [vmem:[%s11089_s15 + $0xe0] sm:$0xf]  ;;  %v12405_v39 = vsel %vm11945_vm8, %v1880_v21, %v1881_v4 }
 0x1c6   : > { %v1345_v11 = vpop.f32.mrb[102].mxu0  ;;  %v8242_v18 = vcombine.low %v12365_v46, %v12368_v54 }
 0x1c7   : > { %15715 = vst [vmem:[#allocation161_spill] sm:$0xff] %v12353_v20  ;;  %v9206_v12 = vpop.f32.mrb[103].mxu0  ;;  %v10856_v20 = vld [vmem:[%s11089_s15 + $0x3c] sm:$0x1] }
 0x1c8   : > { %9510 = vmatmul.mubr.msk.bf16.gmra.mrb[96].mxu1 %vm1022_vm4, %v8242_v18  ;;  %v12388_v12 = vcombine.low %v12376_v63, %v12380_v36  ;;  %v1884_v50 = vrot.slane %v10856_v20, 5  ;;  %v12397_v18 = vld [vmem:[%s11089_s15 + $0xe8] sm:$0xf] }
 0x1c9   : > { %9336 = vmatmul.mubr.msk.bf16.gmra.mrb[208].mxu0 %vm1022_vm4, %v12357_v19  ;;  %9513 = vmatprep.mubr.msk.bf16.mxu1 %vm10974_vm1, %v15598_v29  ;;  %v1883_v19 = vrot.slane %v1881_v4, 4  ;;  %v8153_v4 = vrot.slane %v11880_v1, 9 }
 0x1ca   : > { %9339 = vmatprep.mubr.msk.bf16.mxu0 %vm10974_vm1, %v15598_v29  ;;  %15717 = vst [vmem:[#allocation163_spill] sm:$0xff] %v12388_v12 }
 0x1cb   : > { %v12409_v20 = vsel %vm11945_vm8, %v1883_v19, %v1884_v50  ;;  %v1891_v50 = vrot.slane %v11908_v56, 5 }
 0x1cc   : > { %v1350_v11 = vpop.f32.mrb[104].mxu0 }
 0x1cd   : > { %v9209_v58 = vpop.f32.mrb[105].mxu0  ;;  %v8243_v11 = vcombine.low %v12394_v9, %v12397_v18 }
 0x1ce   : > { %v1353_v14 = vpop.f32.mrb[106].mxu0  ;;  %v1888_v58 = vrot.slane %v11883_v23, 5  ;;  %v12424_v23 = vld [vmem:[%s11089_s15 + $0xf0] sm:$0xf] }
 0x1cf   : > { %v9210_v37 = vpop.f32.mrb[107].mxu0 }
 0x1d0   : > { %9514 = vmatmul.mubr.msk.bf16.gmra.mrb[100].mxu1 %vm1022_vm4, %v8243_v11  ;;  %v1890_v21 = vrot.slane %v1888_v58, 4  ;;  %v8244_v11 = vcombine.low %v12424_v23, %v11507_v25 }
 0x1d1   : > { %9340 = vmatmul.mubr.msk.bf16.gmra.mrb[212].mxu0 %vm1022_vm4, %v12388_v12  ;;  %9517 = vmatprep.mubr.msk.bf16.mxu1 %vm10974_vm1, %v15598_v29  ;;  %v12417_v12 = vcombine.low %v12405_v39, %v12409_v20 }
 0x1d2   : > { %9343 = vmatprep.mubr.msk.bf16.mxu0 %vm10974_vm1, %v15598_v29  ;;  %v12436_v1 = vsel %vm11945_vm8, %v1890_v21, %v1891_v50  ;;  %v1898_v21 = vrot.slane %v11933_v43, 5 }
 0x1d3   : > { %15718 = vst [vmem:[#allocation164_spill] sm:$0xff] %v12417_v12 }
 0x1d4   : > { %v1610_v14 = vpop.f32.mrb[108].mxu0 }
 0x1d5   : > { %v9215_v37 = vpop.f32.mrb[109].mxu0 }
 0x1d6   : > { %v1613_v35 = vpop.f32.mrb[110].mxu0 }
 0x1d7   : > { %v9216_v19 = vpop.f32.mrb[111].mxu0  ;;  %v12432_v35 = vsel %vm11945_vm8, %v8153_v4, %v1888_v58  ;;  %v10860_v58 = vld [vmem:[%s11089_s15 + $0x4c] sm:$0x1] }
 0x1d8   : > { %9518 = vmatmul.mubr.msk.bf16.gmra.mrb[104].mxu1 %vm1022_vm4, %v8244_v11  ;;  %v12443_v25 = vcombine.low %v12432_v35, %v12436_v1  ;;  %v1893_v19 = vrot.slane %v1891_v50, 4  ;;  %v1894_v4 = vrot.slane %v10860_v58, 5 }
 0x1d9   : > { %9344 = vmatmul.mubr.msk.bf16.gmra.mrb[216].mxu0 %vm1022_vm4, %v12417_v12  ;;  %9521 = vmatprep.mubr.msk.bf16.mxu1 %vm10974_vm1, %v15598_v29  ;;  %v8154_v12 = vrot.slane %v11911_v59, 9 }
 0x1da   : > { %9347 = vmatprep.mubr.msk.bf16.mxu0 %vm10974_vm1, %v15598_v29  ;;  %15719 = vst [vmem:[#allocation165_spill] sm:$0xff] %v12443_v25  ;;  %v12462_v59 = vsel %vm11945_vm8, %v1893_v19, %v1894_v4  ;;  %v1900_v4 = vrot.slane %v1898_v21, 4 }
 0x1db   : > { %v12466_v43 = vsel %vm11945_vm8, %v8154_v12, %v1898_v21 }
 0x1dc   : > { %v1618_v56 = vpop.f32.mrb[112].mxu0  ;;  %v12477_v19 = vcombine.low %v12462_v59, %v12466_v43 }
 0x1dd   : > { %v9219_v14 = vpop.f32.mrb[113].mxu0  ;;  %v12454_v56 = vld [vmem:[%s11089_s15 + $0xf8] sm:$0xf] }
 0x1de   : > { %v1621_v37 = vpop.f32.mrb[114].mxu0  ;;  %v8245_v14 = vcombine.low %v12454_v56, %v11540_v55  ;;  %15722 = vst [vmem:[#allocation168_spill] sm:$0xff] %v12477_v19 }
 0x1df   : > { %v12449_v16 = vadd.f32 %v1621_v37, %v11795_v31  ;;  %v9220_v11 = vpop.f32.mrb[115].mxu0  ;;  %v1901_v31 = vrot.slane %v11936_v32, 5 }
 0x1e0   : > { %9522 = vmatmul.mubr.msk.bf16.gmra.mrb[108].mxu1 %vm1022_vm4, %v8245_v14  ;;  %v10862_v11 = vld [vmem:[%s11089_s15 + $0x5c] sm:$0x1] }
 0x1e1   : > { %15720 = vst [vmem:[#allocation166_spill] sm:$0xff] %v12449_v16  ;;  %9348 = vmatmul.mubr.msk.bf16.gmra.mrb[220].mxu0 %vm1022_vm4, %v12443_v25  ;;  %9525 = vmatprep.mubr.msk.bf16.mxu1 %vm10974_vm1, %v15598_v29  ;;  %v1903_v12 = vrot.slane %v1901_v31, 4  ;;  %v1904_v25 = vrot.slane %v10862_v11, 5  ;;  %v15727_v11 = vld [vmem:[#allocation115_spill] sm:$0xff] }
 0x1e2   : > { %9351 = vmatprep.mubr.msk.bf16.mxu0 %vm10974_vm1, %v15598_v29 }
 0x1e3   : > { %v12495_v21 = vsel %vm11945_vm8, %v1903_v12, %v1904_v25  ;;  %v8155_v25 = vrot.slane %v15727_v11, 9 }
 0x1e4   : > { %v1626_v50 = vpop.f32.mrb[116].mxu0 }
 0x1e5   : > { %v12473_v55 = vadd.f32 %v1626_v50, %v11800_v44  ;;  %v9223_v37 = vpop.f32.mrb[117].mxu0  ;;  %v8246_v44 = vcombine.low %v11543_v5, %v11558_v10  ;;  %v12491_v50 = vsel %vm11945_vm8, %v1900_v4, %v1901_v31  ;;  %v15724_v10 = vld [vmem:[#allocation94_spill] sm:$0xff] }
 0x1e6   : > { %v1629_v58 = vpop.f32.mrb[118].mxu0  ;;  %v12506_v31 = vcombine.low %v12491_v50, %v12495_v21 }
 0x1e7   : > { %15721 = vst [vmem:[#allocation167_spill] sm:$0xff] %v12473_v55  ;;  %v12481_v32 = vadd.f32 %v1629_v58, %v11810_v47  ;;  %v9224_v14 = vpop.f32.mrb[119].mxu0  ;;  %v1908_v47 = vrot.slane %v11976_v61, 5 }
 0x1e8   : > { %9526 = vmatmul.mubr.msk.bf16.gmra.mrb[112].mxu1 %vm1022_vm4, %v8246_v44  ;;  %15726 = vst [vmem:[#allocation170_spill] sm:$0xff] %v12506_v31  ;;  %v15728_v14 = vld [vmem:[#allocation119_spill] sm:$0xff] }
 0x1e9   : > { %15723 = vst [vmem:[#allocation169_spill] sm:$0xff] %v12481_v32  ;;  %9352 = vmatmul.mubr.msk.bf16.gmra.mrb[224].mxu0 %vm1022_vm4, %v12477_v19  ;;  %9529 = vmatprep.mubr.msk.bf16.mxu1 %vm10974_vm1, %v15598_v29  ;;  %v1910_v12 = vrot.slane %v1908_v47, 4  ;;  %v1911_v61 = vrot.slane %v15728_v14, 5  ;;  %v15729_v19 = vld [vmem:[#allocation96_spill] sm:$0xff]  ;;  %v12521_v11 = vsel %vm11945_vm8, %v8155_v25, %v1908_v47 }
 0x1ea   : > { %9355 = vmatprep.mubr.msk.bf16.mxu0 %vm10974_vm1, %v15598_v29 }
 0x1eb   : > { %v12525_v14 = vsel %vm11945_vm8, %v1910_v12, %v1911_v61  ;;  %v1913_v25 = vrot.slane %v1911_v61, 4  ;;  %v15736_v12 = vld [vmem:[#allocation120_spill] sm:$0xff] }
 0x1ec   : > { %v1634_v37 = vpop.f32.mrb[120].mxu0  ;;  %v8156_v0 = vrot.slane %v15736_v12, 9 }
 0x1ed   : > { %v12502_v5 = vadd.f32 %v1634_v37, %v15724_v10  ;;  %v9227_v58 = vpop.f32.mrb[121].mxu0  ;;  %v15731_v37 = vld [vmem:[#allocation66_spill] sm:$0xff]  ;;  %v15732_v10 = vld [vmem:[#allocation64_spill] sm:$0xff] }
 0x1ee   : > { %v1637_v4 = vpop.f32.mrb[122].mxu0  ;;  %v8247_v58 = vcombine.low %v15732_v10, %v15731_v37  ;;  %v12535_v10 = vcombine.low %v12521_v11, %v12525_v14 }
 0x1ef   : > { %15725 = vst [vmem:[#allocation94_spill] sm:$0xff] %v12502_v5  ;;  %v12511_v44 = vadd.f32 %v1637_v4, %v15729_v19  ;;  %v9228_v48 = vpop.f32.mrb[123].mxu0  ;;  %v15733_v19 = vld [vmem:[#allocation97_spill] sm:$0xff]  ;;  %v15738_v5 = vld [vmem:[#allocation99_spill] sm:$0xff] }
 0x1f0   : > { %9530 = vmatmul.mubr.msk.bf16.gmra.mrb[116].mxu1 %vm1022_vm4, %v8247_v58  ;;  %15735 = vst [vmem:[#allocation96_spill] sm:$0xff] %v12535_v10 }
 0x1f1   : > { %15730 = vst [vmem:[#allocation115_spill] sm:$0xff] %v12511_v44  ;;  %9356 = vmatmul.mubr.msk.bf16.gmra.mrb[228].mxu0 %vm1022_vm4, %v12506_v31  ;;  %9533 = vmatprep.mubr.msk.bf16.mxu1 %vm10974_vm1, %v15598_v29  ;;  %v10863_v31 = vld [vmem:[%s11089_s15 + $0x6c] sm:$0x1]  ;;  %v15737_v44 = vld [vmem:[#allocation124_spill] sm:$0xff] }
 0x1f2   : > { %9359 = vmatprep.mubr.msk.bf16.mxu0 %vm10974_vm1, %v15598_v29  ;;  %v1914_v57 = vrot.slane %v10863_v31, 5  ;;  %v1918_v58 = vrot.slane %v15737_v44, 5  ;;  %v15742_v44 = vld [vmem:[#allocation100_spill] sm:$0xff] }
 0x1f4   : > { %v1642_v48 = vpop.f32.mrb[124].mxu0  ;;  %v12551_v31 = vsel %vm11945_vm8, %v1913_v25, %v1914_v57  ;;  %v12555_v61 = vsel %vm11945_vm8, %v8156_v0, %v1918_v58 }
 0x1f5   : > { %v12531_v4 = vadd.f32 %v1642_v48, %v15733_v19  ;;  %v9231_v37 = vpop.f32.mrb[125].mxu0  ;;  %v15740_v48 = vld [vmem:[#allocation74_spill] sm:$0xff]  ;;  %v15741_v19 = vld [vmem:[#allocation72_spill] sm:$0xff]  ;;  %v12566_v57 = vcombine.low %v12551_v31, %v12555_v61 }
 0x1f6   : > { %v1645_v47 = vpop.f32.mrb[126].mxu0  ;;  %v8248_v37 = vcombine.low %v15741_v19, %v15740_v48  ;;  %v1920_v48 = vrot.slane %v1918_v58, 4  ;;  %v10864_v19 = vld [vmem:[%s11089_s15 + $0x7c] sm:$0x1] }
 0x1f7   : > { %15734 = vst [vmem:[#allocation119_spill] sm:$0xff] %v12531_v4  ;;  %v12541_v32 = vadd.f32 %v1645_v47, %v15738_v5  ;;  %v9232_v55 = vpop.f32.mrb[127].mxu0  ;;  %15744 = vst [vmem:[#allocation97_spill] sm:$0xff] %v12566_v57 }
 0x1f8   : > { %v1921_v55 = vrot.slane %v12022_v51, 5  ;;  %9534 = vmatmul.mubr.msk.bf16.gmra.mrb[120].mxu1 %vm1022_vm4, %v8248_v37  ;;  %v1818_v51 = vpop.f32.mrb[16].mxu1 }
 0x1f9   : > { %15739 = vst [vmem:[#allocation66_spill] sm:$0xff] %v12541_v32  ;;  %9360 = vmatmul.mubr.msk.bf16.gmra.mrb[232].mxu0 %vm1022_vm4, %v12535_v10  ;;  %9537 = vmatprep.mubr.msk.bf16.mxu1 %vm10974_vm1, %v15598_v29  ;;  %v1924_v10 = vrot.slane %v10864_v19, 5  ;;  %v15745_v32 = vld [vmem:[#allocation102_spill] sm:$0xff]  ;;  %v9319_v16 = vpop.f32.mrb[17].mxu1 }
 0x1fa   : > { %9363 = vmatprep.mubr.msk.bf16.mxu0 %vm10974_vm1, %v15598_v29  ;;  %v1923_v0 = vrot.slane %v1921_v55, 4  ;;  %v1821_v30 = vpop.f32.mrb[18].mxu1  ;;  %v12580_v58 = vsel %vm11945_vm8, %v1920_v48, %v1921_v55  ;;  %v8157_v48 = vrot.slane %v12042_v24, 9  ;;  %v8333_v19 = vld [vmem:[%s15382_s1 + $0xa] sm:$0x3] }
 0x1fb   : > { %v1928_v30 = vrot.slane %v12045_v28, 5  ;;  %v1931_v28 = vrot.slane %v12069_v2, 5 }
 0x1fc   : > { %v1650_v5 = vpop.f32.mrb[128].mxu0 }
 0x1fd   : > { %v12562_v47 = vadd.f32 %v1650_v5, %v15742_v44  ;;  %v9235_v12 = vpop.f32.mrb[129].mxu0  ;;  %v15746_v5 = vld [vmem:[#allocation77_spill] sm:$0xff]  ;;  %v15747_v44 = vld [vmem:[#allocation76_spill] sm:$0xff]  ;;  %v12613_v2 = vsel %vm11945_vm8, %v8157_v48, %v1928_v30 }
 0x1fe   : > { %v1653_v25 = vpop.f32.mrb[130].mxu0  ;;  %v8249_v12 = vcombine.low %v15747_v44, %v15746_v5  ;;  %v15750_v5 = vld [vmem:[#allocation106_spill] sm:$0xff] }
 0x1ff   : > { %15743 = vst [vmem:[#allocation64_spill] sm:$0xff] %v12562_v47  ;;  %v12570_v37 = vadd.f32 %v1653_v25, %v15745_v32  ;;  %v9236_v4 = vpop.f32.mrb[131].mxu0  ;;  %v9320_v47 = vpop.f32.mrb[19].mxu1  ;;  %v12584_v32 = vsel %vm11945_vm8, %v1923_v0, %v1924_v10  ;;  %v1930_v0 = vrot.slane %v1928_v30, 4 }
 0x200   : > { %9538 = vmatmul.mubr.msk.bf16.gmra.mrb[124].mxu1 %vm1022_vm4, %v8249_v12  ;;  %v15748_v4 = vld [vmem:[#allocation104_spill] sm:$0xff]  ;;  %v12595_v55 = vcombine.low %v12580_v58, %v12584_v32 }
 0x201   : > { %9364 = vmatmul.mubr.msk.bf16.gmra.mrb[236].mxu0 %vm1022_vm4, %v12566_v57  ;;  %9653 = vmatprep.mubr.msk.bf16.mxu1 %vm10974_vm1, %v15598_v29 }
 0x202   : > { %9367 = vmatprep.mubr.msk.bf16.mxu0 %vm10974_vm1, %v15598_v29  ;;  %15749 = vst [vmem:[#allocation120_spill] sm:$0xff] %v12595_v55 }
 0x203   : > { %v2649_v51 = vpop.f32.mrb[20].mxu1 }
 0x204   : > { %v1658_v16 = vpop.f32.mrb[132].mxu0 }
 0x205   : > { %v12591_v47 = vadd.f32 %v1658_v16, %v15748_v4  ;;  %v9239_v25 = vpop.f32.mrb[133].mxu0  ;;  %v3496_v16 = vsel %vm1104_vm0, %v8333_v19, 0  ;;  %v9435_v4 = vpop.f32.mrb[21].mxu1  ;;  %v15751_v19 = vcombine.low %v11951_v38, %v11957_v62  ;;  %v8158_v62 = vrot.slane %v12072_v60, 9 }
 0x206   : > { %v1661_v10 = vpop.f32.mrb[134].mxu0  ;;  %9652 = vmatpush3.bf16.msra.mxu1 %v3496_v16  ;;  %v2652_v25 = vpop.f32.mrb[22].mxu1  ;;  %v10865_v4 = vld [vmem:[%s11089_s15 + $0x8c] sm:$0x1]  ;;  %v1938_v38 = vrot.slane %v12096_v26, 5 }
 0x207   : > { %v12603_v44 = vadd.f32 %v1661_v10, %v15750_v5  ;;  %v9240_v12 = vpop.f32.mrb[135].mxu0  ;;  %v9436_v24 = vpop.f32.mrb[23].mxu1  ;;  %9871 = vmatprep.subr.bf16.mxu1 %v15598_v29  ;;  %v12617_v10 = vsel %vm11945_vm8, %v1930_v0, %v1931_v28  ;;  %v15752_v5 = vld [vmem:[#allocation107_spill] sm:$0xff]  ;;  %v1933_v0 = vrot.slane %v1931_v28, 4  ;;  %v1934_v25 = vrot.slane %v10865_v4, 5 }
 0x208   : > { %v12630_v30 = vcombine.low %v12613_v2, %v12617_v10  ;;  %v8335_v28 = vcombine.low %v12314_v41, %v12343_v3  ;;  %v12652_v60 = vsel %vm11945_vm8, %v8158_v62, %v1938_v38  ;;  %v15757_v41 = vld [vmem:[#allocation110_spill] sm:$0xff] }
 0x209   : > { %9368 = vmatmul.mubr.msk.bf16.gmra.mrb[240].mxu0 %vm1022_vm4, %v12595_v55  ;;  %9654 = vmatmul.mubr.msk.bf16.vlgmr.msra.gmra.mrb[128].mxu1 %vm1022_vm4, %v15751_v19  ;;  %v15755_v19 = vld [vmem:[#allocation109_spill] sm:$0xff]  ;;  %v12648_v26 = vsel %vm11945_vm8, %v1933_v0, %v1934_v25 }
 0x20a   : > { %9371 = vmatprep.mubr.msk.bf16.mxu0 %vm10974_vm1, %v15598_v29  ;;  %9657 = vmatprep.mubr.msk.bf16.mxu1 %vm10974_vm1, %v15598_v29  ;;  %15754 = vst [vmem:[#allocation99_spill] sm:$0xff] %v12630_v30  ;;  %v12663_v0 = vcombine.low %v12648_v26, %v12652_v60 }
 0x20b   : > { %v2657_v24 = vpop.f32.mrb[24].mxu1 }
 0x20c   : > { %v1666_v51 = vpop.f32.mrb[136].mxu0  ;;  %15759 = vst [vmem:[#allocation100_spill] sm:$0xff] %v12663_v0  ;;  %v1940_v24 = vrot.slane %v1938_v38, 4  ;;  %v1948_v38 = vrot.slane %v12221_v27, 5 }
 0x20d   : > { %v12626_v12 = vadd.f32 %v1666_v51, %v15752_v5  ;;  %v9243_v16 = vpop.f32.mrb[137].mxu0  ;;  %v9439_v51 = vpop.f32.mrb[25].mxu1 }
 0x20e   : > { %v1669_v48 = vpop.f32.mrb[138].mxu0  ;;  %v12638_v5 = vpop.f32.mrb[26].mxu1 }
 0x20f   : > { %15753 = vst [vmem:[#allocation124_spill] sm:$0xff] %v12626_v12  ;;  %v12636_v55 = vadd.f32 %v1669_v48, %v15755_v19  ;;  %v9244_v57 = vpop.f32.mrb[139].mxu0  ;;  %v9440_v16 = vpop.f32.mrb[27].mxu1  ;;  %v10866_v19 = vld [vmem:[%s11089_s15 + $0x9c] sm:$0x1] }
 0x210   : > { %v1941_v57 = vrot.slane %v12099_v53, 5  ;;  %v1944_v51 = vrot.slane %v10866_v19, 5 }
 0x211   : > { %15756 = vst [vmem:[#allocation74_spill] sm:$0xff] %v12636_v55  ;;  %9372 = vmatmul.mubr.msk.bf16.gmra.mrb[244].mxu0 %vm1022_vm4, %v12630_v30  ;;  %9658 = vmatmul.mubr.msk.bf16.gmra.mrb[132].mxu1 %vm1022_vm4, %v8335_v28  ;;  %v15760_v28 = vld [vmem:[#allocation112_spill] sm:$0xff] }
 0x212   : > { %9375 = vmatprep.mubr.msk.bf16.mxu0 %vm10974_vm1, %v15598_v29  ;;  %9661 = vmatprep.mubr.msk.bf16.mxu1 %vm10974_vm1, %v15598_v29  ;;  %v1943_v62 = vrot.slane %v1941_v57, 4 }
 0x213   : > { %v12666_v53 = vpop.f32.mrb[28].mxu1 }
 0x214   : > { %v1674_v48 = vpop.f32.mrb[140].mxu0  ;;  %v9443_v55 = vpop.f32.mrb[29].mxu1 }
 0x215   : > { %v12659_v3 = vadd.f32 %v1674_v48, %v15757_v41  ;;  %v9247_v4 = vpop.f32.mrb[141].mxu0  ;;  %v12671_v12 = vpop.f32.mrb[30].mxu1  ;;  %v8336_v48 = vcombine.low %v12347_v13, %v12376_v63  ;;  %v12686_v55 = vsel %vm11945_vm8, %v1943_v62, %v1944_v51  ;;  %v15762_v13 = vld [vmem:[#allocation114_spill] sm:$0xff]  ;;  %v1951_v62 = vrot.slane %v12224_v6, 5 }
 0x216   : > { %v1677_v25 = vpop.f32.mrb[142].mxu0  ;;  %v9444_v41 = vpop.f32.mrb[31].mxu1  ;;  %v12682_v4 = vsel %vm11945_vm8, %v1940_v24, %v1941_v57  ;;  %v8159_v57 = vrot.slane %v12123_v52, 9  ;;  %v1950_v24 = vrot.slane %v1948_v38, 4  ;;  %v8337_v52 = vcombine.low %v12380_v36, %v12405_v39 }
 0x217   : > { %15758 = vst [vmem:[#allocation72_spill] sm:$0xff] %v12659_v3  ;;  %v12669_v16 = vadd.f32 %v1677_v25, %v15760_v28  ;;  %v9248_v30 = vpop.f32.mrb[143].mxu0  ;;  %v12696_v25 = vcombine.low %v12682_v4, %v12686_v55  ;;  %v15765_v28 = vld [vmem:[#allocation117_spill] sm:$0xff] }
 0x218   : > { %v12713_v6 = vsel %vm11945_vm8, %v8159_v57, %v1948_v38  ;;  %v1953_v57 = vrot.slane %v1951_v62, 4 }
 0x219   : > { %15761 = vst [vmem:[#allocation102_spill] sm:$0xff] %v12669_v16  ;;  %9376 = vmatmul.mubr.msk.bf16.gmra.mrb[248].mxu0 %vm1022_vm4, %v12663_v0  ;;  %9662 = vmatmul.mubr.msk.bf16.gmra.mrb[136].mxu1 %vm1022_vm4, %v8336_v48  ;;  %15764 = vst [vmem:[#allocation76_spill] sm:$0xff] %v12696_v25 }
 0x21a   : > { %9379 = vmatprep.mubr.msk.bf16.mxu0 %vm10974_vm1, %v15598_v29  ;;  %9665 = vmatprep.mubr.msk.bf16.mxu1 %vm10974_vm1, %v15598_v29 }
 0x21b   : > { %v12700_v51 = vpop.f32.mrb[32].mxu1 }
 0x21c   : > { %v1682_v30 = vpop.f32.mrb[144].mxu0 }
 0x21d   : > { %v12692_v63 = vadd.f32 %v1682_v30, %v15762_v13  ;;  %v9251_v27 = vpop.f32.mrb[145].mxu0  ;;  %v9447_v30 = vpop.f32.mrb[33].mxu1 }
 0x21e   : > { %v1685_v19 = vpop.f32.mrb[146].mxu0  ;;  %v12705_v13 = vpop.f32.mrb[34].mxu1 }
 0x21f   : > { %15763 = vst [vmem:[#allocation77_spill] sm:$0xff] %v12692_v63  ;;  %v12703_v48 = vadd.f32 %v1685_v19, %v15765_v28  ;;  %v9252_v41 = vpop.f32.mrb[147].mxu0  ;;  %v9448_v27 = vpop.f32.mrb[35].mxu1  ;;  %v12717_v19 = vsel %vm11945_vm8, %v1950_v24, %v1951_v62  ;;  %v10867_v24 = vld [vmem:[%s11089_s15 + $0xac] sm:$0x1]  ;;  %v8338_v62 = vcombine.low %v12409_v20, %v12432_v35  ;;  %v15773_v35 = vld [vmem:[#allocation123_spill] sm:$0xff] }
 0x220   : > { %v15767_v41 = vld [vmem:[#allocation118_spill] sm:$0xff]  ;;  %v12729_v38 = vcombine.low %v12713_v6, %v12717_v19  ;;  %v1954_v30 = vrot.slane %v10867_v24, 5  ;;  %v8160_v27 = vrot.slane %v12247_v34, 9  ;;  %v1961_v24 = vrot.slane %v12276_v42, 5  ;;  %v10868_v42 = vld [vmem:[%s11089_s15 + $0xbc] sm:$0x1] }
 0x221   : > { %15766 = vst [vmem:[#allocation104_spill] sm:$0xff] %v12703_v48  ;;  %9380 = vmatmul.mubr.msk.bf16.gmra.mrb[252].mxu0 %vm1022_vm4, %v12696_v25  ;;  %9666 = vmatmul.mubr.msk.bf16.gmra.mrb[140].mxu1 %vm1022_vm4, %v8337_v52  ;;  %v1958_v25 = vrot.slane %v12250_v33, 5  ;;  %v15770_v48 = vld [vmem:[#allocation122_spill] sm:$0xff] }
 0x222   : > { %9383 = vmatprep.mubr.msk.bf16.mxu0 %vm10974_vm1, %v15598_v29  ;;  %9669 = vmatprep.mubr.msk.bf16.mxu1 %vm10974_vm1, %v15598_v29  ;;  %15769 = vst [vmem:[#allocation107_spill] sm:$0xff] %v12729_v38  ;;  %v12747_v33 = vsel %vm11945_vm8, %v1953_v57, %v1954_v30 }
 0x223   : > { %v12734_v0 = vpop.f32.mrb[36].mxu1 }
 0x224   : > { %v1690_v28 = vpop.f32.mrb[148].mxu0 }
 0x225   : > { %v12725_v36 = vadd.f32 %v1690_v28, %v15767_v41  ;;  %v9255_v39 = vpop.f32.mrb[149].mxu0  ;;  %v9451_v41 = vpop.f32.mrb[37].mxu1 }
 0x226   : > { %v1693_v52 = vpop.f32.mrb[150].mxu0  ;;  %v12739_v39 = vpop.f32.mrb[38].mxu1  ;;  %v1964_v41 = vrot.slane %v10868_v42, 5  ;;  %v1971_v42 = vrot.slane %v12306_v22, 5 }
 0x227   : > { %15768 = vst [vmem:[#allocation106_spill] sm:$0xff] %v12725_v36  ;;  %v12737_v63 = vadd.f32 %v1693_v52, %v15770_v48  ;;  %v9256_v28 = vpop.f32.mrb[151].mxu0  ;;  %v9452_v34 = vpop.f32.mrb[39].mxu1  ;;  %v12751_v48 = vsel %vm11945_vm8, %v8160_v27, %v1958_v25  ;;  %v1960_v27 = vrot.slane %v1958_v25, 4 }
 0x228   : > { %v12761_v20 = vcombine.low %v12747_v33, %v12751_v48  ;;  %v1963_v28 = vrot.slane %v1961_v24, 4 }
 0x229   : > { %15771 = vst [vmem:[#allocation109_spill] sm:$0xff] %v12737_v63  ;;  %9384 = vmatmul.mubr.msk.bf16.gmra.mrb[0].mxu0 %vm1022_vm4, %v12729_v38  ;;  %9670 = vmatmul.mubr.msk.bf16.gmra.mrb[144].mxu1 %vm1022_vm4, %v8338_v62  ;;  %v15775_v62 = vld [vmem:[#allocation126_spill] sm:$0xff] }
 0x22a   : > { %9387 = vmatprep.mubr.msk.bf16.mxu0 %vm10974_vm1, %v15598_v29  ;;  %9673 = vmatprep.mubr.msk.bf16.mxu1 %vm10974_vm1, %v15598_v29  ;;  %15772 = vst [vmem:[#allocation110_spill] sm:$0xff] %v12761_v20 }
 0x22b   : > { %v12767_v38 = vpop.f32.mrb[40].mxu1 }
 0x22c   : > { %v1698_v52 = vpop.f32.mrb[152].mxu0  ;;  %v9455_v16 = vpop.f32.mrb[41].mxu1 }
 0x22d   : > { %v12764_v57 = vadd.f32 %v1698_v52, %v15773_v35  ;;  %v9259_v30 = vpop.f32.mrb[153].mxu0  ;;  %v12772_v3 = vpop.f32.mrb[42].mxu1  ;;  %v8339_v52 = vcombine.low %v12436_v1, %v12462_v59  ;;  %v12780_v35 = vsel %vm11945_vm8, %v1960_v27, %v1961_v24  ;;  %v15778_v59 = vld [vmem:[#allocation127_spill] sm:$0xff] }
 0x22e   : > { %v1701_v34 = vpop.f32.mrb[154].mxu0  ;;  %v9456_v25 = vpop.f32.mrb[43].mxu1  ;;  %v12784_v30 = vsel %vm11945_vm8, %v1963_v28, %v1964_v41  ;;  %v8161_v28 = vrot.slane %v12279_v45, 9  ;;  %v8340_v45 = vcombine.low %v12466_v43, %v12491_v50 }
 0x22f   : > { %15774 = vst [vmem:[#allocation112_spill] sm:$0xff] %v12764_v57  ;;  %v12770_v63 = vadd.f32 %v1701_v34, %v15775_v62  ;;  %v9260_v36 = vpop.f32.mrb[155].mxu0  ;;  %v12794_v1 = vcombine.low %v12780_v35, %v12784_v30  ;;  %v15780_v62 = vld [vmem:[#allocation129_spill] sm:$0xff] }
 0x230   : > { %v1968_v36 = vrot.slane %v12303_v17, 5 }
 0x231   : > { %15776 = vst [vmem:[#allocation114_spill] sm:$0xff] %v12770_v63  ;;  %9388 = vmatmul.mubr.msk.bf16.gmra.mrb[4].mxu0 %vm1022_vm4, %v12761_v20  ;;  %9674 = vmatmul.mubr.msk.bf16.gmra.mrb[148].mxu1 %vm1022_vm4, %v8339_v52  ;;  %15777 = vst [vmem:[#allocation117_spill] sm:$0xff] %v12794_v1 }
 0x232   : > { %9391 = vmatprep.mubr.msk.bf16.mxu0 %vm10974_vm1, %v15598_v29  ;;  %9677 = vmatprep.mubr.msk.bf16.mxu1 %vm10974_vm1, %v15598_v29  ;;  %v1970_v17 = vrot.slane %v1968_v36, 4  ;;  %v12814_v22 = vsel %vm11945_vm8, %v8161_v28, %v1968_v36  ;;  %v1973_v28 = vrot.slane %v1971_v42, 4 }
 0x233   : > { %v12801_v34 = vpop.f32.mrb[44].mxu1 }
 0x234   : > { %v1706_v16 = vpop.f32.mrb[156].mxu0  ;;  %v9459_v20 = vpop.f32.mrb[45].mxu1 }
 0x235   : > { %v12797_v24 = vadd.f32 %v1706_v16, %v15778_v59  ;;  %v9263_v27 = vpop.f32.mrb[157].mxu0  ;;  %v12806_v63 = vpop.f32.mrb[46].mxu1  ;;  %v12818_v59 = vsel %vm11945_vm8, %v1970_v17, %v1971_v42  ;;  %v10869_v17 = vld [vmem:[%s11089_s15 + $0xcc] sm:$0x1]  ;;  %v8341_v42 = vcombine.low %v12495_v21, %v12521_v11  ;;  %v15788_v11 = vld [vmem:[#allocation133_spill] sm:$0xff] }
 0x236   : > { %v1709_v41 = vpop.f32.mrb[158].mxu0  ;;  %v9460_v16 = vpop.f32.mrb[47].mxu1  ;;  %v15782_v27 = vld [vmem:[#allocation130_spill] sm:$0xff]  ;;  %v12830_v36 = vcombine.low %v12814_v22, %v12818_v59 }
 0x237   : > { %15779 = vst [vmem:[#allocation118_spill] sm:$0xff] %v12797_v24  ;;  %v12804_v52 = vadd.f32 %v1709_v41, %v15780_v62  ;;  %v9264_v25 = vpop.f32.mrb[159].mxu0  ;;  %v1974_v41 = vrot.slane %v10869_v17, 5  ;;  %v8162_v62 = vrot.slane %v12332_v40, 9  ;;  %v1981_v17 = vrot.slane %v12365_v46, 5 }
 0x238   : > { %15784 = vst [vmem:[#allocation126_spill] sm:$0xff] %v12830_v36  ;;  %v1978_v25 = vrot.slane %v12335_v8, 5  ;;  %v10870_v46 = vld [vmem:[%s11089_s15 + $0xdc] sm:$0x1] }
 0x239   : > { %15781 = vst [vmem:[#allocation122_spill] sm:$0xff] %v12804_v52  ;;  %9392 = vmatmul.mubr.msk.bf16.gmra.mrb[8].mxu0 %vm1022_vm4, %v12794_v1  ;;  %9678 = vmatmul.mubr.msk.bf16.gmra.mrb[152].mxu1 %vm1022_vm4, %v8340_v45  ;;  %v15785_v1 = vld [vmem:[#allocation132_spill] sm:$0xff]  ;;  %v12848_v8 = vsel %vm11945_vm8, %v1973_v28, %v1974_v41 }
 0x23a   : > { %9395 = vmatprep.mubr.msk.bf16.mxu0 %vm10974_vm1, %v15598_v29  ;;  %9681 = vmatprep.mubr.msk.bf16.mxu1 %vm10974_vm1, %v15598_v29 }
 0x23b   : > { %v12835_v16 = vpop.f32.mrb[48].mxu1 }
 0x23c   : > { %v1714_v20 = vpop.f32.mrb[160].mxu0 }
 0x23d   : > { %v12826_v43 = vadd.f32 %v1714_v20, %v15782_v27  ;;  %v9267_v50 = vpop.f32.mrb[161].mxu0  ;;  %v9463_v27 = vpop.f32.mrb[49].mxu1 }
 0x23e   : > { %v1717_v45 = vpop.f32.mrb[162].mxu0  ;;  %v12840_v50 = vpop.f32.mrb[50].mxu1  ;;  %v1984_v27 = vrot.slane %v10870_v46, 5  ;;  %v1991_v46 = vrot.slane %v12397_v18, 5 }
 0x23f   : > { %15783 = vst [vmem:[#allocation123_spill] sm:$0xff] %v12826_v43  ;;  %v12838_v52 = vadd.f32 %v1717_v45, %v15785_v1  ;;  %v9268_v20 = vpop.f32.mrb[163].mxu0  ;;  %v9464_v40 = vpop.f32.mrb[51].mxu1  ;;  %v12852_v1 = vsel %vm11945_vm8, %v8162_v62, %v1978_v25  ;;  %v1980_v62 = vrot.slane %v1978_v25, 4 }
 0x240   : > { %v12862_v21 = vcombine.low %v12848_v8, %v12852_v1  ;;  %v1983_v20 = vrot.slane %v1981_v17, 4 }
 0x241   : > { %15786 = vst [vmem:[#allocation127_spill] sm:$0xff] %v12838_v52  ;;  %9396 = vmatmul.mubr.msk.bf16.gmra.mrb[12].mxu0 %vm1022_vm4, %v12830_v36  ;;  %9682 = vmatmul.mubr.msk.bf16.gmra.mrb[156].mxu1 %vm1022_vm4, %v8341_v42  ;;  %v15790_v42 = vld [vmem:[#allocation135_spill] sm:$0xff] }
 0x242   : > { %9399 = vmatprep.mubr.msk.bf16.mxu0 %vm10974_vm1, %v15598_v29  ;;  %9685 = vmatprep.mubr.msk.bf16.mxu1 %vm10974_vm1, %v15598_v29  ;;  %15787 = vst [vmem:[#allocation129_spill] sm:$0xff] %v12862_v21 }
 0x243   : > { %v12868_v36 = vpop.f32.mrb[52].mxu1 }
 0x244   : > { %v1722_v45 = vpop.f32.mrb[164].mxu0  ;;  %v9467_v24 = vpop.f32.mrb[53].mxu1 }
 0x245   : > { %v12865_v28 = vadd.f32 %v1722_v45, %v15788_v11  ;;  %v9271_v41 = vpop.f32.mrb[165].mxu0  ;;  %v12873_v57 = vpop.f32.mrb[54].mxu1  ;;  %v8342_v45 = vcombine.low %v12525_v14, %v12551_v31  ;;  %v12881_v11 = vsel %vm11945_vm8, %v1980_v62, %v1981_v17  ;;  %v15793_v31 = vld [vmem:[#allocation136_spill] sm:$0xff] }
 0x246   : > { %v1725_v40 = vpop.f32.mrb[166].mxu0  ;;  %v9468_v25 = vpop.f32.mrb[55].mxu1  ;;  %v12885_v41 = vsel %vm11945_vm8, %v1983_v20, %v1984_v27  ;;  %v8163_v20 = vrot.slane %v12368_v54, 9  ;;  %v8343_v54 = vcombine.low %v12555_v61, %v12580_v58 }
 0x247   : > { %15789 = vst [vmem:[#allocation130_spill] sm:$0xff] %v12865_v28  ;;  %v12871_v52 = vadd.f32 %v1725_v40, %v15790_v42  ;;  %v9272_v43 = vpop.f32.mrb[167].mxu0  ;;  %v12895_v14 = vcombine.low %v12881_v11, %v12885_v41  ;;  %v15795_v42 = vld [vmem:[#allocation138_spill] sm:$0xff] }
 0x248   : > { %v1988_v43 = vrot.slane %v12394_v9, 5 }
 0x249   : > { %15791 = vst [vmem:[#allocation132_spill] sm:$0xff] %v12871_v52  ;;  %9400 = vmatmul.mubr.msk.bf16.gmra.mrb[16].mxu0 %vm1022_vm4, %v12862_v21  ;;  %9686 = vmatmul.mubr.msk.bf16.gmra.mrb[160].mxu1 %vm1022_vm4, %v8342_v45  ;;  %15792 = vst [vmem:[#allocation133_spill] sm:$0xff] %v12895_v14 }
 0x24a   : > { %9403 = vmatprep.mubr.msk.bf16.mxu0 %vm10974_vm1, %v15598_v29  ;;  %9689 = vmatprep.mubr.msk.bf16.mxu1 %vm10974_vm1, %v15598_v29  ;;  %v1990_v9 = vrot.slane %v1988_v43, 4  ;;  %v12915_v18 = vsel %vm11945_vm8, %v8163_v20, %v1988_v43  ;;  %v10871_v20 = vld [vmem:[%s11089_s15 + $0xec] sm:$0x1] }
 0x24b   : > { %v12902_v40 = vpop.f32.mrb[56].mxu1 }
 0x24c   : > { %v1730_v24 = vpop.f32.mrb[168].mxu0  ;;  %v9471_v21 = vpop.f32.mrb[57].mxu1 }
 0x24d   : > { %v12898_v17 = vadd.f32 %v1730_v24, %v15793_v31  ;;  %v9275_v62 = vpop.f32.mrb[169].mxu0  ;;  %v12907_v52 = vpop.f32.mrb[58].mxu1  ;;  %v12919_v31 = vsel %vm11945_vm8, %v1990_v9, %v1991_v46  ;;  %v1994_v9 = vrot.slane %v10871_v20, 5 }
 0x24e   : > { %v1733_v27 = vpop.f32.mrb[170].mxu0  ;;  %v9472_v24 = vpop.f32.mrb[59].mxu1  ;;  %v12931_v43 = vcombine.low %v12915_v18, %v12919_v31  ;;  %v1993_v62 = vrot.slane %v1991_v46, 4  ;;  %v8344_v46 = vcombine.low %v12584_v32, %v12613_v2  ;;  %v15801_v2 = vld [vmem:[#allocation140_spill] sm:$0xff] }
 0x24f   : > { %15794 = vst [vmem:[#allocation135_spill] sm:$0xff] %v12898_v17  ;;  %v12905_v45 = vadd.f32 %v1733_v27, %v15795_v42  ;;  %v9276_v25 = vpop.f32.mrb[171].mxu0  ;;  %v8164_v27 = vrot.slane %v12424_v23, 9  ;;  %v10872_v42 = vld [vmem:[%s11089_s15 + $0xf4] sm:$0xf] }
 0x250   : > { %15798 = vst [vmem:[#allocation171_spill] sm:$0xff] %v12931_v43  ;;  %v1998_v25 = vrot.slane %v10872_v42, 5  ;;  %v12949_v20 = vsel %vm11945_vm8, %v1993_v62, %v1994_v9  ;;  %v2001_v42 = vrot.slane %v12454_v56, 5 }
 0x251   : > { %15796 = vst [vmem:[#allocation136_spill] sm:$0xff] %v12905_v45  ;;  %9404 = vmatmul.mubr.msk.bf16.gmra.mrb[20].mxu0 %vm1022_vm4, %v12895_v14  ;;  %9690 = vmatmul.mubr.msk.bf16.gmra.mrb[164].mxu1 %vm1022_vm4, %v8343_v54 }
 0x252   : > { %9407 = vmatprep.mubr.msk.bf16.mxu0 %vm10974_vm1, %v15598_v29  ;;  %9693 = vmatprep.mubr.msk.bf16.mxu1 %vm10974_vm1, %v15598_v29  ;;  %v2003_v56 = vrot.slane %v2001_v42, 4 }
 0x253   : > { %v12936_v24 = vpop.f32.mrb[60].mxu1 }
 0x254   : > { %v1738_v21 = vpop.f32.mrb[172].mxu0 }
 0x255   : > { %v12927_v61 = vadd.f32 %v1738_v21, %v12140_v7  ;;  %v9279_v58 = vpop.f32.mrb[173].mxu0  ;;  %v9475_v21 = vpop.f32.mrb[61].mxu1 }
 0x256   : > { %v1741_v54 = vpop.f32.mrb[174].mxu0  ;;  %v12941_v58 = vpop.f32.mrb[62].mxu1 }
 0x257   : > { %15797 = vst [vmem:[#allocation138_spill] sm:$0xff] %v12927_v61  ;;  %v12939_v14 = vadd.f32 %v1741_v54, %v12148_v49  ;;  %v9280_v7 = vpop.f32.mrb[175].mxu0  ;;  %v9476_v23 = vpop.f32.mrb[63].mxu1  ;;  %v12953_v49 = vsel %vm11945_vm8, %v8164_v27, %v1998_v25  ;;  %v2000_v27 = vrot.slane %v1998_v25, 4  ;;  %v8345_v25 = vcombine.low %v12617_v10, %v12648_v26  ;;  %v15807_v26 = vld [vmem:[#allocation143_spill] sm:$0xff] }
 0x258   : > { %v12963_v32 = vcombine.low %v12949_v20, %v12953_v49  ;;  %v10873_v7 = vld [vmem:[%s11089_s15 + $0xfc] sm:$0x1] }
 0x259   : > { %15799 = vst [vmem:[#allocation172_spill] sm:$0xff] %v12939_v14  ;;  %9408 = vmatmul.mubr.msk.bf16.gmra.mrb[24].mxu0 %vm1022_vm4, %v12931_v43  ;;  %9694 = vmatmul.mubr.msk.bf16.gmra.mrb[168].mxu1 %vm1022_vm4, %v8344_v46  ;;  %v2004_v21 = vrot.slane %v10873_v7, 5  ;;  %v15803_v46 = vld [vmem:[#allocation142_spill] sm:$0xff] }
 0x25a   : > { %9411 = vmatprep.mubr.msk.bf16.mxu0 %vm10974_vm1, %v15598_v29  ;;  %9697 = vmatprep.mubr.msk.bf16.mxu1 %vm10974_vm1, %v15598_v29  ;;  %15800 = vst [vmem:[#allocation173_spill] sm:$0xff] %v12963_v32 }
 0x25b   : > { %v12969_v43 = vpop.f32.mrb[64].mxu1 }
 0x25c   : > { %v1746_v54 = vpop.f32.mrb[176].mxu0  ;;  %v9479_v45 = vpop.f32.mrb[65].mxu1 }
 0x25d   : > { %v12966_v62 = vadd.f32 %v1746_v54, %v15801_v2  ;;  %v9283_v9 = vpop.f32.mrb[177].mxu0  ;;  %v12974_v17 = vpop.f32.mrb[66].mxu1  ;;  %v12982_v2 = vsel %vm11945_vm8, %v2000_v27, %v2001_v42  ;;  %v10874_v45 = vld [vmem:[%s11089_s15 + $0x104] sm:$0xf] }
 0x25e   : > { %v1749_v23 = vpop.f32.mrb[178].mxu0  ;;  %15805 = vst [vmem:[#allocation174_spill] sm:$0xff] %v12974_v17  ;;  %v9480_v54 = vpop.f32.mrb[67].mxu1  ;;  %v12986_v9 = vsel %vm11945_vm8, %v2003_v56, %v2004_v21  ;;  %v10875_v56 = vld [vmem:[%s11089_s15 + $0x100] sm:$0xf] }
 0x25f   : > { %15802 = vst [vmem:[#allocation140_spill] sm:$0xff] %v12966_v62  ;;  %v12972_v14 = vadd.f32 %v1749_v23, %v15803_v46  ;;  %v9284_v61 = vpop.f32.mrb[179].mxu0  ;;  %v12996_v10 = vcombine.low %v12982_v2, %v12986_v9  ;;  %v8165_v21 = vrot.slane %v10875_v56, 9  ;;  %v10876_v46 = vld [vmem:[%s11089_s15 + $0x108] sm:$0xf] }
 0x260   : > { %v2008_v61 = vrot.slane %v10874_v45, 5  ;;  %v2011_v54 = vrot.slane %v10876_v46, 5 }
 0x261   : > { %15804 = vst [vmem:[#allocation142_spill] sm:$0xff] %v12972_v14  ;;  %9412 = vmatmul.mubr.msk.bf16.gmra.mrb[28].mxu0 %vm1022_vm4, %v12963_v32  ;;  %9698 = vmatmul.mubr.msk.bf16.gmra.mrb[172].mxu1 %vm1022_vm4, %v8345_v25  ;;  %15806 = vst [vmem:[#allocation175_spill] sm:$0xff] %v12996_v10  ;;  %v15810_v25 = vld [vmem:[#allocation145_spill] sm:$0xff] }
 0x262   : > { %9415 = vmatprep.mubr.msk.bf16.mxu0 %vm10974_vm1, %v15598_v29  ;;  %9701 = vmatprep.mubr.msk.bf16.mxu1 %vm10974_vm1, %v15598_v29  ;;  %v2010_v23 = vrot.slane %v2008_v61, 4 }
 0x263   : > { %v13003_v32 = vpop.f32.mrb[68].mxu1 }
 0x264   : > { %v1754_v7 = vpop.f32.mrb[180].mxu0  ;;  %15809 = vst [vmem:[#allocation176_spill] sm:$0xff] %v13003_v32  ;;  %v9483_v28 = vpop.f32.mrb[69].mxu1 }
 0x265   : > { %v12999_v42 = vadd.f32 %v1754_v7, %v15807_v26  ;;  %v9287_v27 = vpop.f32.mrb[181].mxu0  ;;  %v13008_v17 = vpop.f32.mrb[70].mxu1  ;;  %v8346_v7 = vcombine.low %v12652_v60, %v12682_v4  ;;  %v15813_v60 = vld [vmem:[#allocation146_spill] sm:$0xff] }
 0x266   : > { %v1757_v45 = vpop.f32.mrb[182].mxu0  ;;  %15812 = vst [vmem:[#allocation177_spill] sm:$0xff] %v13008_v17  ;;  %v9484_v26 = vpop.f32.mrb[71].mxu1  ;;  %v13016_v27 = vsel %vm11945_vm8, %v8165_v21, %v2008_v61  ;;  %v2013_v21 = vrot.slane %v2011_v54, 4 }
 0x267   : > { %15808 = vst [vmem:[#allocation143_spill] sm:$0xff] %v12999_v42  ;;  %v13006_v14 = vadd.f32 %v1757_v45, %v15810_v25  ;;  %v9288_v62 = vpop.f32.mrb[183].mxu0  ;;  %v10878_v45 = vld [vmem:[%s11089_s15 + $0x110] sm:$0xf]  ;;  %v10879_v26 = vld [vmem:[%s11089_s15 + $0x114] sm:$0xf] }
 0x268   : > { %v13020_v62 = vsel %vm11945_vm8, %v2010_v23, %v2011_v54  ;;  %v10877_v23 = vld [vmem:[%s11089_s15 + $0x10c] sm:$0x1]  ;;  %v8166_v25 = vrot.slane %v10878_v45, 9  ;;  %v15817_v42 = vld [vmem:[#allocation148_spill] sm:$0xff]  ;;  %v8347_v54 = vcombine.low %v12686_v55, %v12713_v6  ;;  %v15821_v6 = vld [vmem:[#allocation149_spill] sm:$0xff] }
 0x269   : > { %15811 = vst [vmem:[#allocation145_spill] sm:$0xff] %v13006_v14  ;;  %9416 = vmatmul.mubr.msk.bf16.gmra.mrb[32].mxu0 %vm1022_vm4, %v12996_v10  ;;  %9702 = vmatmul.mubr.msk.bf16.gmra.mrb[176].mxu1 %vm1022_vm4, %v8346_v7  ;;  %v13032_v61 = vcombine.low %v13016_v27, %v13020_v62  ;;  %v2014_v46 = vrot.slane %v10877_v23, 5  ;;  %v2018_v7 = vrot.slane %v10879_v26, 5 }
 0x26a   : > { %9419 = vmatprep.mubr.msk.bf16.mxu0 %vm10974_vm1, %v15598_v29  ;;  %9705 = vmatprep.mubr.msk.bf16.mxu1 %vm10974_vm1, %v15598_v29 }
 0x26b   : > { %15815 = vst [vmem:[#allocation178_spill] sm:$0xff] %v13032_v61  ;;  %v13037_v14 = vpop.f32.mrb[72].mxu1  ;;  %v13050_v45 = vsel %vm11945_vm8, %v2013_v21, %v2014_v46 }
 0x26c   : > { %v1762_v28 = vpop.f32.mrb[184].mxu0  ;;  %15816 = vst [vmem:[#allocation179_spill] sm:$0xff] %v13037_v14 }
 0x26d   : > { %v13028_v4 = vadd.f32 %v1762_v28, %v15813_v60  ;;  %v9291_v56 = vpop.f32.mrb[185].mxu0  ;;  %v9487_v60 = vpop.f32.mrb[73].mxu1 }
 0x26e   : > { %v1765_v10 = vpop.f32.mrb[186].mxu0  ;;  %v13042_v56 = vpop.f32.mrb[74].mxu1 }
 0x26f   : > { %15814 = vst [vmem:[#allocation146_spill] sm:$0xff] %v13028_v4  ;;  %v13040_v17 = vadd.f32 %v1765_v10, %v15817_v42  ;;  %v9292_v28 = vpop.f32.mrb[187].mxu0  ;;  %15819 = vst [vmem:[#allocation180_spill] sm:$0xff] %v13042_v56  ;;  %v9488_v23 = vpop.f32.mrb[75].mxu1  ;;  %v13054_v10 = vsel %vm11945_vm8, %v8166_v25, %v2018_v7  ;;  %v10880_v42 = vld [vmem:[%s11089_s15 + $0x118] sm:$0xf] }
 0x270   : > { %v2021_v26 = vrot.slane %v10880_v42, 5  ;;  %v13064_v55 = vcombine.low %v13050_v45, %v13054_v10  ;;  %v2020_v25 = vrot.slane %v2018_v7, 4  ;;  %v10881_v23 = vld [vmem:[%s11089_s15 + $0x11c] sm:$0x1] }
 0x271   : > { %15818 = vst [vmem:[#allocation148_spill] sm:$0xff] %v13040_v17  ;;  %9420 = vmatmul.mubr.msk.bf16.gmra.mrb[36].mxu0 %vm1022_vm4, %v13032_v61  ;;  %9706 = vmatmul.mubr.msk.bf16.gmra.mrb[180].mxu1 %vm1022_vm4, %v8347_v54  ;;  %v2024_v42 = vrot.slane %v10881_v23, 5  ;;  %v15822_v54 = vld [vmem:[#allocation151_spill] sm:$0xff] }
 0x272   : > { %9423 = vmatprep.mubr.msk.bf16.mxu0 %vm10974_vm1, %v15598_v29  ;;  %9709 = vmatprep.mubr.msk.bf16.mxu1 %vm10974_vm1, %v15598_v29  ;;  %15820 = vst [vmem:[#allocation181_spill] sm:$0xff] %v13064_v55  ;;  %v2023_v60 = vrot.slane %v2021_v26, 4 }
 0x273   : > { %v13070_v17 = vpop.f32.mrb[76].mxu1 }
 0x274   : > { %v1770_v28 = vpop.f32.mrb[188].mxu0  ;;  %v9491_v14 = vpop.f32.mrb[77].mxu1 }
 0x275   : > { %v13067_v21 = vadd.f32 %v1770_v28, %v15821_v6  ;;  %v9295_v46 = vpop.f32.mrb[189].mxu0  ;;  %v13075_v32 = vpop.f32.mrb[78].mxu1  ;;  %v8348_v28 = vcombine.low %v12717_v19, %v12747_v33  ;;  %v13083_v6 = vsel %vm11945_vm8, %v2020_v25, %v2021_v26  ;;  %v15825_v33 = vld [vmem:[#allocation152_spill] sm:$0xff] }
 0x276   : > { %v1773_v61 = vpop.f32.mrb[190].mxu0  ;;  %v9492_v7 = vpop.f32.mrb[79].mxu1  ;;  %v13087_v46 = vsel %vm11945_vm8, %v2023_v60, %v2024_v42  ;;  %v15827_v60 = vld [vmem:[#allocation154_spill] sm:$0xff] }
 0x277   : > { %v13073_v4 = vadd.f32 %v1773_v61, %v15822_v54  ;;  %v9296_v56 = vpop.f32.mrb[191].mxu0  ;;  %v13096_v19 = vcombine.low %v13083_v6, %v13087_v46  ;;  %v8349_v7 = vcombine.low %v12751_v48, %v12780_v35 }
 0x279   : > { %15823 = vst [vmem:[#allocation149_spill] sm:$0xff] %v13073_v4  ;;  %9424 = vmatmul.mubr.msk.bf16.gmra.mrb[40].mxu0 %vm1022_vm4, %v13064_v55  ;;  %9710 = vmatmul.mubr.msk.bf16.gmra.mrb[184].mxu1 %vm1022_vm4, %v8348_v28  ;;  %15824 = vst [vmem:[#allocation151_spill] sm:$0xff] %v13096_v19 }
 0x27a   : > { %9427 = vmatprep.mubr.msk.bf16.mxu0 %vm10974_vm1, %v15598_v29  ;;  %9713 = vmatprep.mubr.msk.bf16.mxu1 %vm10974_vm1, %v15598_v29 }
 0x27b   : > { %v13101_v25 = vpop.f32.mrb[80].mxu1 }
 0x27c   : > { %v1778_v14 = vpop.f32.mrb[192].mxu0  ;;  %v9495_v54 = vpop.f32.mrb[81].mxu1 }
 0x27d   : > { %v13099_v61 = vadd.f32 %v1778_v14, %v15825_v33  ;;  %v9299_v56 = vpop.f32.mrb[193].mxu0  ;;  %v13106_v28 = vpop.f32.mrb[82].mxu1  ;;  %v8388_v33 = vld [vmem:[%s15382_s1 + $0xc] sm:$0x3] }
 0x27e   : > { %v1781_v26 = vpop.f32.mrb[194].mxu0  ;;  %v9496_v55 = vpop.f32.mrb[83].mxu1  ;;  %v3822_v48 = vsel %vm1104_vm0, %v8388_v33, 0  ;;  %v15829_v54 = vld [vmem:[#allocation6_spill] sm:$0xff] }
 0x27f   : > { %15826 = vst [vmem:[#allocation152_spill] sm:$0xff] %v13099_v61  ;;  %v13104_v23 = vadd.f32 %v1781_v26, %v15827_v60  ;;  %v9300_v42 = vpop.f32.mrb[195].mxu0  ;;  %v15840_v61 = vld [vmem:[#allocation11_spill] sm:$0xff] }
 0x281   : > { %15828 = vst [vmem:[#allocation154_spill] sm:$0xff] %v13104_v23  ;;  %9428 = vmatmul.mubr.msk.bf16.gmra.mrb[44].mxu0 %vm1022_vm4, %v13096_v19  ;;  %9714 = vmatmul.mubr.msk.bf16.gmra.mrb[188].mxu1 %vm1022_vm4, %v8349_v7  ;;  %v15830_v7 = vld [vmem:[#allocation7_spill] sm:$0xff]  ;;  %v8350_v19 = vcombine.low %v12784_v30, %v12814_v22 }
 0x282   : > { %9543 = vmatprep.mubr.msk.bf16.mxu0 %vm10974_vm1, %v15598_v29  ;;  %9717 = vmatprep.mubr.msk.bf16.mxu1 %vm10974_vm1, %v15598_v29 }
 0x283   : > { %v13120_v60 = vpop.f32.mrb[84].mxu1 }
 0x284   : > { %v2227_v14 = vpop.f32.mrb[196].mxu0  ;;  %v9499_v35 = vpop.f32.mrb[85].mxu1 }
 0x285   : > { %v9325_v56 = vpop.f32.mrb[197].mxu0  ;;  %v13123_v55 = vpop.f32.mrb[86].mxu1  ;;  %v15831_v14 = vcombine.low %v15829_v54, %v15830_v7  ;;  %v15832_v35 = vld [vmem:[#allocation166_spill] sm:$0xff]  ;;  %v15835_v7 = vld [vmem:[#allocation9_spill] sm:$0xff] }
 0x286   : > { %v2230_v26 = vpop.f32.mrb[198].mxu0  ;;  %v9500_v23 = vpop.f32.mrb[87].mxu1 }
 0x287   : > { %v9326_v42 = vpop.f32.mrb[199].mxu0 }
 0x289   : > { %9544 = vmatmul.mubr.msk.bf16.vlgmr.msra.gmra.mrb[48].mxu0 %vm1022_vm4, %v15831_v14  ;;  %9718 = vmatmul.mubr.msk.bf16.gmra.mrb[192].mxu1 %vm1022_vm4, %v8350_v19  ;;  %v15834_v19 = vld [vmem:[#allocation8_spill] sm:$0xff] }
 0x28a   : > { %9762 = vmatpush3.bf16.msra.mxu0 %v3822_v48  ;;  %9547 = vmatprep.mubr.msk.bf16.mxu0 %vm10974_vm1, %v15598_v29  ;;  %v15836_v14 = vcombine.low %v15834_v19, %v15835_v7  ;;  %v15838_v19 = vld [vmem:[#allocation169_spill] sm:$0xff] }
 0x28b   : > { %9981 = vmatprep.subr.bf16.mxu0 %v15598_v29  ;;  %9721 = vmatprep.mubr.msk.bf16.mxu1 %vm10974_vm1, %v15598_v29  ;;  %v13137_v42 = vpop.f32.mrb[88].mxu1 }
 0x28c   : > { %v2235_v33 = vpop.f32.mrb[200].mxu0  ;;  %v9503_v22 = vpop.f32.mrb[89].mxu1 }
 0x28d   : > { %v9329_v56 = vpop.f32.mrb[201].mxu0  ;;  %v13140_v23 = vpop.f32.mrb[90].mxu1  ;;  %v8351_v33 = vcombine.low %v12818_v59, %v12848_v8 }
 0x28e   : > { %v2238_v26 = vpop.f32.mrb[202].mxu0  ;;  %v9504_v56 = vpop.f32.mrb[91].mxu1 }
 0x28f   : > { %v2445_v54 = vadd.f32 %v2238_v26, %v15832_v35  ;;  %v9330_v30 = vpop.f32.mrb[203].mxu0 }
 0x291   : > { %v13143_v48 = vadd.f32 %v12638_v5, %v2445_v54  ;;  %9548 = vmatmul.mubr.msk.bf16.gmra.mrb[52].mxu0 %vm1022_vm4, %v15836_v14  ;;  %9722 = vmatmul.mubr.msk.bf16.gmra.mrb[196].mxu1 %vm1022_vm4, %v8351_v33  ;;  %v15837_v5 = vld [vmem:[#allocation167_spill] sm:$0xff] }
 0x292   : > { %9551 = vmatprep.mubr.msk.bf16.mxu0 %vm10974_vm1, %v15598_v29  ;;  %9725 = vmatprep.mubr.msk.bf16.mxu1 %vm10974_vm1, %v15598_v29 }
 0x293   : > { %15833 = vst [vmem:[#allocation6_spill] sm:$0xff] %v13143_v48  ;;  %v13157_v22 = vpop.f32.mrb[92].mxu1  ;;  %v15839_v48 = vld [vmem:[#allocation10_spill] sm:$0xff] }
 0x294   : > { %v2243_v26 = vpop.f32.mrb[204].mxu0  ;;  %v9507_v14 = vpop.f32.mrb[93].mxu1  ;;  %v15841_v4 = vcombine.low %v15839_v48, %v15840_v61 }
 0x295   : > { %v2446_v35 = vadd.f32 %v2243_v26, %v15837_v5  ;;  %v9333_v54 = vpop.f32.mrb[205].mxu0  ;;  %v13163_v56 = vpop.f32.mrb[94].mxu1  ;;  %v8352_v26 = vcombine.low %v12852_v1, %v12881_v11  ;;  %v15844_v14 = vld [vmem:[#allocation12_spill] sm:$0xff] }
 0x296   : > { %v2246_v30 = vpop.f32.mrb[206].mxu0  ;;  %v9508_v5 = vpop.f32.mrb[95].mxu1 }
 0x297   : > { %v2447_v7 = vadd.f32 %v2246_v30, %v15838_v19  ;;  %v13161_v59 = vadd.f32 %v12666_v53, %v2446_v35  ;;  %v9334_v8 = vpop.f32.mrb[207].mxu0 }
 0x299   : > { %v13166_v33 = vadd.f32 %v12671_v12, %v2447_v7  ;;  %9552 = vmatmul.mubr.msk.bf16.gmra.mrb[56].mxu0 %vm1022_vm4, %v15841_v4  ;;  %9726 = vmatmul.mubr.msk.bf16.gmra.mrb[200].mxu1 %vm1022_vm4, %v8352_v26  ;;  %v15842_v12 = vld [vmem:[#allocation94_spill] sm:$0xff]  ;;  %v15843_v4 = vld [vmem:[#allocation115_spill] sm:$0xff]  ;;  %v15845_v26 = vld [vmem:[#allocation13_spill] sm:$0xff] }
 0x29a   : > { %9555 = vmatprep.mubr.msk.bf16.mxu0 %vm10974_vm1, %v15598_v29  ;;  %9729 = vmatprep.mubr.msk.bf16.mxu1 %vm10974_vm1, %v15598_v29  ;;  %v15846_v5 = vcombine.low %v15844_v14, %v15845_v26 }
 0x29b   : > { %v13180_v61 = vpop.f32.mrb[96].mxu1 }
 0x29c   : > { %v2251_v53 = vpop.f32.mrb[208].mxu0  ;;  %v9511_v19 = vpop.f32.mrb[97].mxu1 }
 0x29d   : > { %v2448_v35 = vadd.f32 %v2251_v53, %v15842_v12  ;;  %v9337_v54 = vpop.f32.mrb[209].mxu0  ;;  %v13186_v7 = vpop.f32.mrb[98].mxu1  ;;  %v8353_v53 = vcombine.low %v12885_v41, %v12915_v18 }
 0x29e   : > { %v2254_v30 = vpop.f32.mrb[210].mxu0  ;;  %v9512_v12 = vpop.f32.mrb[99].mxu1 }
 0x29f   : > { %v2449_v48 = vadd.f32 %v2254_v30, %v15843_v4  ;;  %v13184_v1 = vadd.f32 %v12700_v51, %v2448_v35  ;;  %v9338_v11 = vpop.f32.mrb[211].mxu0 }
 0x2a1   : > { %v13189_v8 = vadd.f32 %v12705_v13, %v2449_v48  ;;  %9556 = vmatmul.mubr.msk.bf16.gmra.mrb[60].mxu0 %vm1022_vm4, %v15846_v5  ;;  %9730 = vmatmul.mubr.msk.bf16.gmra.mrb[204].mxu1 %vm1022_vm4, %v8353_v53  ;;  %v15847_v13 = vld [vmem:[#allocation119_spill] sm:$0xff]  ;;  %v15848_v48 = vld [vmem:[#allocation66_spill] sm:$0xff]  ;;  %v15850_v53 = vld [vmem:[#allocation16_spill] sm:$0xff] }
 0x2a2   : > { %9559 = vmatprep.mubr.msk.bf16.mxu0 %vm10974_vm1, %v15598_v29  ;;  %9733 = vmatprep.mubr.msk.bf16.mxu1 %vm10974_vm1, %v15598_v29  ;;  %v15849_v5 = vld [vmem:[#allocation15_spill] sm:$0xff] }
 0x2a3   : > { %v13203_v4 = vpop.f32.mrb[100].mxu1  ;;  %v15851_v12 = vcombine.low %v15849_v5, %v15850_v53  ;;  %v15853_v53 = vld [vmem:[#allocation17_spill] sm:$0xff] }
 0x2a4   : > { %v2259_v51 = vpop.f32.mrb[212].mxu0  ;;  %v9515_v19 = vpop.f32.mrb[101].mxu1 }
 0x2a5   : > { %v2450_v35 = vadd.f32 %v2259_v51, %v15847_v13  ;;  %v9341_v54 = vpop.f32.mrb[213].mxu0  ;;  %v13209_v14 = vpop.f32.mrb[102].mxu1  ;;  %v8354_v51 = vcombine.low %v12919_v31, %v12949_v20 }
 0x2a6   : > { %v2262_v30 = vpop.f32.mrb[214].mxu0  ;;  %v9516_v13 = vpop.f32.mrb[103].mxu1 }
 0x2a7   : > { %v2451_v11 = vadd.f32 %v2262_v30, %v15848_v48  ;;  %v13207_v41 = vadd.f32 %v12734_v0, %v2450_v35  ;;  %v9342_v18 = vpop.f32.mrb[215].mxu0  ;;  %v8355_v13 = vcombine.low %v12953_v49, %v12982_v2 }
 0x2a9   : > { %v13212_v26 = vadd.f32 %v12739_v39, %v2451_v11  ;;  %9560 = vmatmul.mubr.msk.bf16.gmra.mrb[64].mxu0 %vm1022_vm4, %v15851_v12  ;;  %9734 = vmatmul.mubr.msk.bf16.gmra.mrb[208].mxu1 %vm1022_vm4, %v8354_v51  ;;  %v15852_v39 = vld [vmem:[#allocation64_spill] sm:$0xff]  ;;  %v15854_v12 = vld [vmem:[#allocation18_spill] sm:$0xff] }
 0x2aa   : > { %9563 = vmatprep.mubr.msk.bf16.mxu0 %vm10974_vm1, %v15598_v29  ;;  %9737 = vmatprep.mubr.msk.bf16.mxu1 %vm10974_vm1, %v15598_v29  ;;  %v15855_v51 = vcombine.low %v15853_v53, %v15854_v12  ;;  %v15857_v53 = vld [vmem:[#allocation21_spill] sm:$0xff] }
 0x2ab   : > { %v13226_v48 = vpop.f32.mrb[104].mxu1 }
 0x2ac   : > { %v2267_v0 = vpop.f32.mrb[216].mxu0  ;;  %v9519_v18 = vpop.f32.mrb[105].mxu1 }
 0x2ad   : > { %v2452_v35 = vadd.f32 %v2267_v0, %v15852_v39  ;;  %v9345_v54 = vpop.f32.mrb[217].mxu0  ;;  %v13232_v19 = vpop.f32.mrb[106].mxu1  ;;  %v15856_v18 = vld [vmem:[#allocation20_spill] sm:$0xff] }
 0x2ae   : > { %v2270_v30 = vpop.f32.mrb[218].mxu0  ;;  %v9520_v0 = vpop.f32.mrb[107].mxu1  ;;  %v15858_v12 = vcombine.low %v15856_v18, %v15857_v53  ;;  %v15862_v18 = vld [vmem:[#allocation24_spill] sm:$0xff] }
 0x2af   : > { %v2453_v11 = vadd.f32 %v2270_v30, %v12570_v37  ;;  %v13230_v31 = vadd.f32 %v12767_v38, %v2452_v35  ;;  %v9346_v20 = vpop.f32.mrb[219].mxu0 }
 0x2b1   : > { %v13235_v5 = vadd.f32 %v12772_v3, %v2453_v11  ;;  %9564 = vmatmul.mubr.msk.bf16.gmra.mrb[68].mxu0 %vm1022_vm4, %v15855_v51  ;;  %9738 = vmatmul.mubr.msk.bf16.gmra.mrb[212].mxu1 %vm1022_vm4, %v8355_v13 }
 0x2b2   : > { %9567 = vmatprep.mubr.msk.bf16.mxu0 %vm10974_vm1, %v15598_v29  ;;  %9741 = vmatprep.mubr.msk.bf16.mxu1 %vm10974_vm1, %v15598_v29 }
 0x2b3   : > { %v13249_v35 = vpop.f32.mrb[108].mxu1 }
 0x2b4   : > { %v2275_v37 = vpop.f32.mrb[220].mxu0  ;;  %v9523_v30 = vpop.f32.mrb[109].mxu1 }
 0x2b5   : > { %v2454_v3 = vadd.f32 %v2275_v37, %v12591_v47  ;;  %v9349_v38 = vpop.f32.mrb[221].mxu0  ;;  %v13255_v11 = vpop.f32.mrb[110].mxu1  ;;  %v8356_v47 = vcombine.low %v12986_v9, %v13016_v27  ;;  %v15861_v30 = vld [vmem:[#allocation23_spill] sm:$0xff] }
 0x2b6   : > { %v2278_v39 = vpop.f32.mrb[222].mxu0  ;;  %v9524_v51 = vpop.f32.mrb[111].mxu1  ;;  %v15863_v53 = vcombine.low %v15861_v30, %v15862_v18  ;;  %v15867_v30 = vld [vmem:[#allocation26_spill] sm:$0xff] }
 0x2b7   : > { %v2455_v54 = vadd.f32 %v2278_v39, %v12603_v44  ;;  %v13253_v49 = vadd.f32 %v12801_v34, %v2454_v3  ;;  %v9350_v2 = vpop.f32.mrb[223].mxu0  ;;  %v15860_v3 = vld [vmem:[#allocation74_spill] sm:$0xff] }
 0x2b9   : > { %v13258_v20 = vadd.f32 %v12806_v63, %v2455_v54  ;;  %9568 = vmatmul.mubr.msk.bf16.gmra.mrb[72].mxu0 %vm1022_vm4, %v15858_v12  ;;  %9742 = vmatmul.mubr.msk.bf16.gmra.mrb[216].mxu1 %vm1022_vm4, %v8356_v47  ;;  %v15859_v63 = vld [vmem:[#allocation124_spill] sm:$0xff]  ;;  %v8357_v12 = vcombine.low %v13020_v62, %v13050_v45 }
 0x2ba   : > { %9571 = vmatprep.mubr.msk.bf16.mxu0 %vm10974_vm1, %v15598_v29  ;;  %9745 = vmatprep.mubr.msk.bf16.mxu1 %vm10974_vm1, %v15598_v29 }
 0x2bb   : > { %v13272_v37 = vpop.f32.mrb[112].mxu1 }
 0x2bc   : > { %v2283_v44 = vpop.f32.mrb[224].mxu0  ;;  %v9527_v39 = vpop.f32.mrb[113].mxu1 }
 0x2bd   : > { %v2456_v34 = vadd.f32 %v2283_v44, %v15859_v63  ;;  %v9353_v13 = vpop.f32.mrb[225].mxu0  ;;  %v13278_v54 = vpop.f32.mrb[114].mxu1  ;;  %v15866_v39 = vld [vmem:[#allocation25_spill] sm:$0xff] }
 0x2be   : > { %v2286_v0 = vpop.f32.mrb[226].mxu0  ;;  %v9528_v47 = vpop.f32.mrb[115].mxu1  ;;  %v15865_v13 = vld [vmem:[#allocation102_spill] sm:$0xff]  ;;  %v15868_v18 = vcombine.low %v15866_v39, %v15867_v30 }
 0x2bf   : > { %v2457_v38 = vadd.f32 %v2286_v0, %v15860_v3  ;;  %v13276_v9 = vadd.f32 %v12835_v16, %v2456_v34  ;;  %v9354_v27 = vpop.f32.mrb[227].mxu0 }
 0x2c1   : > { %v13281_v2 = vadd.f32 %v12840_v50, %v2457_v38  ;;  %9572 = vmatmul.mubr.msk.bf16.gmra.mrb[76].mxu0 %vm1022_vm4, %v15863_v53  ;;  %9746 = vmatmul.mubr.msk.bf16.gmra.mrb[220].mxu1 %vm1022_vm4, %v8357_v12  ;;  %v15864_v50 = vld [vmem:[#allocation72_spill] sm:$0xff]  ;;  %v8358_v53 = vcombine.low %v13054_v10, %v13083_v6 }
 0x2c2   : > { %9575 = vmatprep.mubr.msk.bf16.mxu0 %vm10974_vm1, %v15598_v29  ;;  %9749 = vmatprep.mubr.msk.bf16.mxu1 %vm10974_vm1, %v15598_v29  ;;  %v15870_v6 = vld [vmem:[#allocation104_spill] sm:$0xff] }
 0x2c3   : > { %v13295_v34 = vpop.f32.mrb[116].mxu1 }
 0x2c4   : > { %v2291_v16 = vpop.f32.mrb[228].mxu0  ;;  %v9531_v3 = vpop.f32.mrb[117].mxu1 }
 0x2c5   : > { %v2458_v51 = vadd.f32 %v2291_v16, %v15864_v50  ;;  %v9357_v44 = vpop.f32.mrb[229].mxu0  ;;  %v13301_v38 = vpop.f32.mrb[118].mxu1 }
 0x2c6   : > { %v2294_v63 = vpop.f32.mrb[230].mxu0  ;;  %v9532_v12 = vpop.f32.mrb[119].mxu1  ;;  %v10882_v44 = vld [vmem:[%s11089_s15 + $0x120] sm:$0xf] }
 0x2c7   : > { %v2459_v0 = vadd.f32 %v2294_v63, %v15865_v13  ;;  %v13299_v62 = vadd.f32 %v12868_v36, %v2458_v51  ;;  %v9358_v45 = vpop.f32.mrb[231].mxu0  ;;  %v8332_v63 = vrot.slane %v10882_v44, 9  ;;  %v10883_v13 = vld [vmem:[%s11089_s15 + $0x124] sm:$0xf]  ;;  %v15873_v12 = vld [vmem:[#allocation27_spill] sm:$0xff] }
 0x2c8   : > { %v3374_v10 = vrot.slane %v10883_v13, 5  ;;  %v13349_v44 = vld [vmem:[%s11089_s15 + $0x12c] sm:$0x1] }
 0x2c9   : > { %v13304_v27 = vadd.f32 %v12873_v57, %v2459_v0  ;;  %9576 = vmatmul.mubr.msk.bf16.gmra.mrb[80].mxu0 %vm1022_vm4, %v15868_v18  ;;  %9750 = vmatmul.mubr.msk.bf16.gmra.mrb[224].mxu1 %vm1022_vm4, %v8358_v53  ;;  %v15869_v57 = vld [vmem:[#allocation77_spill] sm:$0xff] }
 0x2ca   : > { %9579 = vmatprep.mubr.msk.bf16.mxu0 %vm10974_vm1, %v15598_v29  ;;  %9753 = vmatprep.mubr.msk.bf16.mxu1 %vm10974_vm1, %v15598_v29  ;;  %v13328_v30 = vsel %vm11945_vm8, %v8332_v63, %v3374_v10  ;;  %v15876_v63 = vld [vmem:[#allocation106_spill] sm:$0xff] }
 0x2cb   : > { %v13318_v51 = vpop.f32.mrb[120].mxu1  ;;  %15871 = vst [vmem:[#allocation7_spill] sm:$0xff] %v13328_v30 }
 0x2cc   : > { %v2299_v36 = vpop.f32.mrb[232].mxu0  ;;  %v9535_v39 = vpop.f32.mrb[121].mxu1 }
 0x2cd   : > { %v2460_v47 = vadd.f32 %v2299_v36, %v15869_v57  ;;  %v9361_v16 = vpop.f32.mrb[233].mxu0  ;;  %v2852_v18 = vpop.f32.mrb[122].mxu1  ;;  %v15874_v36 = vld [vmem:[#allocation28_spill] sm:$0xff]  ;;  %v3380_v39 = vrot.slane %v13349_v44, 5 }
 0x2ce   : > { %v2302_v50 = vpop.f32.mrb[234].mxu0  ;;  %v15875_v57 = vcombine.low %v15873_v12, %v15874_v36  ;;  %v8359_v16 = vcombine.low %v13087_v46, %v13328_v30  ;;  %v15877_v12 = vld [vmem:[#allocation109_spill] sm:$0xff] }
 0x2cf   : > { %v2461_v0 = vadd.f32 %v2302_v50, %v15870_v6  ;;  %v13324_v45 = vadd.f32 %v12902_v40, %v2460_v47  ;;  %v9362_v3 = vpop.f32.mrb[235].mxu0  ;;  %v9536_v40 = vpop.f32.mrb[123].mxu1 }
 0x2d1   : > { %v13331_v53 = vadd.f32 %v12907_v52, %v2461_v0  ;;  %9580 = vmatmul.mubr.msk.bf16.gmra.mrb[84].mxu0 %vm1022_vm4, %v15875_v57  ;;  %9754 = vmatmul.mubr.msk.bf16.gmra.mrb[228].mxu1 %vm1022_vm4, %v8359_v16  ;;  %v13345_v52 = vld [vmem:[%s11089_s15 + $0x128] sm:$0xf]  ;;  %v3376_v0 = vrot.slane %v3374_v10, 4 }
 0x2d2   : > { %9583 = vmatprep.mubr.msk.bf16.mxu0 %vm10974_vm1, %v15598_v29  ;;  %9757 = vmatprep.mubr.msk.bf16.mxu1 %vm10974_vm1, %v15598_v29  ;;  %v3377_v50 = vrot.slane %v13345_v52, 5 }
 0x2d3   : > { %15872 = vst [vmem:[#allocation166_spill] sm:$0xff] %v13331_v53  ;;  %v2857_v18 = vpop.f32.mrb[124].mxu1 }
 0x2d4   : > { %v2307_v47 = vpop.f32.mrb[236].mxu0  ;;  %v3379_v3 = vrot.slane %v3377_v50, 4  ;;  %v9539_v40 = vpop.f32.mrb[125].mxu1  ;;  %v13359_v53 = vsel %vm11945_vm8, %v3376_v0, %v3377_v50  ;;  %v15881_v18 = vld [vmem:[#allocation31_spill] sm:$0xff]  ;;  %v15885_v50 = vld [vmem:[#allocation174_spill] sm:$0xff] }
 0x2d5   : > { %v2462_v13 = vadd.f32 %v2307_v47, %v15876_v63  ;;  %v9365_v6 = vpop.f32.mrb[237].mxu0  ;;  %15878 = vst [vmem:[#allocation8_spill] sm:$0xff] %v13359_v53  ;;  %v2860_v10 = vpop.f32.mrb[126].mxu1  ;;  %v15884_v40 = vld [vmem:[#allocation114_spill] sm:$0xff] }
 0x2d6   : > { %v2310_v46 = vpop.f32.mrb[238].mxu0  ;;  %v13363_v47 = vsel %vm11945_vm8, %v3379_v3, %v3380_v39  ;;  %v15880_v6 = vld [vmem:[#allocation30_spill] sm:$0xff] }
 0x2d7   : > { %v2463_v36 = vadd.f32 %v2310_v46, %v15877_v12  ;;  %v13355_v57 = vadd.f32 %v12936_v24, %v2462_v13  ;;  %v9366_v16 = vpop.f32.mrb[239].mxu0  ;;  %15879 = vst [vmem:[#allocation9_spill] sm:$0xff] %v13363_v47  ;;  %v15882_v46 = vcombine.low %v15880_v6, %v15881_v18  ;;  %v8360_v24 = vcombine.low %v13359_v53, %v13363_v47  ;;  %v9540_v13 = vpop.f32.mrb[127].mxu1  ;;  %v15898_v53 = vld [vmem:[#allocation36_spill] sm:$0xff] }
 0x2d8   : > { %v15899_v30 = vcombine.low %v15897_v15, %v15898_v53  ;;  %v15902_v15 = vld [vmem:[#allocation127_spill] sm:$0xff] }
 0x2d9   : > { %v13366_v63 = vadd.f32 %v12941_v58, %v2463_v36  ;;  %9584 = vmatmul.mubr.msk.bf16.gmra.mrb[88].mxu0 %vm1022_vm4, %v15882_v46  ;;  %9758 = vmatmul.mubr.msk.bf16.gmra.mrb[232].mxu1 %vm1022_vm4, %v8360_v24  ;;  %v15883_v58 = vld [vmem:[#allocation112_spill] sm:$0xff]  ;;  %v8419_v36 = vld [vmem:[%s15382_s1 + $0xe] sm:$0x3] }
 0x2da   : > { %9587 = vmatprep.mubr.msk.bf16.mxu0 %vm10974_vm1, %v15598_v29  ;;  %9873 = vmatprep.mubr.msk.bf16.mxu1 %vm10974_vm1, %v15598_v29  ;;  %v4179_v46 = vsel %vm1104_vm0, %v8419_v36, 0 }
 0x2db   : > { %9872 = vmatpush3.bf16.msra.mxu1 %v4179_v46 }
 0x2dc   : > { %v2315_v0 = vpop.f32.mrb[240].mxu0  ;;  %v3532_v16 = vpop.f32.mrb[128].mxu1 }
 0x2dd   : > { %v2464_v3 = vadd.f32 %v2315_v0, %v15883_v58  ;;  %v9369_v39 = vpop.f32.mrb[241].mxu0  ;;  %v9655_v24 = vpop.f32.mrb[129].mxu1  ;;  %v15887_v58 = vld [vmem:[#allocation33_spill] sm:$0xff] }
 0x2de   : > { %v2318_v12 = vpop.f32.mrb[242].mxu0  ;;  %v3535_v13 = vpop.f32.mrb[130].mxu1  ;;  %v15888_v39 = vld [vmem:[#allocation34_spill] sm:$0xff]  ;;  %v15893_v24 = vld [vmem:[#allocation176_spill] sm:$0xff] }
 0x2df   : > { %v2465_v10 = vadd.f32 %v2318_v12, %v15884_v40  ;;  %v13387_v6 = vadd.f32 %v12969_v43, %v2464_v3  ;;  %v9370_v18 = vpop.f32.mrb[243].mxu0  ;;  %v15889_v47 = vcombine.low %v15887_v58, %v15888_v39  ;;  %v9656_v16 = vpop.f32.mrb[131].mxu1  ;;  %v15890_v43 = vld [vmem:[#allocation14_spill] sm:$0xff] }
 0x2e0   : > { %v15891_v12 = vld [vmem:[#allocation118_spill] sm:$0xff]  ;;  %v15895_v16 = vld [vmem:[#allocation177_spill] sm:$0xff] }
 0x2e1   : > { %v13391_v0 = vadd.f32 %v15885_v50, %v2465_v10  ;;  %9588 = vmatmul.mubr.msk.bf16.gmra.mrb[92].mxu0 %vm1022_vm4, %v15889_v47  ;;  %9874 = vmatmul.mubr.msk.bf16.vlgmr.msra.gmra.mrb[236].mxu1 %vm1022_vm4, %v15890_v43  ;;  %v15892_v18 = vld [vmem:[#allocation122_spill] sm:$0xff] }
 0x2e2   : > { %9591 = vmatprep.mubr.msk.bf16.mxu0 %vm10974_vm1, %v15598_v29  ;;  %9877 = vmatprep.mubr.msk.bf16.mxu1 %vm10974_vm1, %v15598_v29 }
 0x2e3   : > { %15886 = vst [vmem:[#allocation167_spill] sm:$0xff] %v13391_v0 }
 0x2e4   : > { %v2323_v3 = vpop.f32.mrb[244].mxu0  ;;  %v3540_v10 = vpop.f32.mrb[132].mxu1 }
 0x2e5   : > { %v2466_v36 = vadd.f32 %v2323_v3, %v15891_v12  ;;  %v9373_v50 = vpop.f32.mrb[245].mxu0  ;;  %v9659_v58 = vpop.f32.mrb[133].mxu1  ;;  %v15900_v12 = vld [vmem:[#allocation19_spill] sm:$0xff] }
 0x2e6   : > { %v2326_v40 = vpop.f32.mrb[246].mxu0  ;;  %v13408_v39 = vpop.f32.mrb[134].mxu1  ;;  %v15901_v50 = vld [vmem:[#allocation123_spill] sm:$0xff] }
 0x2e7   : > { %v2467_v46 = vadd.f32 %v2326_v40, %v15892_v18  ;;  %v13406_v47 = vadd.f32 %v15893_v24, %v2466_v36  ;;  %v9374_v13 = vpop.f32.mrb[247].mxu0  ;;  %v9660_v3 = vpop.f32.mrb[135].mxu1 }
 0x2e8   : > { %v15905_v3 = vld [vmem:[#allocation180_spill] sm:$0xff] }
 0x2e9   : > { %15894 = vst [vmem:[#allocation169_spill] sm:$0xff] %v13406_v47  ;;  %v13411_v43 = vadd.f32 %v15895_v16, %v2467_v46  ;;  %9592 = vmatmul.mubr.msk.bf16.gmra.mrb[96].mxu0 %vm1022_vm4, %v15899_v30  ;;  %9878 = vmatmul.mubr.msk.bf16.gmra.mrb[240].mxu1 %vm1022_vm4, %v15900_v12  ;;  %v15903_v30 = vld [vmem:[#allocation179_spill] sm:$0xff] }
 0x2ea   : > { %9595 = vmatprep.mubr.msk.bf16.mxu0 %vm10974_vm1, %v15598_v29  ;;  %9881 = vmatprep.mubr.msk.bf16.mxu1 %vm10974_vm1, %v15598_v29  ;;  %v15908_v47 = vld [vmem:[#allocation39_spill] sm:$0xff] }
 0x2eb   : > { %15896 = vst [vmem:[#allocation10_spill] sm:$0xff] %v13411_v43  ;;  %v15907_v43 = vld [vmem:[#allocation38_spill] sm:$0xff] }
 0x2ec   : > { %v2331_v36 = vpop.f32.mrb[248].mxu0  ;;  %v13424_v46 = vpop.f32.mrb[136].mxu1  ;;  %v15909_v0 = vcombine.low %v15907_v43, %v15908_v47  ;;  %v15912_v47 = vld [vmem:[#allocation132_spill] sm:$0xff] }
 0x2ed   : > { %v2468_v40 = vadd.f32 %v2331_v36, %v15901_v50  ;;  %v9377_v10 = vpop.f32.mrb[249].mxu0  ;;  %v9663_v58 = vpop.f32.mrb[137].mxu1  ;;  %v15910_v50 = vld [vmem:[#allocation22_spill] sm:$0xff] }
 0x2ee   : > { %v2334_v18 = vpop.f32.mrb[250].mxu0  ;;  %v13430_v16 = vpop.f32.mrb[138].mxu1  ;;  %v15911_v10 = vld [vmem:[#allocation130_spill] sm:$0xff] }
 0x2ef   : > { %v2469_v53 = vadd.f32 %v2334_v18, %v15902_v15  ;;  %v13428_v24 = vadd.f32 %v15903_v30, %v2468_v40  ;;  %v9378_v13 = vpop.f32.mrb[251].mxu0  ;;  %v9664_v36 = vpop.f32.mrb[139].mxu1 }
 0x2f1   : > { %15904 = vst [vmem:[#allocation11_spill] sm:$0xff] %v13428_v24  ;;  %v13433_v12 = vadd.f32 %v15905_v3, %v2469_v53  ;;  %9596 = vmatmul.mubr.msk.bf16.gmra.mrb[100].mxu0 %vm1022_vm4, %v15909_v0  ;;  %9882 = vmatmul.mubr.msk.bf16.gmra.mrb[244].mxu1 %vm1022_vm4, %v15910_v50  ;;  %v15915_v50 = vld [vmem:[#allocation40_spill] sm:$0xff] }
 0x2f2   : > { %9599 = vmatprep.mubr.msk.bf16.mxu0 %vm10974_vm1, %v15598_v29  ;;  %9885 = vmatprep.mubr.msk.bf16.mxu1 %vm10974_vm1, %v15598_v29 }
 0x2f3   : > { %15906 = vst [vmem:[#allocation94_spill] sm:$0xff] %v13433_v12  ;;  %v15916_v12 = vld [vmem:[#allocation41_spill] sm:$0xff] }
 0x2f4   : > { %v2339_v40 = vpop.f32.mrb[252].mxu0  ;;  %v13446_v30 = vpop.f32.mrb[140].mxu1  ;;  %v15917_v24 = vcombine.low %v15915_v50, %v15916_v12  ;;  %v15920_v12 = vld [vmem:[#allocation136_spill] sm:$0xff] }
 0x2f5   : > { %v2470_v18 = vadd.f32 %v2339_v40, %v15911_v10  ;;  %v9381_v15 = vpop.f32.mrb[253].mxu0  ;;  %v9667_v58 = vpop.f32.mrb[141].mxu1  ;;  %v15918_v10 = vld [vmem:[#allocation29_spill] sm:$0xff] }
 0x2f6   : > { %v2342_v53 = vpop.f32.mrb[254].mxu0  ;;  %v13452_v3 = vpop.f32.mrb[142].mxu1 }
 0x2f7   : > { %v2471_v43 = vadd.f32 %v2342_v53, %v15912_v47  ;;  %v13450_v0 = vadd.f32 %v13070_v17, %v2470_v18  ;;  %v9382_v13 = vpop.f32.mrb[255].mxu0  ;;  %v9668_v40 = vpop.f32.mrb[143].mxu1  ;;  %v15919_v18 = vld [vmem:[#allocation135_spill] sm:$0xff] }
 0x2f9   : > { %15913 = vst [vmem:[#allocation115_spill] sm:$0xff] %v13450_v0  ;;  %v13455_v36 = vadd.f32 %v13075_v32, %v2471_v43  ;;  %9600 = vmatmul.mubr.msk.bf16.gmra.mrb[104].mxu0 %vm1022_vm4, %v15917_v24  ;;  %9886 = vmatmul.mubr.msk.bf16.gmra.mrb[248].mxu1 %vm1022_vm4, %v15918_v10  ;;  %v15923_v10 = vld [vmem:[#allocation43_spill] sm:$0xff] }
 0x2fa   : > { %9603 = vmatprep.mubr.msk.bf16.mxu0 %vm10974_vm1, %v15598_v29  ;;  %9889 = vmatprep.mubr.msk.bf16.mxu1 %vm10974_vm1, %v15598_v29 }
 0x2fb   : > { %15914 = vst [vmem:[#allocation12_spill] sm:$0xff] %v13455_v36  ;;  %v15924_v36 = vld [vmem:[#allocation44_spill] sm:$0xff] }
 0x2fc   : > { %v2347_v17 = vpop.f32.mrb[0].mxu0  ;;  %v13468_v47 = vpop.f32.mrb[144].mxu1  ;;  %v15925_v0 = vcombine.low %v15923_v10, %v15924_v36  ;;  %v15928_v36 = vld [vmem:[#allocation172_spill] sm:$0xff] }
 0x2fd   : > { %v2472_v15 = vadd.f32 %v2347_v17, %v15919_v18  ;;  %v9385_v32 = vpop.f32.mrb[1].mxu0  ;;  %v9671_v58 = vpop.f32.mrb[145].mxu1  ;;  %v15926_v18 = vld [vmem:[#allocation32_spill] sm:$0xff] }
 0x2fe   : > { %v2350_v53 = vpop.f32.mrb[2].mxu0  ;;  %v13474_v50 = vpop.f32.mrb[146].mxu1 }
 0x2ff   : > { %v2473_v43 = vadd.f32 %v2350_v53, %v15920_v12  ;;  %v13472_v24 = vadd.f32 %v13101_v25, %v2472_v15  ;;  %v9386_v13 = vpop.f32.mrb[3].mxu0  ;;  %v9672_v17 = vpop.f32.mrb[147].mxu1  ;;  %v15927_v15 = vld [vmem:[#allocation138_spill] sm:$0xff] }
 0x301   : > { %15921 = vst [vmem:[#allocation13_spill] sm:$0xff] %v13472_v24  ;;  %v13477_v40 = vadd.f32 %v13106_v28, %v2473_v43  ;;  %9604 = vmatmul.mubr.msk.bf16.gmra.mrb[108].mxu0 %vm1022_vm4, %v15925_v0  ;;  %9890 = vmatmul.mubr.msk.bf16.gmra.mrb[252].mxu1 %vm1022_vm4, %v15926_v18  ;;  %v15931_v18 = vld [vmem:[#allocation46_spill] sm:$0xff] }
 0x302   : > { %9607 = vmatprep.mubr.msk.bf16.mxu0 %vm10974_vm1, %v15598_v29  ;;  %9893 = vmatprep.mubr.msk.bf16.mxu1 %vm10974_vm1, %v15598_v29 }
 0x303   : > { %15922 = vst [vmem:[#allocation119_spill] sm:$0xff] %v13477_v40  ;;  %v15932_v40 = vld [vmem:[#allocation47_spill] sm:$0xff] }
 0x304   : > { %v2355_v25 = vpop.f32.mrb[4].mxu0  ;;  %v13490_v12 = vpop.f32.mrb[148].mxu1  ;;  %v15933_v24 = vcombine.low %v15931_v18, %v15932_v40  ;;  %v15936_v40 = vld [vmem:[#allocation142_spill] sm:$0xff] }
 0x305   : > { %v2474_v32 = vadd.f32 %v2355_v25, %v15927_v15  ;;  %v9389_v28 = vpop.f32.mrb[5].mxu0  ;;  %v9675_v58 = vpop.f32.mrb[149].mxu1  ;;  %v15934_v15 = vld [vmem:[#allocation37_spill] sm:$0xff] }
 0x306   : > { %v2358_v53 = vpop.f32.mrb[6].mxu0  ;;  %v13496_v10 = vpop.f32.mrb[150].mxu1 }
 0x307   : > { %v2475_v43 = vadd.f32 %v2358_v53, %v15928_v36  ;;  %v13494_v0 = vadd.f32 %v13120_v60, %v2474_v32  ;;  %v9390_v13 = vpop.f32.mrb[7].mxu0  ;;  %v9676_v25 = vpop.f32.mrb[151].mxu1  ;;  %v15935_v32 = vld [vmem:[#allocation140_spill] sm:$0xff] }
 0x308   : > { %v15938_v25 = vld [vmem:[#allocation49_spill] sm:$0xff] }
 0x309   : > { %15929 = vst [vmem:[#allocation66_spill] sm:$0xff] %v13494_v0  ;;  %v13499_v17 = vadd.f32 %v13123_v55, %v2475_v43  ;;  %9608 = vmatmul.mubr.msk.bf16.gmra.mrb[112].mxu0 %vm1022_vm4, %v15933_v24  ;;  %9894 = vmatmul.mubr.msk.bf16.gmra.mrb[0].mxu1 %vm1022_vm4, %v15934_v15  ;;  %v15939_v15 = vld [vmem:[#allocation50_spill] sm:$0xff] }
 0x30a   : > { %9611 = vmatprep.mubr.msk.bf16.mxu0 %vm10974_vm1, %v15598_v29  ;;  %9897 = vmatprep.mubr.msk.bf16.mxu1 %vm10974_vm1, %v15598_v29 }
 0x30b   : > { %15930 = vst [vmem:[#allocation15_spill] sm:$0xff] %v13499_v17  ;;  %v15940_v17 = vcombine.low %v15938_v25, %v15939_v15  ;;  %v15946_v15 = vld [vmem:[#allocation51_spill] sm:$0xff] }
 0x30c   : > { %v2363_v60 = vpop.f32.mrb[8].mxu0  ;;  %v13512_v36 = vpop.f32.mrb[152].mxu1 }
 0x30d   : > { %v2476_v28 = vadd.f32 %v2363_v60, %v15935_v32  ;;  %v9393_v55 = vpop.f32.mrb[9].mxu0  ;;  %v9679_v13 = vpop.f32.mrb[153].mxu1  ;;  %v15942_v32 = vld [vmem:[#allocation42_spill] sm:$0xff] }
 0x30e   : > { %v2366_v53 = vpop.f32.mrb[10].mxu0  ;;  %v13518_v18 = vpop.f32.mrb[154].mxu1 }
 0x30f   : > { %v2477_v43 = vadd.f32 %v2366_v53, %v15936_v40  ;;  %v9394_v24 = vpop.f32.mrb[11].mxu0  ;;  %v13516_v58 = vadd.f32 %v13137_v42, %v2476_v28  ;;  %v9680_v0 = vpop.f32.mrb[155].mxu1  ;;  %v15943_v42 = vld [vmem:[#allocation143_spill] sm:$0xff] }
 0x310   : > { %v15944_v0 = vld [vmem:[#allocation145_spill] sm:$0xff] }
 0x311   : > { %15937 = vst [vmem:[#allocation16_spill] sm:$0xff] %v13516_v58  ;;  %9612 = vmatmul.mubr.msk.bf16.gmra.mrb[116].mxu0 %vm1022_vm4, %v15940_v17  ;;  %v13525_v60 = vadd.f32 %v13140_v23, %v2477_v43  ;;  %9898 = vmatmul.mubr.msk.bf16.gmra.mrb[4].mxu1 %vm1022_vm4, %v15942_v32  ;;  %v15947_v32 = vld [vmem:[#allocation52_spill] sm:$0xff] }
 0x312   : > { %9615 = vmatprep.mubr.msk.bf16.mxu0 %vm10974_vm1, %v15598_v29  ;;  %9901 = vmatprep.mubr.msk.bf16.mxu1 %vm10974_vm1, %v15598_v29 }
 0x313   : > { %15941 = vst [vmem:[#allocation64_spill] sm:$0xff] %v13525_v60  ;;  %v15948_v60 = vcombine.low %v15946_v15, %v15947_v32  ;;  %v15954_v32 = vld [vmem:[#allocation54_spill] sm:$0xff] }
 0x314   : > { %v2371_v55 = vpop.f32.mrb[12].mxu0  ;;  %v13534_v24 = vpop.f32.mrb[156].mxu1 }
 0x315   : > { %v2478_v28 = vadd.f32 %v2371_v55, %v15943_v42  ;;  %v9397_v53 = vpop.f32.mrb[13].mxu0  ;;  %v9683_v43 = vpop.f32.mrb[157].mxu1  ;;  %v15950_v42 = vld [vmem:[#allocation45_spill] sm:$0xff] }
 0x316   : > { %v2374_v40 = vpop.f32.mrb[14].mxu0  ;;  %v13540_v25 = vpop.f32.mrb[158].mxu1 }
 0x317   : > { %v2479_v17 = vadd.f32 %v2374_v40, %v15944_v0  ;;  %v9398_v23 = vpop.f32.mrb[15].mxu0  ;;  %v13538_v13 = vadd.f32 %v13157_v22, %v2478_v28  ;;  %v9684_v58 = vpop.f32.mrb[159].mxu1  ;;  %v15951_v22 = vld [vmem:[#allocation146_spill] sm:$0xff] }
 0x318   : > { %v15952_v58 = vld [vmem:[#allocation148_spill] sm:$0xff] }
 0x319   : > { %15945 = vst [vmem:[#allocation17_spill] sm:$0xff] %v13538_v13  ;;  %9616 = vmatmul.mubr.msk.bf16.gmra.mrb[120].mxu0 %vm1022_vm4, %v15948_v60  ;;  %v13547_v55 = vadd.f32 %v13163_v56, %v2479_v17  ;;  %9902 = vmatmul.mubr.msk.bf16.gmra.mrb[8].mxu1 %vm1022_vm4, %v15950_v42  ;;  %v15955_v42 = vld [vmem:[#allocation55_spill] sm:$0xff] }
 0x31a   : > { %9619 = vmatprep.mubr.msk.bf16.mxu0 %vm10974_vm1, %v15598_v29  ;;  %9905 = vmatprep.mubr.msk.bf16.mxu1 %vm10974_vm1, %v15598_v29 }
 0x31b   : > { %15949 = vst [vmem:[#allocation18_spill] sm:$0xff] %v13547_v55  ;;  %v15956_v55 = vcombine.low %v15954_v32, %v15955_v42  ;;  %v15961_v32 = vld [vmem:[#allocation58_spill] sm:$0xff]  ;;  %v15962_v42 = vld [vmem:[#allocation59_spill] sm:$0xff] }
 0x31c   : > { %v2379_v53 = vpop.f32.mrb[16].mxu0  ;;  %v13556_v23 = vpop.f32.mrb[160].mxu1 }
 0x31d   : > { %v2480_v28 = vadd.f32 %v2379_v53, %v15951_v22  ;;  %v9401_v40 = vpop.f32.mrb[17].mxu0  ;;  %v9687_v17 = vpop.f32.mrb[161].mxu1  ;;  %v15958_v22 = vld [vmem:[#allocation48_spill] sm:$0xff] }
 0x31e   : > { %v2382_v0 = vpop.f32.mrb[18].mxu0  ;;  %v13562_v15 = vpop.f32.mrb[162].mxu1 }
 0x31f   : > { %v2481_v60 = vadd.f32 %v2382_v0, %v15952_v58  ;;  %v9402_v56 = vpop.f32.mrb[19].mxu0  ;;  %v13560_v43 = vadd.f32 %v13180_v61, %v2480_v28  ;;  %v9688_v13 = vpop.f32.mrb[163].mxu1 }
 0x320   : > { %v15959_v13 = vld [vmem:[#allocation149_spill] sm:$0xff] }
 0x321   : > { %15953 = vst [vmem:[#allocation20_spill] sm:$0xff] %v13560_v43  ;;  %9620 = vmatmul.mubr.msk.bf16.gmra.mrb[124].mxu0 %vm1022_vm4, %v15956_v55  ;;  %v13569_v53 = vadd.f32 %v13186_v7, %v2481_v60  ;;  %9906 = vmatmul.mubr.msk.bf16.gmra.mrb[12].mxu1 %vm1022_vm4, %v15958_v22  ;;  %v15963_v22 = vcombine.low %v15961_v32, %v15962_v42 }
 0x322   : > { %9623 = vmatprep.mubr.msk.bf16.mxu0 %vm10974_vm1, %v15598_v29  ;;  %9909 = vmatprep.mubr.msk.bf16.mxu1 %vm10974_vm1, %v15598_v29 }
 0x323   : > { %15957 = vst [vmem:[#allocation21_spill] sm:$0xff] %v13569_v53 }
 0x324   : > { %v2387_v40 = vpop.f32.mrb[20].mxu0  ;;  %v13578_v58 = vpop.f32.mrb[164].mxu1 }
 0x325   : > { %v2482_v61 = vadd.f32 %v2387_v40, %v13067_v21  ;;  %v9405_v28 = vpop.f32.mrb[21].mxu0  ;;  %v9691_v60 = vpop.f32.mrb[165].mxu1  ;;  %v15965_v40 = vld [vmem:[#allocation53_spill] sm:$0xff] }
 0x326   : > { %v2390_v0 = vpop.f32.mrb[22].mxu0  ;;  %v13584_v17 = vpop.f32.mrb[166].mxu1 }
 0x327   : > { %v2483_v55 = vadd.f32 %v2390_v0, %v15959_v13  ;;  %v9406_v7 = vpop.f32.mrb[23].mxu0  ;;  %v13582_v56 = vadd.f32 %v13203_v4, %v2482_v61  ;;  %v9692_v53 = vpop.f32.mrb[167].mxu1  ;;  %v15966_v4 = vld [vmem:[#allocation152_spill] sm:$0xff] }
 0x328   : > { %v15967_v53 = vld [vmem:[#allocation154_spill] sm:$0xff] }
 0x329   : > { %15960 = vst [vmem:[#allocation124_spill] sm:$0xff] %v13582_v56  ;;  %9624 = vmatmul.mubr.msk.bf16.gmra.mrb[128].mxu0 %vm1022_vm4, %v15963_v22  ;;  %v13591_v21 = vadd.f32 %v13209_v14, %v2483_v55  ;;  %9910 = vmatmul.mubr.msk.bf16.gmra.mrb[16].mxu1 %vm1022_vm4, %v15965_v40  ;;  %v15969_v22 = vld [vmem:[#allocation62_spill] sm:$0xff]  ;;  %v15970_v40 = vld [vmem:[#allocation63_spill] sm:$0xff] }
 0x32a   : > { %9627 = vmatprep.mubr.msk.bf16.mxu0 %vm10974_vm1, %v15598_v29  ;;  %9913 = vmatprep.mubr.msk.bf16.mxu1 %vm10974_vm1, %v15598_v29 }
 0x32b   : > { %15964 = vst [vmem:[#allocation74_spill] sm:$0xff] %v13591_v21  ;;  %v15971_v21 = vcombine.low %v15969_v22, %v15970_v40  ;;  %v15977_v40 = vld [vmem:[#allocation67_spill] sm:$0xff] }
 0x32c   : > { %v2395_v28 = vpop.f32.mrb[24].mxu0  ;;  %v13600_v7 = vpop.f32.mrb[168].mxu1 }
 0x32d   : > { %v2484_v61 = vadd.f32 %v2395_v28, %v15966_v4  ;;  %v9409_v0 = vpop.f32.mrb[25].mxu0  ;;  %v9695_v55 = vpop.f32.mrb[169].mxu1  ;;  %v15973_v4 = vld [vmem:[#allocation56_spill] sm:$0xff] }
 0x32e   : > { %v2398_v13 = vpop.f32.mrb[26].mxu0  ;;  %v13606_v42 = vpop.f32.mrb[170].mxu1 }
 0x32f   : > { %v2485_v60 = vadd.f32 %v2398_v13, %v15967_v53  ;;  %v9410_v14 = vpop.f32.mrb[27].mxu0  ;;  %v13604_v32 = vadd.f32 %v13226_v48, %v2484_v61  ;;  %v9696_v56 = vpop.f32.mrb[171].mxu1  ;;  %v15974_v48 = vld [vmem:[#allocation155_spill] sm:$0xff] }
 0x330   : > { %v15975_v56 = vld [vmem:[#allocation156_spill] sm:$0xff] }
 0x331   : > { %15968 = vst [vmem:[#allocation23_spill] sm:$0xff] %v13604_v32  ;;  %9628 = vmatmul.mubr.msk.bf16.gmra.mrb[132].mxu0 %vm1022_vm4, %v15971_v21  ;;  %v13613_v28 = vadd.f32 %v13232_v19, %v2485_v60  ;;  %9914 = vmatmul.mubr.msk.bf16.gmra.mrb[20].mxu1 %vm1022_vm4, %v15973_v4  ;;  %v15978_v4 = vld [vmem:[#allocation68_spill] sm:$0xff] }
 0x332   : > { %9631 = vmatprep.mubr.msk.bf16.mxu0 %vm10974_vm1, %v15598_v29  ;;  %9917 = vmatprep.mubr.msk.bf16.mxu1 %vm10974_vm1, %v15598_v29 }
 0x333   : > { %15972 = vst [vmem:[#allocation24_spill] sm:$0xff] %v13613_v28  ;;  %v15979_v28 = vcombine.low %v15977_v40, %v15978_v4  ;;  %v15985_v4 = vld [vmem:[#allocation70_spill] sm:$0xff] }
 0x334   : > { %v2403_v0 = vpop.f32.mrb[28].mxu0  ;;  %v13622_v14 = vpop.f32.mrb[172].mxu1 }
 0x335   : > { %v2486_v61 = vadd.f32 %v2403_v0, %v15974_v48  ;;  %v9413_v13 = vpop.f32.mrb[29].mxu0  ;;  %v9699_v60 = vpop.f32.mrb[173].mxu1  ;;  %v15981_v48 = vld [vmem:[#allocation61_spill] sm:$0xff] }
 0x336   : > { %v2406_v53 = vpop.f32.mrb[30].mxu0  ;;  %v13628_v22 = vpop.f32.mrb[174].mxu1 }
 0x337   : > { %v2487_v21 = vadd.f32 %v2406_v53, %v15975_v56  ;;  %v9414_v19 = vpop.f32.mrb[31].mxu0  ;;  %v13626_v55 = vadd.f32 %v13249_v35, %v2486_v61  ;;  %v9700_v32 = vpop.f32.mrb[175].mxu1  ;;  %v15982_v35 = vld [vmem:[#allocation157_spill] sm:$0xff] }
 0x338   : > { %v15983_v32 = vld [vmem:[#allocation158_spill] sm:$0xff] }
 0x339   : > { %15976 = vst [vmem:[#allocation72_spill] sm:$0xff] %v13626_v55  ;;  %9632 = vmatmul.mubr.msk.bf16.gmra.mrb[136].mxu0 %vm1022_vm4, %v15979_v28  ;;  %v13635_v0 = vadd.f32 %v13255_v11, %v2487_v21  ;;  %9918 = vmatmul.mubr.msk.bf16.gmra.mrb[24].mxu1 %vm1022_vm4, %v15981_v48  ;;  %v15986_v48 = vld [vmem:[#allocation71_spill] sm:$0xff] }
 0x33a   : > { %9635 = vmatprep.mubr.msk.bf16.mxu0 %vm10974_vm1, %v15598_v29  ;;  %9921 = vmatprep.mubr.msk.bf16.mxu1 %vm10974_vm1, %v15598_v29 }
 0x33b   : > { %15980 = vst [vmem:[#allocation102_spill] sm:$0xff] %v13635_v0  ;;  %v15987_v0 = vcombine.low %v15985_v4, %v15986_v48 }
 0x33c   : > { %v2411_v13 = vpop.f32.mrb[32].mxu0  ;;  %v13644_v19 = vpop.f32.mrb[176].mxu1 }
 0x33d   : > { %v2488_v61 = vadd.f32 %v2411_v13, %v15982_v35  ;;  %v9417_v53 = vpop.f32.mrb[33].mxu0  ;;  %v9703_v21 = vpop.f32.mrb[177].mxu1  ;;  %v2942_v35 = vshrl.u32 %v13345_v52, 16 }
 0x33e   : > { %v2414_v56 = vpop.f32.mrb[34].mxu0  ;;  %v13650_v40 = vpop.f32.mrb[178].mxu1  ;;  %v15989_v53 = vld [vmem:[#allocation69_spill] sm:$0xff] }
 0x33f   : > { %v2489_v28 = vadd.f32 %v2414_v56, %v15983_v32  ;;  %v9418_v11 = vpop.f32.mrb[35].mxu0  ;;  %v13648_v60 = vadd.f32 %v13272_v37, %v2488_v61  ;;  %v9704_v55 = vpop.f32.mrb[179].mxu1  ;;  %v15990_v61 = vld [vmem:[#allocation159_spill] sm:$0xff] }
 0x341   : > { %15984 = vst [vmem:[#allocation25_spill] sm:$0xff] %v13648_v60  ;;  %9636 = vmatmul.mubr.msk.bf16.gmra.mrb[140].mxu0 %vm1022_vm4, %v15987_v0  ;;  %v13657_v13 = vadd.f32 %v13278_v54, %v2489_v28  ;;  %9922 = vmatmul.mubr.msk.bf16.gmra.mrb[28].mxu1 %vm1022_vm4, %v15989_v53  ;;  %v2944_v0 = vrot.slane %v2942_v35, 4  ;;  %v15991_v54 = vld [vmem:[#allocation160_spill] sm:$0xff]  ;;  %v15993_v53 = vld [vmem:[#allocation78_spill] sm:$0xff] }
 0x342   : > { %9639 = vmatprep.mubr.msk.bf16.mxu0 %vm10974_vm1, %v15598_v29  ;;  %9925 = vmatprep.mubr.msk.bf16.mxu1 %vm10974_vm1, %v15598_v29 }
 0x343   : > { %15988 = vst [vmem:[#allocation26_spill] sm:$0xff] %v13657_v13  ;;  %v15994_v13 = vld [vmem:[#allocation79_spill] sm:$0xff] }
 0x344   : > { %v2419_v37 = vpop.f32.mrb[36].mxu0  ;;  %v13667_v11 = vpop.f32.mrb[180].mxu1  ;;  %v15995_v60 = vcombine.low %v15993_v53, %v15994_v13  ;;  %v15999_v13 = vld [vmem:[#allocation82_spill] sm:$0xff] }
 0x345   : > { %v2490_v56 = vadd.f32 %v2419_v37, %v15990_v61  ;;  %v9421_v32 = vpop.f32.mrb[37].mxu0  ;;  %v9707_v21 = vpop.f32.mrb[181].mxu1  ;;  %v15997_v61 = vld [vmem:[#allocation81_spill] sm:$0xff] }
 0x346   : > { %v2422_v55 = vpop.f32.mrb[38].mxu0  ;;  %v13673_v48 = vpop.f32.mrb[182].mxu1  ;;  %v2945_v32 = vor.u32 %v2944_v0, %v15997_v61 }
 0x347   : > { %v2491_v28 = vadd.f32 %v2422_v55, %v15991_v54  ;;  %v9422_v52 = vpop.f32.mrb[39].mxu0  ;;  %v13671_v4 = vadd.f32 %v13295_v34, %v2490_v56  ;;  %v9708_v37 = vpop.f32.mrb[183].mxu1  ;;  %v2948_v55 = vshll.u32 %v13349_v44, 16  ;;  %v15998_v34 = vld [vmem:[#allocation75_spill] sm:$0xff] }
 0x348   : > { %v2946_v21 = vrot.slane %v2945_v32, 4  ;;  %v16004_v32 = vld [vmem:[#allocation80_spill] sm:$0xff] }
 0x349   : > { %15992 = vst [vmem:[#allocation77_spill] sm:$0xff] %v13671_v4  ;;  %9640 = vmatmul.mubr.msk.bf16.gmra.mrb[144].mxu0 %vm1022_vm4, %v15995_v60  ;;  %v13680_v35 = vadd.f32 %v13301_v38, %v2491_v28  ;;  %9926 = vmatmul.mubr.msk.bf16.gmra.mrb[32].mxu1 %vm1022_vm4, %v15998_v34  ;;  %v16000_v60 = vld [vmem:[#allocation92_spill] sm:$0xff]  ;;  %v16001_v38 = vld [vmem:[#allocation161_spill] sm:$0xff]  ;;  %v2950_v0 = vrot.slane %v2948_v55, 5 }
 0x34a   : > { %9643 = vmatprep.mubr.msk.bf16.mxu0 %vm10974_vm1, %v15598_v29  ;;  %9929 = vmatprep.mubr.msk.bf16.mxu1 %vm10974_vm1, %v15598_v29  ;;  %v8303_v54 = vcombine.low %v16000_v60, %v15999_v13 }
 0x34b   : > { %15996 = vst [vmem:[#allocation104_spill] sm:$0xff] %v13680_v35  ;;  %v13703_v60 = vsel %vm11100_vm5, %v2946_v21, %v2950_v0 }
 0x34c   : > { %v2427_v56 = vpop.f32.mrb[40].mxu0  ;;  %v13693_v44 = vpop.f32.mrb[184].mxu1 }
 0x34d   : > { %v9425_v52 = vpop.f32.mrb[41].mxu0  ;;  %v2492_v28 = vadd.f32 %v2427_v56, %v16001_v38  ;;  %v9711_v34 = vpop.f32.mrb[185].mxu1 }
 0x34e   : > { %v2430_v53 = vpop.f32.mrb[42].mxu0  ;;  %v13698_v35 = vpop.f32.mrb[186].mxu1  ;;  %v8451_v34 = vld [vmem:[%s15382_s1 + $0x10] sm:$0x3] }
 0x34f   : > { %v13696_v37 = vadd.f32 %v13318_v51, %v2492_v28  ;;  %v9426_v61 = vpop.f32.mrb[43].mxu0  ;;  %v9712_v4 = vpop.f32.mrb[187].mxu1  ;;  %v16005_v51 = vld [vmem:[#allocation83_spill] sm:$0xff]  ;;  %v16006_v53 = vld [vmem:[#allocation84_spill] sm:$0xff] }
 0x350   : > { %v8304_v56 = vcombine.low %v16005_v51, %v13703_v60 }
 0x351   : > { %16002 = vst [vmem:[#allocation27_spill] sm:$0xff] %v13696_v37  ;;  %9644 = vmatmul.mubr.msk.bf16.gmra.mrb[148].mxu0 %vm1022_vm4, %v8303_v54  ;;  %9930 = vmatmul.mubr.msk.bf16.gmra.mrb[36].mxu1 %vm1022_vm4, %v16004_v32  ;;  %v16011_v37 = vld [vmem:[#allocation6_spill] sm:$0xff] }
 0x352   : > { %9647 = vmatprep.mubr.msk.bf16.mxu0 %vm10974_vm1, %v15598_v29  ;;  %9933 = vmatprep.mubr.msk.bf16.mxu1 %vm10974_vm1, %v15598_v29 }
 0x354   : > { %v2435_v55 = vpop.f32.mrb[44].mxu0  ;;  %v13713_v4 = vpop.f32.mrb[188].mxu1 }
 0x355   : > { %v9429_v52 = vpop.f32.mrb[45].mxu0  ;;  %v9715_v28 = vpop.f32.mrb[189].mxu1 }
 0x356   : > { %v2438_v54 = vpop.f32.mrb[46].mxu0  ;;  %v13715_v21 = vpop.f32.mrb[190].mxu1 }
 0x357   : > { %v9430_v38 = vpop.f32.mrb[47].mxu0  ;;  %v9716_v0 = vpop.f32.mrb[191].mxu1  ;;  %v4513_v54 = vsel %vm1104_vm0, %v8451_v34, 0 }
 0x358   : > { %v16009_v0 = vld [vmem:[#allocation95_spill] sm:$0xff] }
 0x359   : > { %9648 = vmatmul.mubr.msk.bf16.gmra.mrb[152].mxu0 %vm1022_vm4, %v8304_v56  ;;  %9934 = vmatmul.mubr.msk.bf16.gmra.mrb[40].mxu1 %vm1022_vm4, %v16006_v53 }
 0x35a   : > { %9763 = vmatprep.mubr.msk.bf16.mxu0 %vm10974_vm1, %v15598_v29  ;;  %9937 = vmatprep.mubr.msk.bf16.mxu1 %vm10974_vm1, %v15598_v29 }
 0x35c   : > { %v3102_v61 = vpop.f32.mrb[48].mxu0  ;;  %v13727_v52 = vpop.f32.mrb[192].mxu1 }
 0x35d   : > { %v9545_v32 = vpop.f32.mrb[49].mxu0  ;;  %16007 = vst [vmem:[#allocation28_spill] sm:$0xff] %v13727_v52  ;;  %v9719_v38 = vpop.f32.mrb[193].mxu1  ;;  %v16010_v61 = vld [vmem:[#allocation85_spill] sm:$0xff]  ;;  %v16014_v52 = vld [vmem:[#allocation98_spill] sm:$0xff] }
 0x35e   : > { %v3105_v55 = vpop.f32.mrb[50].mxu0  ;;  %v13730_v28 = vpop.f32.mrb[194].mxu1 }
 0x35f   : > { %v9546_v56 = vpop.f32.mrb[51].mxu0  ;;  %16008 = vst [vmem:[#allocation106_spill] sm:$0xff] %v13730_v28  ;;  %v9720_v53 = vpop.f32.mrb[195].mxu1 }
 0x361   : > { %9764 = vmatmul.mubr.msk.bf16.vlgmr.msra.gmra.mrb[156].mxu0 %vm1022_vm4, %v16009_v0  ;;  %9938 = vmatmul.mubr.msk.bf16.gmra.mrb[44].mxu1 %vm1022_vm4, %v16010_v61 }
 0x362   : > { %9982 = vmatpush3.bf16.msra.mxu0 %v4513_v54  ;;  %9767 = vmatprep.mubr.msk.bf16.mxu0 %vm10974_vm1, %v15598_v29 }
 0x363   : > { %9941 = vmatprep.mubr.msk.bf16.mxu1 %vm10974_vm1, %v15598_v29 }
 0x364   : > { %v3110_v32 = vpop.f32.mrb[52].mxu0  ;;  %v13740_v56 = vpop.f32.mrb[196].mxu1 }
 0x365   : > { %v9549_v55 = vpop.f32.mrb[53].mxu0  ;;  %v9723_v0 = vpop.f32.mrb[197].mxu1  ;;  %v16015_v32 = vld [vmem:[#allocation86_spill] sm:$0xff] }
 0x366   : > { %v3113_v34 = vpop.f32.mrb[54].mxu0  ;;  %v13743_v53 = vpop.f32.mrb[198].mxu1 }
 0x367   : > { %v9550_v38 = vpop.f32.mrb[55].mxu0  ;;  %v3320_v28 = vadd.f32 %v3113_v34, %v16011_v37  ;;  %16012 = vst [vmem:[#allocation109_spill] sm:$0xff] %v13743_v53  ;;  %v9724_v61 = vpop.f32.mrb[199].mxu1  ;;  %v16017_v53 = vld [vmem:[#allocation101_spill] sm:$0xff] }
 0x369   : > { %v13746_v54 = vadd.f32 %v13408_v39, %v3320_v28  ;;  %9768 = vmatmul.mubr.msk.bf16.gmra.mrb[160].mxu0 %vm1022_vm4, %v16014_v52  ;;  %9942 = vmatmul.mubr.msk.bf16.gmra.mrb[48].mxu1 %vm1022_vm4, %v16015_v32 }
 0x36a   : > { %9771 = vmatprep.mubr.msk.bf16.mxu0 %vm10974_vm1, %v15598_v29  ;;  %9945 = vmatprep.mubr.msk.bf16.mxu1 %vm10974_vm1, %v15598_v29 }
 0x36b   : > { %16013 = vst [vmem:[#allocation30_spill] sm:$0xff] %v13746_v54 }
 0x36c   : > { %v3118_v55 = vpop.f32.mrb[56].mxu0  ;;  %v13757_v39 = vpop.f32.mrb[200].mxu1 }
 0x36d   : > { %v9553_v37 = vpop.f32.mrb[57].mxu0  ;;  %v3321_v34 = vadd.f32 %v3118_v55, %v13161_v59  ;;  %v9727_v61 = vpop.f32.mrb[201].mxu1  ;;  %v16018_v59 = vld [vmem:[#allocation87_spill] sm:$0xff] }
 0x36e   : > { %v3121_v38 = vpop.f32.mrb[58].mxu0  ;;  %v13763_v54 = vpop.f32.mrb[202].mxu1 }
 0x36f   : > { %v13760_v28 = vadd.f32 %v13424_v46, %v3321_v34  ;;  %v9554_v52 = vpop.f32.mrb[59].mxu0  ;;  %v3322_v0 = vadd.f32 %v3121_v38, %v13166_v33  ;;  %v9728_v37 = vpop.f32.mrb[203].mxu1 }
 0x371   : > { %v13766_v32 = vadd.f32 %v13430_v16, %v3322_v0  ;;  %9772 = vmatmul.mubr.msk.bf16.gmra.mrb[164].mxu0 %vm1022_vm4, %v16017_v53  ;;  %9946 = vmatmul.mubr.msk.bf16.gmra.mrb[52].mxu1 %vm1022_vm4, %v16018_v59  ;;  %v16021_v59 = vld [vmem:[#allocation105_spill] sm:$0xff] }
 0x372   : > { %9775 = vmatprep.mubr.msk.bf16.mxu0 %vm10974_vm1, %v15598_v29  ;;  %9949 = vmatprep.mubr.msk.bf16.mxu1 %vm10974_vm1, %v15598_v29 }
 0x373   : > { %16016 = vst [vmem:[#allocation31_spill] sm:$0xff] %v13766_v32 }
 0x374   : > { %v3126_v46 = vpop.f32.mrb[60].mxu0  ;;  %v13777_v16 = vpop.f32.mrb[204].mxu1 }
 0x375   : > { %v9557_v33 = vpop.f32.mrb[61].mxu0  ;;  %v3323_v55 = vadd.f32 %v3126_v46, %v13184_v1  ;;  %v9731_v0 = vpop.f32.mrb[205].mxu1  ;;  %v16022_v1 = vld [vmem:[#allocation88_spill] sm:$0xff] }
 0x376   : > { %v3129_v34 = vpop.f32.mrb[62].mxu0  ;;  %v13783_v61 = vpop.f32.mrb[206].mxu1 }
 0x377   : > { %v13780_v38 = vadd.f32 %v13446_v30, %v3323_v55  ;;  %v9558_v53 = vpop.f32.mrb[63].mxu0  ;;  %v3324_v52 = vadd.f32 %v3129_v34, %v13189_v8  ;;  %v9732_v33 = vpop.f32.mrb[207].mxu1 }
 0x379   : > { %16019 = vst [vmem:[#allocation112_spill] sm:$0xff] %v13780_v38  ;;  %v13786_v37 = vadd.f32 %v13452_v3, %v3324_v52  ;;  %9776 = vmatmul.mubr.msk.bf16.gmra.mrb[168].mxu0 %vm1022_vm4, %v16021_v59  ;;  %9950 = vmatmul.mubr.msk.bf16.gmra.mrb[56].mxu1 %vm1022_vm4, %v16022_v1  ;;  %v16025_v1 = vld [vmem:[#allocation108_spill] sm:$0xff] }
 0x37a   : > { %9779 = vmatprep.mubr.msk.bf16.mxu0 %vm10974_vm1, %v15598_v29  ;;  %9953 = vmatprep.mubr.msk.bf16.mxu1 %vm10974_vm1, %v15598_v29 }
 0x37b   : > { %16020 = vst [vmem:[#allocation114_spill] sm:$0xff] %v13786_v37 }
 0x37c   : > { %v3134_v30 = vpop.f32.mrb[64].mxu0  ;;  %v13797_v3 = vpop.f32.mrb[208].mxu1 }
 0x37d   : > { %v9561_v8 = vpop.f32.mrb[65].mxu0  ;;  %v3325_v46 = vadd.f32 %v3134_v30, %v13207_v41  ;;  %v9735_v0 = vpop.f32.mrb[209].mxu1  ;;  %v16026_v41 = vld [vmem:[#allocation89_spill] sm:$0xff] }
 0x37e   : > { %v3137_v55 = vpop.f32.mrb[66].mxu0  ;;  %v13803_v59 = vpop.f32.mrb[210].mxu1 }
 0x37f   : > { %v13800_v34 = vadd.f32 %v13468_v47, %v3325_v46  ;;  %v9562_v53 = vpop.f32.mrb[67].mxu0  ;;  %v3326_v52 = vadd.f32 %v3137_v55, %v13212_v26  ;;  %v9736_v8 = vpop.f32.mrb[211].mxu1 }
 0x381   : > { %16023 = vst [vmem:[#allocation174_spill] sm:$0xff] %v13800_v34  ;;  %v13806_v33 = vadd.f32 %v13474_v50, %v3326_v52  ;;  %9780 = vmatmul.mubr.msk.bf16.gmra.mrb[172].mxu0 %vm1022_vm4, %v16025_v1  ;;  %9954 = vmatmul.mubr.msk.bf16.gmra.mrb[60].mxu1 %vm1022_vm4, %v16026_v41  ;;  %v16029_v41 = vld [vmem:[#allocation111_spill] sm:$0xff] }
 0x382   : > { %9783 = vmatprep.mubr.msk.bf16.mxu0 %vm10974_vm1, %v15598_v29  ;;  %9957 = vmatprep.mubr.msk.bf16.mxu1 %vm10974_vm1, %v15598_v29 }
 0x383   : > { %16024 = vst [vmem:[#allocation33_spill] sm:$0xff] %v13806_v33 }
 0x384   : > { %v3142_v47 = vpop.f32.mrb[68].mxu0  ;;  %v13817_v50 = vpop.f32.mrb[212].mxu1 }
 0x385   : > { %v9565_v26 = vpop.f32.mrb[69].mxu0  ;;  %v3327_v30 = vadd.f32 %v3142_v47, %v13230_v31  ;;  %v9739_v0 = vpop.f32.mrb[213].mxu1  ;;  %v16030_v47 = vld [vmem:[#allocation90_spill] sm:$0xff] }
 0x386   : > { %v3145_v46 = vpop.f32.mrb[70].mxu0  ;;  %v13823_v1 = vpop.f32.mrb[214].mxu1 }
 0x387   : > { %v13820_v55 = vadd.f32 %v13490_v12, %v3327_v30  ;;  %v9566_v53 = vpop.f32.mrb[71].mxu0  ;;  %v3328_v52 = vadd.f32 %v3145_v46, %v13235_v5  ;;  %v9740_v31 = vpop.f32.mrb[215].mxu1 }
 0x388   : > { %v13846_v31 = vld [vmem:[%s11089_s15 + $0x130] sm:$0xf] }
 0x389   : > { %16027 = vst [vmem:[#allocation34_spill] sm:$0xff] %v13820_v55  ;;  %v13826_v8 = vadd.f32 %v13496_v10, %v3328_v52  ;;  %9784 = vmatmul.mubr.msk.bf16.gmra.mrb[176].mxu0 %vm1022_vm4, %v16029_v41  ;;  %9958 = vmatmul.mubr.msk.bf16.gmra.mrb[64].mxu1 %vm1022_vm4, %v16030_v47 }
 0x38a   : > { %9787 = vmatprep.mubr.msk.bf16.mxu0 %vm10974_vm1, %v15598_v29  ;;  %9961 = vmatprep.mubr.msk.bf16.mxu1 %vm10974_vm1, %v15598_v29 }
 0x38b   : > { %16028 = vst [vmem:[#allocation14_spill] sm:$0xff] %v13826_v8 }
 0x38c   : > { %v3150_v12 = vpop.f32.mrb[72].mxu0  ;;  %v13837_v30 = vpop.f32.mrb[216].mxu1 }
 0x38d   : > { %v9569_v5 = vpop.f32.mrb[73].mxu0  ;;  %v3329_v26 = vadd.f32 %v3150_v12, %v13253_v49  ;;  %v9743_v0 = vpop.f32.mrb[217].mxu1  ;;  %v4131_v12 = vshll.u32 %v13846_v31, 16 }
 0x38e   : > { %v3153_v10 = vpop.f32.mrb[74].mxu0  ;;  %v13843_v41 = vpop.f32.mrb[218].mxu1  ;;  %v16033_v5 = vld [vmem:[#allocation116_spill] sm:$0xff] }
 0x38f   : > { %v13840_v46 = vadd.f32 %v13512_v36, %v3329_v26  ;;  %v9570_v53 = vpop.f32.mrb[75].mxu0  ;;  %v3330_v52 = vadd.f32 %v3153_v10, %v13258_v20  ;;  %v9744_v49 = vpop.f32.mrb[219].mxu1  ;;  %v16034_v36 = vld [vmem:[#allocation91_spill] sm:$0xff]  ;;  %v4128_v20 = vshrl.u32 %v13846_v31, 16  ;;  %v4133_v8 = vrot.slane %v4131_v12, 5 }
 0x391   : > { %16031 = vst [vmem:[#allocation118_spill] sm:$0xff] %v13840_v46  ;;  %v13849_v47 = vadd.f32 %v13518_v18, %v3330_v52  ;;  %9788 = vmatmul.mubr.msk.bf16.gmra.mrb[180].mxu0 %vm1022_vm4, %v16033_v5  ;;  %9962 = vmatmul.mubr.msk.bf16.gmra.mrb[68].mxu1 %vm1022_vm4, %v16034_v36  ;;  %v4130_v46 = vrot.slane %v4128_v20, 4 }
 0x392   : > { %9791 = vmatprep.mubr.msk.bf16.mxu0 %vm10974_vm1, %v15598_v29  ;;  %9965 = vmatprep.mubr.msk.bf16.mxu1 %vm10974_vm1, %v15598_v29 }
 0x393   : > { %16032 = vst [vmem:[#allocation122_spill] sm:$0xff] %v13849_v47  ;;  %v13869_v47 = vld [vmem:[%s11089_s15 + $0x134] sm:$0xf]  ;;  %v4134_v20 = vor.u32 %v4133_v8, %v4130_v46 }
 0x394   : > { %v3158_v26 = vpop.f32.mrb[76].mxu0  ;;  %v13862_v52 = vpop.f32.mrb[220].mxu1  ;;  %v4141_v12 = vshrl.u32 %v13869_v47, 16 }
 0x395   : > { %v9573_v18 = vpop.f32.mrb[77].mxu0  ;;  %v3331_v10 = vadd.f32 %v3158_v26, %v13276_v9  ;;  %v9747_v36 = vpop.f32.mrb[221].mxu1  ;;  %v16037_v9 = vld [vmem:[#allocation121_spill] sm:$0xff]  ;;  %v4135_v33 = vrot.slane %v4134_v20, 4 }
 0x396   : > { %v3161_v53 = vpop.f32.mrb[78].mxu0  ;;  %v13871_v55 = vpop.f32.mrb[222].mxu1  ;;  %v4143_v34 = vrot.slane %v4141_v12, 4 }
 0x397   : > { %v13865_v0 = vadd.f32 %v13534_v24, %v3331_v10  ;;  %v9574_v5 = vpop.f32.mrb[79].mxu0  ;;  %v3332_v49 = vadd.f32 %v3161_v53, %v13281_v2  ;;  %v9748_v26 = vpop.f32.mrb[223].mxu1  ;;  %v13881_v24 = vld [vmem:[%s11089_s15 + $0x138] sm:$0xf]  ;;  %v4137_v2 = vshll.u32 %v13869_v47, 16  ;;  %v16038_v10 = vld [vmem:[#allocation93_spill] sm:$0xff] }
 0x398   : > { %v4151_v53 = vshrl.u32 %v13881_v24, 16 }
 0x399   : > { %16035 = vst [vmem:[#allocation176_spill] sm:$0xff] %v13865_v0  ;;  %v13874_v18 = vadd.f32 %v13540_v25, %v3332_v49  ;;  %9792 = vmatmul.mubr.msk.bf16.gmra.mrb[184].mxu0 %vm1022_vm4, %v16037_v9  ;;  %9966 = vmatmul.mubr.msk.bf16.gmra.mrb[72].mxu1 %vm1022_vm4, %v16038_v10  ;;  %v4147_v25 = vshll.u32 %v13881_v24, 16 }
 0x39a   : > { %9795 = vmatprep.mubr.msk.bf16.mxu0 %vm10974_vm1, %v15598_v29  ;;  %9969 = vmatprep.mubr.msk.bf16.mxu1 %vm10974_vm1, %v15598_v29  ;;  %v4153_v38 = vrot.slane %v4151_v53, 4 }
 0x39b   : > { %16036 = vst [vmem:[#allocation177_spill] sm:$0xff] %v13874_v18  ;;  %v4139_v18 = vrot.slane %v4137_v2, 5  ;;  %v4149_v37 = vrot.slane %v4147_v25, 5 }
 0x39c   : > { %v3166_v5 = vpop.f32.mrb[80].mxu0  ;;  %v13892_v26 = vpop.f32.mrb[224].mxu1 }
 0x39d   : > { %v9577_v49 = vpop.f32.mrb[81].mxu0  ;;  %v3333_v36 = vadd.f32 %v3166_v5, %v13299_v62  ;;  %v9751_v0 = vpop.f32.mrb[225].mxu1  ;;  %v16039_v5 = vld [vmem:[#allocation125_spill] sm:$0xff]  ;;  %v4154_v20 = vor.u32 %v4153_v38, %v4149_v37 }
 0x39e   : > { %v3169_v9 = vpop.f32.mrb[82].mxu0  ;;  %v13898_v32 = vpop.f32.mrb[226].mxu1  ;;  %v322_v49 = vld [vmem:[%s11089_s15 + $0x13c] sm:$0x1]  ;;  %v4144_v0 = vor.u32 %v4143_v34, %v4139_v18 }
 0x39f   : > { %v13895_v8 = vadd.f32 %v13556_v23, %v3333_v36  ;;  %v9578_v46 = vpop.f32.mrb[83].mxu0  ;;  %v3334_v10 = vadd.f32 %v3169_v9, %v13304_v27  ;;  %v9752_v2 = vpop.f32.mrb[227].mxu1  ;;  %v16040_v27 = vcombine.low %v15999_v13, %v16005_v51  ;;  %v4140_v23 = vsel %vm11100_vm5, %v4135_v33, %v4139_v18  ;;  %v16041_v33 = vld [vmem:[#allocation166_spill] sm:$0xff] }
 0x3a0   : > { %v4157_v12 = vshll.u32 %v322_v49, 16  ;;  %v8421_v13 = vcombine.low %v13703_v60, %v4140_v23  ;;  %v4145_v18 = vrot.slane %v4144_v0, 4 }
 0x3a1   : > { %v13902_v62 = vadd.f32 %v13562_v15, %v3334_v10  ;;  %9796 = vmatmul.mubr.msk.bf16.gmra.mrb[188].mxu0 %vm1022_vm4, %v16039_v5  ;;  %9970 = vmatmul.mubr.msk.bf16.gmra.mrb[76].mxu1 %vm1022_vm4, %v16040_v27  ;;  %v4155_v10 = vrot.slane %v4154_v20, 4 }
 0x3a2   : > { %9799 = vmatprep.mubr.msk.bf16.mxu0 %vm10974_vm1, %v15598_v29  ;;  %9973 = vmatprep.mubr.msk.bf16.mxu1 %vm10974_vm1, %v15598_v29  ;;  %v4159_v49 = vrot.slane %v4157_v12, 5 }
 0x3a4   : > { %v3174_v15 = vpop.f32.mrb[84].mxu0  ;;  %v13917_v9 = vpop.f32.mrb[228].mxu1  ;;  %v4160_v60 = vsel %vm11100_vm5, %v4155_v10, %v4159_v49  ;;  %v16044_v10 = vld [vmem:[#allocation167_spill] sm:$0xff] }
 0x3a5   : > { %v9581_v25 = vpop.f32.mrb[85].mxu0  ;;  %v3335_v53 = vadd.f32 %v3174_v15, %v13324_v45  ;;  %v9755_v38 = vpop.f32.mrb[229].mxu1  ;;  %v16042_v45 = vld [vmem:[#allocation128_spill] sm:$0xff] }
 0x3a6   : > { %v3177_v36 = vpop.f32.mrb[86].mxu0  ;;  %v3735_v5 = vpop.f32.mrb[230].mxu1 }
 0x3a7   : > { %v13921_v51 = vadd.f32 %v13578_v58, %v3335_v53  ;;  %v9582_v46 = vpop.f32.mrb[87].mxu0  ;;  %v3336_v34 = vadd.f32 %v3177_v36, %v16041_v33  ;;  %v9756_v27 = vpop.f32.mrb[231].mxu1  ;;  %v4150_v58 = vsel %vm11100_vm5, %v4145_v18, %v4149_v37 }
 0x3a8   : > { %v8422_v15 = vcombine.low %v4150_v58, %v4160_v60  ;;  %v16043_v46 = vld [vmem:[#allocation131_spill] sm:$0xff]  ;;  %v16045_v58 = vld [vmem:[#allocation134_spill] sm:$0xff] }
 0x3a9   : > { %v13925_v2 = vadd.f32 %v13584_v17, %v3336_v34  ;;  %9800 = vmatmul.mubr.msk.bf16.gmra.mrb[192].mxu0 %vm1022_vm4, %v16042_v45  ;;  %9974 = vmatmul.mubr.msk.bf16.gmra.mrb[80].mxu1 %vm1022_vm4, %v8421_v13 }
 0x3aa   : > { %9803 = vmatprep.mubr.msk.bf16.mxu0 %vm10974_vm1, %v15598_v29  ;;  %9977 = vmatprep.mubr.msk.bf16.mxu1 %vm10974_vm1, %v15598_v29 }
 0x3ac   : > { %v3182_v23 = vpop.f32.mrb[88].mxu0  ;;  %v3740_v12 = vpop.f32.mrb[232].mxu1 }
 0x3ad   : > { %v9585_v17 = vpop.f32.mrb[89].mxu0  ;;  %v3337_v0 = vadd.f32 %v3182_v23, %v13355_v57  ;;  %v9759_v37 = vpop.f32.mrb[233].mxu1 }
 0x3ae   : > { %v3185_v20 = vpop.f32.mrb[90].mxu0  ;;  %v3743_v13 = vpop.f32.mrb[234].mxu1  ;;  %v16046_v17 = vld [vmem:[#allocation169_spill] sm:$0xff] }
 0x3af   : > { %v13940_v25 = vadd.f32 %v13600_v7, %v3337_v0  ;;  %v9586_v53 = vpop.f32.mrb[91].mxu0  ;;  %v3338_v36 = vadd.f32 %v3185_v20, %v13366_v63  ;;  %v9760_v33 = vpop.f32.mrb[235].mxu1 }
 0x3b0   : > { %v16047_v53 = vld [vmem:[#allocation10_spill] sm:$0xff] }
 0x3b1   : > { %v13944_v43 = vadd.f32 %v13606_v42, %v3338_v36  ;;  %9804 = vmatmul.mubr.msk.bf16.gmra.mrb[196].mxu0 %vm1022_vm4, %v16043_v46  ;;  %9978 = vmatmul.mubr.msk.bf16.gmra.mrb[84].mxu1 %vm1022_vm4, %v8422_v15  ;;  %v16048_v46 = vld [vmem:[#allocation137_spill] sm:$0xff] }
 0x3b2   : > { %9807 = vmatprep.mubr.msk.bf16.mxu0 %vm10974_vm1, %v15598_v29 }
 0x3b4   : > { %v3190_v57 = vpop.f32.mrb[92].mxu0  ;;  %v4215_v63 = vpop.f32.mrb[236].mxu1 }
 0x3b5   : > { %v9589_v7 = vpop.f32.mrb[93].mxu0  ;;  %v3339_v34 = vadd.f32 %v3190_v57, %v13387_v6  ;;  %v9875_v5 = vpop.f32.mrb[237].mxu1 }
 0x3b6   : > { %v3193_v38 = vpop.f32.mrb[94].mxu0  ;;  %v4218_v45 = vpop.f32.mrb[238].mxu1 }
 0x3b7   : > { %v13953_v18 = vadd.f32 %v13622_v14, %v3339_v34  ;;  %v9590_v42 = vpop.f32.mrb[95].mxu0  ;;  %v3340_v49 = vadd.f32 %v3193_v38, %v16044_v10  ;;  %v9876_v60 = vpop.f32.mrb[239].mxu1 }
 0x3b8   : > { %v16051_v60 = vld [vmem:[#allocation139_spill] sm:$0xff] }
 0x3b9   : > { %v13957_v27 = vadd.f32 %v13628_v22, %v3340_v49  ;;  %9808 = vmatmul.mubr.msk.bf16.gmra.mrb[200].mxu0 %vm1022_vm4, %v16045_v58 }
 0x3ba   : > { %9811 = vmatprep.mubr.msk.bf16.mxu0 %vm10974_vm1, %v15598_v29 }
 0x3bc   : > { %v3198_v6 = vpop.f32.mrb[96].mxu0  ;;  %v4223_v20 = vpop.f32.mrb[240].mxu1 }
 0x3bd   : > { %v9593_v23 = vpop.f32.mrb[97].mxu0  ;;  %v3341_v14 = vadd.f32 %v3198_v6, %v16046_v17  ;;  %v9879_v36 = vpop.f32.mrb[241].mxu1 }
 0x3be   : > { %v3201_v0 = vpop.f32.mrb[98].mxu0  ;;  %v13968_v37 = vpop.f32.mrb[242].mxu1 }
 0x3bf   : > { %v13965_v12 = vadd.f32 %v13644_v19, %v3341_v14  ;;  %v9594_v15 = vpop.f32.mrb[99].mxu0  ;;  %v3342_v22 = vadd.f32 %v3201_v0, %v16047_v53  ;;  %v9880_v33 = vpop.f32.mrb[243].mxu1  ;;  %v16049_v19 = vld [vmem:[#allocation11_spill] sm:$0xff] }
 0x3c1   : > { %v13971_v13 = vadd.f32 %v13650_v40, %v3342_v22  ;;  %9812 = vmatmul.mubr.msk.bf16.gmra.mrb[204].mxu0 %vm1022_vm4, %v16048_v46  ;;  %v16050_v40 = vld [vmem:[#allocation94_spill] sm:$0xff] }
 0x3c2   : > { %9815 = vmatprep.mubr.msk.bf16.mxu0 %vm10974_vm1, %v15598_v29 }
 0x3c4   : > { %v3206_v57 = vpop.f32.mrb[100].mxu0  ;;  %v13978_v63 = vpop.f32.mrb[244].mxu1 }
 0x3c5   : > { %v9597_v7 = vpop.f32.mrb[101].mxu0  ;;  %v3343_v34 = vadd.f32 %v3206_v57, %v16049_v19  ;;  %v9883_v5 = vpop.f32.mrb[245].mxu1  ;;  %v16054_v57 = vld [vmem:[#allocation141_spill] sm:$0xff] }
 0x3c6   : > { %v3209_v38 = vpop.f32.mrb[102].mxu0  ;;  %v13984_v45 = vpop.f32.mrb[246].mxu1 }
 0x3c7   : > { %v13981_v42 = vadd.f32 %v13667_v11, %v3343_v34  ;;  %v9598_v10 = vpop.f32.mrb[103].mxu0  ;;  %v3344_v49 = vadd.f32 %v3209_v38, %v16050_v40  ;;  %v9884_v6 = vpop.f32.mrb[247].mxu1  ;;  %v16052_v11 = vld [vmem:[#allocation115_spill] sm:$0xff] }
 0x3c9   : > { %v13987_v58 = vadd.f32 %v13673_v48, %v3344_v49  ;;  %9816 = vmatmul.mubr.msk.bf16.gmra.mrb[208].mxu0 %vm1022_vm4, %v16051_v60  ;;  %v16053_v48 = vld [vmem:[#allocation12_spill] sm:$0xff] }
 0x3ca   : > { %9819 = vmatprep.mubr.msk.bf16.mxu0 %vm10974_vm1, %v15598_v29 }
 0x3cc   : > { %v3214_v23 = vpop.f32.mrb[104].mxu0  ;;  %v13994_v20 = vpop.f32.mrb[248].mxu1 }
 0x3cd   : > { %v9601_v17 = vpop.f32.mrb[105].mxu0  ;;  %v3345_v14 = vadd.f32 %v3214_v23, %v16052_v11  ;;  %v9887_v36 = vpop.f32.mrb[249].mxu1  ;;  %v16057_v11 = vld [vmem:[#allocation144_spill] sm:$0xff] }
 0x3ce   : > { %v3217_v0 = vpop.f32.mrb[106].mxu0  ;;  %v14000_v46 = vpop.f32.mrb[250].mxu1 }
 0x3cf   : > { %v13997_v15 = vadd.f32 %v13693_v44, %v3345_v14  ;;  %v9602_v53 = vpop.f32.mrb[107].mxu0  ;;  %v3346_v22 = vadd.f32 %v3217_v0, %v16053_v48  ;;  %v9888_v7 = vpop.f32.mrb[251].mxu1  ;;  %v16055_v44 = vld [vmem:[#allocation13_spill] sm:$0xff] }
 0x3d1   : > { %v14003_v33 = vadd.f32 %v13698_v35, %v3346_v22  ;;  %9820 = vmatmul.mubr.msk.bf16.gmra.mrb[212].mxu0 %vm1022_vm4, %v16054_v57  ;;  %v16056_v35 = vld [vmem:[#allocation119_spill] sm:$0xff]  ;;  %v16059_v57 = vld [vmem:[#allocation28_spill] sm:$0xff] }
 0x3d2   : > { %9823 = vmatprep.mubr.msk.bf16.mxu0 %vm10974_vm1, %v15598_v29 }
 0x3d4   : > { %v3222_v19 = vpop.f32.mrb[108].mxu0  ;;  %v14010_v40 = vpop.f32.mrb[252].mxu1 }
 0x3d5   : > { %v9605_v34 = vpop.f32.mrb[109].mxu0  ;;  %v3347_v38 = vadd.f32 %v3222_v19, %v16055_v44  ;;  %v9891_v6 = vpop.f32.mrb[253].mxu1 }
 0x3d6   : > { %v3225_v10 = vpop.f32.mrb[110].mxu0  ;;  %v14016_v23 = vpop.f32.mrb[254].mxu1 }
 0x3d7   : > { %v14013_v49 = vadd.f32 %v13713_v4, %v3347_v38  ;;  %v9606_v5 = vpop.f32.mrb[111].mxu0  ;;  %v3348_v60 = vadd.f32 %v3225_v10, %v16056_v35  ;;  %v9892_v14 = vpop.f32.mrb[255].mxu1  ;;  %v16058_v4 = vld [vmem:[#allocation66_spill] sm:$0xff]  ;;  %v16063_v35 = vld [vmem:[#allocation147_spill] sm:$0xff] }
 0x3d8   : > { %v16061_v10 = vld [vmem:[#allocation106_spill] sm:$0xff] }
 0x3d9   : > { %v14019_v17 = vadd.f32 %v13715_v21, %v3348_v60  ;;  %9824 = vmatmul.mubr.msk.bf16.gmra.mrb[216].mxu0 %vm1022_vm4, %v16057_v11  ;;  %v16060_v21 = vld [vmem:[#allocation15_spill] sm:$0xff]  ;;  %v16064_v11 = vld [vmem:[#allocation16_spill] sm:$0xff] }
 0x3da   : > { %9827 = vmatprep.mubr.msk.bf16.mxu0 %vm10974_vm1, %v15598_v29 }
 0x3dc   : > { %v3230_v0 = vpop.f32.mrb[112].mxu0  ;;  %v14026_v36 = vpop.f32.mrb[0].mxu1 }
 0x3dd   : > { %v9609_v53 = vpop.f32.mrb[113].mxu0  ;;  %v3349_v48 = vadd.f32 %v3230_v0, %v16058_v4  ;;  %v9895_v44 = vpop.f32.mrb[1].mxu1 }
 0x3de   : > { %v3233_v22 = vpop.f32.mrb[114].mxu0  ;;  %v14032_v38 = vpop.f32.mrb[2].mxu1  ;;  %v16067_v44 = vld [vmem:[#allocation109_spill] sm:$0xff] }
 0x3df   : > { %v14029_v7 = vadd.f32 %v16059_v57, %v3349_v48  ;;  %v9610_v19 = vpop.f32.mrb[115].mxu0  ;;  %v3350_v34 = vadd.f32 %v3233_v22, %v16060_v21  ;;  %v9896_v60 = vpop.f32.mrb[3].mxu1  ;;  %v16065_v48 = vld [vmem:[#allocation64_spill] sm:$0xff] }
 0x3e1   : > { %v14035_v5 = vadd.f32 %v16061_v10, %v3350_v34  ;;  %9828 = vmatmul.mubr.msk.bf16.gmra.mrb[220].mxu0 %vm1022_vm4, %v16063_v35  ;;  %v16069_v35 = vld [vmem:[#allocation150_spill] sm:$0xff] }
 0x3e2   : > { %9831 = vmatprep.mubr.msk.bf16.mxu0 %vm10974_vm1, %v15598_v29 }
 0x3e3   : > { %16062 = vst [vmem:[#allocation35_spill] sm:$0xff] %v14035_v5 }
 0x3e4   : > { %v3238_v6 = vpop.f32.mrb[116].mxu0  ;;  %v14042_v4 = vpop.f32.mrb[4].mxu1 }
 0x3e5   : > { %v3351_v14 = vadd.f32 %v3238_v6, %v16064_v11  ;;  %v9613_v0 = vpop.f32.mrb[117].mxu0  ;;  %v9899_v21 = vpop.f32.mrb[5].mxu1  ;;  %v16070_v11 = vld [vmem:[#allocation17_spill] sm:$0xff] }
 0x3e6   : > { %v3241_v53 = vpop.f32.mrb[118].mxu0  ;;  %v14048_v34 = vpop.f32.mrb[6].mxu1 }
 0x3e7   : > { %v3352_v22 = vadd.f32 %v3241_v53, %v16065_v48  ;;  %v14046_v57 = vadd.f32 %v13740_v56, %v3351_v14  ;;  %v9614_v19 = vpop.f32.mrb[119].mxu0  ;;  %v9900_v60 = vpop.f32.mrb[7].mxu1  ;;  %v16071_v48 = vld [vmem:[#allocation18_spill] sm:$0xff] }
 0x3e8   : > { %v16074_v60 = vld [vmem:[#allocation153_spill] sm:$0xff] }
 0x3e9   : > { %16066 = vst [vmem:[#allocation36_spill] sm:$0xff] %v14046_v57  ;;  %v14051_v10 = vadd.f32 %v16067_v44, %v3352_v22  ;;  %9832 = vmatmul.mubr.msk.bf16.gmra.mrb[224].mxu0 %vm1022_vm4, %v16069_v35 }
 0x3ea   : > { %9835 = vmatprep.mubr.msk.bf16.mxu0 %vm10974_vm1, %v15598_v29 }
 0x3eb   : > { %16068 = vst [vmem:[#allocation19_spill] sm:$0xff] %v14051_v10 }
 0x3ec   : > { %v3246_v6 = vpop.f32.mrb[120].mxu0  ;;  %v14058_v14 = vpop.f32.mrb[8].mxu1 }
 0x3ed   : > { %v3353_v0 = vadd.f32 %v3246_v6, %v16070_v11  ;;  %v9617_v53 = vpop.f32.mrb[121].mxu0  ;;  %v9903_v44 = vpop.f32.mrb[9].mxu1 }
 0x3ee   : > { %v3249_v56 = vpop.f32.mrb[122].mxu0  ;;  %v14064_v10 = vpop.f32.mrb[10].mxu1  ;;  %v16075_v53 = vld [vmem:[#allocation20_spill] sm:$0xff] }
 0x3ef   : > { %v3354_v19 = vadd.f32 %v3249_v56, %v16071_v48  ;;  %v14062_v21 = vadd.f32 %v13757_v39, %v3353_v0  ;;  %v9618_v22 = vpop.f32.mrb[123].mxu0  ;;  %v9904_v6 = vpop.f32.mrb[11].mxu1 }
 0x3f0   : > { %v16076_v22 = vld [vmem:[#allocation21_spill] sm:$0xff] }
 0x3f1   : > { %16072 = vst [vmem:[#allocation123_spill] sm:$0xff] %v14062_v21  ;;  %v14067_v35 = vadd.f32 %v13763_v54, %v3354_v19  ;;  %9836 = vmatmul.mubr.msk.bf16.gmra.mrb[228].mxu0 %vm1022_vm4, %v16074_v60  ;;  %v16079_v6 = vld [vmem:[#allocation57_spill] sm:$0xff] }
 0x3f2   : > { %9839 = vmatprep.mubr.msk.bf16.mxu0 %vm10974_vm1, %v15598_v29 }
 0x3f3   : > { %16073 = vst [vmem:[#allocation127_spill] sm:$0xff] %v14067_v35 }
 0x3f4   : > { %v3254_v11 = vpop.f32.mrb[124].mxu0  ;;  %v14074_v0 = vpop.f32.mrb[12].mxu1 }
 0x3f5   : > { %v3355_v56 = vadd.f32 %v3254_v11, %v16075_v53  ;;  %v9621_v48 = vpop.f32.mrb[125].mxu0  ;;  %v9907_v19 = vpop.f32.mrb[13].mxu1 }
 0x3f6   : > { %v3257_v39 = vpop.f32.mrb[126].mxu0  ;;  %v14080_v35 = vpop.f32.mrb[14].mxu1  ;;  %v16080_v48 = vld [vmem:[#allocation124_spill] sm:$0xff] }
 0x3f7   : > { %v3356_v44 = vadd.f32 %v3257_v39, %v16076_v22  ;;  %v14078_v21 = vadd.f32 %v13777_v16, %v3355_v56  ;;  %v9622_v54 = vpop.f32.mrb[127].mxu0  ;;  %v9908_v11 = vpop.f32.mrb[15].mxu1 }
 0x3f8   : > { %v16081_v54 = vld [vmem:[#allocation74_spill] sm:$0xff]  ;;  %v16084_v11 = vld [vmem:[#allocation60_spill] sm:$0xff] }
 0x3f9   : > { %16077 = vst [vmem:[#allocation179_spill] sm:$0xff] %v14078_v21  ;;  %v14083_v60 = vadd.f32 %v13783_v61, %v3356_v44  ;;  %9840 = vmatmul.mubr.msk.bf16.gmra.mrb[232].mxu0 %vm1022_vm4, %v16079_v6 }
 0x3fa   : > { %9843 = vmatprep.mubr.msk.bf16.mxu0 %vm10974_vm1, %v15598_v29 }
 0x3fb   : > { %16078 = vst [vmem:[#allocation180_spill] sm:$0xff] %v14083_v60 }
 0x3fc   : > { %v3262_v53 = vpop.f32.mrb[128].mxu0  ;;  %v14090_v56 = vpop.f32.mrb[16].mxu1 }
 0x3fd   : > { %v3357_v39 = vadd.f32 %v3262_v53, %v16080_v48  ;;  %v9625_v22 = vpop.f32.mrb[129].mxu0  ;;  %v9911_v44 = vpop.f32.mrb[17].mxu1 }
 0x3fe   : > { %v3265_v16 = vpop.f32.mrb[130].mxu0  ;;  %v14096_v60 = vpop.f32.mrb[18].mxu1  ;;  %v16085_v22 = vld [vmem:[#allocation23_spill] sm:$0xff] }
 0x3ff   : > { %v3358_v19 = vadd.f32 %v3265_v16, %v16081_v54  ;;  %v14094_v21 = vadd.f32 %v13797_v3, %v3357_v39  ;;  %v9626_v61 = vpop.f32.mrb[131].mxu0  ;;  %v9912_v53 = vpop.f32.mrb[19].mxu1 }
 0x400   : > { %v16086_v61 = vld [vmem:[#allocation24_spill] sm:$0xff]  ;;  %v16089_v53 = vld [vmem:[#allocation65_spill] sm:$0xff] }
 0x401   : > { %16082 = vst [vmem:[#allocation38_spill] sm:$0xff] %v14094_v21  ;;  %v14099_v6 = vadd.f32 %v13803_v59, %v3358_v19  ;;  %9844 = vmatmul.mubr.msk.bf16.gmra.mrb[236].mxu0 %vm1022_vm4, %v16084_v11 }
 0x402   : > { %9847 = vmatprep.mubr.msk.bf16.mxu0 %vm10974_vm1, %v15598_v29 }
 0x403   : > { %16083 = vst [vmem:[#allocation39_spill] sm:$0xff] %v14099_v6 }
 0x404   : > { %v3270_v48 = vpop.f32.mrb[132].mxu0  ;;  %v14106_v39 = vpop.f32.mrb[20].mxu1 }
 0x405   : > { %v3359_v16 = vadd.f32 %v3270_v48, %v16085_v22  ;;  %v9629_v54 = vpop.f32.mrb[133].mxu0  ;;  %v9915_v19 = vpop.f32.mrb[21].mxu1 }
 0x406   : > { %v3273_v3 = vpop.f32.mrb[134].mxu0  ;;  %v14112_v6 = vpop.f32.mrb[22].mxu1  ;;  %v16090_v54 = vld [vmem:[#allocation72_spill] sm:$0xff] }
 0x407   : > { %v3360_v44 = vadd.f32 %v3273_v3, %v16086_v61  ;;  %v14110_v21 = vadd.f32 %v13817_v50, %v3359_v16  ;;  %v9630_v59 = vpop.f32.mrb[135].mxu0  ;;  %v9916_v48 = vpop.f32.mrb[23].mxu1 }
 0x408   : > { %v16091_v59 = vld [vmem:[#allocation102_spill] sm:$0xff]  ;;  %v16094_v48 = vld [vmem:[#allocation73_spill] sm:$0xff] }
 0x409   : > { %16087 = vst [vmem:[#allocation22_spill] sm:$0xff] %v14110_v21  ;;  %v14115_v11 = vadd.f32 %v13823_v1, %v3360_v44  ;;  %9848 = vmatmul.mubr.msk.bf16.gmra.mrb[240].mxu0 %vm1022_vm4, %v16089_v53 }
 0x40a   : > { %9851 = vmatprep.mubr.msk.bf16.mxu0 %vm10974_vm1, %v15598_v29 }
 0x40b   : > { %16088 = vst [vmem:[#allocation130_spill] sm:$0xff] %v14115_v11 }
 0x40c   : > { %v3278_v22 = vpop.f32.mrb[136].mxu0  ;;  %v14122_v16 = vpop.f32.mrb[24].mxu1 }
 0x40d   : > { %v3361_v3 = vadd.f32 %v3278_v22, %v16090_v54  ;;  %v9633_v61 = vpop.f32.mrb[137].mxu0  ;;  %v9919_v44 = vpop.f32.mrb[25].mxu1 }
 0x40e   : > { %v3281_v50 = vpop.f32.mrb[138].mxu0  ;;  %v14128_v11 = vpop.f32.mrb[26].mxu1  ;;  %v16095_v61 = vld [vmem:[#allocation25_spill] sm:$0xff] }
 0x40f   : > { %v3362_v19 = vadd.f32 %v3281_v50, %v16091_v59  ;;  %v14126_v21 = vadd.f32 %v13837_v30, %v3361_v3  ;;  %v9634_v1 = vpop.f32.mrb[139].mxu0  ;;  %v9920_v22 = vpop.f32.mrb[27].mxu1 }
 0x410   : > { %v16096_v1 = vld [vmem:[#allocation26_spill] sm:$0xff] }
 0x411   : > { %16092 = vst [vmem:[#allocation132_spill] sm:$0xff] %v14126_v21  ;;  %v14131_v53 = vadd.f32 %v13843_v41, %v3362_v19  ;;  %9852 = vmatmul.mubr.msk.bf16.gmra.mrb[244].mxu0 %vm1022_vm4, %v16094_v48  ;;  %v16099_v21 = vld [vmem:[#allocation103_spill] sm:$0xff] }
 0x412   : > { %9855 = vmatprep.mubr.msk.bf16.mxu0 %vm10974_vm1, %v15598_v29 }
 0x413   : > { %16093 = vst [vmem:[#allocation40_spill] sm:$0xff] %v14131_v53 }
 0x414   : > { %v3286_v54 = vpop.f32.mrb[140].mxu0  ;;  %v14138_v59 = vpop.f32.mrb[28].mxu1 }
 0x415   : > { %v3363_v30 = vadd.f32 %v3286_v54, %v16095_v61  ;;  %v9637_v3 = vpop.f32.mrb[141].mxu0  ;;  %v9923_v48 = vpop.f32.mrb[29].mxu1 }
 0x416   : > { %v3289_v50 = vpop.f32.mrb[142].mxu0  ;;  %v14144_v22 = vpop.f32.mrb[30].mxu1  ;;  %v10885_v3 = vld [vmem:[%s11089_s15 + $0x120] sm:$0xf] }
 0x417   : > { %v3364_v44 = vadd.f32 %v3289_v50, %v16096_v1  ;;  %v14142_v41 = vadd.f32 %v13862_v52, %v3363_v30  ;;  %v9638_v19 = vpop.f32.mrb[143].mxu0  ;;  %v9924_v54 = vpop.f32.mrb[31].mxu1  ;;  %v10886_v50 = vld [vmem:[%s11089_s15 + $0x124] sm:$0xf] }
 0x418   : > { %v8389_v52 = vcombine.low %v10885_v3, %v10886_v50  ;;  %v16100_v30 = vld [vmem:[#allocation77_spill] sm:$0xff]  ;;  %v10887_v50 = vld [vmem:[%s11089_s15 + $0x128] sm:$0xf] }
 0x419   : > { %16097 = vst [vmem:[#allocation41_spill] sm:$0xff] %v14142_v41  ;;  %v14147_v53 = vadd.f32 %v13871_v55, %v3364_v44  ;;  %9856 = vmatmul.mubr.msk.bf16.gmra.mrb[248].mxu0 %vm1022_vm4, %v16099_v21  ;;  %v16101_v55 = vld [vmem:[#allocation104_spill] sm:$0xff] }
 0x41a   : > { %9859 = vmatprep.mubr.msk.bf16.mxu0 %vm10974_vm1, %v15598_v29 }
 0x41b   : > { %16098 = vst [vmem:[#allocation29_spill] sm:$0xff] %v14147_v53 }
 0x41c   : > { %v3294_v61 = vpop.f32.mrb[144].mxu0  ;;  %v14156_v41 = vpop.f32.mrb[32].mxu1 }
 0x41d   : > { %v3365_v1 = vadd.f32 %v3294_v61, %v16100_v30  ;;  %v9641_v19 = vpop.f32.mrb[145].mxu0  ;;  %v9927_v54 = vpop.f32.mrb[33].mxu1  ;;  %v8390_v30 = vcombine.low %v10887_v50, %v13846_v31 }
 0x41e   : > { %v3297_v48 = vpop.f32.mrb[146].mxu0  ;;  %v14162_v57 = vpop.f32.mrb[34].mxu1  ;;  %v16104_v19 = vld [vmem:[#allocation27_spill] sm:$0xff] }
 0x41f   : > { %v3366_v44 = vadd.f32 %v3297_v48, %v16101_v55  ;;  %v14160_v53 = vadd.f32 %v13892_v26, %v3365_v1  ;;  %v9642_v21 = vpop.f32.mrb[147].mxu0  ;;  %v9928_v3 = vpop.f32.mrb[35].mxu1 }
 0x420   : > { %v8391_v3 = vcombine.low %v13869_v47, %v13881_v24 }
 0x421   : > { %16102 = vst [vmem:[#allocation135_spill] sm:$0xff] %v14160_v53  ;;  %v14165_v5 = vadd.f32 %v13898_v32, %v3366_v44  ;;  %9860 = vmatmul.mubr.msk.bf16.gmra.mrb[252].mxu0 %vm1022_vm4, %v8389_v52 }
 0x422   : > { %9863 = vmatprep.mubr.msk.bf16.mxu0 %vm10974_vm1, %v15598_v29 }
 0x423   : > { %16103 = vst [vmem:[#allocation136_spill] sm:$0xff] %v14165_v5  ;;  %v16110_v5 = vld [vmem:[#allocation163_spill] sm:$0xff] }
 0x424   : > { %v3302_v61 = vpop.f32.mrb[148].mxu0  ;;  %v14173_v55 = vpop.f32.mrb[36].mxu1 }
 0x425   : > { %v3367_v26 = vadd.f32 %v3302_v61, %v16104_v19  ;;  %v9645_v1 = vpop.f32.mrb[149].mxu0  ;;  %v9931_v44 = vpop.f32.mrb[37].mxu1 }
 0x426   : > { %v3305_v48 = vpop.f32.mrb[150].mxu0  ;;  %v14178_v52 = vpop.f32.mrb[38].mxu1 }
 0x427   : > { %v14176_v21 = vadd.f32 %v13917_v9, %v3367_v26  ;;  %v9646_v32 = vpop.f32.mrb[151].mxu0  ;;  %v9932_v54 = vpop.f32.mrb[39].mxu1 }
 0x429   : > { %16105 = vst [vmem:[#allocation43_spill] sm:$0xff] %v14176_v21  ;;  %9864 = vmatmul.mubr.msk.bf16.gmra.mrb[0].mxu0 %vm1022_vm4, %v8390_v30 }
 0x42a   : > { %9867 = vmatprep.mubr.msk.bf16.mxu0 %vm10974_vm1, %v15598_v29 }
 0x42c   : > { %v3310_v31 = vpop.f32.mrb[152].mxu0  ;;  %v14185_v19 = vpop.f32.mrb[40].mxu1 }
 0x42d   : > { %v9649_v61 = vpop.f32.mrb[153].mxu0  ;;  %v9935_v26 = vpop.f32.mrb[41].mxu1 }
 0x42e   : > { %v3313_v50 = vpop.f32.mrb[154].mxu0  ;;  %v14187_v1 = vpop.f32.mrb[42].mxu1  ;;  %v16106_v61 = vld [vmem:[#allocation162_spill] sm:$0xff] }
 0x42f   : > { %v9650_v9 = vpop.f32.mrb[155].mxu0  ;;  %v9936_v48 = vpop.f32.mrb[43].mxu1 }
 0x431   : > { %9868 = vmatmul.mubr.msk.bf16.gmra.mrb[4].mxu0 %vm1022_vm4, %v8391_v3 }
 0x432   : > { %9983 = vmatprep.mubr.msk.bf16.mxu0 %vm10974_vm1, %v15598_v29 }
 0x434   : > { %v3858_v30 = vpop.f32.mrb[156].mxu0  ;;  %v14192_v54 = vpop.f32.mrb[44].mxu1 }
 0x435   : > { %v9765_v32 = vpop.f32.mrb[157].mxu0  ;;  %v9939_v24 = vpop.f32.mrb[45].mxu1  ;;  %v16107_v30 = vld [vmem:[#allocation30_spill] sm:$0xff] }
 0x436   : > { %v3861_v44 = vpop.f32.mrb[158].mxu0  ;;  %v14194_v31 = vpop.f32.mrb[46].mxu1 }
 0x437   : > { %v9766_v47 = vpop.f32.mrb[159].mxu0  ;;  %v9940_v50 = vpop.f32.mrb[47].mxu1 }
 0x439   : > { %9984 = vmatmul.mubr.msk.bf16.vlgmr.msra.gmra.mrb[8].mxu0 %vm1022_vm4, %v16106_v61  ;;  %v10792_v61 = vld [vmem:[%s15384_s3 + $0x10] sm:$0xff]  }
 0x43a   : > { %9987 = vmatprep.mubr.msk.bf16.mxu0 %vm10974_vm1, %v15598_v29  ;;  %10091 = vmatprep.subr.bf16.mxu1 %v10792_v61 }
 0x43b   : > { %10092 = vmatpush3.bf16.msra.mxu1 %v10792_v61 }
 0x43c   : > { %v3866_v3 = vpop.f32.mrb[160].mxu0  ;;  %v14200_v48 = vpop.f32.mrb[48].mxu1 }
 0x43d   : > { %v9769_v9 = vpop.f32.mrb[161].mxu0  ;;  %v9943_v21 = vpop.f32.mrb[49].mxu1 }
 0x43e   : > { %v3869_v26 = vpop.f32.mrb[162].mxu0  ;;  %v14203_v47 = vpop.f32.mrb[50].mxu1 }
 0x43f   : > { %v4076_v32 = vadd.f32 %v3869_v26, %v16107_v30  ;;  %v9770_v44 = vpop.f32.mrb[163].mxu0  ;;  %16108 = vst [vmem:[#allocation44_spill] sm:$0xff] %v14203_v47  ;;  %v9944_v50 = vpop.f32.mrb[51].mxu1  ;;  %v16111_v30 = vld [vmem:[#allocation31_spill] sm:$0xff]  ;;  %v16113_v47 = vld [vmem:[#allocation164_spill] sm:$0xff] }
 0x441   : > { %v14206_v24 = vadd.f32 %v13968_v37, %v4076_v32  ;;  %9988 = vmatmul.mubr.msk.bf16.gmra.mrb[12].mxu0 %vm1022_vm4, %v16110_v5 }
 0x442   : > { %9991 = vmatprep.mubr.msk.bf16.mxu0 %vm10974_vm1, %v15598_v29 }
 0x443   : > { %16109 = vst [vmem:[#allocation32_spill] sm:$0xff] %v14206_v24 }
 0x444   : > { %v3874_v3 = vpop.f32.mrb[164].mxu0  ;;  %v14216_v37 = vpop.f32.mrb[52].mxu1 }
 0x445   : > { %v4077_v21 = vadd.f32 %v3874_v3, %v13760_v28  ;;  %v9773_v9 = vpop.f32.mrb[165].mxu0  ;;  %v9947_v24 = vpop.f32.mrb[53].mxu1  ;;  %v16114_v3 = vld [vmem:[#allocation112_spill] sm:$0xff] }
 0x446   : > { %v3877_v26 = vpop.f32.mrb[166].mxu0  ;;  %v14222_v50 = vpop.f32.mrb[54].mxu1  ;;  %v16115_v24 = vld [vmem:[#allocation114_spill] sm:$0xff] }
 0x447   : > { %v4078_v32 = vadd.f32 %v3877_v26, %v16111_v30  ;;  %v14220_v5 = vadd.f32 %v13978_v63, %v4077_v21  ;;  %v9774_v44 = vpop.f32.mrb[167].mxu0  ;;  %v9948_v28 = vpop.f32.mrb[55].mxu1 }
 0x448   : > { %v16118_v28 = vld [vmem:[#allocation165_spill] sm:$0xff] }
 0x449   : > { %v14225_v53 = vadd.f32 %v13984_v45, %v4078_v32  ;;  %9992 = vmatmul.mubr.msk.bf16.gmra.mrb[16].mxu0 %vm1022_vm4, %v16113_v47 }
 0x44a   : > { %9995 = vmatprep.mubr.msk.bf16.mxu0 %vm10974_vm1, %v15598_v29 }
 0x44b   : > { %16112 = vst [vmem:[#allocation138_spill] sm:$0xff] %v14225_v53 }
 0x44c   : > { %v3882_v61 = vpop.f32.mrb[168].mxu0  ;;  %v14232_v21 = vpop.f32.mrb[56].mxu1 }
 0x44d   : > { %v4079_v9 = vadd.f32 %v3882_v61, %v16114_v3  ;;  %v9777_v26 = vpop.f32.mrb[169].mxu0  ;;  %v9951_v32 = vpop.f32.mrb[57].mxu1 }
 0x44e   : > { %v3885_v63 = vpop.f32.mrb[170].mxu0  ;;  %v14238_v53 = vpop.f32.mrb[58].mxu1  ;;  %v16119_v26 = vld [vmem:[#allocation174_spill] sm:$0xff] }
 0x44f   : > { %v4080_v30 = vadd.f32 %v3885_v63, %v16115_v24  ;;  %v14236_v44 = vadd.f32 %v13994_v20, %v4079_v9  ;;  %v9778_v45 = vpop.f32.mrb[171].mxu0  ;;  %v9952_v61 = vpop.f32.mrb[59].mxu1 }
 0x450   : > { %v16120_v45 = vld [vmem:[#allocation33_spill] sm:$0xff]  ;;  %v16123_v61 = vld [vmem:[#allocation168_spill] sm:$0xff] }
 0x451   : > { %16116 = vst [vmem:[#allocation172_spill] sm:$0xff] %v14236_v44  ;;  %v14241_v47 = vadd.f32 %v14000_v46, %v4080_v30  ;;  %9996 = vmatmul.mubr.msk.bf16.gmra.mrb[20].mxu0 %vm1022_vm4, %v16118_v28 }
 0x452   : > { %9999 = vmatprep.mubr.msk.bf16.mxu0 %vm10974_vm1, %v15598_v29 }
 0x453   : > { %16117 = vst [vmem:[#allocation46_spill] sm:$0xff] %v14241_v47 }
 0x454   : > { %v3890_v3 = vpop.f32.mrb[172].mxu0  ;;  %v14248_v9 = vpop.f32.mrb[60].mxu1 }
 0x455   : > { %v4081_v63 = vadd.f32 %v3890_v3, %v16119_v26  ;;  %v9781_v24 = vpop.f32.mrb[173].mxu0  ;;  %v9955_v30 = vpop.f32.mrb[61].mxu1 }
 0x456   : > { %v3893_v20 = vpop.f32.mrb[174].mxu0  ;;  %v14254_v47 = vpop.f32.mrb[62].mxu1  ;;  %v16124_v24 = vld [vmem:[#allocation34_spill] sm:$0xff] }
 0x457   : > { %v4082_v32 = vadd.f32 %v3893_v20, %v16120_v45  ;;  %v14252_v44 = vadd.f32 %v14010_v40, %v4081_v63  ;;  %v9782_v46 = vpop.f32.mrb[175].mxu0  ;;  %v9956_v3 = vpop.f32.mrb[63].mxu1 }
 0x458   : > { %v16125_v46 = vld [vmem:[#allocation14_spill] sm:$0xff] }
 0x459   : > { %16121 = vst [vmem:[#allocation47_spill] sm:$0xff] %v14252_v44  ;;  %v14257_v28 = vadd.f32 %v14016_v23, %v4082_v32  ;;  %10000 = vmatmul.mubr.msk.bf16.gmra.mrb[24].mxu0 %vm1022_vm4, %v16123_v61  ;;  %v16128_v3 = vld [vmem:[#allocation170_spill] sm:$0xff] }
 0x45a   : > { %10003 = vmatprep.mubr.msk.bf16.mxu0 %vm10974_vm1, %v15598_v29 }
 0x45b   : > { %16122 = vst [vmem:[#allocation37_spill] sm:$0xff] %v14257_v28 }
 0x45c   : > { %v3898_v26 = vpop.f32.mrb[176].mxu0  ;;  %v14264_v63 = vpop.f32.mrb[64].mxu1 }
 0x45d   : > { %v4083_v20 = vadd.f32 %v3898_v26, %v16124_v24  ;;  %v9785_v45 = vpop.f32.mrb[177].mxu0  ;;  %v9959_v32 = vpop.f32.mrb[65].mxu1 }
 0x45e   : > { %v3901_v40 = vpop.f32.mrb[178].mxu0  ;;  %v14270_v28 = vpop.f32.mrb[66].mxu1  ;;  %v16129_v45 = vld [vmem:[#allocation118_spill] sm:$0xff] }
 0x45f   : > { %v4084_v30 = vadd.f32 %v3901_v40, %v16125_v46  ;;  %v14268_v44 = vadd.f32 %v14026_v36, %v4083_v20  ;;  %v9786_v23 = vpop.f32.mrb[179].mxu0  ;;  %v9960_v26 = vpop.f32.mrb[67].mxu1 }
 0x460   : > { %v16130_v23 = vld [vmem:[#allocation122_spill] sm:$0xff]  ;;  %v16133_v26 = vld [vmem:[#allocation96_spill] sm:$0xff] }
 0x461   : > { %16126 = vst [vmem:[#allocation140_spill] sm:$0xff] %v14268_v44  ;;  %v14273_v61 = vadd.f32 %v14032_v38, %v4084_v30  ;;  %10004 = vmatmul.mubr.msk.bf16.gmra.mrb[28].mxu0 %vm1022_vm4, %v16128_v3 }
 0x462   : > { %10007 = vmatprep.mubr.msk.bf16.mxu0 %vm10974_vm1, %v15598_v29 }
 0x463   : > { %16127 = vst [vmem:[#allocation142_spill] sm:$0xff] %v14273_v61 }
 0x464   : > { %v3906_v24 = vpop.f32.mrb[180].mxu0  ;;  %v14280_v20 = vpop.f32.mrb[68].mxu1 }
 0x465   : > { %v4085_v40 = vadd.f32 %v3906_v24, %v16129_v45  ;;  %v9789_v46 = vpop.f32.mrb[181].mxu0  ;;  %v9963_v30 = vpop.f32.mrb[69].mxu1 }
 0x466   : > { %v3909_v36 = vpop.f32.mrb[182].mxu0  ;;  %v14286_v61 = vpop.f32.mrb[70].mxu1  ;;  %v16134_v46 = vld [vmem:[#allocation176_spill] sm:$0xff] }
 0x467   : > { %v4086_v32 = vadd.f32 %v3909_v36, %v16130_v23  ;;  %v14284_v44 = vadd.f32 %v14042_v4, %v4085_v40  ;;  %v9790_v38 = vpop.f32.mrb[183].mxu0  ;;  %v9964_v24 = vpop.f32.mrb[71].mxu1 }
 0x468   : > { %v16135_v38 = vld [vmem:[#allocation177_spill] sm:$0xff] }
 0x469   : > { %16131 = vst [vmem:[#allocation49_spill] sm:$0xff] %v14284_v44  ;;  %v14289_v3 = vadd.f32 %v14048_v34, %v4086_v32  ;;  %10008 = vmatmul.mubr.msk.bf16.gmra.mrb[32].mxu0 %vm1022_vm4, %v16133_v26  ;;  %v16136_v24 = vld [vmem:[#allocation97_spill] sm:$0xff] }
 0x46a   : > { %10011 = vmatprep.mubr.msk.bf16.mxu0 %vm10974_vm1, %v15598_v29 }
 0x46b   : > { %16132 = vst [vmem:[#allocation50_spill] sm:$0xff] %v14289_v3 }
 0x46c   : > { %v3914_v45 = vpop.f32.mrb[184].mxu0  ;;  %v14296_v40 = vpop.f32.mrb[72].mxu1 }
 0x46d   : > { %v4087_v36 = vadd.f32 %v3914_v45, %v16134_v46  ;;  %v9793_v23 = vpop.f32.mrb[185].mxu0  ;;  %v9967_v32 = vpop.f32.mrb[73].mxu1 }
 0x46e   : > { %v3917_v4 = vpop.f32.mrb[186].mxu0  ;;  %v14302_v3 = vpop.f32.mrb[74].mxu1 }
 0x46f   : > { %v4088_v30 = vadd.f32 %v3917_v4, %v16135_v38  ;;  %v14300_v44 = vadd.f32 %v14058_v14, %v4087_v36  ;;  %v9794_v34 = vpop.f32.mrb[187].mxu0  ;;  %v9968_v45 = vpop.f32.mrb[75].mxu1 }
 0x470   : > { %v16138_v45 = vld [vmem:[#allocation120_spill] sm:$0xff] }
 0x471   : > { %v14305_v26 = vadd.f32 %v14064_v10, %v4088_v30  ;;  %10012 = vmatmul.mubr.msk.bf16.gmra.mrb[36].mxu0 %vm1022_vm4, %v16136_v24 }
 0x472   : > { %10015 = vmatprep.mubr.msk.bf16.mxu0 %vm10974_vm1, %v15598_v29 }
 0x474   : > { %v3922_v46 = vpop.f32.mrb[188].mxu0  ;;  %v14312_v36 = vpop.f32.mrb[76].mxu1 }
 0x475   : > { %v4089_v23 = vadd.f32 %v3922_v46, %v13895_v8  ;;  %v9797_v4 = vpop.f32.mrb[189].mxu0  ;;  %v9971_v30 = vpop.f32.mrb[77].mxu1 }
 0x476   : > { %v3925_v14 = vpop.f32.mrb[190].mxu0  ;;  %v14318_v32 = vpop.f32.mrb[78].mxu1 }
 0x477   : > { %v4090_v38 = vadd.f32 %v3925_v14, %v13902_v62  ;;  %v14316_v34 = vadd.f32 %v14074_v0, %v4089_v23  ;;  %v9798_v10 = vpop.f32.mrb[191].mxu0  ;;  %v9972_v8 = vpop.f32.mrb[79].mxu1 }
 0x478   : > { %v16139_v8 = vld [vmem:[#allocation99_spill] sm:$0xff] }
 0x479   : > { %v14321_v24 = vadd.f32 %v14080_v35, %v4090_v38  ;;  %10016 = vmatmul.mubr.msk.bf16.gmra.mrb[40].mxu0 %vm1022_vm4, %v16138_v45 }
 0x47a   : > { %10019 = vmatprep.mubr.msk.bf16.mxu0 %vm10974_vm1, %v15598_v29 }
 0x47b   : > { %16137 = vst [vmem:[#allocation42_spill] sm:$0xff] %v14321_v24 }
 0x47c   : > { %v3930_v46 = vpop.f32.mrb[192].mxu0  ;;  %v14328_v23 = vpop.f32.mrb[80].mxu1 }
 0x47d   : > { %v4091_v62 = vadd.f32 %v3930_v46, %v13921_v51  ;;  %v9801_v4 = vpop.f32.mrb[193].mxu0  ;;  %v9975_v38 = vpop.f32.mrb[81].mxu1 }
 0x47e   : > { %v3933_v0 = vpop.f32.mrb[194].mxu0  ;;  %v4418_v30 = vpop.f32.mrb[82].mxu1 }
 0x47f   : > { %v4092_v14 = vadd.f32 %v3933_v0, %v13925_v2  ;;  %v14332_v10 = vadd.f32 %v14090_v56, %v4091_v62  ;;  %v9802_v35 = vpop.f32.mrb[195].mxu0  ;;  %v9976_v24 = vpop.f32.mrb[83].mxu1 }
 0x480   : > { %v16140_v24 = vld [vmem:[#allocation100_spill] sm:$0xff] }
 0x481   : > { %v14335_v45 = vadd.f32 %v14096_v60, %v4092_v14  ;;  %10020 = vmatmul.mubr.msk.bf16.gmra.mrb[44].mxu0 %vm1022_vm4, %v16139_v8 }
 0x482   : > { %10023 = vmatprep.mubr.msk.bf16.mxu0 %vm10974_vm1, %v15598_v29 }
 0x484   : > { %v3938_v51 = vpop.f32.mrb[196].mxu0  ;;  %v4423_v56 = vpop.f32.mrb[84].mxu1 }
 0x485   : > { %v4093_v46 = vadd.f32 %v3938_v51, %v13940_v25  ;;  %v9805_v2 = vpop.f32.mrb[197].mxu0  ;;  %v9979_v14 = vpop.f32.mrb[85].mxu1 }
 0x486   : > { %v3941_v4 = vpop.f32.mrb[198].mxu0  ;;  %v4426_v35 = vpop.f32.mrb[86].mxu1 }
 0x487   : > { %v4094_v62 = vadd.f32 %v3941_v4, %v13944_v43  ;;  %v14344_v0 = vadd.f32 %v14106_v39, %v4093_v46  ;;  %v9806_v60 = vpop.f32.mrb[199].mxu0  ;;  %v9980_v30 = vpop.f32.mrb[87].mxu1  ;;  %v16141_v4 = vld [vmem:[#allocation76_spill] sm:$0xff]  ;;  %v16142_v35 = vld [vmem:[#allocation107_spill] sm:$0xff] }
 0x489   : > { %v14347_v38 = vadd.f32 %v14112_v6, %v4094_v62  ;;  %10024 = vmatmul.mubr.msk.bf16.gmra.mrb[48].mxu0 %vm1022_vm4, %v16140_v24 }
 0x48a   : > { %10027 = vmatprep.mubr.msk.bf16.mxu0 %vm10974_vm1, %v15598_v29 }
 0x48c   : > { %v3946_v25 = vpop.f32.mrb[200].mxu0 }
 0x48d   : > { %v4095_v8 = vadd.f32 %v3946_v25, %v13953_v18  ;;  %v9809_v43 = vpop.f32.mrb[201].mxu0 }
 0x48e   : > { %v3949_v51 = vpop.f32.mrb[202].mxu0  ;;  %v16143_v43 = vld [vmem:[#allocation110_spill] sm:$0xff] }
 0x48f   : > { %v4096_v39 = vadd.f32 %v3949_v51, %v13957_v27  ;;  %v14356_v46 = vadd.f32 %v14122_v16, %v4095_v8  ;;  %v9810_v2 = vpop.f32.mrb[203].mxu0 }
 0x491   : > { %v14359_v6 = vadd.f32 %v14128_v11, %v4096_v39  ;;  %10028 = vmatmul.mubr.msk.bf16.gmra.mrb[52].mxu0 %vm1022_vm4, %v16141_v4 }
 0x492   : > { %10031 = vmatprep.mubr.msk.bf16.mxu0 %vm10974_vm1, %v15598_v29 }
 0x494   : > { %v3954_v56 = vpop.f32.mrb[204].mxu0 }
 0x495   : > { %v4097_v18 = vadd.f32 %v3954_v56, %v13965_v12  ;;  %v9813_v62 = vpop.f32.mrb[205].mxu0 }
 0x496   : > { %v3957_v60 = vpop.f32.mrb[206].mxu0 }
 0x497   : > { %v4098_v27 = vadd.f32 %v3957_v60, %v13971_v13  ;;  %v14368_v16 = vadd.f32 %v14138_v59, %v4097_v18  ;;  %v9814_v14 = vpop.f32.mrb[207].mxu0  ;;  %v16144_v18 = vld [vmem:[#allocation117_spill] sm:$0xff] }
 0x499   : > { %v14371_v11 = vadd.f32 %v14144_v22, %v4098_v27  ;;  %10032 = vmatmul.mubr.msk.bf16.gmra.mrb[56].mxu0 %vm1022_vm4, %v16142_v35 }
 0x49a   : > { %10035 = vmatprep.mubr.msk.bf16.mxu0 %vm10974_vm1, %v15598_v29 }
 0x49c   : > { %v3962_v24 = vpop.f32.mrb[208].mxu0 }
 0x49d   : > { %v4099_v12 = vadd.f32 %v3962_v24, %v13981_v42  ;;  %v9817_v30 = vpop.f32.mrb[209].mxu0 }
 0x49e   : > { %v3965_v25 = vpop.f32.mrb[210].mxu0 }
 0x49f   : > { %v4100_v13 = vadd.f32 %v3965_v25, %v13987_v58  ;;  %v14380_v59 = vadd.f32 %v14156_v41, %v4099_v12  ;;  %v9818_v8 = vpop.f32.mrb[211].mxu0  ;;  %v16146_v12 = vld [vmem:[#allocation126_spill] sm:$0xff] }
 0x4a0   : > { %v16147_v8 = vld [vmem:[#allocation35_spill] sm:$0xff] }
 0x4a1   : > { %v14383_v22 = vadd.f32 %v14162_v57, %v4100_v13  ;;  %10036 = vmatmul.mubr.msk.bf16.gmra.mrb[60].mxu0 %vm1022_vm4, %v16143_v43  ;;  %v10793_v57 = vld [vmem:[%s15384_s3 + $0x18] sm:$0xff]  }
 0x4a2   : > { %10039 = vmatprep.mubr.msk.bf16.mxu0 %vm10974_vm1, %v15598_v29  ;;  %10093 = vmatprep.subr.bf16.mxu1 %v10793_v57 }
 0x4a3   : > { %10094 = vmatpush3.bf16.msra.mxu1 %v10793_v57 }
 0x4a4   : > { %v3970_v51 = vpop.f32.mrb[212].mxu0 }
 0x4a5   : > { %v4101_v42 = vadd.f32 %v3970_v51, %v13997_v15  ;;  %v9821_v39 = vpop.f32.mrb[213].mxu0  ;;  %v10975_v15 = vmov 0.0|0.0   ;;  %v16148_v51 = vld [vmem:[#allocation129_spill] sm:$0xff] }
 0x4a6   : > { %v3973_v2 = vpop.f32.mrb[214].mxu0  ;;  %v16149_v39 = vld [vmem:[#allocation36_spill] sm:$0xff] }
 0x4a7   : > { %v4102_v58 = vadd.f32 %v3973_v2, %v14003_v33  ;;  %v14392_v41 = vadd.f32 %v14173_v55, %v4101_v42  ;;  %v9822_v4 = vpop.f32.mrb[215].mxu0  ;;  %v14404_v33 = vrot.slane %v10975_v15, 2  ;;  %v16151_v15 = vld [vmem:[#allocation44_spill] sm:$0xff] }
 0x4a8   : > { %v16150_v4 = vld [vmem:[#allocation19_spill] sm:$0xff] }
 0x4a9   : > { %v14398_v56 = vadd.f32 %v14178_v52, %v4102_v58  ;;  %10040 = vmatmul.mubr.msk.bf16.gmra.mrb[64].mxu0 %vm1022_vm4, %v16144_v18  ;;  %16145 = vst [vmem:[#allocation143_spill] sm:$0xff] %v14404_v33  ;;  %10095 = vmatprep.mubr.msk.bf16.mxu1 %vm5700_vm9, %v14404_v33 }
 0x4aa   : > { %10043 = vmatprep.mubr.msk.bf16.mxu0 %vm10974_vm1, %v15598_v29 }
 0x4ac   : > { %v3978_v55 = vpop.f32.mrb[216].mxu0 }
 0x4ad   : > { %v4103_v62 = vadd.f32 %v3978_v55, %v14013_v49  ;;  %v9825_v52 = vpop.f32.mrb[217].mxu0  ;;  %v16152_v55 = vld [vmem:[#allocation133_spill] sm:$0xff] }
 0x4ae   : > { %v3981_v60 = vpop.f32.mrb[218].mxu0  ;;  %v16153_v52 = vld [vmem:[#allocation123_spill] sm:$0xff] }
 0x4af   : > { %v4104_v27 = vadd.f32 %v3981_v60, %v14019_v17  ;;  %v14411_v14 = vadd.f32 %v14185_v19, %v4103_v62  ;;  %v9826_v35 = vpop.f32.mrb[219].mxu0 }
 0x4b1   : > { %v14414_v24 = vadd.f32 %v14187_v1, %v4104_v27  ;;  %10044 = vmatmul.mubr.msk.bf16.gmra.mrb[68].mxu0 %vm1022_vm4, %v16146_v12  ;;  %v16154_v12 = vld [vmem:[#allocation127_spill] sm:$0xff] }
 0x4b2   : > { %10047 = vmatprep.mubr.msk.bf16.mxu0 %vm10974_vm1, %v15598_v29 }
 0x4b4   : > { %v3986_v30 = vpop.f32.mrb[220].mxu0 }
 0x4b5   : > { %v4105_v49 = vadd.f32 %v3986_v30, %v14029_v7  ;;  %v9829_v25 = vpop.f32.mrb[221].mxu0 }
 0x4b6   : > { %v3989_v13 = vpop.f32.mrb[222].mxu0 }
 0x4b7   : > { %v4106_v17 = vadd.f32 %v3989_v13, %v16147_v8  ;;  %v14423_v19 = vadd.f32 %v14192_v54, %v4105_v49  ;;  %v9830_v43 = vpop.f32.mrb[223].mxu0  ;;  %v16155_v13 = vld [vmem:[#allocation171_spill] sm:$0xff] }
 0x4b9   : > { %v14426_v1 = vadd.f32 %v14194_v31, %v4106_v17  ;;  %10048 = vmatmul.mubr.msk.bf16.gmra.mrb[72].mxu0 %vm1022_vm4, %v16148_v51  ;;  %v16156_v17 = vld [vmem:[#allocation179_spill] sm:$0xff] }
 0x4ba   : > { %10051 = vmatprep.mubr.msk.bf16.mxu0 %vm10974_vm1, %v15598_v29 }
 0x4bc   : > { %v3994_v42 = vpop.f32.mrb[224].mxu0 }
 0x4bd   : > { %v4107_v7 = vadd.f32 %v3994_v42, %v16149_v39  ;;  %v9833_v2 = vpop.f32.mrb[225].mxu0  ;;  %v16157_v39 = vld [vmem:[#allocation180_spill] sm:$0xff] }
 0x4be   : > { %v3997_v58 = vpop.f32.mrb[226].mxu0 }
 0x4bf   : > { %v4108_v57 = vadd.f32 %v3997_v58, %v16150_v4  ;;  %v14435_v54 = vadd.f32 %v14200_v48, %v4107_v7  ;;  %v9834_v18 = vpop.f32.mrb[227].mxu0  ;;  %v16158_v58 = vld [vmem:[#allocation173_spill] sm:$0xff] }
 0x4c1   : > { %v14438_v31 = vadd.f32 %v16151_v15, %v4108_v57  ;;  %10052 = vmatmul.mubr.msk.bf16.gmra.mrb[76].mxu0 %vm1022_vm4, %v16152_v55  ;;  %v16159_v57 = vld [vmem:[#allocation38_spill] sm:$0xff] }
 0x4c2   : > { %10055 = vmatprep.mubr.msk.bf16.mxu0 %vm10974_vm1, %v15598_v29 }
 0x4c4   : > { %v4002_v62 = vpop.f32.mrb[228].mxu0 }
 0x4c5   : > { %v4109_v60 = vadd.f32 %v4002_v62, %v16153_v52  ;;  %v9837_v27 = vpop.f32.mrb[229].mxu0  ;;  %v16160_v62 = vld [vmem:[#allocation39_spill] sm:$0xff] }
 0x4c6   : > { %v4005_v35 = vpop.f32.mrb[230].mxu0  ;;  %v16161_v27 = vld [vmem:[#allocation175_spill] sm:$0xff] }
 0x4c7   : > { %v4110_v30 = vadd.f32 %v4005_v35, %v16154_v12  ;;  %v14447_v48 = vadd.f32 %v14216_v37, %v4109_v60  ;;  %v9838_v49 = vpop.f32.mrb[231].mxu0  ;;  %v16162_v12 = vld [vmem:[#allocation22_spill] sm:$0xff] }
 0x4c9   : > { %v14450_v25 = vadd.f32 %v14222_v50, %v4110_v30  ;;  %10056 = vmatmul.mubr.msk.bf16.gmra.mrb[80].mxu0 %vm1022_vm4, %v16155_v13 }
 0x4ca   : > { %10059 = vmatprep.mubr.msk.bf16.mxu0 %vm10974_vm1, %v15598_v29 }
 0x4cc   : > { %v4010_v8 = vpop.f32.mrb[232].mxu0 }
 0x4cd   : > { %v4111_v43 = vadd.f32 %v4010_v8, %v16156_v17  ;;  %v9841_v51 = vpop.f32.mrb[233].mxu0  ;;  %v16163_v8 = vld [vmem:[#allocation130_spill] sm:$0xff] }
 0x4ce   : > { %v4013_v42 = vpop.f32.mrb[234].mxu0  ;;  %v16164_v51 = vld [vmem:[#allocation178_spill] sm:$0xff] }
 0x4cf   : > { %v4112_v7 = vadd.f32 %v4013_v42, %v16157_v39  ;;  %v14459_v37 = vadd.f32 %v14232_v21, %v4111_v43  ;;  %v9842_v2 = vpop.f32.mrb[235].mxu0  ;;  %v16165_v39 = vld [vmem:[#allocation132_spill] sm:$0xff] }
 0x4d1   : > { %v14462_v50 = vadd.f32 %v14238_v53, %v4112_v7  ;;  %10060 = vmatmul.mubr.msk.bf16.gmra.mrb[84].mxu0 %vm1022_vm4, %v16158_v58 }
 0x4d2   : > { %10063 = vmatprep.mubr.msk.bf16.mxu0 %vm10974_vm1, %v15598_v29 }
 0x4d4   : > { %v4018_v4 = vpop.f32.mrb[236].mxu0 }
 0x4d5   : > { %v4113_v18 = vadd.f32 %v4018_v4, %v16159_v57  ;;  %v9845_v15 = vpop.f32.mrb[237].mxu0  ;;  %v16166_v4 = vld [vmem:[#allocation40_spill] sm:$0xff] }
 0x4d6   : > { %v4021_v55 = vpop.f32.mrb[238].mxu0  ;;  %v16167_v15 = vld [vmem:[#allocation181_spill] sm:$0xff] }
 0x4d7   : > { %v4114_v52 = vadd.f32 %v4021_v55, %v16160_v62  ;;  %v14471_v21 = vadd.f32 %v14248_v9, %v4113_v18  ;;  %v9846_v60 = vpop.f32.mrb[239].mxu0  ;;  %v16168_v62 = vld [vmem:[#allocation41_spill] sm:$0xff] }
 0x4d9   : > { %v14474_v53 = vadd.f32 %v14254_v47, %v4114_v52  ;;  %10064 = vmatmul.mubr.msk.bf16.gmra.mrb[88].mxu0 %vm1022_vm4, %v16161_v27 }
 0x4da   : > { %10067 = vmatprep.mubr.msk.bf16.mxu0 %vm10974_vm1, %v15598_v29 }
 0x4dc   : > { %v4026_v35 = vpop.f32.mrb[240].mxu0 }
 0x4dd   : > { %v4115_v30 = vadd.f32 %v4026_v35, %v16162_v12  ;;  %v9849_v49 = vpop.f32.mrb[241].mxu0  ;;  %v16169_v35 = vld [vmem:[#allocation29_spill] sm:$0xff] }
 0x4de   : > { %v4029_v13 = vpop.f32.mrb[242].mxu0  ;;  %v16170_v49 = vld [vmem:[#allocation151_spill] sm:$0xff] }
 0x4df   : > { %v4116_v17 = vadd.f32 %v4029_v13, %v16163_v8  ;;  %v14483_v9 = vadd.f32 %v14264_v63, %v4115_v30  ;;  %v9850_v43 = vpop.f32.mrb[243].mxu0  ;;  %v16171_v8 = vld [vmem:[#allocation135_spill] sm:$0xff] }
 0x4e1   : > { %v14486_v47 = vadd.f32 %v14270_v28, %v4116_v17  ;;  %10068 = vmatmul.mubr.msk.bf16.gmra.mrb[92].mxu0 %vm1022_vm4, %v16164_v51  ;;  %v10888_v51 = vld [vmem:[%s11089_s15 + $0x130] sm:$0xf] }
 0x4e2   : > { %10071 = vmatprep.mubr.msk.bf16.mxu0 %vm10974_vm1, %v15598_v29 }
 0x4e4   : > { %v4034_v42 = vpop.f32.mrb[244].mxu0 }
 0x4e5   : > { %v4117_v7 = vadd.f32 %v4034_v42, %v16165_v39  ;;  %v9853_v2 = vpop.f32.mrb[245].mxu0  ;;  %v8450_v42 = vrot.slane %v10888_v51, 9  ;;  %v10889_v39 = vld [vmem:[%s11089_s15 + $0x134] sm:$0xf] }
 0x4e6   : > { %v4037_v58 = vpop.f32.mrb[246].mxu0  ;;  %v16172_v2 = vld [vmem:[#allocation136_spill] sm:$0xff] }
 0x4e7   : > { %v4118_v57 = vadd.f32 %v4037_v58, %v16166_v4  ;;  %v14495_v63 = vadd.f32 %v14280_v20, %v4117_v7  ;;  %v9854_v18 = vpop.f32.mrb[247].mxu0 }
 0x4e8   : > { %v16173_v18 = vld [vmem:[#allocation7_spill] sm:$0xff] }
 0x4e9   : > { %v14498_v28 = vadd.f32 %v14286_v61, %v4118_v57  ;;  %10072 = vmatmul.mubr.msk.bf16.gmra.mrb[96].mxu0 %vm1022_vm4, %v16167_v15  ;;  %v16174_v15 = vld [vmem:[#allocation8_spill] sm:$0xff] }
 0x4ea   : > { %10075 = vmatprep.mubr.msk.bf16.mxu0 %vm10974_vm1, %v15598_v29 }
 0x4ec   : > { %v4042_v55 = vpop.f32.mrb[248].mxu0 }
 0x4ed   : > { %v4119_v52 = vadd.f32 %v4042_v55, %v16168_v62  ;;  %v9857_v60 = vpop.f32.mrb[249].mxu0  ;;  %v16175_v55 = vcombine.low %v16173_v18, %v16174_v15  ;;  %v16180_v62 = vld [vmem:[#allocation32_spill] sm:$0xff] }
 0x4ee   : > { %v4045_v27 = vpop.f32.mrb[250].mxu0  ;;  %v10890_v60 = vld [vmem:[%s11089_s15 + $0x138] sm:$0xf] }
 0x4ef   : > { %v4120_v20 = vadd.f32 %v4045_v27, %v16169_v35  ;;  %v14507_v12 = vadd.f32 %v14296_v40, %v4119_v52  ;;  %v9858_v61 = vpop.f32.mrb[251].mxu0  ;;  %v4487_v40 = vrot.slane %v10889_v39, 5  ;;  %v4490_v27 = vrot.slane %v10890_v60, 5 }
 0x4f0   : > { %v16178_v61 = vld [vmem:[#allocation43_spill] sm:$0xff] }
 0x4f1   : > { %v14510_v30 = vadd.f32 %v14302_v3, %v4120_v20  ;;  %10076 = vmatmul.mubr.msk.bf16.gmra.mrb[100].mxu0 %vm1022_vm4, %v16170_v49  ;;  %v4488_v52 = vsel %vm11945_vm8, %v8450_v42, %v4487_v40 }
 0x4f2   : > { %10079 = vmatprep.mubr.msk.bf16.mxu0 %vm10974_vm1, %v15598_v29 }
 0x4f4   : > { %v4050_v13 = vpop.f32.mrb[252].mxu0 }
 0x4f5   : > { %v4121_v17 = vadd.f32 %v4050_v13, %v16171_v8  ;;  %v9861_v43 = vpop.f32.mrb[253].mxu0  ;;  %v4489_v13 = vrot.slane %v4487_v40, 4  ;;  %v4492_v8 = vrot.slane %v4490_v27, 4 }
 0x4f6   : > { %v4053_v7 = vpop.f32.mrb[254].mxu0 }
 0x4f7   : > { %v4122_v3 = vadd.f32 %v4053_v7, %v16172_v2  ;;  %v14521_v58 = vadd.f32 %v14312_v36, %v4121_v17  ;;  %v9862_v4 = vpop.f32.mrb[255].mxu0  ;;  %v16177_v36 = vld [vmem:[#allocation9_spill] sm:$0xff]  ;;  %v10891_v17 = vld [vmem:[%s11089_s15 + $0x13c] sm:$0x1]  ;;  %v4491_v7 = vsel %vm11945_vm8, %v4489_v13, %v4490_v27  ;;  %s15323_s15 = scalar_lea.hbm %s15386_s5, %s8686_s16 }
 0x4f8   : > { %v8453_v20 = vcombine.low %v16177_v36, %v4488_v52  ;;  %v4493_v43 = vrot.slane %v10891_v17, 5 }
 0x4f9   : > { %v14524_v57 = vadd.f32 %v14318_v32, %v4122_v3  ;;  %10080 = vmatmul.mubr.msk.bf16.gmra.mrb[104].mxu0 %vm1022_vm4, %v16175_v55 }
 0x4fa   : > { %10083 = vmatprep.mubr.msk.bf16.mxu0 %vm10974_vm1, %v15598_v29  ;;  %v4494_v2 = vsel %vm11945_vm8, %v4492_v8, %v4493_v43 }
 0x4fb   : > { %v8454_v3 = vcombine.low %v4491_v7, %v4494_v2 }
 0x4fc   : > { %v4058_v35 = vpop.f32.mrb[0].mxu0 }
 0x4fd   : > { %v4123_v49 = vadd.f32 %v4058_v35, %v16178_v61  ;;  %v9865_v32 = vpop.f32.mrb[1].mxu0  ;;  %v4952_v35 = vlaneseq }
 0x4fe   : > { %v4061_v51 = vpop.f32.mrb[2].mxu0 }
 0x4ff   : > { %v14539_v39 = vadd.f32 %v14328_v23, %v4123_v49  ;;  %v9866_v42 = vpop.f32.mrb[3].mxu0  ;;  %v4953_v49 = vshrl.u32 %v4952_v35, 7 }
 0x501   : > { %16179 = vst [vmem:[#allocation145_spill] sm:$0xff] %v14539_v39  ;;  %10084 = vmatmul.mubr.msk.bf16.gmra.mrb[108].mxu0 %vm1022_vm4, %v8453_v20  ;;  %v4955_v8 = vadd.s32 16, %v4953_v49  ;;  %v14556_v17 = vadd.s32 4294967292, %v4953_v49 }
 0x502   : > { %10087 = vmatprep.mubr.msk.bf16.mxu0 %vm10974_vm1, %v15598_v29  ;;  %v14553_v29 = vld [vmem:[%s15383_s2] ss:$0 sm:$0xff] }
 0x503   : > { %vm5013_vm10 = vcmp.ge.s32.totalorder %v14556_v17, 0  ;;  %v10797_v17 = vld [vmem:[%s15384_s3 + $0x28] sm:$0xff]  }
 0x504   : > { %v4066_v40 = vpop.f32.mrb[4].mxu0 }
 0x505   : > { %v9869_v4 = vpop.f32.mrb[5].mxu0  ;;  %v14559_v40 = vadd.s32 4294967292, %v4955_v8 }
 0x506   : > { %v4069_v18 = vpop.f32.mrb[6].mxu0  ;;  %v16181_v4 = vld [vmem:[#allocation138_spill] sm:$0xff] }
 0x507   : > { %v9870_v15 = vpop.f32.mrb[7].mxu0  ;;  %vm5072_vm11 = vcmp.lt.s32.totalorder %v14559_v40, 16 }
 0x509   : > { %10088 = vmatmul.mubr.msk.bf16.gmra.mrb[112].mxu0 %vm1022_vm4, %v8454_v3 }
 0x50c   : > { %v4549_v23 = vpop.f32.mrb[8].mxu0 }
 0x50d   : > { %v9985_v55 = vpop.f32.mrb[9].mxu0 }
 0x50e   : > { %v4552_v52 = vpop.f32.mrb[10].mxu0 }
 0x50f   : > { %v9986_v60 = vpop.f32.mrb[11].mxu0 }
 0x514   : > { %v4557_v36 = vpop.f32.mrb[12].mxu0 }
 0x515   : > { %v9989_v27 = vpop.f32.mrb[13].mxu0 }
 0x516   : > { %v4560_v20 = vpop.f32.mrb[14].mxu0 }
 0x517   : > { %v4767_v61 = vadd.f32 %v4560_v20, %v16180_v62  ;;  %v9990_v32 = vpop.f32.mrb[15].mxu0 }
 0x519   : > { %v4828_v13 = vadd.f32 %v14553_v29, %v4767_v61  ;;  %v10794_v61 = vld [vmem:[%s15384_s3] sm:$0xff]  }
 0x51a   : > { %10127 = vmatprep.subr.bf16.mxu1 %v10794_v61 }
 0x51b   : > { %v4882_v7 = vmax.f32 %v4828_v13, 0.0  ;;  %v16182_v13 = vld [vmem:[#allocation172_spill] sm:$0xff] }
 0x51c   : > { %v4565_v43 = vpop.f32.mrb[16].mxu0 }
 0x51d   : > { %v4768_v51 = vadd.f32 %v4565_v43, %v14220_v5  ;;  %v9993_v42 = vpop.f32.mrb[17].mxu0  ;;  %v5238_v52 = vsel %vm5013_vm10, %v4882_v7, 0.0 }
 0x51e   : > { %v4568_v2 = vpop.f32.mrb[18].mxu0 }
 0x51f   : > { %v4829_v3 = vadd.f32 %v14553_v29, %v4768_v51  ;;  %v4769_v18 = vadd.f32 %v4568_v2, %v16181_v4  ;;  %v9994_v15 = vpop.f32.mrb[19].mxu0 }
 0x521   : > { %v4883_v23 = vmax.f32 %v4829_v3, 0.0  ;;  %v4830_v55 = vadd.f32 %v14553_v29, %v4769_v18 }
 0x523   : > { %v5291_v5 = vpack.c.bf16 %v4883_v23, %v5238_v52  ;;  %v4884_v60 = vmax.f32 %v4830_v55, 0.0  ;;  %v16183_v52 = vld [vmem:[#allocation46_spill] sm:$0xff] }
 0x524   : > { %v4573_v35 = vpop.f32.mrb[20].mxu0 }
 0x525   : > { %v5344_v36 = vshrl.u32 %v5291_v5, 16  ;;  %v5347_v27 = vshll.u32 %v5291_v5, 16  ;;  %v5240_v20 = vsel %vm5072_vm11, %v4884_v60, 0.0  ;;  %v9997_v62 = vpop.f32.mrb[21].mxu0  ;;  %v5638_v49 = vrot.slane %v5291_v5, 2 }
 0x526   : > { %v5292_v32 = vpack.c.bf16 %v5240_v20, %v5240_v20  ;;  %v4770_v8 = vadd.f32 %v4573_v35, %v16182_v13  ;;  %v4576_v43 = vpop.f32.mrb[22].mxu0 }
 0x527   : > { %v5346_v51 = vrot.slane %v5344_v36, 1  ;;  %v5349_v42 = vrot.slane %v5347_v27, 2  ;;  %v6139_v7 = vrot.slane %v5344_v36, 2  ;;  %v6140_v2 = vrot.slane %v5347_v27, 3  ;;  %v9998_v3 = vpop.f32.mrb[23].mxu0 }
 0x528   : > { %v5352_v4 = vshrl.u32 %v5292_v32, 16  ;;  %v5355_v18 = vshll.u32 %v5292_v32, 16  ;;  %v5639_v15 = vrot.slane %v5292_v32, 2  ;;  %v4831_v23 = vadd.f32 %v14553_v29, %v4770_v8 }
 0x529   : > { %v6141_v55 = vor.u32 %v6140_v2, %v6139_v7  ;;  %v4771_v60 = vadd.f32 %v4576_v43, %v16183_v52  ;;  %v5350_v32 = vor.u32 %v5349_v42, %v5346_v51  ;;  %v16185_v2 = vld [vmem:[#allocation47_spill] sm:$0xff] }
 0x52a   : > { %v5354_v5 = vrot.slane %v5352_v4, 1  ;;  %v5357_v20 = vrot.slane %v5355_v18, 2  ;;  %v14577_v62 = vsel %vm5634_vm12, %v5638_v49, %v5639_v15  ;;  %v6142_v35 = vrot.slane %v5352_v4, 2 }
 0x52b   : > { %16184 = vst [vmem:[#allocation51_spill] sm:$0xff] %v14577_v62  ;;  %v6143_v13 = vrot.slane %v5355_v18, 3  ;;  %v4885_v36 = vmax.f32 %v4831_v23, 0.0  ;;  %v4832_v27 = vadd.f32 %v14553_v29, %v4771_v60  ;;  %10096 = vmatmul.mubr.msk.bf16.vlgmr.msra.gmra.mrb[88].mxu1 %vm5700_vm9, %v14577_v62  ;;  %v16188_v60 = vld [vmem:[#allocation37_spill] sm:$0xff] }
 0x52c   : > { %v5358_v3 = vor.u32 %v5357_v20, %v5354_v5  ;;  %v4581_v8 = vpop.f32.mrb[24].mxu0  ;;  %10128 = vmatpush3.bf16.msra.mxu1 %v10794_v61 }
 0x52d   : > { %v6144_v43 = vor.u32 %v6143_v13, %v6142_v35  ;;  %v5241_v7 = vsel %vm5013_vm10, %v4885_v36, 0.0  ;;  %v4886_v49 = vmax.f32 %v4832_v27, 0.0  ;;  %v4772_v4 = vadd.f32 %v4581_v8, %v16185_v2  ;;  %v10001_v15 = vpop.f32.mrb[25].mxu0 }
 0x52e   : > { %v14586_v18 = vsel %vm5325_vm13, %v5350_v32, %v5358_v3  ;;  %v4584_v23 = vpop.f32.mrb[26].mxu0 }
 0x52f   : > { %16186 = vst [vmem:[#allocation52_spill] sm:$0xff] %v14586_v18  ;;  %v14589_v52 = vsel %vm6131_vm14, %v6141_v55, %v6144_v43  ;;  %v5293_v51 = vpack.c.bf16 %v4886_v49, %v5241_v7  ;;  %v4833_v42 = vadd.f32 %v14553_v29, %v4772_v4  ;;  %v4773_v61 = vadd.f32 %v4584_v23, %v16188_v60  ;;  %v10002_v5 = vpop.f32.mrb[27].mxu0  ;;  %v16189_v7 = vld [vmem:[#allocation140_spill] sm:$0xff] }
 0x530   : > { %16187 = vst [vmem:[#allocation45_spill] sm:$0xff] %v14589_v52  ;;  %v16190_v52 = vld [vmem:[#allocation142_spill] sm:$0xff] }
 0x531   : > { %v5361_v20 = vshrl.u32 %v5293_v51, 16  ;;  %v5364_v35 = vshll.u32 %v5293_v51, 16  ;;  %v4887_v13 = vmax.f32 %v4833_v42, 0.0  ;;  %v4834_v36 = vadd.f32 %v14553_v29, %v4773_v61 }
 0x532   : > { %v5641_v8 = vrot.slane %v5293_v51, 2 }
 0x533   : > { %v5243_v27 = vsel %vm5072_vm11, %v4887_v13, 0.0  ;;  %v6146_v2 = vrot.slane %v5361_v20, 2  ;;  %v6147_v55 = vrot.slane %v5364_v35, 3  ;;  %v4888_v43 = vmax.f32 %v4834_v36, 0.0 }
 0x534   : > { %v5294_v32 = vpack.c.bf16 %v5243_v27, %v5243_v27  ;;  %v4589_v3 = vpop.f32.mrb[28].mxu0  ;;  %v5363_v15 = vrot.slane %v5361_v20, 1  ;;  %v5366_v23 = vrot.slane %v5364_v35, 2 }
 0x535   : > { %v4774_v49 = vadd.f32 %v4589_v3, %v16189_v7  ;;  %v10005_v4 = vpop.f32.mrb[29].mxu0  ;;  %v6148_v62 = vor.u32 %v6147_v55, %v6146_v2 }
 0x536   : > { %v5369_v60 = vshrl.u32 %v5294_v32, 16  ;;  %v5372_v5 = vshll.u32 %v5294_v32, 16  ;;  %v4592_v33 = vpop.f32.mrb[30].mxu0  ;;  %v5642_v42 = vrot.slane %v5294_v32, 2  ;;  %v5244_v32 = vsel %vm5013_vm10, %v4888_v43, 0.0 }
 0x537   : > { %v4835_v61 = vadd.f32 %v14553_v29, %v4774_v49  ;;  %v4775_v13 = vadd.f32 %v4592_v33, %v16190_v52  ;;  %v10006_v27 = vpop.f32.mrb[31].mxu0  ;;  %v5367_v2 = vor.u32 %v5366_v23, %v5363_v15 }
 0x538   : > { %v14600_v51 = vsel %vm5634_vm12, %v5641_v8, %v5642_v42  ;;  %v5371_v18 = vrot.slane %v5369_v60, 1  ;;  %v5374_v36 = vrot.slane %v5372_v5, 2  ;;  %v6149_v39 = vrot.slane %v5369_v60, 2  ;;  %v16192_v27 = vld [vmem:[#allocation49_spill] sm:$0xff] }
 0x539   : > { %16191 = vst [vmem:[#allocation146_spill] sm:$0xff] %v14600_v51  ;;  %v4889_v3 = vmax.f32 %v4835_v61, 0.0  ;;  %v4836_v20 = vadd.f32 %v14553_v29, %v4775_v13  ;;  %10099 = vmatprep.mubr.msk.bf16.mxu1 %vm5700_vm9, %v14600_v51  ;;  %v6150_v35 = vrot.slane %v5372_v5, 3 }
 0x53a   : > { %v5375_v55 = vor.u32 %v5374_v36, %v5371_v18 }
 0x53b   : > { %v5295_v33 = vpack.c.bf16 %v4889_v3, %v5244_v32  ;;  %v4890_v52 = vmax.f32 %v4836_v20, 0.0  ;;  %v6151_v7 = vor.u32 %v6150_v35, %v6149_v39 }
 0x53c   : > { %v4597_v8 = vpop.f32.mrb[32].mxu0  ;;  %v14608_v49 = vsel %vm5325_vm13, %v5367_v2, %v5375_v55 }
 0x53d   : > { %v5378_v4 = vshrl.u32 %v5295_v33, 16  ;;  %v5381_v60 = vshll.u32 %v5295_v33, 16  ;;  %v5246_v42 = vsel %vm5072_vm11, %v4890_v52, 0.0  ;;  %v10009_v61 = vpop.f32.mrb[33].mxu0  ;;  %v5644_v13 = vrot.slane %v5295_v33, 2  ;;  %v16193_v52 = vld [vmem:[#allocation50_spill] sm:$0xff] }
 0x53e   : > { %v5296_v5 = vpack.c.bf16 %v5246_v42, %v5246_v42  ;;  %v4776_v51 = vadd.f32 %v4597_v8, %v16192_v27  ;;  %v4600_v43 = vpop.f32.mrb[34].mxu0  ;;  %v14614_v18 = vsel %vm6131_vm14, %v6148_v62, %v6151_v7  ;;  %v10795_v8 = vld [vmem:[%s15384_s3 + $0x8] sm:$0xff]  }
 0x53f   : > { %v5380_v15 = vrot.slane %v5378_v4, 1  ;;  %v5383_v39 = vrot.slane %v5381_v60, 2  ;;  %v6153_v23 = vrot.slane %v5378_v4, 2  ;;  %v6154_v36 = vrot.slane %v5381_v60, 3  ;;  %v10010_v3 = vpop.f32.mrb[35].mxu0  ;;  %10129 = vmatprep.subr.bf16.mxu1 %v10795_v8 }
 0x540   : > { %v5386_v20 = vshrl.u32 %v5296_v5, 16  ;;  %v5389_v35 = vshll.u32 %v5296_v5, 16  ;;  %v5645_v32 = vrot.slane %v5296_v5, 2  ;;  %v4837_v2 = vadd.f32 %v14553_v29, %v4776_v51  ;;  %10130 = vmatpush3.bf16.msra.mxu1 %v10795_v8 }
 0x541   : > { %v6155_v55 = vor.u32 %v6154_v36, %v6153_v23  ;;  %v4777_v33 = vadd.f32 %v4600_v43, %v16193_v52  ;;  %v5384_v51 = vor.u32 %v5383_v39, %v5380_v15 }
 0x542   : > { %v5388_v42 = vrot.slane %v5386_v20, 1  ;;  %v5391_v62 = vrot.slane %v5389_v35, 2  ;;  %v14622_v7 = vsel %vm5634_vm12, %v5644_v13, %v5645_v32  ;;  %v6156_v4 = vrot.slane %v5386_v20, 2 }
 0x543   : > { %16194 = vst [vmem:[#allocation148_spill] sm:$0xff] %v14622_v7  ;;  %v6157_v60 = vrot.slane %v5389_v35, 3  ;;  %v4891_v61 = vmax.f32 %v4837_v2, 0.0  ;;  %v4838_v27 = vadd.f32 %v14553_v29, %v4777_v33  ;;  %10100 = vmatmul.mubr.msk.bf16.gmra.mrb[92].mxu1 %vm5700_vm9, %v14622_v7 }
 0x544   : > { %v5392_v5 = vor.u32 %v5391_v62, %v5388_v42  ;;  %v4605_v43 = vpop.f32.mrb[36].mxu0 }
 0x545   : > { %v6158_v23 = vor.u32 %v6157_v60, %v6156_v4  ;;  %v5247_v36 = vsel %vm5013_vm10, %v4891_v61, 0.0  ;;  %v4892_v3 = vmax.f32 %v4838_v27, 0.0  ;;  %v4778_v13 = vadd.f32 %v4605_v43, %v14300_v44  ;;  %v10013_v20 = vpop.f32.mrb[37].mxu0 }
 0x546   : > { %v4608_v35 = vpop.f32.mrb[38].mxu0  ;;  %v14631_v32 = vsel %vm5325_vm13, %v5384_v51, %v5392_v5 }
 0x547   : > { %v5297_v2 = vpack.c.bf16 %v4892_v3, %v5247_v36  ;;  %v4839_v52 = vadd.f32 %v14553_v29, %v4778_v13  ;;  %v4779_v15 = vadd.f32 %v4608_v35, %v14305_v26  ;;  %v10014_v39 = vpop.f32.mrb[39].mxu0  ;;  %v14636_v33 = vsel %vm6131_vm14, %v6155_v55, %v6158_v23 }
 0x548   : > { %16195 = vst [vmem:[#allocation54_spill] sm:$0xff] %v14636_v33  ;;  %v16196_v39 = vld [vmem:[#allocation42_spill] sm:$0xff] }
 0x549   : > { %v5395_v8 = vshrl.u32 %v5297_v2, 16  ;;  %v5398_v42 = vshll.u32 %v5297_v2, 16  ;;  %v4893_v62 = vmax.f32 %v4839_v52, 0.0  ;;  %v4840_v4 = vadd.f32 %v14553_v29, %v4779_v15 }
 0x54a   : > { %v5647_v27 = vrot.slane %v5297_v2, 2 }
 0x54b   : > { %v5249_v44 = vsel %vm5072_vm11, %v4893_v62, 0.0  ;;  %v6160_v51 = vrot.slane %v5395_v8, 2  ;;  %v6161_v5 = vrot.slane %v5398_v42, 3  ;;  %v4894_v43 = vmax.f32 %v4840_v4, 0.0 }
 0x54c   : > { %v5298_v60 = vpack.c.bf16 %v5249_v44, %v5249_v44  ;;  %v4613_v61 = vpop.f32.mrb[40].mxu0  ;;  %v5397_v3 = vrot.slane %v5395_v8, 1  ;;  %v5400_v55 = vrot.slane %v5398_v42, 2 }
 0x54d   : > { %v4780_v26 = vadd.f32 %v4613_v61, %v14316_v34  ;;  %v10017_v36 = vpop.f32.mrb[41].mxu0  ;;  %v6162_v52 = vor.u32 %v6161_v5, %v6160_v51 }
 0x54e   : > { %v5403_v23 = vshrl.u32 %v5298_v60, 16  ;;  %v5406_v13 = vshll.u32 %v5298_v60, 16  ;;  %v4616_v20 = vpop.f32.mrb[42].mxu0  ;;  %v5648_v35 = vrot.slane %v5298_v60, 2  ;;  %v5250_v60 = vsel %vm5013_vm10, %v4894_v43, 0.0 }
 0x54f   : > { %v4841_v15 = vadd.f32 %v14553_v29, %v4780_v26  ;;  %v4781_v62 = vadd.f32 %v4616_v20, %v16196_v39  ;;  %v10018_v44 = vpop.f32.mrb[43].mxu0  ;;  %v5401_v61 = vor.u32 %v5400_v55, %v5397_v3 }
 0x550   : > { %v14645_v2 = vsel %vm5634_vm12, %v5647_v27, %v5648_v35  ;;  %v5405_v7 = vrot.slane %v5403_v23, 1  ;;  %v5408_v4 = vrot.slane %v5406_v13, 2  ;;  %v6163_v33 = vrot.slane %v5403_v23, 2 }
 0x551   : > { %v4895_v34 = vmax.f32 %v4841_v15, 0.0  ;;  %v4842_v8 = vadd.f32 %v14553_v29, %v4781_v62  ;;  %10103 = vmatprep.mubr.msk.bf16.mxu1 %vm5700_vm9, %v14645_v2  ;;  %v6164_v42 = vrot.slane %v5406_v13, 3 }
 0x552   : > { %v5409_v51 = vor.u32 %v5408_v4, %v5405_v7 }
 0x553   : > { %v5299_v5 = vpack.c.bf16 %v4895_v34, %v5250_v60  ;;  %v4896_v26 = vmax.f32 %v4842_v8, 0.0  ;;  %v6165_v36 = vor.u32 %v6164_v42, %v6163_v33 }
 0x554   : > { %v4621_v27 = vpop.f32.mrb[44].mxu0  ;;  %v14653_v20 = vsel %vm5325_vm13, %v5401_v61, %v5409_v51 }
 0x555   : > { %v5412_v23 = vshrl.u32 %v5299_v5, 16  ;;  %v5415_v35 = vshll.u32 %v5299_v5, 16  ;;  %v5252_v15 = vsel %vm5072_vm11, %v4896_v26, 0.0  ;;  %v10021_v39 = vpop.f32.mrb[45].mxu0  ;;  %v5650_v62 = vrot.slane %v5299_v5, 2 }
 0x556   : > { %v5300_v13 = vpack.c.bf16 %v5252_v15, %v5252_v15  ;;  %v4782_v44 = vadd.f32 %v4621_v27, %v14332_v10  ;;  %v4624_v43 = vpop.f32.mrb[46].mxu0  ;;  %v14659_v7 = vsel %vm6131_vm14, %v6162_v52, %v6165_v36 }
 0x557   : > { %v5414_v3 = vrot.slane %v5412_v23, 1  ;;  %v5417_v33 = vrot.slane %v5415_v35, 2  ;;  %v6167_v55 = vrot.slane %v5412_v23, 2  ;;  %v6168_v4 = vrot.slane %v5415_v35, 3  ;;  %v10022_v34 = vpop.f32.mrb[47].mxu0 }
 0x558   : > { %v5420_v8 = vshrl.u32 %v5300_v13, 16  ;;  %v5423_v42 = vshll.u32 %v5300_v13, 16  ;;  %v5651_v60 = vrot.slane %v5300_v13, 2  ;;  %v4843_v61 = vadd.f32 %v14553_v29, %v4782_v44 }
 0x559   : > { %v6169_v51 = vor.u32 %v6168_v4, %v6167_v55  ;;  %v4783_v5 = vadd.f32 %v4624_v43, %v14335_v45  ;;  %v5418_v35 = vor.u32 %v5417_v33, %v5414_v3 }
 0x55a   : > { %v5422_v26 = vrot.slane %v5420_v8, 1  ;;  %v5425_v15 = vrot.slane %v5423_v42, 2  ;;  %v14664_v10 = vsel %vm5634_vm12, %v5650_v62, %v5651_v60  ;;  %v6170_v52 = vrot.slane %v5420_v8, 2 }
 0x55b   : > { %v6171_v36 = vrot.slane %v5423_v42, 3  ;;  %v4897_v27 = vmax.f32 %v4843_v61, 0.0  ;;  %v4844_v23 = vadd.f32 %v14553_v29, %v4783_v5  ;;  %10104 = vmatmul.mubr.msk.bf16.gmra.mrb[96].mxu1 %vm5700_vm9, %v14664_v10 }
 0x55c   : > { %v5426_v39 = vor.u32 %v5425_v15, %v5422_v26  ;;  %v4629_v13 = vpop.f32.mrb[48].mxu0 }
 0x55d   : > { %v6172_v44 = vor.u32 %v6171_v36, %v6170_v52  ;;  %v5253_v45 = vsel %vm5013_vm10, %v4897_v27, 0.0  ;;  %v4898_v43 = vmax.f32 %v4844_v23, 0.0  ;;  %v4784_v55 = vadd.f32 %v4629_v13, %v14344_v0  ;;  %v10025_v62 = vpop.f32.mrb[49].mxu0  ;;  %v14686_v23 = vld [vmem:[%s15384_s3 + $0x20] sm:$0xff]  }
 0x55e   : > { %v4632_v4 = vpop.f32.mrb[50].mxu0  ;;  %v14673_v34 = vsel %vm5325_vm13, %v5418_v35, %v5426_v39  ;;  %10163 = vmatprep.subr.bf16.mxu1 %v14686_v23 }
 0x55f   : > { %v5301_v8 = vpack.c.bf16 %v4898_v43, %v5253_v45  ;;  %v4845_v42 = vadd.f32 %v14553_v29, %v4784_v55  ;;  %v4785_v60 = vadd.f32 %v4632_v4, %v14347_v38  ;;  %v10026_v3 = vpop.f32.mrb[51].mxu0  ;;  %v14678_v33 = vsel %vm6131_vm14, %v6169_v51, %v6172_v44 }
 0x561   : > { %v5429_v61 = vshrl.u32 %v5301_v8, 16  ;;  %v5432_v5 = vshll.u32 %v5301_v8, 16  ;;  %v4899_v26 = vmax.f32 %v4845_v42, 0.0  ;;  %v4846_v15 = vadd.f32 %v14553_v29, %v4785_v60 }
 0x562   : > { %v5653_v27 = vrot.slane %v5301_v8, 2 }
 0x563   : > { %v5255_v0 = vsel %vm5072_vm11, %v4899_v26, 0.0  ;;  %v6174_v38 = vrot.slane %v5429_v61, 2  ;;  %v6175_v35 = vrot.slane %v5432_v5, 3  ;;  %v4900_v51 = vmax.f32 %v4846_v15, 0.0 }
 0x564   : > { %v5302_v52 = vpack.c.bf16 %v5255_v0, %v5255_v0  ;;  %v4637_v36 = vpop.f32.mrb[52].mxu0  ;;  %v5431_v44 = vrot.slane %v5429_v61, 1  ;;  %v5434_v45 = vrot.slane %v5432_v5, 2 }
 0x565   : > { %v4786_v39 = vadd.f32 %v4637_v36, %v14356_v46  ;;  %v10029_v13 = vpop.f32.mrb[53].mxu0  ;;  %v6176_v8 = vor.u32 %v6175_v35, %v6174_v38  ;;  %v5256_v36 = vsel %vm5013_vm10, %v4900_v51, 0.0 }
 0x566   : > { %v5437_v43 = vshrl.u32 %v5302_v52, 16  ;;  %v5440_v55 = vshll.u32 %v5302_v52, 16  ;;  %v4640_v62 = vpop.f32.mrb[54].mxu0  ;;  %v5654_v4 = vrot.slane %v5302_v52, 2  ;;  %v5435_v38 = vor.u32 %v5434_v45, %v5431_v44 }
 0x567   : > { %v4847_v42 = vadd.f32 %v14553_v29, %v4786_v39  ;;  %v4787_v60 = vadd.f32 %v4640_v62, %v14359_v6  ;;  %v10030_v3 = vpop.f32.mrb[55].mxu0 }
 0x568   : > { %v14693_v26 = vsel %vm5634_vm12, %v5653_v27, %v5654_v4  ;;  %v5439_v15 = vrot.slane %v5437_v43, 1  ;;  %v5442_v46 = vrot.slane %v5440_v55, 2  ;;  %v6177_v0 = vrot.slane %v5437_v43, 2 }
 0x569   : > { %16197 = vst [vmem:[#allocation55_spill] sm:$0xff] %v14693_v26  ;;  %v4901_v61 = vmax.f32 %v4847_v42, 0.0  ;;  %v4848_v5 = vadd.f32 %v14553_v29, %v4787_v60  ;;  %10107 = vmatprep.mubr.msk.bf16.mxu1 %vm5700_vm9, %v14693_v26  ;;  %v6178_v52 = vrot.slane %v5440_v55, 3 }
 0x56a   : > { %v5443_v35 = vor.u32 %v5442_v46, %v5439_v15 }
 0x56b   : > { %v5303_v6 = vpack.c.bf16 %v4901_v61, %v5256_v36  ;;  %v4902_v39 = vmax.f32 %v4848_v5, 0.0  ;;  %v6179_v13 = vor.u32 %v6178_v52, %v6177_v0 }
 0x56c   : > { %v4645_v27 = vpop.f32.mrb[56].mxu0  ;;  %v14701_v62 = vsel %vm5325_vm13, %v5435_v38, %v5443_v35 }
 0x56d   : > { %v5446_v43 = vshrl.u32 %v5303_v6, 16  ;;  %v5449_v4 = vshll.u32 %v5303_v6, 16  ;;  %v5258_v42 = vsel %vm5072_vm11, %v4902_v39, 0.0  ;;  %v10033_v60 = vpop.f32.mrb[57].mxu0  ;;  %v5656_v3 = vrot.slane %v5303_v6, 2 }
 0x56e   : > { %v5304_v55 = vpack.c.bf16 %v5258_v42, %v5258_v42  ;;  %v4788_v26 = vadd.f32 %v4645_v27, %v14368_v16  ;;  %v4648_v51 = vpop.f32.mrb[58].mxu0  ;;  %v14707_v44 = vsel %vm6131_vm14, %v6176_v8, %v6179_v13 }
 0x56f   : > { %v5448_v45 = vrot.slane %v5446_v43, 1  ;;  %v5451_v15 = vrot.slane %v5449_v4, 2  ;;  %v6181_v46 = vrot.slane %v5446_v43, 2  ;;  %v6182_v0 = vrot.slane %v5449_v4, 3  ;;  %v10034_v61 = vpop.f32.mrb[59].mxu0 }
 0x570   : > { %v5454_v5 = vshrl.u32 %v5304_v55, 16  ;;  %v5457_v52 = vshll.u32 %v5304_v55, 16  ;;  %v5657_v36 = vrot.slane %v5304_v55, 2  ;;  %v4849_v38 = vadd.f32 %v14553_v29, %v4788_v26 }
 0x571   : > { %v6183_v35 = vor.u32 %v6182_v0, %v6181_v46  ;;  %v4789_v6 = vadd.f32 %v4648_v51, %v14371_v11  ;;  %v5452_v4 = vor.u32 %v5451_v15, %v5448_v45 }
 0x572   : > { %v5456_v39 = vrot.slane %v5454_v5, 1  ;;  %v5459_v42 = vrot.slane %v5457_v52, 2  ;;  %v14712_v16 = vsel %vm5634_vm12, %v5656_v3, %v5657_v36  ;;  %v6184_v8 = vrot.slane %v5454_v5, 2 }
 0x573   : > { %v6185_v13 = vrot.slane %v5457_v52, 3  ;;  %v4903_v27 = vmax.f32 %v4849_v38, 0.0  ;;  %v4850_v43 = vadd.f32 %v14553_v29, %v4789_v6  ;;  %10108 = vmatmul.mubr.msk.bf16.gmra.mrb[100].mxu1 %vm5700_vm9, %v14712_v16 }
 0x574   : > { %v5460_v60 = vor.u32 %v5459_v42, %v5456_v39  ;;  %v4653_v55 = vpop.f32.mrb[60].mxu0 }
 0x575   : > { %v6186_v26 = vor.u32 %v6185_v13, %v6184_v8  ;;  %v5259_v11 = vsel %vm5013_vm10, %v4903_v27, 0.0  ;;  %v4904_v51 = vmax.f32 %v4850_v43, 0.0  ;;  %v4790_v46 = vadd.f32 %v4653_v55, %v14380_v59  ;;  %v10037_v3 = vpop.f32.mrb[61].mxu0 }
 0x576   : > { %v4656_v0 = vpop.f32.mrb[62].mxu0  ;;  %v14721_v61 = vsel %vm5325_vm13, %v5452_v4, %v5460_v60 }
 0x577   : > { %v5305_v5 = vpack.c.bf16 %v4904_v51, %v5259_v11  ;;  %v4851_v52 = vadd.f32 %v14553_v29, %v4790_v46  ;;  %v4791_v36 = vadd.f32 %v4656_v0, %v14383_v22  ;;  %v10038_v45 = vpop.f32.mrb[63].mxu0  ;;  %v14726_v15 = vsel %vm6131_vm14, %v6183_v35, %v6186_v26 }
 0x579   : > { %v5463_v38 = vshrl.u32 %v5305_v5, 16  ;;  %v5466_v6 = vshll.u32 %v5305_v5, 16  ;;  %v4905_v39 = vmax.f32 %v4851_v52, 0.0  ;;  %v4852_v42 = vadd.f32 %v14553_v29, %v4791_v36 }
 0x57a   : > { %v5659_v27 = vrot.slane %v5305_v5, 2 }
 0x57b   : > { %v5261_v59 = vsel %vm5072_vm11, %v4905_v39, 0.0  ;;  %v6188_v43 = vrot.slane %v5463_v38, 2  ;;  %v6189_v4 = vrot.slane %v5466_v6, 3  ;;  %v4906_v60 = vmax.f32 %v4852_v42, 0.0 }
 0x57c   : > { %v5306_v8 = vpack.c.bf16 %v5261_v59, %v5261_v59  ;;  %v4661_v13 = vpop.f32.mrb[64].mxu0  ;;  %v5465_v11 = vrot.slane %v5463_v38, 1  ;;  %v5468_v35 = vrot.slane %v5466_v6, 2 }
 0x57d   : > { %v4792_v22 = vadd.f32 %v4661_v13, %v14392_v41  ;;  %v10041_v55 = vpop.f32.mrb[65].mxu0  ;;  %v6190_v0 = vor.u32 %v6189_v4, %v6188_v43 }
 0x57e   : > { %v5471_v26 = vshrl.u32 %v5306_v8, 16  ;;  %v5474_v51 = vshll.u32 %v5306_v8, 16  ;;  %v4664_v46 = vpop.f32.mrb[66].mxu0  ;;  %v5660_v3 = vrot.slane %v5306_v8, 2  ;;  %v5262_v8 = vsel %vm5013_vm10, %v4906_v60, 0.0 }
 0x57f   : > { %v4853_v52 = vadd.f32 %v14553_v29, %v4792_v22  ;;  %v4793_v36 = vadd.f32 %v4664_v46, %v14398_v56  ;;  %v10042_v45 = vpop.f32.mrb[67].mxu0  ;;  %v5469_v13 = vor.u32 %v5468_v35, %v5465_v11 }
 0x580   : > { %v14735_v5 = vsel %vm5634_vm12, %v5659_v27, %v5660_v3  ;;  %v5473_v39 = vrot.slane %v5471_v26, 1  ;;  %v5476_v42 = vrot.slane %v5474_v51, 2  ;;  %v6191_v59 = vrot.slane %v5471_v26, 2 }
 0x581   : > { %v4907_v41 = vmax.f32 %v4853_v52, 0.0  ;;  %v4854_v38 = vadd.f32 %v14553_v29, %v4793_v36  ;;  %10111 = vmatprep.mubr.msk.bf16.mxu1 %vm5700_vm9, %v14735_v5  ;;  %v6192_v6 = vrot.slane %v5474_v51, 3 }
 0x582   : > { %v5477_v43 = vor.u32 %v5476_v42, %v5473_v39 }
 0x583   : > { %v5307_v56 = vpack.c.bf16 %v4907_v41, %v5262_v8  ;;  %v4908_v4 = vmax.f32 %v4854_v38, 0.0  ;;  %v6193_v22 = vor.u32 %v6192_v6, %v6191_v59 }
 0x584   : > { %v4669_v27 = vpop.f32.mrb[68].mxu0  ;;  %v14743_v55 = vsel %vm5325_vm13, %v5469_v13, %v5477_v43 }
 0x585   : > { %v5480_v26 = vshrl.u32 %v5307_v56, 16  ;;  %v5483_v46 = vshll.u32 %v5307_v56, 16  ;;  %v5264_v3 = vsel %vm5072_vm11, %v4908_v4, 0.0  ;;  %v10045_v52 = vpop.f32.mrb[69].mxu0  ;;  %v5662_v36 = vrot.slane %v5307_v56, 2 }
 0x586   : > { %v5308_v51 = vpack.c.bf16 %v5264_v3, %v5264_v3  ;;  %v4794_v45 = vadd.f32 %v4669_v27, %v14411_v14  ;;  %v4672_v60 = vpop.f32.mrb[70].mxu0  ;;  %v14749_v11 = vsel %vm6131_vm14, %v6190_v0, %v6193_v22 }
 0x587   : > { %v5482_v35 = vrot.slane %v5480_v26, 1  ;;  %v5485_v39 = vrot.slane %v5483_v46, 2  ;;  %v6195_v42 = vrot.slane %v5480_v26, 2  ;;  %v6196_v59 = vrot.slane %v5483_v46, 3  ;;  %v10046_v41 = vpop.f32.mrb[71].mxu0 }
 0x588   : > { %v5488_v38 = vshrl.u32 %v5308_v51, 16  ;;  %v5491_v6 = vshll.u32 %v5308_v51, 16  ;;  %v5663_v8 = vrot.slane %v5308_v51, 2  ;;  %v4855_v13 = vadd.f32 %v14553_v29, %v4794_v45 }
 0x589   : > { %v6197_v43 = vor.u32 %v6196_v59, %v6195_v42  ;;  %v4795_v56 = vadd.f32 %v4672_v60, %v14414_v24  ;;  %v5486_v46 = vor.u32 %v5485_v39, %v5482_v35 }
 0x58a   : > { %v5490_v4 = vrot.slane %v5488_v38, 1  ;;  %v5493_v3 = vrot.slane %v5491_v6, 2  ;;  %v14754_v14 = vsel %vm5634_vm12, %v5662_v36, %v5663_v8  ;;  %v6198_v0 = vrot.slane %v5488_v38, 2 }
 0x58b   : > { %16198 = vst [vmem:[#allocation48_spill] sm:$0xff] %v14754_v14  ;;  %v6199_v22 = vrot.slane %v5491_v6, 3  ;;  %v4909_v27 = vmax.f32 %v4855_v13, 0.0  ;;  %v4856_v26 = vadd.f32 %v14553_v29, %v4795_v56  ;;  %10112 = vmatmul.mubr.msk.bf16.gmra.mrb[104].mxu1 %vm5700_vm9, %v14754_v14 }
 0x58c   : > { %v5494_v52 = vor.u32 %v5493_v3, %v5490_v4  ;;  %v4677_v51 = vpop.f32.mrb[72].mxu0 }
 0x58d   : > { %v6200_v45 = vor.u32 %v6199_v22, %v6198_v0  ;;  %v5265_v24 = vsel %vm5013_vm10, %v4909_v27, 0.0  ;;  %v4910_v60 = vmax.f32 %v4856_v26, 0.0  ;;  %v4796_v42 = vadd.f32 %v4677_v51, %v14423_v19  ;;  %v10049_v36 = vpop.f32.mrb[73].mxu0 }
 0x58e   : > { %v4680_v59 = vpop.f32.mrb[74].mxu0  ;;  %v14763_v41 = vsel %vm5325_vm13, %v5486_v46, %v5494_v52  ;;  %v15546_v22 = vmov 0  }
 0x58f   : > { %v5309_v38 = vpack.c.bf16 %v4910_v60, %v5265_v24  ;;  %v4857_v6 = vadd.f32 %v14553_v29, %v4796_v42  ;;  %v4797_v8 = vadd.f32 %v4680_v59, %v14426_v1  ;;  %v10050_v35 = vpop.f32.mrb[75].mxu0  ;;  %v14768_v39 = vsel %vm6131_vm14, %v6197_v43, %v6200_v45 }
 0x590   : > { %v14774_v27 = vrot.slane %v15546_v22, 2  ;;  %v6133_v1 = vrot.slane %v15546_v22, 3 }
 0x591   : > { %v5497_v13 = vshrl.u32 %v5309_v38, 16  ;;  %v5500_v56 = vshll.u32 %v5309_v38, 16  ;;  %v4911_v4 = vmax.f32 %v4857_v6, 0.0  ;;  %v4858_v3 = vadd.f32 %v14553_v29, %v4797_v8 }
 0x592   : > { %v5665_v0 = vrot.slane %v5309_v38, 2  ;;  %v14779_v8 = vor.u32 %v6133_v1, %v14774_v27 }
 0x593   : > { %v5267_v19 = vsel %vm5072_vm11, %v4911_v4, 0.0  ;;  %v6202_v52 = vrot.slane %v5497_v13, 2  ;;  %v6203_v43 = vrot.slane %v5500_v56, 3  ;;  %v4912_v51 = vmax.f32 %v4858_v3, 0.0 }
 0x594   : > { %v5310_v26 = vpack.c.bf16 %v5267_v19, %v5267_v19  ;;  %v4685_v46 = vpop.f32.mrb[76].mxu0  ;;  %v5499_v60 = vrot.slane %v5497_v13, 1  ;;  %v5502_v42 = vrot.slane %v5500_v56, 2 }
 0x595   : > { %v4798_v45 = vadd.f32 %v4685_v46, %v14435_v54  ;;  %v10053_v24 = vpop.f32.mrb[77].mxu0  ;;  %v6204_v22 = vor.u32 %v6203_v43, %v6202_v52  ;;  %v5268_v1 = vsel %vm5013_vm10, %v4912_v51, 0.0 }
 0x596   : > { %v5505_v36 = vshrl.u32 %v5310_v26, 16  ;;  %v5508_v59 = vshll.u32 %v5310_v26, 16  ;;  %v4688_v6 = vpop.f32.mrb[78].mxu0  ;;  %v5666_v38 = vrot.slane %v5310_v26, 2 }
 0x597   : > { %v4859_v35 = vadd.f32 %v14553_v29, %v4798_v45  ;;  %v4799_v4 = vadd.f32 %v4688_v6, %v14438_v31  ;;  %v10054_v19 = vpop.f32.mrb[79].mxu0  ;;  %v5503_v45 = vor.u32 %v5502_v42, %v5499_v60 }
 0x598   : > { %v14784_v3 = vsel %vm5634_vm12, %v5665_v0, %v5666_v38  ;;  %v5507_v54 = vrot.slane %v5505_v36, 1  ;;  %v5510_v46 = vrot.slane %v5508_v59, 2  ;;  %v6205_v13 = vrot.slane %v5505_v36, 2 }
 0x599   : > { %16199 = vst [vmem:[#allocation149_spill] sm:$0xff] %v14784_v3  ;;  %v4913_v56 = vmax.f32 %v4859_v35, 0.0  ;;  %v4860_v24 = vadd.f32 %v14553_v29, %v4799_v4  ;;  %10115 = vmatprep.mubr.msk.bf16.mxu1 %vm5700_vm9, %v14784_v3  ;;  %v6206_v26 = vrot.slane %v5508_v59, 3 }
 0x59a   : > { %v5511_v31 = vor.u32 %v5510_v46, %v5507_v54 }
 0x59b   : > { %v5311_v6 = vpack.c.bf16 %v4913_v56, %v5268_v1  ;;  %v4914_v52 = vmax.f32 %v4860_v24, 0.0  ;;  %v6207_v43 = vor.u32 %v6206_v26, %v6205_v13 }
 0x59c   : > { %v4693_v0 = vpop.f32.mrb[80].mxu0  ;;  %v14792_v38 = vsel %vm5325_vm13, %v5503_v45, %v5511_v31 }
 0x59d   : > { %v5514_v36 = vshrl.u32 %v5311_v6, 16  ;;  %v5517_v35 = vshll.u32 %v5311_v6, 16  ;;  %v5270_v4 = vsel %vm5072_vm11, %v4914_v52, 0.0  ;;  %v10057_v19 = vpop.f32.mrb[81].mxu0  ;;  %v5668_v3 = vrot.slane %v5311_v6, 2 }
 0x59e   : > { %v5312_v59 = vpack.c.bf16 %v5270_v4, %v5270_v4  ;;  %v4800_v14 = vadd.f32 %v4693_v0, %v14447_v48  ;;  %v4696_v51 = vpop.f32.mrb[82].mxu0  ;;  %v14798_v60 = vsel %vm6131_vm14, %v6204_v22, %v6207_v43 }
 0x59f   : > { %v5516_v42 = vrot.slane %v5514_v36, 1  ;;  %v5519_v54 = vrot.slane %v5517_v35, 2  ;;  %v6209_v46 = vrot.slane %v5514_v36, 2  ;;  %v6210_v13 = vrot.slane %v5517_v35, 3  ;;  %v10058_v56 = vpop.f32.mrb[83].mxu0 }
 0x5a0   : > { %v5522_v24 = vshrl.u32 %v5312_v59, 16  ;;  %v5525_v26 = vshll.u32 %v5312_v59, 16  ;;  %v5669_v1 = vrot.slane %v5312_v59, 2  ;;  %v4861_v45 = vadd.f32 %v14553_v29, %v4800_v14 }
 0x5a1   : > { %v6211_v31 = vor.u32 %v6210_v13, %v6209_v46  ;;  %v4801_v6 = vadd.f32 %v4696_v51, %v14450_v25  ;;  %v5520_v35 = vor.u32 %v5519_v54, %v5516_v42 }
 0x5a2   : > { %v5524_v52 = vrot.slane %v5522_v24, 1  ;;  %v5527_v4 = vrot.slane %v5525_v26, 2  ;;  %v14803_v48 = vsel %vm5634_vm12, %v5668_v3, %v5669_v1  ;;  %v6212_v22 = vrot.slane %v5522_v24, 2 }
 0x5a3   : > { %v6213_v43 = vrot.slane %v5525_v26, 3  ;;  %v4915_v0 = vmax.f32 %v4861_v45, 0.0  ;;  %v4862_v36 = vadd.f32 %v14553_v29, %v4801_v6  ;;  %10116 = vmatmul.mubr.msk.bf16.gmra.mrb[108].mxu1 %vm5700_vm9, %v14803_v48 }
 0x5a4   : > { %v5528_v19 = vor.u32 %v5527_v4, %v5524_v52  ;;  %v4701_v59 = vpop.f32.mrb[84].mxu0 }
 0x5a5   : > { %v6214_v14 = vor.u32 %v6213_v43, %v6212_v22  ;;  %v5271_v25 = vsel %vm5013_vm10, %v4915_v0, 0.0  ;;  %v4916_v51 = vmax.f32 %v4862_v36, 0.0  ;;  %v4802_v46 = vadd.f32 %v4701_v59, %v14459_v37  ;;  %v10061_v3 = vpop.f32.mrb[85].mxu0 }
 0x5a6   : > { %v4704_v13 = vpop.f32.mrb[86].mxu0  ;;  %v14812_v56 = vsel %vm5325_vm13, %v5520_v35, %v5528_v19 }
 0x5a7   : > { %v5313_v24 = vpack.c.bf16 %v4916_v51, %v5271_v25  ;;  %v4863_v26 = vadd.f32 %v14553_v29, %v4802_v46  ;;  %v4803_v1 = vadd.f32 %v4704_v13, %v14462_v50  ;;  %v10062_v42 = vpop.f32.mrb[87].mxu0  ;;  %v14817_v54 = vsel %vm6131_vm14, %v6211_v31, %v6214_v14 }
 0x5a9   : > { %v5531_v45 = vshrl.u32 %v5313_v24, 16  ;;  %v5534_v6 = vshll.u32 %v5313_v24, 16  ;;  %v4917_v52 = vmax.f32 %v4863_v26, 0.0  ;;  %v4864_v4 = vadd.f32 %v14553_v29, %v4803_v1 }
 0x5aa   : > { %v5671_v0 = vrot.slane %v5313_v24, 2 }
 0x5ab   : > { %v5273_v37 = vsel %vm5072_vm11, %v4917_v52, 0.0  ;;  %v6216_v36 = vrot.slane %v5531_v45, 2  ;;  %v6217_v35 = vrot.slane %v5534_v6, 3  ;;  %v4918_v19 = vmax.f32 %v4864_v4, 0.0 }
 0x5ac   : > { %v5314_v22 = vpack.c.bf16 %v5273_v37, %v5273_v37  ;;  %v4709_v43 = vpop.f32.mrb[88].mxu0  ;;  %v5533_v25 = vrot.slane %v5531_v45, 1  ;;  %v5536_v31 = vrot.slane %v5534_v6, 2  ;;  %v14831_v45 = vld [vmem:[%s15383_s2] ss:$0 sm:$0xff] }
 0x5ad   : > { %v4804_v50 = vadd.f32 %v4709_v43, %v14471_v21  ;;  %v10065_v59 = vpop.f32.mrb[89].mxu0  ;;  %v6218_v13 = vor.u32 %v6217_v35, %v6216_v36 }
 0x5ae   : > { %v5539_v14 = vshrl.u32 %v5314_v22, 16  ;;  %v5542_v51 = vshll.u32 %v5314_v22, 16  ;;  %v4712_v46 = vpop.f32.mrb[90].mxu0  ;;  %v5672_v3 = vrot.slane %v5314_v22, 2  ;;  %v5537_v22 = vor.u32 %v5536_v31, %v5533_v25 }
 0x5af   : > { %v4865_v26 = vadd.f32 %v14553_v29, %v4804_v50  ;;  %v4805_v1 = vadd.f32 %v4712_v46, %v14474_v53  ;;  %v10066_v42 = vpop.f32.mrb[91].mxu0  ;;  %v5274_v53 = vsel %vm5013_vm10, %v4918_v19, 0.0 }
 0x5b0   : > { %v14826_v24 = vsel %vm5634_vm12, %v5671_v0, %v5672_v3  ;;  %v5541_v52 = vrot.slane %v5539_v14, 1  ;;  %v5544_v4 = vrot.slane %v5542_v51, 2  ;;  %v6219_v37 = vrot.slane %v5539_v14, 2 }
 0x5b1   : > { %v4919_v21 = vmax.f32 %v4865_v26, 0.0  ;;  %v4866_v6 = vadd.f32 %v14831_v45, %v4805_v1  ;;  %10119 = vmatprep.mubr.msk.bf16.mxu1 %vm5700_vm9, %v14826_v24  ;;  %v6220_v29 = vrot.slane %v5542_v51, 3 }
 0x5b2   : > { %v5545_v43 = vor.u32 %v5544_v4, %v5541_v52 }
 0x5b3   : > { %v5315_v0 = vpack.c.bf16 %v4919_v21, %v5274_v53  ;;  %v4920_v36 = vmax.f32 %v4866_v6, 0.0  ;;  %v6221_v35 = vor.u32 %v6220_v29, %v6219_v37 }
 0x5b4   : > { %v4717_v50 = vpop.f32.mrb[92].mxu0  ;;  %v14839_v59 = vsel %vm5325_vm13, %v5537_v22, %v5545_v43 }
 0x5b5   : > { %v5548_v14 = vshrl.u32 %v5315_v0, 16  ;;  %v5551_v46 = vshll.u32 %v5315_v0, 16  ;;  %v5276_v3 = vsel %vm5072_vm11, %v4920_v36, 0.0  ;;  %v10069_v26 = vpop.f32.mrb[93].mxu0  ;;  %v5674_v1 = vrot.slane %v5315_v0, 2 }
 0x5b6   : > { %v5316_v51 = vpack.c.bf16 %v5276_v3, %v5276_v3  ;;  %v4806_v42 = vadd.f32 %v4717_v50, %v14483_v9  ;;  %v4720_v19 = vpop.f32.mrb[94].mxu0  ;;  %v14845_v25 = vsel %vm6131_vm14, %v6218_v13, %v6221_v35 }
 0x5b7   : > { %v5550_v31 = vrot.slane %v5548_v14, 1  ;;  %v5553_v52 = vrot.slane %v5551_v46, 2  ;;  %v6223_v4 = vrot.slane %v5548_v14, 2  ;;  %v6224_v37 = vrot.slane %v5551_v46, 3  ;;  %v10070_v21 = vpop.f32.mrb[95].mxu0 }
 0x5b8   : > { %v5556_v6 = vshrl.u32 %v5316_v51, 16  ;;  %v5559_v29 = vshll.u32 %v5316_v51, 16  ;;  %v5675_v53 = vrot.slane %v5316_v51, 2  ;;  %v4867_v22 = vadd.f32 %v14831_v45, %v4806_v42 }
 0x5b9   : > { %v6225_v43 = vor.u32 %v6224_v37, %v6223_v4  ;;  %v4807_v0 = vadd.f32 %v4720_v19, %v14486_v47  ;;  %v5554_v46 = vor.u32 %v5553_v52, %v5550_v31 }
 0x5ba   : > { %v5558_v36 = vrot.slane %v5556_v6, 1  ;;  %v5561_v3 = vrot.slane %v5559_v29, 2  ;;  %v14850_v9 = vsel %vm5634_vm12, %v5674_v1, %v5675_v53  ;;  %v6226_v13 = vrot.slane %v5556_v6, 2 }
 0x5bb   : > { %v6227_v35 = vrot.slane %v5559_v29, 3  ;;  %v4921_v50 = vmax.f32 %v4867_v22, 0.0  ;;  %v4868_v14 = vadd.f32 %v14831_v45, %v4807_v0  ;;  %10120 = vmatmul.mubr.msk.bf16.gmra.mrb[112].mxu1 %vm5700_vm9, %v14850_v9 }
 0x5bc   : > { %v5562_v26 = vor.u32 %v5561_v3, %v5558_v36  ;;  %v4725_v51 = vpop.f32.mrb[96].mxu0 }
 0x5bd   : > { %v6228_v42 = vor.u32 %v6227_v35, %v6226_v13  ;;  %v5277_v47 = vsel %vm5013_vm10, %v4921_v50, 0.0  ;;  %v4922_v19 = vmax.f32 %v4868_v14, 0.0  ;;  %v4808_v4 = vadd.f32 %v4725_v51, %v14495_v63  ;;  %v10073_v1 = vpop.f32.mrb[97].mxu0 }
 0x5be   : > { %v4728_v37 = vpop.f32.mrb[98].mxu0  ;;  %v14859_v21 = vsel %vm5325_vm13, %v5554_v46, %v5562_v26 }
 0x5bf   : > { %v5317_v6 = vpack.c.bf16 %v4922_v19, %v5277_v47  ;;  %v4869_v29 = vadd.f32 %v14831_v45, %v4808_v4  ;;  %v4809_v53 = vadd.f32 %v4728_v37, %v14498_v28  ;;  %v10074_v31 = vpop.f32.mrb[99].mxu0  ;;  %v14864_v52 = vsel %vm6131_vm14, %v6225_v43, %v6228_v42 }
 0x5c1   : > { %v5565_v22 = vshrl.u32 %v5317_v6, 16  ;;  %v5568_v0 = vshll.u32 %v5317_v6, 16  ;;  %v4923_v36 = vmax.f32 %v4869_v29, 0.0  ;;  %v4870_v3 = vadd.f32 %v14831_v45, %v4809_v53 }
 0x5c2   : > { %v5677_v50 = vrot.slane %v5317_v6, 2 }
 0x5c3   : > { %v5279_v63 = vsel %vm5072_vm11, %v4923_v36, 0.0  ;;  %v6230_v14 = vrot.slane %v5565_v22, 2  ;;  %v6231_v46 = vrot.slane %v5568_v0, 3  ;;  %v4924_v26 = vmax.f32 %v4870_v3, 0.0 }
 0x5c4   : > { %v5318_v13 = vpack.c.bf16 %v5279_v63, %v5279_v63  ;;  %v4733_v35 = vpop.f32.mrb[100].mxu0  ;;  %v5567_v47 = vrot.slane %v5565_v22, 1  ;;  %v5570_v43 = vrot.slane %v5568_v0, 2  ;;  %v16200_v0 = vmov 0  }
 0x5c5   : > { %v4810_v28 = vadd.f32 %v4733_v35, %v14507_v12  ;;  %v10077_v51 = vpop.f32.mrb[101].mxu0  ;;  %v6232_v37 = vor.u32 %v6231_v46, %v6230_v14  ;;  %v5280_v14 = vsel %vm5013_vm10, %v4924_v26, 0.0 }
 0x5c6   : > { %v5573_v42 = vshrl.u32 %v5318_v13, 16  ;;  %v5576_v19 = vshll.u32 %v5318_v13, 16  ;;  %v4736_v4 = vpop.f32.mrb[102].mxu0  ;;  %v5678_v1 = vrot.slane %v5318_v13, 2  ;;  %v5329_v13 = vrot.slane %v16200_v0, 1 }
 0x5c7   : > { %v4871_v29 = vadd.f32 %v14831_v45, %v4810_v28  ;;  %v4811_v53 = vadd.f32 %v4736_v4, %v14510_v30  ;;  %v10078_v31 = vpop.f32.mrb[103].mxu0  ;;  %v5571_v30 = vor.u32 %v5570_v43, %v5567_v47 }
 0x5c8   : > { %v14873_v6 = vsel %vm5634_vm12, %v5677_v50, %v5678_v1  ;;  %v5575_v36 = vrot.slane %v5573_v42, 1  ;;  %v5578_v3 = vrot.slane %v5576_v19, 2  ;;  %v6233_v63 = vrot.slane %v5573_v42, 2 }
 0x5c9   : > { %v4925_v12 = vmax.f32 %v4871_v29, 0.0  ;;  %v4872_v22 = vadd.f32 %v14831_v45, %v4811_v53  ;;  %10123 = vmatprep.mubr.msk.bf16.mxu1 %vm5700_vm9, %v14873_v6  ;;  %v6234_v35 = vrot.slane %v5576_v19, 3  ;;  %v14887_v19 = vor.u32 %v14774_v27, %v5329_v13 }
 0x5ca   : > { %v5579_v46 = vor.u32 %v5578_v3, %v5575_v36 }
 0x5cb   : > { %v5319_v28 = vpack.c.bf16 %v4925_v12, %v5280_v14  ;;  %v4926_v50 = vmax.f32 %v4872_v22, 0.0  ;;  %v6235_v51 = vor.u32 %v6234_v35, %v6233_v63 }
 0x5cc   : > { %v4741_v4 = vpop.f32.mrb[104].mxu0  ;;  %v14882_v42 = vsel %vm5325_vm13, %v5571_v30, %v5579_v46 }
 0x5cd   : > { %v5582_v1 = vshrl.u32 %v5319_v28, 16  ;;  %v5585_v29 = vshll.u32 %v5319_v28, 16  ;;  %v5282_v53 = vsel %vm5072_vm11, %v4926_v50, 0.0  ;;  %v10081_v31 = vpop.f32.mrb[105].mxu0  ;;  %v5680_v0 = vrot.slane %v5319_v28, 2 }
 0x5ce   : > { %v5320_v26 = vpack.c.bf16 %v5282_v53, %v5282_v53  ;;  %v4812_v47 = vadd.f32 %v4741_v4, %v14521_v58  ;;  %v4744_v43 = vpop.f32.mrb[106].mxu0  ;;  %v14891_v36 = vsel %vm6131_vm14, %v6232_v37, %v6235_v51 }
 0x5cf   : > { %v5584_v3 = vrot.slane %v5582_v1, 1  ;;  %v5587_v63 = vrot.slane %v5585_v29, 2  ;;  %v6237_v12 = vrot.slane %v5582_v1, 2  ;;  %v6238_v22 = vrot.slane %v5585_v29, 3  ;;  %v10082_v35 = vpop.f32.mrb[107].mxu0 }
 0x5d0   : > { %v5590_v14 = vshrl.u32 %v5320_v26, 16  ;;  %v5593_v30 = vshll.u32 %v5320_v26, 16  ;;  %v5681_v46 = vrot.slane %v5320_v26, 2  ;;  %v4873_v50 = vadd.f32 %v14831_v45, %v4812_v47 }
 0x5d1   : > { %v6239_v27 = vor.u32 %v6238_v22, %v6237_v12  ;;  %v4813_v13 = vadd.f32 %v4744_v43, %v14524_v57  ;;  %v5588_v29 = vor.u32 %v5587_v63, %v5584_v3  ;;  %v16201_v43 = vld [vmem:[#allocation145_spill] sm:$0xff] }
 0x5d2   : > { %v5592_v28 = vrot.slane %v5590_v14, 1  ;;  %v5595_v53 = vrot.slane %v5593_v30, 2  ;;  %v14896_v58 = vsel %vm5634_vm12, %v5680_v0, %v5681_v46  ;;  %v6240_v37 = vrot.slane %v5590_v14, 2 }
 0x5d3   : > { %v6241_v51 = vrot.slane %v5593_v30, 3  ;;  %v4927_v4 = vmax.f32 %v4873_v50, 0.0  ;;  %v4874_v1 = vadd.f32 %v14831_v45, %v4813_v13  ;;  %10124 = vmatmul.mubr.msk.bf16.gmra.mrb[116].mxu1 %vm5700_vm9, %v14896_v58 }
 0x5d4   : > { %v5596_v31 = vor.u32 %v5595_v53, %v5592_v28  ;;  %v4749_v26 = vpop.f32.mrb[108].mxu0  ;;  %10131 = vmatprep.mubr.msk.bf16.mxu1 %vm5700_vm9, %v14887_v19 }
 0x5d5   : > { %v6242_v57 = vor.u32 %v6241_v51, %v6240_v37  ;;  %v5283_v47 = vsel %vm5013_vm10, %v4927_v4, 0.0  ;;  %v4928_v0 = vmax.f32 %v4874_v1, 0.0  ;;  %v4814_v12 = vadd.f32 %v4749_v26, %v16201_v43  ;;  %v10085_v22 = vpop.f32.mrb[109].mxu0  ;;  %v16202_v51 = vld [vmem:[#allocation52_spill] sm:$0xff] }
 0x5d6   : > { %v14907_v35 = vsel %vm5325_vm13, %v5588_v29, %v5596_v31  ;;  %v4752_v14 = vpop.f32.mrb[110].mxu0  ;;  %v10798_v29 = vld [vmem:[%s15384_s3 + $0x30] sm:$0xff]  }
 0x5d7   : > { %v5321_v30 = vpack.c.bf16 %v4928_v0, %v5283_v47  ;;  %v4875_v3 = vadd.f32 %v14831_v45, %v4814_v12  ;;  %v14911_v63 = vsel %vm6131_vm14, %v6239_v27, %v6242_v57  ;;  %v10086_v46 = vpop.f32.mrb[111].mxu0 }
 0x5d9   : > { %v6503_v50 = vshrl.u32 %v5321_v30, 16  ;;  %v6506_v13 = vshll.u32 %v5321_v30, 16  ;;  %v4929_v28 = vmax.f32 %v4875_v3, 0.0  ;;  %v6734_v57 = vrot.slane %v5321_v30, 2 }
 0x5db   : > { %v6950_v53 = vrot.slane %v6503_v50, 2  ;;  %v6951_v37 = vrot.slane %v6506_v13, 3  ;;  %10132 = vmatmul.mubr.msk.bf16.vlgmr.msra.gmra.mrb[88].mxu1 %vm5700_vm9, %v16202_v51  ;;  %v5285_v4 = vsel %vm5072_vm11, %v4929_v28, 0.0  ;;  %v6505_v26 = vrot.slane %v6503_v50, 1 }
 0x5dc   : > { %10164 = vmatpush3.bf16.msra.mxu1 %v14686_v23  ;;  %10135 = vmatprep.mubr.msk.bf16.mxu1 %vm5700_vm9, %v14608_v49  ;;  %v4757_v45 = vpop.f32.mrb[112].mxu0  ;;  %v5322_v1 = vpack.c.bf16 %v5285_v4, %v5285_v4  ;;  %v6508_v0 = vrot.slane %v6506_v13, 2  ;;  %v16203_v4 = vld [vmem:[#allocation45_spill] sm:$0xff] }
 0x5dd   : > { %v6952_v27 = vor.u32 %v6951_v37, %v6950_v53  ;;  %10165 = vmatprep.subr.bf16.mxu1 %v10797_v17  ;;  %v10089_v31 = vpop.f32.mrb[113].mxu0  ;;  %v10800_v45 = vld [vmem:[%s15384_s3 + $0x40] sm:$0xff]  }
 0x5de   : > { %v4760_v47 = vpop.f32.mrb[114].mxu0  ;;  %v6511_v40 = vshrl.u32 %v5322_v1, 16  ;;  %v6514_v43 = vshll.u32 %v5322_v1, 16  ;;  %v6735_v12 = vrot.slane %v5322_v1, 2  ;;  %v6509_v53 = vor.u32 %v6508_v0, %v6505_v26  ;;  %v10801_v1 = vld [vmem:[%s15384_s3 + $0x48] sm:$0xff]   ;;  %v10803_v31 = vld [vmem:[%s15384_s3 + $0x58] sm:$0xff]  }
 0x5df   : > { %v10090_v23 = vpop.f32.mrb[115].mxu0  ;;  %v16206_v26 = vld [vmem:[#allocation146_spill] sm:$0xff]  ;;  %v10804_v47 = vld [vmem:[%s15384_s3 + $0x60] sm:$0xff]   ;;  %v16208_v0 = vld [vmem:[#allocation55_spill] sm:$0xff] }
 0x5e0   : > { %10166 = vmatpush3.bf16.msra.mxu1 %v10797_v17  ;;  %v6513_v22 = vrot.slane %v6511_v40, 1  ;;  %v6516_v14 = vrot.slane %v6514_v43, 2  ;;  %v14927_v3 = vsel %vm5634_vm12, %v6734_v57, %v6735_v12  ;;  %v6953_v46 = vrot.slane %v6511_v40, 2  ;;  %v10799_v17 = vld [vmem:[%s15384_s3 + $0x38] sm:$0xff]   ;;  %v10805_v12 = vld [vmem:[%s15384_s3 + $0x68] sm:$0xff]   ;;  %v10806_v23 = vld [vmem:[%s15384_s3 + $0x70] sm:$0xff]  }
 0x5e1   : > { %10199 = vmatprep.subr.bf16.mxu1 %v10798_v29  ;;  %v6954_v28 = vrot.slane %v6514_v43, 3  ;;  %v16207_v57 = vld [vmem:[#allocation148_spill] sm:$0xff]  ;;  %v16210_v43 = vld [vmem:[#allocation149_spill] sm:$0xff] }
 0x5e2   : > { %v6517_v37 = vor.u32 %v6516_v14, %v6513_v22  ;;  %v16209_v40 = vld [vmem:[#allocation48_spill] sm:$0xff]  ;;  %v10808_v14 = vld [vmem:[%s15384_s3 + $0x80] sm:$0xff]  }
 0x5e3   : > { %10136 = vmatmul.mubr.msk.bf16.gmra.mrb[92].mxu1 %vm5700_vm9, %v14631_v32  ;;  %v6955_v30 = vor.u32 %v6954_v28, %v6953_v46  ;;  %v10807_v22 = vld [vmem:[%s15384_s3 + $0x78] sm:$0xff]  }
 0x5e4   : > { %10139 = vmatprep.mubr.msk.bf16.mxu1 %vm5700_vm9, %v14653_v20  ;;  %v14934_v50 = vsel %vm5325_vm13, %v6509_v53, %v6517_v37 }
 0x5e5   : > { %v14937_v13 = vsel %vm6131_vm14, %v6952_v27, %v6955_v30  ;;  %v16204_v27 = vld [vmem:[#allocation54_spill] sm:$0xff] }
 0x5eb   : > { %10140 = vmatmul.mubr.msk.bf16.gmra.mrb[96].mxu1 %vm5700_vm9, %v14673_v34 }
 0x5ec   : > { %10143 = vmatprep.mubr.msk.bf16.mxu1 %vm5700_vm9, %v14701_v62 }
 0x5f3   : > { %10144 = vmatmul.mubr.msk.bf16.gmra.mrb[100].mxu1 %vm5700_vm9, %v14721_v61 }
 0x5f4   : > { %10147 = vmatprep.mubr.msk.bf16.mxu1 %vm5700_vm9, %v14743_v55 }
 0x5fb   : > { %10148 = vmatmul.mubr.msk.bf16.gmra.mrb[104].mxu1 %vm5700_vm9, %v14763_v41 }
 0x5fc   : > { %10151 = vmatprep.mubr.msk.bf16.mxu1 %vm5700_vm9, %v14792_v38 }
 0x603   : > { %10152 = vmatmul.mubr.msk.bf16.gmra.mrb[108].mxu1 %vm5700_vm9, %v14812_v56 }
 0x604   : > { %10155 = vmatprep.mubr.msk.bf16.mxu1 %vm5700_vm9, %v14839_v59 }
 0x60b   : > { %10156 = vmatmul.mubr.msk.bf16.gmra.mrb[112].mxu1 %vm5700_vm9, %v14859_v21 }
 0x60c   : > { %10159 = vmatprep.mubr.msk.bf16.mxu1 %vm5700_vm9, %v14882_v42 }
 0x613   : > { %10160 = vmatmul.mubr.msk.bf16.gmra.mrb[116].mxu1 %vm5700_vm9, %v14907_v35 }
 0x614   : > { %10167 = vmatprep.mubr.msk.bf16.mxu1 %vm5700_vm9, %v14779_v8 }
 0x61b   : > { %10168 = vmatmul.mubr.msk.bf16.vlgmr.msra.gmra.mrb[88].mxu1 %vm5700_vm9, %v16203_v4 }
 0x61c   : > { %10200 = vmatpush3.bf16.msra.mxu1 %v10798_v29  ;;  %10171 = vmatprep.mubr.msk.bf16.mxu1 %vm5700_vm9, %v14614_v18  ;;  %v10802_v29 = vld [vmem:[%s15384_s3 + $0x50] sm:$0xff]  }
 0x61d   : > { %10201 = vmatprep.subr.bf16.mxu1 %v10799_v17 }
 0x620   : > { %10202 = vmatpush3.bf16.msra.mxu1 %v10799_v17 }
 0x621   : > { %10235 = vmatprep.subr.bf16.mxu1 %v10800_v45 }
 0x623   : > { %10172 = vmatmul.mubr.msk.bf16.gmra.mrb[92].mxu1 %vm5700_vm9, %v16204_v27 }
 0x624   : > { %10175 = vmatprep.mubr.msk.bf16.mxu1 %vm5700_vm9, %v14659_v7 }
 0x62b   : > { %10176 = vmatmul.mubr.msk.bf16.gmra.mrb[96].mxu1 %vm5700_vm9, %v14678_v33 }
 0x62c   : > { %10179 = vmatprep.mubr.msk.bf16.mxu1 %vm5700_vm9, %v14707_v44 }
 0x633   : > { %10180 = vmatmul.mubr.msk.bf16.gmra.mrb[100].mxu1 %vm5700_vm9, %v14726_v15 }
 0x634   : > { %10183 = vmatprep.mubr.msk.bf16.mxu1 %vm5700_vm9, %v14749_v11 }
 0x63b   : > { %10184 = vmatmul.mubr.msk.bf16.gmra.mrb[104].mxu1 %vm5700_vm9, %v14768_v39 }
 0x63c   : > { %10187 = vmatprep.mubr.msk.bf16.mxu1 %vm5700_vm9, %v14798_v60 }
 0x643   : > { %10188 = vmatmul.mubr.msk.bf16.gmra.mrb[108].mxu1 %vm5700_vm9, %v14817_v54 }
 0x644   : > { %10191 = vmatprep.mubr.msk.bf16.mxu1 %vm5700_vm9, %v14845_v25 }
 0x64b   : > { %10192 = vmatmul.mubr.msk.bf16.gmra.mrb[112].mxu1 %vm5700_vm9, %v14864_v52 }
 0x64c   : > { %10195 = vmatprep.mubr.msk.bf16.mxu1 %vm5700_vm9, %v14891_v36 }
 0x653   : > { %10196 = vmatmul.mubr.msk.bf16.gmra.mrb[116].mxu1 %vm5700_vm9, %v14911_v63 }
 0x654   : > { %10203 = vmatprep.mubr.msk.bf16.mxu1 %vm5700_vm9, %v16202_v51  ;;  %v16205_v51 = vld [vmem:[#allocation51_spill] sm:$0xff] }
 0x65b   : > { %10204 = vmatmul.mubr.msk.bf16.vlgmr.msra.gmra.mrb[88].mxu1 %vm5700_vm9, %v14608_v49 }
 0x65c   : > { %10236 = vmatpush3.bf16.msra.mxu1 %v10800_v45  ;;  %10207 = vmatprep.mubr.msk.bf16.mxu1 %vm5700_vm9, %v14631_v32 }
 0x65d   : > { %10237 = vmatprep.subr.bf16.mxu1 %v10801_v1 }
 0x660   : > { %10238 = vmatpush3.bf16.msra.mxu1 %v10801_v1 }
 0x661   : > { %10271 = vmatprep.subr.bf16.mxu1 %v10802_v29 }
 0x663   : > { %10208 = vmatmul.mubr.msk.bf16.gmra.mrb[92].mxu1 %vm5700_vm9, %v14653_v20 }
 0x664   : > { %10211 = vmatprep.mubr.msk.bf16.mxu1 %vm5700_vm9, %v14673_v34 }
 0x66b   : > { %10212 = vmatmul.mubr.msk.bf16.gmra.mrb[96].mxu1 %vm5700_vm9, %v14701_v62 }
 0x66c   : > { %10215 = vmatprep.mubr.msk.bf16.mxu1 %vm5700_vm9, %v14721_v61 }
 0x673   : > { %10216 = vmatmul.mubr.msk.bf16.gmra.mrb[100].mxu1 %vm5700_vm9, %v14743_v55 }
 0x674   : > { %10219 = vmatprep.mubr.msk.bf16.mxu1 %vm5700_vm9, %v14763_v41 }
 0x67b   : > { %10220 = vmatmul.mubr.msk.bf16.gmra.mrb[104].mxu1 %vm5700_vm9, %v14792_v38 }
 0x67c   : > { %10223 = vmatprep.mubr.msk.bf16.mxu1 %vm5700_vm9, %v14812_v56 }
 0x683   : > { %10224 = vmatmul.mubr.msk.bf16.gmra.mrb[108].mxu1 %vm5700_vm9, %v14839_v59 }
 0x684   : > { %10227 = vmatprep.mubr.msk.bf16.mxu1 %vm5700_vm9, %v14859_v21 }
 0x68b   : > { %10228 = vmatmul.mubr.msk.bf16.gmra.mrb[112].mxu1 %vm5700_vm9, %v14882_v42 }
 0x68c   : > { %10231 = vmatprep.mubr.msk.bf16.mxu1 %vm5700_vm9, %v14907_v35 }
 0x693   : > { %10232 = vmatmul.mubr.msk.bf16.gmra.mrb[116].mxu1 %vm5700_vm9, %v14934_v50 }
 0x694   : > { %10239 = vmatprep.mubr.msk.bf16.mxu1 %vm5700_vm9, %v16205_v51 }
 0x69b   : > { %10240 = vmatmul.mubr.msk.bf16.vlgmr.msra.gmra.mrb[88].mxu1 %vm5700_vm9, %v16206_v26 }
 0x69c   : > { %10272 = vmatpush3.bf16.msra.mxu1 %v10802_v29  ;;  %10243 = vmatprep.mubr.msk.bf16.mxu1 %vm5700_vm9, %v16207_v57 }
 0x69d   : > { %10273 = vmatprep.subr.bf16.mxu1 %v10803_v31 }
 0x6a0   : > { %10274 = vmatpush3.bf16.msra.mxu1 %v10803_v31 }
 0x6a1   : > { %10307 = vmatprep.subr.bf16.mxu1 %v10804_v47 }
 0x6a3   : > { %10244 = vmatmul.mubr.msk.bf16.gmra.mrb[92].mxu1 %vm5700_vm9, %v14645_v2 }
 0x6a4   : > { %10247 = vmatprep.mubr.msk.bf16.mxu1 %vm5700_vm9, %v14664_v10 }
 0x6ab   : > { %10248 = vmatmul.mubr.msk.bf16.gmra.mrb[96].mxu1 %vm5700_vm9, %v16208_v0 }
 0x6ac   : > { %10251 = vmatprep.mubr.msk.bf16.mxu1 %vm5700_vm9, %v14712_v16 }
 0x6b3   : > { %10252 = vmatmul.mubr.msk.bf16.gmra.mrb[100].mxu1 %vm5700_vm9, %v14735_v5 }
 0x6b4   : > { %10255 = vmatprep.mubr.msk.bf16.mxu1 %vm5700_vm9, %v16209_v40 }
 0x6bb   : > { %10256 = vmatmul.mubr.msk.bf16.gmra.mrb[104].mxu1 %vm5700_vm9, %v16210_v43 }
 0x6bc   : > { %10259 = vmatprep.mubr.msk.bf16.mxu1 %vm5700_vm9, %v14803_v48 }
 0x6c3   : > { %10260 = vmatmul.mubr.msk.bf16.gmra.mrb[108].mxu1 %vm5700_vm9, %v14826_v24 }
 0x6c4   : > { %10263 = vmatprep.mubr.msk.bf16.mxu1 %vm5700_vm9, %v14850_v9 }
 0x6cb   : > { %10264 = vmatmul.mubr.msk.bf16.gmra.mrb[112].mxu1 %vm5700_vm9, %v14873_v6 }
 0x6cc   : > { %10267 = vmatprep.mubr.msk.bf16.mxu1 %vm5700_vm9, %v14896_v58 }
 0x6d3   : > { %10268 = vmatmul.mubr.msk.bf16.gmra.mrb[116].mxu1 %vm5700_vm9, %v14927_v3 }
 0x6d4   : > { %10275 = vmatprep.mubr.msk.bf16.mxu1 %vm5700_vm9, %v16203_v4 }
 0x6db   : > { %10276 = vmatmul.mubr.msk.bf16.vlgmr.msra.gmra.mrb[88].mxu1 %vm5700_vm9, %v14614_v18 }
 0x6dc   : > { %10308 = vmatpush3.bf16.msra.mxu1 %v10804_v47  ;;  %10279 = vmatprep.mubr.msk.bf16.mxu1 %vm5700_vm9, %v16204_v27 }
 0x6dd   : > { %10309 = vmatprep.subr.bf16.mxu1 %v10805_v12 }
 0x6e0   : > { %10310 = vmatpush3.bf16.msra.mxu1 %v10805_v12 }
 0x6e1   : > { %10343 = vmatprep.subr.bf16.mxu1 %v10806_v23 }
 0x6e3   : > { %10280 = vmatmul.mubr.msk.bf16.gmra.mrb[92].mxu1 %vm5700_vm9, %v14659_v7 }
 0x6e4   : > { %10283 = vmatprep.mubr.msk.bf16.mxu1 %vm5700_vm9, %v14678_v33 }
 0x6eb   : > { %10284 = vmatmul.mubr.msk.bf16.gmra.mrb[96].mxu1 %vm5700_vm9, %v14707_v44 }
 0x6ec   : > { %10287 = vmatprep.mubr.msk.bf16.mxu1 %vm5700_vm9, %v14726_v15 }
 0x6f3   : > { %10288 = vmatmul.mubr.msk.bf16.gmra.mrb[100].mxu1 %vm5700_vm9, %v14749_v11 }
 0x6f4   : > { %10291 = vmatprep.mubr.msk.bf16.mxu1 %vm5700_vm9, %v14768_v39 }
 0x6fb   : > { %10292 = vmatmul.mubr.msk.bf16.gmra.mrb[104].mxu1 %vm5700_vm9, %v14798_v60 }
 0x6fc   : > { %10295 = vmatprep.mubr.msk.bf16.mxu1 %vm5700_vm9, %v14817_v54 }
 0x703   : > { %10296 = vmatmul.mubr.msk.bf16.gmra.mrb[108].mxu1 %vm5700_vm9, %v14845_v25 }
 0x704   : > { %10299 = vmatprep.mubr.msk.bf16.mxu1 %vm5700_vm9, %v14864_v52 }
 0x70b   : > { %10300 = vmatmul.mubr.msk.bf16.gmra.mrb[112].mxu1 %vm5700_vm9, %v14891_v36 }
 0x70c   : > { %10303 = vmatprep.mubr.msk.bf16.mxu1 %vm5700_vm9, %v14911_v63 }
 0x713   : > { %10304 = vmatmul.mubr.msk.bf16.gmra.mrb[116].mxu1 %vm5700_vm9, %v14937_v13 }
 0x714   : > { %10311 = vmatprep.mubr.msk.bf16.mxu1 %vm5700_vm9, %v14608_v49  ;;  %v10809_v49 = vld [vmem:[%s15384_s3 + $0x88] sm:$0xff]  }
 0x71b   : > { %10312 = vmatmul.mubr.msk.bf16.vlgmr.msra.gmra.mrb[88].mxu1 %vm5700_vm9, %v14631_v32  ;;  %v16211_v32 = vld [vmem:[#allocation143_spill] sm:$0xff] }
 0x71c   : > { %10344 = vmatpush3.bf16.msra.mxu1 %v10806_v23  ;;  %10315 = vmatprep.mubr.msk.bf16.mxu1 %vm5700_vm9, %v14653_v20 }
 0x71d   : > { %10345 = vmatprep.subr.bf16.mxu1 %v10807_v22 }
 0x720   : > { %10346 = vmatpush3.bf16.msra.mxu1 %v10807_v22 }
 0x721   : > { %10379 = vmatprep.subr.bf16.mxu1 %v10808_v14 }
 0x723   : > { %10316 = vmatmul.mubr.msk.bf16.gmra.mrb[92].mxu1 %vm5700_vm9, %v14673_v34 }
 0x724   : > { %10319 = vmatprep.mubr.msk.bf16.mxu1 %vm5700_vm9, %v14701_v62 }
 0x72b   : > { %10320 = vmatmul.mubr.msk.bf16.gmra.mrb[96].mxu1 %vm5700_vm9, %v14721_v61 }
 0x72c   : > { %10323 = vmatprep.mubr.msk.bf16.mxu1 %vm5700_vm9, %v14743_v55 }
 0x733   : > { %10324 = vmatmul.mubr.msk.bf16.gmra.mrb[100].mxu1 %vm5700_vm9, %v14763_v41 }
 0x734   : > { %10327 = vmatprep.mubr.msk.bf16.mxu1 %vm5700_vm9, %v14792_v38 }
 0x73b   : > { %10328 = vmatmul.mubr.msk.bf16.gmra.mrb[104].mxu1 %vm5700_vm9, %v14812_v56 }
 0x73c   : > { %10331 = vmatprep.mubr.msk.bf16.mxu1 %vm5700_vm9, %v14839_v59 }
 0x743   : > { %10332 = vmatmul.mubr.msk.bf16.gmra.mrb[108].mxu1 %vm5700_vm9, %v14859_v21 }
 0x744   : > { %10335 = vmatprep.mubr.msk.bf16.mxu1 %vm5700_vm9, %v14882_v42 }
 0x74b   : > { %10336 = vmatmul.mubr.msk.bf16.gmra.mrb[112].mxu1 %vm5700_vm9, %v14907_v35 }
 0x74c   : > { %10339 = vmatprep.mubr.msk.bf16.mxu1 %vm5700_vm9, %v14934_v50 }
 0x753   : > { %10340 = vmatmul.mubr.msk.bf16.gmra.mrb[116].mxu1 %vm5700_vm9, %v14887_v19 }
 0x754   : > { %10347 = vmatprep.mubr.msk.bf16.mxu1 %vm5700_vm9, %v16206_v26 }
 0x75b   : > { %10348 = vmatmul.mubr.msk.bf16.vlgmr.msra.gmra.mrb[88].mxu1 %vm5700_vm9, %v16207_v57 }
 0x75c   : > { %10380 = vmatpush3.bf16.msra.mxu1 %v10808_v14  ;;  %10351 = vmatprep.mubr.msk.bf16.mxu1 %vm5700_vm9, %v14645_v2 }
 0x75d   : > { %10381 = vmatprep.subr.bf16.mxu1 %v10809_v49 }
 0x760   : > { %10382 = vmatpush3.bf16.msra.mxu1 %v10809_v49 }
 0x763   : > { %10352 = vmatmul.mubr.msk.bf16.gmra.mrb[92].mxu1 %vm5700_vm9, %v14664_v10 }
 0x764   : > { %10355 = vmatprep.mubr.msk.bf16.mxu1 %vm5700_vm9, %v16208_v0 }
 0x76b   : > { %10356 = vmatmul.mubr.msk.bf16.gmra.mrb[96].mxu1 %vm5700_vm9, %v14712_v16 }
 0x76c   : > { %10359 = vmatprep.mubr.msk.bf16.mxu1 %vm5700_vm9, %v14735_v5 }
 0x773   : > { %10360 = vmatmul.mubr.msk.bf16.gmra.mrb[100].mxu1 %vm5700_vm9, %v16209_v40 }
 0x774   : > { %10363 = vmatprep.mubr.msk.bf16.mxu1 %vm5700_vm9, %v16210_v43 }
 0x77b   : > { %10364 = vmatmul.mubr.msk.bf16.gmra.mrb[104].mxu1 %vm5700_vm9, %v14803_v48 }
 0x77c   : > { %10367 = vmatprep.mubr.msk.bf16.mxu1 %vm5700_vm9, %v14826_v24 }
 0x783   : > { %10368 = vmatmul.mubr.msk.bf16.gmra.mrb[108].mxu1 %vm5700_vm9, %v14850_v9 }
 0x784   : > { %10371 = vmatprep.mubr.msk.bf16.mxu1 %vm5700_vm9, %v14873_v6 }
 0x78b   : > { %10372 = vmatmul.mubr.msk.bf16.gmra.mrb[112].mxu1 %vm5700_vm9, %v14896_v58 }
 0x78c   : > { %10375 = vmatprep.mubr.msk.bf16.mxu1 %vm5700_vm9, %v14927_v3 }
 0x793   : > { %10376 = vmatmul.mubr.msk.bf16.gmra.mrb[116].mxu1 %vm5700_vm9, %v16211_v32 }
 0x794   : > { %10383 = vmatprep.mubr.msk.bf16.mxu1 %vm5700_vm9, %v14614_v18  ;;  %v15222_v18 = vld [vmem:[%s15385_s4] ss:$0 sm:$0xff] }
 0x79b   : > { %10384 = vmatmul.mubr.msk.bf16.vlgmr.msra.gmra.mrb[88].mxu1 %vm5700_vm9, %v16204_v27 }
 0x79c   : > { %10387 = vmatprep.mubr.msk.bf16.mxu1 %vm5700_vm9, %v14659_v7 }
 0x7a3   : > { %10388 = vmatmul.mubr.msk.bf16.gmra.mrb[92].mxu1 %vm5700_vm9, %v14678_v33 }
 0x7a4   : > { %10391 = vmatprep.mubr.msk.bf16.mxu1 %vm5700_vm9, %v14707_v44 }
 0x7ab   : > { %10392 = vmatmul.mubr.msk.bf16.gmra.mrb[96].mxu1 %vm5700_vm9, %v14726_v15 }
 0x7ac   : > { %10395 = vmatprep.mubr.msk.bf16.mxu1 %vm5700_vm9, %v14749_v11 }
 0x7b3   : > { %10396 = vmatmul.mubr.msk.bf16.gmra.mrb[100].mxu1 %vm5700_vm9, %v14768_v39 }
 0x7b4   : > { %10399 = vmatprep.mubr.msk.bf16.mxu1 %vm5700_vm9, %v14798_v60 }
 0x7bb   : > { %10400 = vmatmul.mubr.msk.bf16.gmra.mrb[104].mxu1 %vm5700_vm9, %v14817_v54 }
 0x7bc   : > { %10403 = vmatprep.mubr.msk.bf16.mxu1 %vm5700_vm9, %v14845_v25 }
 0x7c3   : > { %10404 = vmatmul.mubr.msk.bf16.gmra.mrb[108].mxu1 %vm5700_vm9, %v14864_v52 }
 0x7c4   : > { %10407 = vmatprep.mubr.msk.bf16.mxu1 %vm5700_vm9, %v14891_v36 }
 0x7cb   : > { %10408 = vmatmul.mubr.msk.bf16.gmra.mrb[112].mxu1 %vm5700_vm9, %v14911_v63 }
 0x7cc   : > { %10411 = vmatprep.mubr.msk.bf16.mxu1 %vm5700_vm9, %v14937_v13 }
 0x7d3   : > { %10412 = vmatmul.mubr.msk.bf16.gmra.mrb[116].mxu1 %vm5700_vm9, %v14779_v8 }
 0x86e   : > { %v10385_v2 = vpop.f32.mrb[88].mxu1 }
 0x86f   : > { %v7847_v20 = vadd.f32 %v10385_v2, %v15222_v18  ;;  %v7679_v7 = vpop.f32.mrb[89].mxu1 }
 0x870   : > { %v7845_v10 = vadd.f32 %v15222_v18, %v7679_v7  ;;  %v10386_v34 = vpop.f32.mrb[90].mxu1 }
 0x871   : > { %v7879_v33 = vmax.f32 %v7847_v20, 0.0  ;;  %v7848_v62 = vadd.f32 %v10386_v34, %v15222_v18  ;;  %v7682_v44 = vpop.f32.mrb[91].mxu1 }
 0x872   : > { %v7877_v16 = vmax.f32 %v7845_v10, 0.0  ;;  %v7846_v61 = vadd.f32 %v15222_v18, %v7682_v44 }
 0x873   : > { %7911 = vst.msk [vmem:[%s15230_s14 + $0x10] sm:$0xff] %vm5700_vm9, %v7879_v33  ;;  %v7880_v15 = vmax.f32 %v7848_v62, 0.0 }
 0x874   : > { %7909 = vst.msk [vmem:[%s15230_s14] sm:$0xff] %vm5700_vm9, %v7877_v16  ;;  %v7878_v5 = vmax.f32 %v7846_v61, 0.0 }
 0x875   : > { %7912 = vst.msk [vmem:[%s15230_s14 + $0x18] sm:$0xff] %vm5700_vm9, %v7880_v15 }
 0x876   : > { %7910 = vst.msk [vmem:[%s15230_s14 + $0x8] sm:$0xff] %vm5700_vm9, %v7878_v5  ;;  %v10389_v55 = vpop.f32.mrb[92].mxu1 }
 0x877   : > { %v7851_v11 = vadd.f32 %v10389_v55, %v15222_v18  ;;  %v7695_v41 = vpop.f32.mrb[93].mxu1 }
 0x878   : > { %v7849_v39 = vadd.f32 %v15222_v18, %v7695_v41  ;;  %v10390_v8 = vpop.f32.mrb[94].mxu1 }
 0x879   : > { %v7883_v38 = vmax.f32 %v7851_v11, 0.0  ;;  %v7852_v60 = vadd.f32 %v10390_v8, %v15222_v18  ;;  %v7698_v48 = vpop.f32.mrb[95].mxu1 }
 0x87a   : > { %v7881_v56 = vmax.f32 %v7849_v39, 0.0  ;;  %v7850_v54 = vadd.f32 %v15222_v18, %v7698_v48 }
 0x87b   : > { %7915 = vst.msk [vmem:[%s15230_s14 + $0x30] sm:$0xff] %vm5700_vm9, %v7883_v38  ;;  %v7884_v24 = vmax.f32 %v7852_v60, 0.0 }
 0x87c   : > { %7913 = vst.msk [vmem:[%s15230_s14 + $0x20] sm:$0xff] %vm5700_vm9, %v7881_v56  ;;  %v7882_v59 = vmax.f32 %v7850_v54, 0.0 }
 0x87d   : > { %7916 = vst.msk [vmem:[%s15230_s14 + $0x38] sm:$0xff] %vm5700_vm9, %v7884_v24 }
 0x87e   : > { %7914 = vst.msk [vmem:[%s15230_s14 + $0x28] sm:$0xff] %vm5700_vm9, %v7882_v59  ;;  %v10393_v25 = vpop.f32.mrb[96].mxu1 }
 0x87f   : > { %v7855_v9 = vadd.f32 %v10393_v25, %v15222_v18  ;;  %v7711_v21 = vpop.f32.mrb[97].mxu1 }
 0x880   : > { %v7853_v52 = vadd.f32 %v15222_v18, %v7711_v21  ;;  %v10394_v6 = vpop.f32.mrb[98].mxu1 }
 0x881   : > { %v7887_v42 = vmax.f32 %v7855_v9, 0.0  ;;  %v7856_v19 = vadd.f32 %v10394_v6, %v15222_v18  ;;  %v7714_v36 = vpop.f32.mrb[99].mxu1 }
 0x882   : > { %v7885_v58 = vmax.f32 %v7853_v52, 0.0  ;;  %v7854_v35 = vadd.f32 %v15222_v18, %v7714_v36 }
 0x883   : > { %7919 = vst.msk [vmem:[%s15230_s14 + $0x50] sm:$0xff] %vm5700_vm9, %v7887_v42  ;;  %v7888_v63 = vmax.f32 %v7856_v19, 0.0 }
 0x884   : > { %7917 = vst.msk [vmem:[%s15230_s14 + $0x40] sm:$0xff] %vm5700_vm9, %v7885_v58  ;;  %v7886_v3 = vmax.f32 %v7854_v35, 0.0 }
 0x885   : > { %7920 = vst.msk [vmem:[%s15230_s14 + $0x58] sm:$0xff] %vm5700_vm9, %v7888_v63 }
 0x886   : > { %7918 = vst.msk [vmem:[%s15230_s14 + $0x48] sm:$0xff] %vm5700_vm9, %v7886_v3  ;;  %v10397_v46 = vpop.f32.mrb[100].mxu1 }
 0x887   : > { %v7859_v28 = vadd.f32 %v10397_v46, %v15222_v18  ;;  %v7727_v53 = vpop.f32.mrb[101].mxu1 }
 0x888   : > { %v7857_v37 = vadd.f32 %v15222_v18, %v7727_v53  ;;  %v10398_v30 = vpop.f32.mrb[102].mxu1 }
 0x889   : > { %v7891_v50 = vmax.f32 %v7859_v28, 0.0  ;;  %v7860_v13 = vadd.f32 %v10398_v30, %v15222_v18  ;;  %v7730_v17 = vpop.f32.mrb[103].mxu1 }
 0x88a   : > { %v7889_v4 = vmax.f32 %v7857_v37, 0.0  ;;  %v7858_v45 = vadd.f32 %v15222_v18, %v7730_v17 }
 0x88b   : > { %7923 = vst.msk [vmem:[%s15230_s14 + $0x70] sm:$0xff] %vm5700_vm9, %v7891_v50  ;;  %v7892_v27 = vmax.f32 %v7860_v13, 0.0 }
 0x88c   : > { %7921 = vst.msk [vmem:[%s15230_s14 + $0x60] sm:$0xff] %vm5700_vm9, %v7889_v4  ;;  %v7890_v1 = vmax.f32 %v7858_v45, 0.0 }
 0x88d   : > { %7924 = vst.msk [vmem:[%s15230_s14 + $0x78] sm:$0xff] %vm5700_vm9, %v7892_v27 }
 0x88e   : > { %7922 = vst.msk [vmem:[%s15230_s14 + $0x68] sm:$0xff] %vm5700_vm9, %v7890_v1  ;;  %v10401_v29 = vpop.f32.mrb[104].mxu1 }
 0x88f   : > { %v7863_v51 = vadd.f32 %v10401_v29, %v15222_v18  ;;  %v7743_v31 = vpop.f32.mrb[105].mxu1 }
 0x890   : > { %v7861_v26 = vadd.f32 %v15222_v18, %v7743_v31  ;;  %v10402_v57 = vpop.f32.mrb[106].mxu1 }
 0x891   : > { %v7895_v47 = vmax.f32 %v7863_v51, 0.0  ;;  %v7864_v0 = vadd.f32 %v10402_v57, %v15222_v18  ;;  %v7746_v40 = vpop.f32.mrb[107].mxu1 }
 0x892   : > { %v7893_v43 = vmax.f32 %v7861_v26, 0.0  ;;  %v7862_v12 = vadd.f32 %v15222_v18, %v7746_v40 }
 0x893   : > { %7927 = vst.msk [vmem:[%s15230_s14 + $0x90] sm:$0xff] %vm5700_vm9, %v7895_v47  ;;  %v7896_v23 = vmax.f32 %v7864_v0, 0.0 }
 0x894   : > { %7925 = vst.msk [vmem:[%s15230_s14 + $0x80] sm:$0xff] %vm5700_vm9, %v7893_v43  ;;  %v7894_v22 = vmax.f32 %v7862_v12, 0.0 }
 0x895   : > { %7928 = vst.msk [vmem:[%s15230_s14 + $0x98] sm:$0xff] %vm5700_vm9, %v7896_v23 }
 0x896   : > { %7926 = vst.msk [vmem:[%s15230_s14 + $0x88] sm:$0xff] %vm5700_vm9, %v7894_v22  ;;  %v10405_v14 = vpop.f32.mrb[108].mxu1 }
 0x897   : > { %v7867_v49 = vadd.f32 %v10405_v14, %v15222_v18  ;;  %v7759_v32 = vpop.f32.mrb[109].mxu1 }
 0x898   : > { %v7865_v2 = vadd.f32 %v15222_v18, %v7759_v32  ;;  %v10406_v20 = vpop.f32.mrb[110].mxu1 }
 0x899   : > { %v7899_v7 = vmax.f32 %v7867_v49, 0.0  ;;  %v7868_v10 = vadd.f32 %v10406_v20, %v15222_v18  ;;  %v7762_v34 = vpop.f32.mrb[111].mxu1 }
 0x89a   : > { %v7897_v33 = vmax.f32 %v7865_v2, 0.0  ;;  %v7866_v62 = vadd.f32 %v15222_v18, %v7762_v34 }
 0x89b   : > { %7931 = vst.msk [vmem:[%s15230_s14 + $0xb0] sm:$0xff] %vm5700_vm9, %v7899_v7  ;;  %v7900_v44 = vmax.f32 %v7868_v10, 0.0 }
 0x89c   : > { %7929 = vst.msk [vmem:[%s15230_s14 + $0xa0] sm:$0xff] %vm5700_vm9, %v7897_v33  ;;  %v7898_v16 = vmax.f32 %v7866_v62, 0.0 }
 0x89d   : > { %7932 = vst.msk [vmem:[%s15230_s14 + $0xb8] sm:$0xff] %vm5700_vm9, %v7900_v44 }
 0x89e   : > { %7930 = vst.msk [vmem:[%s15230_s14 + $0xa8] sm:$0xff] %vm5700_vm9, %v7898_v16  ;;  %v10409_v61 = vpop.f32.mrb[112].mxu1 }
 0x89f   : > { %v7871_v15 = vadd.f32 %v10409_v61, %v15222_v18  ;;  %v7775_v5 = vpop.f32.mrb[113].mxu1 }
 0x8a0   : > { %v7869_v55 = vadd.f32 %v15222_v18, %v7775_v5  ;;  %v10410_v11 = vpop.f32.mrb[114].mxu1 }
 0x8a1   : > { %v7903_v41 = vmax.f32 %v7871_v15, 0.0  ;;  %v7872_v39 = vadd.f32 %v10410_v11, %v15222_v18  ;;  %v7778_v8 = vpop.f32.mrb[115].mxu1 }
 0x8a2   : > { %v7901_v38 = vmax.f32 %v7869_v55, 0.0  ;;  %v7870_v60 = vadd.f32 %v15222_v18, %v7778_v8 }
 0x8a3   : > { %7935 = vst.msk [vmem:[%s15230_s14 + $0xd0] sm:$0xff] %vm5700_vm9, %v7903_v41  ;;  %v7904_v48 = vmax.f32 %v7872_v39, 0.0 }
 0x8a4   : > { %7933 = vst.msk [vmem:[%s15230_s14 + $0xc0] sm:$0xff] %vm5700_vm9, %v7901_v38  ;;  %v7902_v56 = vmax.f32 %v7870_v60, 0.0 }
 0x8a5   : > { %7936 = vst.msk [vmem:[%s15230_s14 + $0xd8] sm:$0xff] %vm5700_vm9, %v7904_v48 }
 0x8a6   : > { %7934 = vst.msk [vmem:[%s15230_s14 + $0xc8] sm:$0xff] %vm5700_vm9, %v7902_v56  ;;  %v10413_v54 = vpop.f32.mrb[116].mxu1 }
 0x8a7   : > { %v7875_v24 = vadd.f32 %v10413_v54, %v15222_v18  ;;  %v7791_v59 = vpop.f32.mrb[117].mxu1 }
 0x8a8   : > { %v7873_v25 = vadd.f32 %v15222_v18, %v7791_v59  ;;  %v10414_v9 = vpop.f32.mrb[118].mxu1 }
 0x8a9   : > { %v7907_v21 = vmax.f32 %v7875_v24, 0.0  ;;  %v7876_v52 = vadd.f32 %v10414_v9, %v15222_v18  ;;  %v7794_v6 = vpop.f32.mrb[119].mxu1 }
 0x8aa   : > { %v7905_v42 = vmax.f32 %v7873_v25, 0.0  ;;  %v7874_v19 = vadd.f32 %v15222_v18, %v7794_v6 }
 0x8ab   : > { %7939 = vst.msk [vmem:[%s15230_s14 + $0xf0] sm:$0xff] %vm5700_vm9, %v7907_v21  ;;  %v7908_v36 = vmax.f32 %v7876_v52, 0.0 }
 0x8ac   : > { %7937 = vst.msk [vmem:[%s15230_s14 + $0xe0] sm:$0xff] %vm5700_vm9, %v7905_v42  ;;  %v7906_v58 = vmax.f32 %v7874_v19, 0.0 }
 0x8ad   : > { %7940 = vst.msk [vmem:[%s15230_s14 + $0xf8] sm:$0xff] %vm5700_vm9, %v7908_v36 }
 0x8ae   : > { %7938 = vst.msk [vmem:[%s15230_s14 + $0xe8] sm:$0xff] %vm5700_vm9, %v7906_v58 }
 0x8af   : > { %10906 = shalt.err (!%p10903_p5)
}
 0x8b0   : > { %s10907_s9 = scalar_lea.hbm %s15323_s15, 4096  ;;  %s10911_s12 = scalar_lea.hbm %s15386_s5, 8192 }
 0x8b1   : > { %p10908_p6 = scmp.ne.s32.totalorder %s15323_s15, %s10907_s9  ;;  %p10912_p10 = scmp.lt.u32.totalorder %s15323_s15, %s15386_s5 }
 0x8b2   : > { %p10913_p11 = scmp.lt.u32.totalorder %s10911_s12, %s10907_s9  ;;  %p10915_p13 = scmp.lt.u32.totalorder %s10907_s9, %s15323_s15 }
 0x8b3   : > { %p10909_p7 = pnand %p10908_p6, %p11050_p4 }
 0x8b4   : > { %p10914_p12 = por %p10913_p11, %p10912_p10 }
 0x8b5   : > { %p10910_p9 = pneg %p10909_p7 }
 0x8b6   : > { %p10916_p0 = por %p10915_p13, %p10914_p12 }
 0x8b8   : > { %p10917_p1 = pnand %p10916_p0, %p10910_p9 }
 0x8ba   : > { %10920 = shalt.err (!%p10917_p1)
}
 0x8bb   : > { %s10978_s16 = smov 128   ;;  %s10979_s24 = smov 8  }
 0x8bc   : > { %10674 = dma.vmem_to_hbm [thread:$0]  (%p11050_p4), %s15325_s17, 4096, %s15323_s15, %s15335_s21, %s10978_s16, %s10978_s16, %s10979_s24  }
 0x8bd PF: > { %p10680_p2 = scmp.ge.s32.totalorder %s10971_s23, 2  ;;  %s7973_s25 = sand.u32 1, %s10951_s18  }
 0x8be   : > { %s7974_s27 = scalar_lea.sflag [#allocation3], %s7973_s25 }
 0x8bf   : > { %p10677_p3 = pnand %p10680_p2, %p11057_p8 }
 0x8c1   : > { %10946 = dma.done.wait (!%p10677_p3), %s7974_s27, 4096  }
 0x8c2   : > { %10948 = vsyncadd (!%p10677_p3), %s7974_s27, 4294963200  ;;  %s18_s23 = sadd.s32 1, %s10971_s23   ;;  %s16212_s18 = smov %s10955_s19 }
 0x8c3   : > { %p15_p5 = scmp.ge.s32.totalorder %s18_s23, 4   ;;  %s16213_s19 = smov %s10959_s20 }
 0x8c4   : > { %s16214_s20 = smov %s11063_s6  ;;  %s16215_s21 = smov %s10967_s22 }
 0x8c5   : > { %s16216_s22 = smov %s16218_s26  ;;  %17 = sbr.rel (!%p15_p5) target bundleno = 4 (0x4), region = 92 }
 0x8cc   :  { %7979 = vsyncpa [#allocation3], 1 }
 0x8cd   :  { %7981 = vsyncpa [#allocation3 + $0x1], 1 }

</bundles_post_ra>
